<compile_context>
chip_gen: v6e
topology: v6e:2x2x1
jax: 0.10.0
libtpu: 0.0.40
codegen_flags: <defaults>
</compile_context>

<pallas_src>
import functools

import jax
import jax.numpy as jnp
from jax.experimental import pallas as pl
from jax.experimental.pallas import tpu as pltpu

FEAT = 1280          # EfficientNet-B0 feature dim
HID = 512            # LSTM hidden size
NGATE = 4 * HID      # 2048
KPAD = 32            # im2col K padded 27 -> 32 (lane/sublane friendly)
NC_PAD = 128         # class dim padded to a full lane for dense stores


# ---------------------------------------------------------------------------
# Pallas kernels
# ---------------------------------------------------------------------------

def backbone_gates_kernel(p_ref, ws_ref, scale_ref, bias_ref,
                          wp_ref, bp_ref, wih_ref, bl_ref, g_ref):
    """Fused per-frame backbone + hoisted LSTM input projection.

    p_ref   : (TN, S, KPAD) bf16 im2col patches for TN frames
    ws_ref  : (KPAD, 32)    bf16 stem conv weight (zero-padded rows)
    wp_ref  : (32, 1280)    bf16 projection to the EfficientNet feature dim
    wih_ref : (1280, 2048)  bf16 LSTM input weight
    g_ref   : (TN, 2048)    f32  gate pre-activations X@W_ih + (b_ih+b_hh)
    """
    TN, S, K = p_ref.shape
    p2 = p_ref[...].reshape(TN * S, K)                               # bf16
    y = jnp.dot(p2, ws_ref[...], preferred_element_type=jnp.float32)  # (TN*S, 32)
    y = y * scale_ref[...] + bias_ref[...]                           # folded BN
    y = y * jax.nn.sigmoid(y)                                        # SiLU (f32)
    pooled = jnp.mean(y.reshape(TN, S, -1), axis=1)                  # GAP -> (TN, 32)
    z = jnp.dot(pooled.astype(jnp.bfloat16), wp_ref[...],
                preferred_element_type=jnp.float32) + bp_ref[...]    # (TN, 1280)
    z = z * jax.nn.sigmoid(z)                                        # SiLU
    g = jnp.dot(z.astype(jnp.bfloat16), wih_ref[...],
                preferred_element_type=jnp.float32) + bl_ref[...]    # (TN, 2048)
    g_ref[...] = g


def lstm_fc_kernel(gx_ref, whh_ref, wfc_ref, bfc_ref, o_ref, h_scr, c_scr):
    """One LSTM step per grid iteration (h @ W_hh only; X@W_ih precomputed).

    Final FC is fused into the last-timestep branch, emitting lane-padded logits.
    PyTorch gate order i, f, g, o; only the last hidden state feeds the FC,
    matching `x, _ = lstm(x); x = x[:, -1, :]; x = fc(x)`.
    """
    t = pl.program_id(0)

    @pl.when(t == 0)
    def _():
        h_scr[...] = jnp.zeros_like(h_scr)
        c_scr[...] = jnp.zeros_like(c_scr)

    gates = gx_ref[0] + jnp.dot(h_scr[...].astype(jnp.bfloat16), whh_ref[...],
                                preferred_element_type=jnp.float32)  # (B, 4H)

    H = h_scr.shape[-1]
    i_g = jax.nn.sigmoid(gates[:, 0 * H:1 * H])
    f_g = jax.nn.sigmoid(gates[:, 1 * H:2 * H])
    g_g = jnp.tanh(gates[:, 2 * H:3 * H])
    o_g = jax.nn.sigmoid(gates[:, 3 * H:4 * H])

    c_new = f_g * c_scr[...] + i_g * g_g
    h_new = o_g * jnp.tanh(c_new)
    c_scr[...] = c_new
    h_scr[...] = h_new

    @pl.when(t == pl.num_programs(0) - 1)
    def _():
        o_ref[...] = (jnp.dot(h_new.astype(jnp.bfloat16), wfc_ref[...],
                              preferred_element_type=jnp.float32) + bfc_ref[...])


# ---------------------------------------------------------------------------
# Glue (plain JAX): im2col, parameters, wrapper
# ---------------------------------------------------------------------------

def im2col(x_nhwc, kh, kw, stride, pad, k_pad):
    N, H, W, C = x_nhwc.shape
    xp = jnp.pad(x_nhwc, ((0, 0), (pad, pad), (pad, pad), (0, 0)))
    OH = (H + 2 * pad - kh) // stride + 1
    OW = (W + 2 * pad - kw) // stride + 1
    cols = []
    for i in range(kh):
        for j in range(kw):
            cols.append(xp[:, i:i + stride * OH:stride,
                            j:j + stride * OW:stride, :])
    patches = jnp.stack(cols, axis=-2)                     # (N, OH, OW, kh*kw, C)
    patches = patches.reshape(N, OH * OW, kh * kw * C)
    if k_pad > kh * kw * C:
        patches = jnp.pad(patches, ((0, 0), (0, 0), (0, k_pad - kh * kw * C)))
    return patches, OH, OW


def make_params(key, num_classes=2):
    ks = jax.random.split(key, 9)
    s = 0.02
    p = {}
    # stem conv 3x3, 3->32, stride 2, pad 1; weight in im2col layout, rows
    # zero-padded 27->KPAD; BN folded into per-channel scale/bias.
    w_stem = jax.random.normal(ks[0], (27, 32), jnp.float32) * s
    p["w_stem"] = jnp.pad(w_stem, ((0, KPAD - 27), (0, 0))).astype(jnp.bfloat16)
    p["bn_scale"] = jnp.ones((1, 32), jnp.float32)
    p["bn_bias"] = jax.random.normal(ks[1], (1, 32), jnp.float32) * s
    # projection to the 1280-d EfficientNet feature dim
    p["w_proj"] = (jax.random.normal(ks[2], (32, FEAT), jnp.float32) * s).astype(jnp.bfloat16)
    p["b_proj"] = jax.random.normal(ks[3], (1, FEAT), jnp.float32) * s
    # LSTM(1280 -> 512): weights stored transposed vs PyTorch; bias = b_ih + b_hh.
    p["w_ih"] = (jax.random.normal(ks[4], (FEAT, NGATE), jnp.float32) * s).astype(jnp.bfloat16)
    p["w_hh"] = (jax.random.normal(ks[5], (HID, NGATE), jnp.float32) * s).astype(jnp.bfloat16)
    p["b_lstm"] = jax.random.normal(ks[6], (1, NGATE), jnp.float32) * s
    # fc: 512 -> num_classes, padded to 128 output lanes (zeros beyond num_classes)
    w_fc = jax.random.normal(ks[7], (HID, num_classes), jnp.float32) * s
    p["w_fc"] = jnp.pad(w_fc, ((0, 0), (0, NC_PAD - num_classes))).astype(jnp.bfloat16)
    b_fc = jax.random.normal(ks[8], (1, num_classes), jnp.float32) * s
    p["b_fc"] = jnp.pad(b_fc, ((0, 0), (0, NC_PAD - num_classes)))
    return p


def video_classifier_forward(x, params, num_classes=2):
    """x: (B, T, C, H, W) float32 — same convention as the PyTorch module."""
    B, T, C, H, W = x.shape
    N = B * T

    # ---- per-frame fused backbone + hoisted X @ W_ih ------------------------
    frames = x.reshape(N, C, H, W).transpose(0, 2, 3, 1)              # NCHW -> NHWC
    patches, OH, OW = im2col(frames, 3, 3, 2, 1, KPAD)                # (N, S, KPAD)
    S = OH * OW
    patches = patches.astype(jnp.bfloat16)

    TN = 8 if N >= 8 else N                     # frame-tile; multiple of 8 sublanes
    n_tiles = pl.cdiv(N, TN)
    N_pad = TN * n_tiles
    if N_pad > N:
        patches = jnp.pad(patches, ((0, N_pad - N), (0, 0), (0, 0)))

    gates_x = pl.pallas_call(
        backbone_gates_kernel,
        out_shape=jax.ShapeDtypeStruct((N_pad, NGATE), jnp.float32),
        grid=(n_tiles,),
        in_specs=[
            pl.BlockSpec((TN, S, KPAD), lambda i: (i, 0, 0)),
            pl.BlockSpec((KPAD, 32), lambda i: (0, 0)),
            pl.BlockSpec((1, 32), lambda i: (0, 0)),
            pl.BlockSpec((1, 32), lambda i: (0, 0)),
            pl.BlockSpec((32, FEAT), lambda i: (0, 0)),
            pl.BlockSpec((1, FEAT), lambda i: (0, 0)),
            pl.BlockSpec((FEAT, NGATE), lambda i: (0, 0)),
            pl.BlockSpec((1, NGATE), lambda i: (0, 0)),
        ],
        out_specs=pl.BlockSpec((TN, NGATE), lambda i: (i, 0)),
        compiler_params=pltpu.CompilerParams(
            dimension_semantics=("parallel",),          # sharded across TCs on v7x
            vmem_limit_bytes=32 * 1024 * 1024,          # fits v5e/v6e/v7x
        ),
    )(patches, params["w_stem"], params["bn_scale"], params["bn_bias"],
      params["w_proj"], params["b_proj"], params["w_ih"], params["b_lstm"])

    # time-major gate pre-activations for the recurrence: (T, B, 4H)
    gates_seq = gates_x[:N].reshape(B, T, NGATE).transpose(1, 0, 2)

    # ---- LSTM recurrence + fused FC -----------------------------------------
    logits_pad = pl.pallas_call(
        lstm_fc_kernel,
        out_shape=jax.ShapeDtypeStruct((B, NC_PAD), jnp.float32),
        grid=(T,),
        in_specs=[
            pl.BlockSpec((1, B, NGATE), lambda t: (t, 0, 0)),
            pl.BlockSpec((HID, NGATE), lambda t: (0, 0)),
            pl.BlockSpec((HID, NC_PAD), lambda t: (0, 0)),
            pl.BlockSpec((1, NC_PAD), lambda t: (0, 0)),
        ],
        out_specs=pl.BlockSpec((B, NC_PAD), lambda t: (0, 0)),
        scratch_shapes=[
            pltpu.VMEM((B, HID), jnp.float32),   # h
            pltpu.VMEM((B, HID), jnp.float32),   # c
        ],
        compiler_params=pltpu.CompilerParams(
            dimension_semantics=("arbitrary",),
            vmem_limit_bytes=32 * 1024 * 1024,
        ),
    )(gates_seq, params["w_hh"], params["w_fc"], params["b_fc"])

    return logits_pad[:, :num_classes]


if __name__ == "__main__":
    key = jax.random.PRNGKey(0)
    k_x, k_p = jax.random.split(key)

    B, T, C, H, W = 2, 8, 3, 16, 16
    num_classes = 2
    x = jax.random.normal(k_x, (B, T, C, H, W), jnp.float32)
    params = make_params(k_p, num_classes=num_classes)

    fwd = jax.jit(functools.partial(video_classifier_forward,
                                    num_classes=num_classes))
    logits = fwd(x, params)
    jax.block_until_ready(logits)
    assert logits.shape == (B, num_classes) and logits.dtype == jnp.float32
    print("KERNEL_OK")
</pallas_src>

<mosaic_0001>
module attributes {stable_mosaic.version = 11 : i64} {
  func.func @backbone_gates_kernel(%arg0: i32, %arg1: memref<8x64x32xbf16, #tpu.memory_space<vmem>>, %arg2: memref<32x32xbf16, #tpu.memory_space<vmem>>, %arg3: memref<1x32xf32, #tpu.memory_space<vmem>>, %arg4: memref<1x32xf32, #tpu.memory_space<vmem>>, %arg5: memref<32x1280xbf16, #tpu.memory_space<vmem>>, %arg6: memref<1x1280xf32, #tpu.memory_space<vmem>>, %arg7: memref<1280x2048xbf16, #tpu.memory_space<vmem>>, %arg8: memref<1x2048xf32, #tpu.memory_space<vmem>>, %arg9: memref<8x2048xf32, #tpu.memory_space<vmem>>) attributes {dimension_semantics = [#tpu.dimension_semantics<parallel>], iteration_bounds = array<i64: 2>, scalar_prefetch = 0 : i64, scratch_operands = 0 : i64, tpu.core_type = #tpu.core_type<tc>, window_params = [{transform_indices = @transform_0, window_bounds = array<i64: 8, 64, 32>}, {pipeline_mode = #tpu.pipeline_mode<synchronous>, transform_indices = @transform_1, window_bounds = array<i64: 32, 32>}, {pipeline_mode = #tpu.pipeline_mode<synchronous>, transform_indices = @transform_2, window_bounds = array<i64: 1, 32>}, {pipeline_mode = #tpu.pipeline_mode<synchronous>, transform_indices = @transform_3, window_bounds = array<i64: 1, 32>}, {pipeline_mode = #tpu.pipeline_mode<synchronous>, transform_indices = @transform_4, window_bounds = array<i64: 32, 1280>}, {pipeline_mode = #tpu.pipeline_mode<synchronous>, transform_indices = @transform_5, window_bounds = array<i64: 1, 1280>}, {pipeline_mode = #tpu.pipeline_mode<synchronous>, transform_indices = @transform_6, window_bounds = array<i64: 1280, 2048>}, {pipeline_mode = #tpu.pipeline_mode<synchronous>, transform_indices = @transform_7, window_bounds = array<i64: 1, 2048>}, {transform_indices = @transform_8, window_bounds = array<i64: 8, 2048>}]} {
    %c0 = arith.constant 0 : index
    %c0_0 = arith.constant 0 : index
    %c0_1 = arith.constant 0 : index
    %0 = vector.load %arg1[%c0, %c0_0, %c0_1] : memref<8x64x32xbf16, #tpu.memory_space<vmem>>, vector<8x64x32xbf16>
    %1 = vector.shape_cast %0 : vector<8x64x32xbf16> to vector<512x32xbf16>
    %c0_2 = arith.constant 0 : index
    %c0_3 = arith.constant 0 : index
    %2 = vector.load %arg2[%c0_2, %c0_3] : memref<32x32xbf16, #tpu.memory_space<vmem>>, vector<32x32xbf16>
    %cst = arith.constant dense<0.000000e+00> : vector<512x32xf32>
    %3 = tpu.matmul %1, %2, %cst {dimension_numbers = #tpu.dot_dimension_numbers<[1], [0], [0], [1], [0, 0, 1, 1], [], []>} : vector<512x32xbf16>, vector<32x32xbf16>, vector<512x32xf32> -> vector<512x32xf32>
    %c0_4 = arith.constant 0 : index
    %c0_5 = arith.constant 0 : index
    %4 = vector.load %arg3[%c0_4, %c0_5] : memref<1x32xf32, #tpu.memory_space<vmem>>, vector<1x32xf32>
    %5 = vector.broadcast %4 : vector<1x32xf32> to vector<512x32xf32>
    %6 = arith.mulf %3, %5 : vector<512x32xf32>
    %c0_6 = arith.constant 0 : index
    %c0_7 = arith.constant 0 : index
    %7 = vector.load %arg4[%c0_6, %c0_7] : memref<1x32xf32, #tpu.memory_space<vmem>>, vector<1x32xf32>
    %8 = vector.broadcast %7 : vector<1x32xf32> to vector<512x32xf32>
    %9 = arith.addf %6, %8 : vector<512x32xf32>
    %10 = arith.negf %9 : vector<512x32xf32>
    %11 = math.exp %10 : vector<512x32xf32>
    %cst_8 = arith.constant 1.000000e+00 : f32
    %12 = vector.broadcast %cst_8 : f32 to vector<512x32xf32>
    %13 = arith.addf %12, %11 : vector<512x32xf32>
    %14 = arith.divf %12, %13 : vector<512x32xf32>
    %15 = arith.mulf %9, %14 : vector<512x32xf32>
    %16 = vector.shape_cast %15 : vector<512x32xf32> to vector<8x64x32xf32>
    %cst_9 = arith.constant dense<0.000000e+00> : vector<8x32xf32>
    %17 = vector.multi_reduction <add>, %16, %cst_9 [1] : vector<8x64x32xf32> to vector<8x32xf32>
    %cst_10 = arith.constant 6.400000e+01 : f32
    %18 = vector.broadcast %cst_10 : f32 to vector<8x32xf32>
    %19 = arith.divf %17, %18 : vector<8x32xf32>
    %20 = arith.truncf %19 : vector<8x32xf32> to vector<8x32xbf16>
    %c0_11 = arith.constant 0 : index
    %c0_12 = arith.constant 0 : index
    %21 = vector.load %arg5[%c0_11, %c0_12] : memref<32x1280xbf16, #tpu.memory_space<vmem>>, vector<32x1280xbf16>
    %cst_13 = arith.constant dense<0.000000e+00> : vector<8x1280xf32>
    %22 = tpu.matmul %20, %21, %cst_13 {dimension_numbers = #tpu.dot_dimension_numbers<[1], [0], [0], [1], [0, 0, 1, 1], [], []>} : vector<8x32xbf16>, vector<32x1280xbf16>, vector<8x1280xf32> -> vector<8x1280xf32>
    %c0_14 = arith.constant 0 : index
    %c0_15 = arith.constant 0 : index
    %23 = vector.load %arg6[%c0_14, %c0_15] : memref<1x1280xf32, #tpu.memory_space<vmem>>, vector<1x1280xf32>
    %24 = vector.broadcast %23 : vector<1x1280xf32> to vector<8x1280xf32>
    %25 = arith.addf %22, %24 : vector<8x1280xf32>
    %26 = arith.negf %25 : vector<8x1280xf32>
    %27 = math.exp %26 : vector<8x1280xf32>
    %cst_16 = arith.constant 1.000000e+00 : f32
    %28 = vector.broadcast %cst_16 : f32 to vector<8x1280xf32>
    %29 = arith.addf %28, %27 : vector<8x1280xf32>
    %30 = arith.divf %28, %29 : vector<8x1280xf32>
    %31 = arith.mulf %25, %30 : vector<8x1280xf32>
    %32 = arith.truncf %31 : vector<8x1280xf32> to vector<8x1280xbf16>
    %c0_17 = arith.constant 0 : index
    %c0_18 = arith.constant 0 : index
    %33 = vector.load %arg7[%c0_17, %c0_18] : memref<1280x2048xbf16, #tpu.memory_space<vmem>>, vector<1280x2048xbf16>
    %cst_19 = arith.constant dense<0.000000e+00> : vector<8x2048xf32>
    %34 = tpu.matmul %32, %33, %cst_19 {dimension_numbers = #tpu.dot_dimension_numbers<[1], [0], [0], [1], [0, 0, 1, 1], [], []>} : vector<8x1280xbf16>, vector<1280x2048xbf16>, vector<8x2048xf32> -> vector<8x2048xf32>
    %c0_20 = arith.constant 0 : index
    %c0_21 = arith.constant 0 : index
    %35 = vector.load %arg8[%c0_20, %c0_21] : memref<1x2048xf32, #tpu.memory_space<vmem>>, vector<1x2048xf32>
    %36 = vector.broadcast %35 : vector<1x2048xf32> to vector<8x2048xf32>
    %37 = arith.addf %34, %36 : vector<8x2048xf32>
    %c0_22 = arith.constant 0 : index
    %c0_23 = arith.constant 0 : index
    %38 = vector.load %arg9[%c0_22, %c0_23] : memref<8x2048xf32, #tpu.memory_space<vmem>>, vector<8x2048xf32>
    tpu.vector_store %arg9[%c0_22, %c0_23], %37 {strides = array<i32>} : memref<8x2048xf32, #tpu.memory_space<vmem>>, vector<8x2048xf32>,
    return
  }
  func.func @transform_0(%arg0: i32) -> (i32, i32, i32) {
    %c0_i32 = arith.constant 0 : i32
    %c0_i32_0 = arith.constant 0 : i32
    %c0_i32_1 = arith.constant 0 : i32
    return %arg0, %c0_i32, %c0_i32_0 : i32, i32, i32
  }
  func.func @transform_1(%arg0: i32) -> (i32, i32) {
    %c0_i32 = arith.constant 0 : i32
    %c0_i32_0 = arith.constant 0 : i32
    %c0_i32_1 = arith.constant 0 : i32
    return %c0_i32, %c0_i32_0 : i32, i32
  }
  func.func @transform_2(%arg0: i32) -> (i32, i32) {
    %c0_i32 = arith.constant 0 : i32
    %c0_i32_0 = arith.constant 0 : i32
    %c0_i32_1 = arith.constant 0 : i32
    return %c0_i32, %c0_i32_0 : i32, i32
  }
  func.func @transform_3(%arg0: i32) -> (i32, i32) {
    %c0_i32 = arith.constant 0 : i32
    %c0_i32_0 = arith.constant 0 : i32
    %c0_i32_1 = arith.constant 0 : i32
    return %c0_i32, %c0_i32_0 : i32, i32
  }
  func.func @transform_4(%arg0: i32) -> (i32, i32) {
    %c0_i32 = arith.constant 0 : i32
    %c0_i32_0 = arith.constant 0 : i32
    %c0_i32_1 = arith.constant 0 : i32
    return %c0_i32, %c0_i32_0 : i32, i32
  }
  func.func @transform_5(%arg0: i32) -> (i32, i32) {
    %c0_i32 = arith.constant 0 : i32
    %c0_i32_0 = arith.constant 0 : i32
    %c0_i32_1 = arith.constant 0 : i32
    return %c0_i32, %c0_i32_0 : i32, i32
  }
  func.func @transform_6(%arg0: i32) -> (i32, i32) {
    %c0_i32 = arith.constant 0 : i32
    %c0_i32_0 = arith.constant 0 : i32
    %c0_i32_1 = arith.constant 0 : i32
    return %c0_i32, %c0_i32_0 : i32, i32
  }
  func.func @transform_7(%arg0: i32) -> (i32, i32) {
    %c0_i32 = arith.constant 0 : i32
    %c0_i32_0 = arith.constant 0 : i32
    %c0_i32_1 = arith.constant 0 : i32
    return %c0_i32, %c0_i32_0 : i32, i32
  }
  func.func @transform_8(%arg0: i32) -> (i32, i32) {
    %c0_i32 = arith.constant 0 : i32
    %c0_i32_0 = arith.constant 0 : i32
    return %arg0, %c0_i32 : i32, i32
  }
}

module attributes {stable_mosaic.version = 11 : i64} {
  func.func @lstm_fc_kernel(%arg0: i32, %arg1: memref<1x2x2048xf32, #tpu.memory_space<vmem>>, %arg2: memref<512x2048xbf16, #tpu.memory_space<vmem>>, %arg3: memref<512x128xbf16, #tpu.memory_space<vmem>>, %arg4: memref<1x128xf32, #tpu.memory_space<vmem>>, %arg5: memref<2x128xf32, #tpu.memory_space<vmem>>, %arg6: memref<2x512xf32, #tpu.memory_space<vmem>>, %arg7: memref<2x512xf32, #tpu.memory_space<vmem>>) attributes {dimension_semantics = [#tpu.dimension_semantics<arbitrary>], iteration_bounds = array<i64: 8>, scalar_prefetch = 0 : i64, scratch_operands = 2 : i64, tpu.core_type = #tpu.core_type<tc>, window_params = [{transform_indices = @transform_0, window_bounds = array<i64: 1, 2, 2048>}, {pipeline_mode = #tpu.pipeline_mode<synchronous>, transform_indices = @transform_1, window_bounds = array<i64: 512, 2048>}, {pipeline_mode = #tpu.pipeline_mode<synchronous>, transform_indices = @transform_2, window_bounds = array<i64: 512, 128>}, {pipeline_mode = #tpu.pipeline_mode<synchronous>, transform_indices = @transform_3, window_bounds = array<i64: 1, 128>}, {pipeline_mode = #tpu.pipeline_mode<synchronous>, transform_indices = @transform_4, window_bounds = array<i64: 2, 128>}]} {
    %c0_i32 = arith.constant 0 : i32
    %0 = arith.cmpi eq, %arg0, %c0_i32 : i32
    %1 = arith.extui %0 : i1 to i32
    %c0_i32_0 = arith.constant 0 : i32
    %2 = arith.cmpi ne, %1, %c0_i32_0 : i32
    scf.if %2 {
      %cst_17 = arith.constant 0.000000e+00 : f32
      %41 = vector.broadcast %cst_17 : f32 to vector<2x512xf32>
      %c0_18 = arith.constant 0 : index
      %c0_19 = arith.constant 0 : index
      %42 = vector.load %arg6[%c0_18, %c0_19] : memref<2x512xf32, #tpu.memory_space<vmem>>, vector<2x512xf32>
      tpu.vector_store %arg6[%c0_18, %c0_19], %41 {strides = array<i32>} : memref<2x512xf32, #tpu.memory_space<vmem>>, vector<2x512xf32>,
      %cst_20 = arith.constant 0.000000e+00 : f32
      %43 = vector.broadcast %cst_20 : f32 to vector<2x512xf32>
      %c0_21 = arith.constant 0 : index
      %c0_22 = arith.constant 0 : index
      %44 = vector.load %arg7[%c0_21, %c0_22] : memref<2x512xf32, #tpu.memory_space<vmem>>, vector<2x512xf32>
      tpu.vector_store %arg7[%c0_21, %c0_22], %43 {strides = array<i32>} : memref<2x512xf32, #tpu.memory_space<vmem>>, vector<2x512xf32>,
    } else {
    }
    %c0 = arith.constant 0 : index
    %c0_1 = arith.constant 0 : index
    %c0_2 = arith.constant 0 : index
    %3 = vector.load %arg1[%c0, %c0_1, %c0_2] : memref<1x2x2048xf32, #tpu.memory_space<vmem>>, vector<1x2x2048xf32>
    %4 = vector.shape_cast %3 : vector<1x2x2048xf32> to vector<2x2048xf32>
    %c0_3 = arith.constant 0 : index
    %c0_4 = arith.constant 0 : index
    %5 = vector.load %arg6[%c0_3, %c0_4] : memref<2x512xf32, #tpu.memory_space<vmem>>, vector<2x512xf32>
    %6 = arith.truncf %5 : vector<2x512xf32> to vector<2x512xbf16>
    %c0_5 = arith.constant 0 : index
    %c0_6 = arith.constant 0 : index
    %7 = vector.load %arg2[%c0_5, %c0_6] : memref<512x2048xbf16, #tpu.memory_space<vmem>>, vector<512x2048xbf16>
    %cst = arith.constant dense<0.000000e+00> : vector<2x2048xf32>
    %8 = tpu.matmul %6, %7, %cst {dimension_numbers = #tpu.dot_dimension_numbers<[1], [0], [0], [1], [0, 0, 1, 1], [], []>} : vector<2x512xbf16>, vector<512x2048xbf16>, vector<2x2048xf32> -> vector<2x2048xf32>
    %9 = arith.addf %4, %8 : vector<2x2048xf32>
    %10 = vector.extract_strided_slice %9 {offsets = [0, 0], sizes = [2, 512], strides = [1, 1]} : vector<2x2048xf32> to vector<2x512xf32>
    %11 = arith.negf %10 : vector<2x512xf32>
    %12 = math.exp %11 : vector<2x512xf32>
    %cst_7 = arith.constant 1.000000e+00 : f32
    %13 = vector.broadcast %cst_7 : f32 to vector<2x512xf32>
    %14 = arith.addf %13, %12 : vector<2x512xf32>
    %15 = arith.divf %13, %14 : vector<2x512xf32>
    %16 = vector.extract_strided_slice %9 {offsets = [0, 512], sizes = [2, 512], strides = [1, 1]} : vector<2x2048xf32> to vector<2x512xf32>
    %17 = arith.negf %16 : vector<2x512xf32>
    %18 = math.exp %17 : vector<2x512xf32>
    %cst_8 = arith.constant 1.000000e+00 : f32
    %19 = vector.broadcast %cst_8 : f32 to vector<2x512xf32>
    %20 = arith.addf %19, %18 : vector<2x512xf32>
    %21 = arith.divf %19, %20 : vector<2x512xf32>
    %22 = vector.extract_strided_slice %9 {offsets = [0, 1024], sizes = [2, 512], strides = [1, 1]} : vector<2x2048xf32> to vector<2x512xf32>
    %23 = math.tanh %22 : vector<2x512xf32>
    %24 = vector.extract_strided_slice %9 {offsets = [0, 1536], sizes = [2, 512], strides = [1, 1]} : vector<2x2048xf32> to vector<2x512xf32>
    %25 = arith.negf %24 : vector<2x512xf32>
    %26 = math.exp %25 : vector<2x512xf32>
    %cst_9 = arith.constant 1.000000e+00 : f32
    %27 = vector.broadcast %cst_9 : f32 to vector<2x512xf32>
    %28 = arith.addf %27, %26 : vector<2x512xf32>
    %29 = arith.divf %27, %28 : vector<2x512xf32>
    %c0_10 = arith.constant 0 : index
    %c0_11 = arith.constant 0 : index
    %30 = vector.load %arg7[%c0_10, %c0_11] : memref<2x512xf32, #tpu.memory_space<vmem>>, vector<2x512xf32>
    %31 = arith.mulf %21, %30 : vector<2x512xf32>
    %32 = arith.mulf %15, %23 : vector<2x512xf32>
    %33 = arith.addf %31, %32 : vector<2x512xf32>
    %34 = math.tanh %33 : vector<2x512xf32>
    %35 = arith.mulf %29, %34 : vector<2x512xf32>
    %c0_12 = arith.constant 0 : index
    %c0_13 = arith.constant 0 : index
    %36 = vector.load %arg7[%c0_12, %c0_13] : memref<2x512xf32, #tpu.memory_space<vmem>>, vector<2x512xf32>
    tpu.vector_store %arg7[%c0_12, %c0_13], %33 {strides = array<i32>} : memref<2x512xf32, #tpu.memory_space<vmem>>, vector<2x512xf32>,
    %c0_14 = arith.constant 0 : index
    %c0_15 = arith.constant 0 : index
    %37 = vector.load %arg6[%c0_14, %c0_15] : memref<2x512xf32, #tpu.memory_space<vmem>>, vector<2x512xf32>
    tpu.vector_store %arg6[%c0_14, %c0_15], %35 {strides = array<i32>} : memref<2x512xf32, #tpu.memory_space<vmem>>, vector<2x512xf32>,
    %c7_i32 = arith.constant 7 : i32
    %38 = arith.cmpi eq, %arg0, %c7_i32 : i32
    %39 = arith.extui %38 : i1 to i32
    %c0_i32_16 = arith.constant 0 : i32
    %40 = arith.cmpi ne, %39, %c0_i32_16 : i32
    scf.if %40 {
      %41 = arith.truncf %35 : vector<2x512xf32> to vector<2x512xbf16>
      %c0_17 = arith.constant 0 : index
      %c0_18 = arith.constant 0 : index
      %42 = vector.load %arg3[%c0_17, %c0_18] : memref<512x128xbf16, #tpu.memory_space<vmem>>, vector<512x128xbf16>
      %cst_19 = arith.constant dense<0.000000e+00> : vector<2x128xf32>
      %43 = tpu.matmul %41, %42, %cst_19 {dimension_numbers = #tpu.dot_dimension_numbers<[1], [0], [0], [1], [0, 0, 1, 1], [], []>} : vector<2x512xbf16>, vector<512x128xbf16>, vector<2x128xf32> -> vector<2x128xf32>
      %c0_20 = arith.constant 0 : index
      %c0_21 = arith.constant 0 : index
      %44 = vector.load %arg4[%c0_20, %c0_21] : memref<1x128xf32, #tpu.memory_space<vmem>>, vector<1x128xf32>
      %45 = vector.broadcast %44 : vector<1x128xf32> to vector<2x128xf32>
      %46 = arith.addf %43, %45 : vector<2x128xf32>
      %c0_22 = arith.constant 0 : index
      %c0_23 = arith.constant 0 : index
      %47 = vector.load %arg5[%c0_22, %c0_23] : memref<2x128xf32, #tpu.memory_space<vmem>>, vector<2x128xf32>
      tpu.vector_store %arg5[%c0_22, %c0_23], %46 {strides = array<i32>} : memref<2x128xf32, #tpu.memory_space<vmem>>, vector<2x128xf32>,
    } else {
    }
    return
  }
  func.func @transform_0(%arg0: i32) -> (i32, i32, i32) {
    %c0_i32 = arith.constant 0 : i32
    %c0_i32_0 = arith.constant 0 : i32
    %c0_i32_1 = arith.constant 0 : i32
    return %arg0, %c0_i32, %c0_i32_0 : i32, i32, i32
  }
  func.func @transform_1(%arg0: i32) -> (i32, i32) {
    %c0_i32 = arith.constant 0 : i32
    %c0_i32_0 = arith.constant 0 : i32
    %c0_i32_1 = arith.constant 0 : i32
    return %c0_i32, %c0_i32_0 : i32, i32
  }
  func.func @transform_2(%arg0: i32) -> (i32, i32) {
    %c0_i32 = arith.constant 0 : i32
    %c0_i32_0 = arith.constant 0 : i32
    %c0_i32_1 = arith.constant 0 : i32
    return %c0_i32, %c0_i32_0 : i32, i32
  }
  func.func @transform_3(%arg0: i32) -> (i32, i32) {
    %c0_i32 = arith.constant 0 : i32
    %c0_i32_0 = arith.constant 0 : i32
    %c0_i32_1 = arith.constant 0 : i32
    return %c0_i32, %c0_i32_0 : i32, i32
  }
  func.func @transform_4(%arg0: i32) -> (i32, i32) {
    %c0_i32 = arith.constant 0 : i32
    %c0_i32_0 = arith.constant 0 : i32
    %c0_i32_1 = arith.constant 0 : i32
    return %c0_i32, %c0_i32_0 : i32, i32
  }
}

</mosaic_0001>

<bundles_post_ra>
// kernel: video_classifier_forward.3
= control target key start
LH: loop header
LB: loop body
LE: loop exit
PB: predicated region body
PF: predicated region fallthrough
CT: control target
= control target key end

     0   :  { %9 = vsyncpa [#allocation5], 0  ;;  %s5224_s15 = smov 0   ;;  %s7011_s0 = inlined_call_operand.vmem [shape: f32[8,2,2048], index: 0, kind: input, shape index: {}]   ;;  %s7012_s1 = inlined_call_operand.vmem [shape: bf16[512,2048], index: 1, kind: input, shape index: {}]   ;;  %s7013_s2 = inlined_call_operand.vmem [shape: bf16[512,128], index: 2, kind: input, shape index: {}]   ;;  %s7014_s3 = inlined_call_operand.vmem [shape: f32[1,128], index: 3, kind: input, shape index: {}]   ;;  %s7015_s4 = inlined_call_operand.hbm [shape: f32[2,128], index: 4, kind: output, shape index: {}]  }
   0x1 LB: > { %s5230_s16 = sadd.s32 4294967295, %s5194_s15   ;;  %p4492_p0 = scmp.ge.s32.totalorder %s5194_s15, 1  ;;  %s5194_s15 = sphi %s5224_s15, %s15_s15  }
   0x2   : > { %p158_p1 = scmp.lt.s32.totalorder %s5194_s15, 9 }
   0x4   : > { %p159_p2 = pnand %p4492_p0, %p158_p1 }
   0x5   : > { %p179_p3 = scmp.lt.s32.totalorder (!%p159_p2), %s5230_s16, 7  ;;  %p4495_p4 = scmp.ne.s32.totalorder (!%p159_p2), %s5230_s16, 0 }
   0x6   : > { %162 = sbr.rel (%p159_p2) target bundleno = 1029 (0x405), region = 36 }
   0xb   : > { %s180_s17 = scalar_select %p179_p3, %s5230_s16, 7 }
   0xc   : > { %188 = sbr.rel (%p4495_p4) target bundleno = 19 (0x13), region = 40 }
   0xd   : > { %s5049_s18 = sshll.u32 %s180_s17, 5 }
   0xe   : > { %s5239_s21 = scalar_lea.vmem %s7011_s0, %s5049_s18 }
  0x11   : > { %v5196_v0 = vmov 0.0  }
  0x12   : > { %189 = vst [vmem:[#allocation2] sm:$0xff] %v5196_v0  ;;  %190 = vst [vmem:[#allocation3] sm:$0xff] %v5196_v0 }
  0x13 PF: > { %v334_v1 = vld [vmem:[%s7012_s1 + $0x380] sm:$0xff]  ;;  %v5197_v33 = vmov 1983009808   ;;  %v201_v35 = vlaneseq  ;;  %p5011_p5 = scmp.ne.s32.totalorder %s5230_s16, 7 }
  0x14   : > { %v342_v2 = vld [vmem:[%s7012_s1 + $0x3c0] sm:$0xff]  ;;  %v199_v34 = vunpack.c.l.s4 %v5197_v33 }
  0x15   : > { %v590_v3 = vld [vmem:[%s7012_s1 + $0xb80] sm:$0xff]  ;;  %v4609_v4 = vcombine.high %v334_v1, %v342_v2  ;;  %v4608_v6 = vcombine.low %v334_v1, %v342_v2  ;;  %v202_v45 = vshrl.u32 %v201_v35, 7 }
  0x16   : > { %v598_v5 = vld [vmem:[%s7012_s1 + $0xbc0] sm:$0xff]  ;;  %v200_v44 = vunpack.c.0.s8 %v199_v34 }
  0x17   : > { %v318_v7 = vld [vmem:[%s7012_s1 + $0x300] sm:$0xff]  ;;  %v4865_v9 = vcombine.high %v590_v3, %v598_v5  ;;  %v4864_v10 = vcombine.low %v590_v3, %v598_v5  ;;  %3294 = vmatprep.subr.bf16.mxu0 %v4609_v4 }
  0x18   : > { %v326_v8 = vld [vmem:[%s7012_s1 + $0x340] sm:$0xff]  ;;  %3295 = vmatpush1.bf16.msra.mxu0 %v4608_v6  ;;  %v5320_v54 = vsub.s32 %v200_v44, %v202_v45 }
  0x19   : > { %v4593_v11 = vcombine.high %v318_v7, %v326_v8  ;;  %v574_v12 = vld [vmem:[%s7012_s1 + $0xb00] sm:$0xff]  ;;  %3335 = vmatprep.subr.bf16.mxu1 %v4865_v9  ;;  %v4592_v19 = vcombine.low %v318_v7, %v326_v8 }
  0x1a   : > { %v582_v13 = vld [vmem:[%s7012_s1 + $0xb40] sm:$0xff]  ;;  %3336 = vmatpush1.bf16.msra.mxu1 %v4864_v10 }
  0x1b   : > { %v302_v14 = vld [vmem:[%s7012_s1 + $0x280] sm:$0xff]  ;;  %v4849_v15 = vcombine.high %v574_v12, %v582_v13  ;;  %3296 = vmatprep.subr.bf16.mxu0 %v4593_v11  ;;  %v4848_v20 = vcombine.low %v574_v12, %v582_v13 }
  0x1c   : > { %v310_v16 = vld [vmem:[%s7012_s1 + $0x2c0] sm:$0xff]  ;;  %3297 = vmatpush1.bf16.msra.mxu0 %v4592_v19 }
  0x1d   : > { %v558_v17 = vld [vmem:[%s7012_s1 + $0xa80] sm:$0xff]  ;;  %v4577_v21 = vcombine.high %v302_v14, %v310_v16  ;;  %3337 = vmatprep.subr.bf16.mxu1 %v4849_v15  ;;  %v4576_v27 = vcombine.low %v302_v14, %v310_v16 }
  0x1e   : > { %v566_v18 = vld [vmem:[%s7012_s1 + $0xac0] sm:$0xff]  ;;  %3338 = vmatpush1.bf16.msra.mxu1 %v4848_v20 }
  0x1f   : > { %v4833_v22 = vcombine.high %v558_v17, %v566_v18  ;;  %v286_v23 = vld [vmem:[%s7012_s1 + $0x200] sm:$0xff]  ;;  %3298 = vmatprep.subr.bf16.mxu0 %v4577_v21  ;;  %v4832_v28 = vcombine.low %v558_v17, %v566_v18 }
  0x20   : > { %v294_v24 = vld [vmem:[%s7012_s1 + $0x240] sm:$0xff]  ;;  %3299 = vmatpush1.bf16.msra.mxu0 %v4576_v27 }
  0x21   : > { %v542_v25 = vld [vmem:[%s7012_s1 + $0xa00] sm:$0xff]  ;;  %v4561_v29 = vcombine.high %v286_v23, %v294_v24  ;;  %3339 = vmatprep.subr.bf16.mxu1 %v4833_v22  ;;  %v4560_v38 = vcombine.low %v286_v23, %v294_v24 }
  0x22   : > { %v550_v26 = vld [vmem:[%s7012_s1 + $0xa40] sm:$0xff]  ;;  %3340 = vmatpush1.bf16.msra.mxu1 %v4832_v28 }
  0x23   : > { %v4817_v30 = vcombine.high %v542_v25, %v550_v26  ;;  %v270_v31 = vld [vmem:[%s7012_s1 + $0x180] sm:$0xff]  ;;  %3300 = vmatprep.subr.bf16.mxu0 %v4561_v29  ;;  %v4816_v39 = vcombine.low %v542_v25, %v550_v26 }
  0x24   : > { %v278_v32 = vld [vmem:[%s7012_s1 + $0x1c0] sm:$0xff]  ;;  %3301 = vmatpush1.bf16.msra.mxu0 %v4560_v38 }
  0x25   : > { %v526_v36 = vld [vmem:[%s7012_s1 + $0x980] sm:$0xff]  ;;  %v4545_v40 = vcombine.high %v270_v31, %v278_v32  ;;  %3341 = vmatprep.subr.bf16.mxu1 %v4817_v30  ;;  %v4544_v48 = vcombine.low %v270_v31, %v278_v32 }
  0x26   : > { %v534_v37 = vld [vmem:[%s7012_s1 + $0x9c0] sm:$0xff]  ;;  %3342 = vmatpush1.bf16.msra.mxu1 %v4816_v39 }
  0x27   : > { %v4801_v41 = vcombine.high %v526_v36, %v534_v37  ;;  %v254_v42 = vld [vmem:[%s7012_s1 + $0x100] sm:$0xff]  ;;  %3302 = vmatprep.subr.bf16.mxu0 %v4545_v40  ;;  %v4800_v49 = vcombine.low %v526_v36, %v534_v37 }
  0x28   : > { %v262_v43 = vld [vmem:[%s7012_s1 + $0x140] sm:$0xff]  ;;  %3303 = vmatpush1.bf16.msra.mxu0 %v4544_v48 }
  0x29   : > { %v510_v46 = vld [vmem:[%s7012_s1 + $0x900] sm:$0xff]  ;;  %v4529_v50 = vcombine.high %v254_v42, %v262_v43  ;;  %3343 = vmatprep.subr.bf16.mxu1 %v4801_v41  ;;  %v4528_v57 = vcombine.low %v254_v42, %v262_v43 }
  0x2a   : > { %v518_v47 = vld [vmem:[%s7012_s1 + $0x940] sm:$0xff]  ;;  %3344 = vmatpush1.bf16.msra.mxu1 %v4800_v49 }
  0x2b   : > { %v4785_v51 = vcombine.high %v510_v46, %v518_v47  ;;  %v238_v52 = vld [vmem:[%s7012_s1 + $0x80] sm:$0xff]  ;;  %3304 = vmatprep.subr.bf16.mxu0 %v4529_v50  ;;  %v4784_v58 = vcombine.low %v510_v46, %v518_v47 }
  0x2c   : > { %v246_v53 = vld [vmem:[%s7012_s1 + $0xc0] sm:$0xff]  ;;  %3305 = vmatpush1.bf16.msra.mxu0 %v4528_v57 }
  0x2d   : > { %v494_v55 = vld [vmem:[%s7012_s1 + $0x880] sm:$0xff]  ;;  %v4513_v59 = vcombine.high %v238_v52, %v246_v53  ;;  %3345 = vmatprep.subr.bf16.mxu1 %v4785_v51  ;;  %v4512_v4 = vcombine.low %v238_v52, %v246_v53 }
  0x2e   : > { %v502_v56 = vld [vmem:[%s7012_s1 + $0x8c0] sm:$0xff]  ;;  %3346 = vmatpush1.bf16.msra.mxu1 %v4784_v58 }
  0x2f   : > { %v195_v60 = vld [vmem:[#allocation2] sm:$0xff]  ;;  %v4769_v61 = vcombine.high %v494_v55, %v502_v56  ;;  %3306 = vmatprep.subr.bf16.mxu0 %v4513_v59  ;;  %v4768_v7 = vcombine.low %v494_v55, %v502_v56 }
  0x30   : > { %v222_v62 = vld [vmem:[%s7012_s1] sm:$0xff]  ;;  %v5335_v0 = vrot.slane %v195_v60, %v5320_v54  ;;  %v197_v1 = vcombine.high %v195_v60, %v195_v60  ;;  %3307 = vmatpush1.bf16.msra.mxu0 %v4512_v4 }
  0x31   : > { %v230_v63 = vld [vmem:[%s7012_s1 + $0x40] sm:$0xff]  ;;  %3347 = vmatprep.subr.bf16.mxu1 %v4769_v61 }
  0x32   : > { %v478_v2 = vld [vmem:[%s7012_s1 + $0x800] sm:$0xff]  ;;  %v212_v5 = vcombine.high %v5335_v0, %v5335_v0  ;;  %v5346_v6 = vrot.slane %v197_v1, %v5320_v54  ;;  %v4497_v8 = vcombine.high %v222_v62, %v230_v63  ;;  %v4496_v16 = vcombine.low %v222_v62, %v230_v63  ;;  %3348 = vmatpush1.bf16.msra.mxu1 %v4768_v7 }
  0x33   : > { %v486_v3 = vld [vmem:[%s7012_s1 + $0x840] sm:$0xff] }
  0x34   : > { %v4753_v9 = vcombine.high %v478_v2, %v486_v3  ;;  %v462_v10 = vld [vmem:[%s7012_s1 + $0x780] sm:$0xff]  ;;  %v5354_v12 = vpack.c.bf16 %v212_v5, %v212_v5  ;;  %v213_v13 = vcombine.high %v5346_v6, %v5346_v6  ;;  %3308 = vmatprep.subr.bf16.mxu0 %v4497_v8  ;;  %v4752_v18 = vcombine.low %v478_v2, %v486_v3 }
  0x35   : > { %v470_v11 = vld [vmem:[%s7012_s1 + $0x7c0] sm:$0xff]  ;;  %3309 = vmatpush1.bf16.msra.mxu0 %v4496_v16 }
  0x36   : > { %v718_v14 = vld [vmem:[%s7012_s1 + $0xf80] sm:$0xff]  ;;  %3326 = vmatprep.mubr.bf16.mxu0 %v5354_v12  ;;  %v5365_v17 = vpack.c.bf16 %v213_v13, %v213_v13  ;;  %v4737_v19 = vcombine.high %v462_v10, %v470_v11  ;;  %3349 = vmatprep.subr.bf16.mxu1 %v4753_v9  ;;  %v4736_v25 = vcombine.low %v462_v10, %v470_v11 }
  0x37   : > { %v726_v15 = vld [vmem:[%s7012_s1 + $0xfc0] sm:$0xff]  ;;  %3350 = vmatpush1.bf16.msra.mxu1 %v4752_v18  ;;  %v335_v18 = vld [vmem:[%s7012_s1 + $0x388] sm:$0xff] }
  0x38   : > { %v4993_v20 = vcombine.high %v718_v14, %v726_v15  ;;  %v446_v21 = vld [vmem:[%s7012_s1 + $0x700] sm:$0xff]  ;;  %3367 = vmatprep.mubr.bf16.mxu1 %v5365_v17  ;;  %3310 = vmatprep.subr.bf16.mxu0 %v4737_v19  ;;  %v4992_v26 = vcombine.low %v718_v14, %v726_v15  ;;  %v343_v19 = vld [vmem:[%s7012_s1 + $0x3c8] sm:$0xff] }
  0x39   : > { %v454_v22 = vld [vmem:[%s7012_s1 + $0x740] sm:$0xff]  ;;  %3311 = vmatpush2.bf16.msra.mxu0 %v4736_v25 }
  0x3a   : > { %v702_v23 = vld [vmem:[%s7012_s1 + $0xf00] sm:$0xff]  ;;  %v4721_v27 = vcombine.high %v446_v21, %v454_v22  ;;  %3351 = vmatprep.subr.bf16.mxu1 %v4993_v20  ;;  %v4720_v33 = vcombine.low %v446_v21, %v454_v22  ;;  %v591_v20 = vld [vmem:[%s7012_s1 + $0xb88] sm:$0xff] }
  0x3b   : > { %v710_v24 = vld [vmem:[%s7012_s1 + $0xf40] sm:$0xff]  ;;  %3352 = vmatpush2.bf16.msra.mxu1 %v4992_v26  ;;  %v599_v21 = vld [vmem:[%s7012_s1 + $0xbc8] sm:$0xff] }
  0x3c   : > { %v4977_v28 = vcombine.high %v702_v23, %v710_v24  ;;  %v430_v29 = vld [vmem:[%s7012_s1 + $0x680] sm:$0xff]  ;;  %3312 = vmatprep.subr.bf16.mxu0 %v4721_v27  ;;  %v4976_v34 = vcombine.low %v702_v23, %v710_v24  ;;  %v4611_v24 = vcombine.high %v335_v18, %v343_v19  ;;  %v4867_v25 = vcombine.high %v591_v20, %v599_v21  ;;  %v319_v26 = vld [vmem:[%s7012_s1 + $0x308] sm:$0xff] }
  0x3d   : > { %v438_v30 = vld [vmem:[%s7012_s1 + $0x6c0] sm:$0xff]  ;;  %3313 = vmatpush2.bf16.msra.mxu0 %v4720_v33  ;;  %v327_v27 = vld [vmem:[%s7012_s1 + $0x348] sm:$0xff]  ;;  %v4866_v33 = vcombine.low %v591_v20, %v599_v21 }
  0x3e   : > { %v686_v31 = vld [vmem:[%s7012_s1 + $0xe80] sm:$0xff]  ;;  %v4705_v35 = vcombine.high %v430_v29, %v438_v30  ;;  %3353 = vmatprep.subr.bf16.mxu1 %v4977_v28  ;;  %v4704_v41 = vcombine.low %v430_v29, %v438_v30  ;;  %v5472_v28 = vpack.c.bf16 %v5335_v0, %v5335_v0  ;;  %v575_v29 = vld [vmem:[%s7012_s1 + $0xb08] sm:$0xff] }
  0x3f   : > { %v694_v32 = vld [vmem:[%s7012_s1 + $0xec0] sm:$0xff]  ;;  %3354 = vmatpush2.bf16.msra.mxu1 %v4976_v34  ;;  %v583_v30 = vld [vmem:[%s7012_s1 + $0xb48] sm:$0xff]  ;;  %v4595_v34 = vcombine.high %v319_v26, %v327_v27 }
  0x40   : > { %v4961_v36 = vcombine.high %v686_v31, %v694_v32  ;;  %v414_v37 = vld [vmem:[%s7012_s1 + $0x600] sm:$0xff]  ;;  %3314 = vmatprep.subr.bf16.mxu0 %v4705_v35  ;;  %v4960_v42 = vcombine.low %v686_v31, %v694_v32  ;;  %v5482_v31 = vpack.c.bf16 %v5346_v6, %v5346_v6  ;;  %v4610_v32 = vcombine.low %v335_v18, %v343_v19  ;;  %v303_v35 = vld [vmem:[%s7012_s1 + $0x288] sm:$0xff] }
  0x41   : > { %v422_v38 = vld [vmem:[%s7012_s1 + $0x640] sm:$0xff]  ;;  %3315 = vmatpush2.bf16.msra.mxu0 %v4704_v41  ;;  %v4851_v0 = vcombine.high %v575_v29, %v583_v30  ;;  %v559_v6 = vld [vmem:[%s7012_s1 + $0xa88] sm:$0xff] }
  0x42   : > { %v670_v39 = vld [vmem:[%s7012_s1 + $0xe00] sm:$0xff]  ;;  %v4689_v43 = vcombine.high %v414_v37, %v422_v38  ;;  %3355 = vmatprep.subr.bf16.mxu1 %v4961_v36  ;;  %v4688_v49 = vcombine.low %v414_v37, %v422_v38  ;;  %v311_v36 = vld [vmem:[%s7012_s1 + $0x2c8] sm:$0xff]  ;;  %v4594_v38 = vcombine.low %v319_v26, %v327_v27 }
  0x43   : > { %v678_v40 = vld [vmem:[%s7012_s1 + $0xe40] sm:$0xff]  ;;  %3356 = vmatpush2.bf16.msra.mxu1 %v4960_v42  ;;  %v567_v37 = vld [vmem:[%s7012_s1 + $0xac8] sm:$0xff] }
  0x44   : > { %v4945_v44 = vcombine.high %v670_v39, %v678_v40  ;;  %v398_v45 = vld [vmem:[%s7012_s1 + $0x580] sm:$0xff]  ;;  %3316 = vmatprep.subr.bf16.mxu0 %v4689_v43  ;;  %v4944_v50 = vcombine.low %v670_v39, %v678_v40  ;;  %v4850_v39 = vcombine.low %v575_v29, %v583_v30  ;;  %v4579_v40 = vcombine.high %v303_v35, %v311_v36  ;;  %v287_v42 = vld [vmem:[%s7012_s1 + $0x208] sm:$0xff] }
  0x45   : > { %v406_v46 = vld [vmem:[%s7012_s1 + $0x5c0] sm:$0xff]  ;;  %3317 = vmatpush2.bf16.msra.mxu0 %v4688_v49  ;;  %v4835_v41 = vcombine.high %v559_v6, %v567_v37  ;;  %v295_v43 = vld [vmem:[%s7012_s1 + $0x248] sm:$0xff] }
  0x46   : > { %v654_v47 = vld [vmem:[%s7012_s1 + $0xd80] sm:$0xff]  ;;  %v4673_v51 = vcombine.high %v398_v45, %v406_v46  ;;  %3357 = vmatprep.subr.bf16.mxu1 %v4945_v44  ;;  %v4672_v58 = vcombine.low %v398_v45, %v406_v46  ;;  %v543_v44 = vld [vmem:[%s7012_s1 + $0xa08] sm:$0xff]  ;;  %v4578_v46 = vcombine.low %v303_v35, %v311_v36 }
  0x47   : > { %v662_v48 = vld [vmem:[%s7012_s1 + $0xdc0] sm:$0xff]  ;;  %3358 = vmatpush2.bf16.msra.mxu1 %v4944_v50  ;;  %v551_v45 = vld [vmem:[%s7012_s1 + $0xa48] sm:$0xff] }
  0x48   : > { %v4929_v52 = vcombine.high %v654_v47, %v662_v48  ;;  %v382_v53 = vld [vmem:[%s7012_s1 + $0x500] sm:$0xff]  ;;  %3318 = vmatprep.subr.bf16.mxu0 %v4673_v51  ;;  %v4928_v59 = vcombine.low %v654_v47, %v662_v48  ;;  %v4834_v47 = vcombine.low %v559_v6, %v567_v37  ;;  %v4563_v48 = vcombine.high %v287_v42, %v295_v43  ;;  %v271_v50 = vld [vmem:[%s7012_s1 + $0x188] sm:$0xff] }
  0x49   : > { %v390_v55 = vld [vmem:[%s7012_s1 + $0x540] sm:$0xff]  ;;  %3319 = vmatpush2.bf16.msra.mxu0 %v4672_v58  ;;  %v4819_v49 = vcombine.high %v543_v44, %v551_v45  ;;  %v279_v51 = vld [vmem:[%s7012_s1 + $0x1c8] sm:$0xff] }
  0x4a   : > { %v638_v56 = vld [vmem:[%s7012_s1 + $0xd00] sm:$0xff]  ;;  %v4657_v60 = vcombine.high %v382_v53, %v390_v55  ;;  %3359 = vmatprep.subr.bf16.mxu1 %v4929_v52  ;;  %v4656_v3 = vcombine.low %v382_v53, %v390_v55  ;;  %v527_v52 = vld [vmem:[%s7012_s1 + $0x988] sm:$0xff]  ;;  %v4562_v55 = vcombine.low %v287_v42, %v295_v43 }
  0x4b   : > { %v646_v57 = vld [vmem:[%s7012_s1 + $0xd40] sm:$0xff]  ;;  %3360 = vmatpush2.bf16.msra.mxu1 %v4928_v59  ;;  %v535_v53 = vld [vmem:[%s7012_s1 + $0x9c8] sm:$0xff] }
  0x4c   : > { %v4913_v61 = vcombine.high %v638_v56, %v646_v57  ;;  %v366_v62 = vld [vmem:[%s7012_s1 + $0x480] sm:$0xff]  ;;  %3320 = vmatprep.subr.bf16.mxu0 %v4657_v60  ;;  %v4912_v4 = vcombine.low %v638_v56, %v646_v57  ;;  %v4818_v56 = vcombine.low %v543_v44, %v551_v45  ;;  %v4547_v57 = vcombine.high %v271_v50, %v279_v51  ;;  %v255_v59 = vld [vmem:[%s7012_s1 + $0x108] sm:$0xff] }
  0x4d   : > { %v374_v63 = vld [vmem:[%s7012_s1 + $0x4c0] sm:$0xff]  ;;  %3321 = vmatpush2.bf16.msra.mxu0 %v4656_v3  ;;  %v4803_v58 = vcombine.high %v527_v52, %v535_v53  ;;  %v263_v60 = vld [vmem:[%s7012_s1 + $0x148] sm:$0xff] }
  0x4e   : > { %v622_v1 = vld [vmem:[%s7012_s1 + $0xc80] sm:$0xff]  ;;  %v4641_v5 = vcombine.high %v366_v62, %v374_v63  ;;  %3361 = vmatprep.subr.bf16.mxu1 %v4913_v61  ;;  %v4640_v13 = vcombine.low %v366_v62, %v374_v63  ;;  %v511_v61 = vld [vmem:[%s7012_s1 + $0x908] sm:$0xff]  ;;  %v4546_v63 = vcombine.low %v271_v50, %v279_v51 }
  0x4f   : > { %v630_v2 = vld [vmem:[%s7012_s1 + $0xcc0] sm:$0xff]  ;;  %3362 = vmatpush2.bf16.msra.mxu1 %v4912_v4  ;;  %v519_v62 = vld [vmem:[%s7012_s1 + $0x948] sm:$0xff] }
  0x50   : > { %v4897_v7 = vcombine.high %v622_v1, %v630_v2  ;;  %v350_v8 = vld [vmem:[%s7012_s1 + $0x400] sm:$0xff]  ;;  %3322 = vmatprep.subr.bf16.mxu0 %v4641_v5  ;;  %v4896_v14 = vcombine.low %v622_v1, %v630_v2  ;;  %v4802_v1 = vcombine.low %v527_v52, %v535_v53  ;;  %v4531_v2 = vcombine.high %v255_v59, %v263_v60  ;;  %v239_v4 = vld [vmem:[%s7012_s1 + $0x88] sm:$0xff] }
  0x51   : > { %v358_v9 = vld [vmem:[%s7012_s1 + $0x440] sm:$0xff]  ;;  %3323 = vmatpush2.bf16.msra.mxu0 %v4640_v13  ;;  %v4787_v3 = vcombine.high %v511_v61, %v519_v62  ;;  %v247_v5 = vld [vmem:[%s7012_s1 + $0xc8] sm:$0xff] }
  0x52   : > { %v606_v10 = vld [vmem:[%s7012_s1 + $0xc00] sm:$0xff]  ;;  %v4625_v15 = vcombine.high %v350_v8, %v358_v9  ;;  %3363 = vmatprep.subr.bf16.mxu1 %v4897_v7  ;;  %v4624_v22 = vcombine.low %v350_v8, %v358_v9  ;;  %v495_v7 = vld [vmem:[%s7012_s1 + $0x888] sm:$0xff]  ;;  %v4530_v9 = vcombine.low %v255_v59, %v263_v60  ;;  %v4514_v19 = vcombine.low %v239_v4, %v247_v5 }
  0x53   : > { %v614_v11 = vld [vmem:[%s7012_s1 + $0xc40] sm:$0xff]  ;;  %3364 = vmatpush2.bf16.msra.mxu1 %v4896_v14  ;;  %v503_v8 = vld [vmem:[%s7012_s1 + $0x8c8] sm:$0xff] }
  0x54   : > { %v4881_v16 = vcombine.high %v606_v10, %v614_v11  ;;  %3324 = vmatprep.subr.bf16.mxu0 %v4625_v15  ;;  %v4880_v23 = vcombine.low %v606_v10, %v614_v11  ;;  %v4786_v10 = vcombine.low %v511_v61, %v519_v62  ;;  %v4515_v11 = vcombine.high %v239_v4, %v247_v5  ;;  %v223_v14 = vld [vmem:[%s7012_s1 + $0x8] sm:$0xff] }
  0x55   : > { %3325 = vmatpush2.bf16.msra.mxu0 %v4624_v22  ;;  %v4771_v13 = vcombine.high %v495_v7, %v503_v8  ;;  %v231_v15 = vld [vmem:[%s7012_s1 + $0x48] sm:$0xff]  ;;  %v4770_v20 = vcombine.low %v495_v7, %v503_v8 }
  0x56   : > { %3365 = vmatprep.subr.bf16.mxu1 %v4881_v16  ;;  %3376 = vmatprep.subr.bf16.mxu0 %v4611_v24  ;;  %v479_v16 = vld [vmem:[%s7012_s1 + $0x808] sm:$0xff]  ;;  %v4499_v21 = vcombine.high %v223_v14, %v231_v15  ;;  %v4498_v27 = vcombine.low %v223_v14, %v231_v15 }
  0x57   : > { %3366 = vmatpush2.bf16.msra.mxu1 %v4880_v23  ;;  %v487_v18 = vld [vmem:[%s7012_s1 + $0x848] sm:$0xff] }
  0x58   : > { %3417 = vmatprep.subr.bf16.mxu1 %v4867_v25  ;;  %3327 = vmatmul.mubr.bf16.vlgmr.msra.gmra.mxu0 %v5472_v28  ;;  %v4755_v22 = vcombine.high %v479_v16, %v487_v18  ;;  %v463_v23 = vld [vmem:[%s7012_s1 + $0x788] sm:$0xff]  ;;  %v4754_v29 = vcombine.low %v479_v16, %v487_v18 }
  0x59   : > { %3377 = vmatpush1.bf16.msra.mxu0 %v4610_v32  ;;  %3408 = vmatprep.mubr.bf16.mxu0 %v5354_v12  ;;  %v471_v24 = vld [vmem:[%s7012_s1 + $0x7c8] sm:$0xff] }
  0x5a   : > { %3368 = vmatmul.mubr.bf16.vlgmr.msra.gmra.mxu1 %v5482_v31  ;;  %3378 = vmatprep.subr.bf16.mxu0 %v4595_v34  ;;  %v719_v25 = vld [vmem:[%s7012_s1 + $0xf88] sm:$0xff]  ;;  %v4739_v30 = vcombine.high %v463_v23, %v471_v24  ;;  %v4738_v36 = vcombine.low %v463_v23, %v471_v24 }
  0x5b   : > { %3418 = vmatpush1.bf16.msra.mxu1 %v4866_v33  ;;  %3449 = vmatprep.mubr.bf16.mxu1 %v5365_v17  ;;  %v727_v26 = vld [vmem:[%s7012_s1 + $0xfc8] sm:$0xff] }
  0x5c   : > { %3419 = vmatprep.subr.bf16.mxu1 %v4851_v0  ;;  %v4995_v32 = vcombine.high %v719_v25, %v727_v26  ;;  %v447_v33 = vld [vmem:[%s7012_s1 + $0x708] sm:$0xff]  ;;  %v4994_v6 = vcombine.low %v719_v25, %v727_v26 }
  0x5d   : > { %3379 = vmatpush1.bf16.msra.mxu0 %v4594_v38  ;;  %v455_v34 = vld [vmem:[%s7012_s1 + $0x748] sm:$0xff] }
  0x5e   : > { %3380 = vmatprep.subr.bf16.mxu0 %v4579_v40  ;;  %v703_v0 = vld [vmem:[%s7012_s1 + $0xf08] sm:$0xff]  ;;  %v4723_v37 = vcombine.high %v447_v33, %v455_v34  ;;  %v4722_v43 = vcombine.low %v447_v33, %v455_v34  ;;  %v600_v33 = vld [vmem:[%s7012_s1 + $0xbd0] sm:$0xff] }
  0x5f   : > { %3420 = vmatpush1.bf16.msra.mxu1 %v4850_v39  ;;  %v711_v35 = vld [vmem:[%s7012_s1 + $0xf48] sm:$0xff] }
  0x60   : > { %3421 = vmatprep.subr.bf16.mxu1 %v4835_v41  ;;  %v4979_v38 = vcombine.high %v703_v0, %v711_v35  ;;  %v431_v39 = vld [vmem:[%s7012_s1 + $0x688] sm:$0xff]  ;;  %v4978_v44 = vcombine.low %v703_v0, %v711_v35 }
  0x61   : > { %3381 = vmatpush1.bf16.msra.mxu0 %v4578_v46  ;;  %v439_v40 = vld [vmem:[%s7012_s1 + $0x6c8] sm:$0xff] }
  0x62   : > { %3382 = vmatprep.subr.bf16.mxu0 %v4563_v48  ;;  %v687_v41 = vld [vmem:[%s7012_s1 + $0xe88] sm:$0xff]  ;;  %v4707_v45 = vcombine.high %v431_v39, %v439_v40  ;;  %v4706_v51 = vcombine.low %v431_v39, %v439_v40  ;;  %v584_v39 = vld [vmem:[%s7012_s1 + $0xb50] sm:$0xff] }
  0x63   : > { %3422 = vmatpush1.bf16.msra.mxu1 %v4834_v47  ;;  %v695_v42 = vld [vmem:[%s7012_s1 + $0xec8] sm:$0xff] }
  0x64   : > { %3423 = vmatprep.subr.bf16.mxu1 %v4819_v49  ;;  %v4963_v46 = vcombine.high %v687_v41, %v695_v42  ;;  %v415_v47 = vld [vmem:[%s7012_s1 + $0x608] sm:$0xff]  ;;  %v4962_v52 = vcombine.low %v687_v41, %v695_v42 }
  0x65   : > { %3383 = vmatpush1.bf16.msra.mxu0 %v4562_v55  ;;  %v423_v48 = vld [vmem:[%s7012_s1 + $0x648] sm:$0xff] }
  0x66   : > { %3384 = vmatprep.subr.bf16.mxu0 %v4547_v57  ;;  %v671_v49 = vld [vmem:[%s7012_s1 + $0xe08] sm:$0xff]  ;;  %v4691_v53 = vcombine.high %v415_v47, %v423_v48  ;;  %v4690_v60 = vcombine.low %v415_v47, %v423_v48  ;;  %v568_v47 = vld [vmem:[%s7012_s1 + $0xad0] sm:$0xff] }
  0x67   : > { %3424 = vmatpush1.bf16.msra.mxu1 %v4818_v56  ;;  %v679_v50 = vld [vmem:[%s7012_s1 + $0xe48] sm:$0xff] }
  0x68   : > { %3425 = vmatprep.subr.bf16.mxu1 %v4803_v58  ;;  %v4947_v55 = vcombine.high %v671_v49, %v679_v50  ;;  %v399_v56 = vld [vmem:[%s7012_s1 + $0x588] sm:$0xff]  ;;  %v4946_v61 = vcombine.low %v671_v49, %v679_v50 }
  0x69   : > { %3385 = vmatpush1.bf16.msra.mxu0 %v4546_v63  ;;  %v407_v57 = vld [vmem:[%s7012_s1 + $0x5c8] sm:$0xff] }
  0x6a   : > { %3386 = vmatprep.subr.bf16.mxu0 %v4531_v2  ;;  %v655_v58 = vld [vmem:[%s7012_s1 + $0xd88] sm:$0xff]  ;;  %v4675_v62 = vcombine.high %v399_v56, %v407_v57  ;;  %v4674_v5 = vcombine.low %v399_v56, %v407_v57  ;;  %v552_v56 = vld [vmem:[%s7012_s1 + $0xa50] sm:$0xff] }
  0x6b   : > { %3426 = vmatpush1.bf16.msra.mxu1 %v4802_v1  ;;  %v663_v59 = vld [vmem:[%s7012_s1 + $0xdc8] sm:$0xff] }
  0x6c   : > { %3427 = vmatprep.subr.bf16.mxu1 %v4787_v3  ;;  %v4931_v63 = vcombine.high %v655_v58, %v663_v59  ;;  %v383_v1 = vld [vmem:[%s7012_s1 + $0x508] sm:$0xff]  ;;  %v4930_v7 = vcombine.low %v655_v58, %v663_v59 }
  0x6d   : > { %3387 = vmatpush1.bf16.msra.mxu0 %v4530_v9  ;;  %v391_v2 = vld [vmem:[%s7012_s1 + $0x548] sm:$0xff] }
  0x6e   : > { %3388 = vmatprep.subr.bf16.mxu0 %v4515_v11  ;;  %v639_v3 = vld [vmem:[%s7012_s1 + $0xd08] sm:$0xff]  ;;  %v4659_v8 = vcombine.high %v383_v1, %v391_v2  ;;  %v4658_v15 = vcombine.low %v383_v1, %v391_v2  ;;  %v536_v1 = vld [vmem:[%s7012_s1 + $0x9d0] sm:$0xff] }
  0x6f   : > { %3428 = vmatpush1.bf16.msra.mxu1 %v4786_v10  ;;  %v647_v4 = vld [vmem:[%s7012_s1 + $0xd48] sm:$0xff] }
  0x70   : > { %3429 = vmatprep.subr.bf16.mxu1 %v4771_v13  ;;  %v4915_v9 = vcombine.high %v639_v3, %v647_v4  ;;  %v367_v10 = vld [vmem:[%s7012_s1 + $0x488] sm:$0xff]  ;;  %v4914_v16 = vcombine.low %v639_v3, %v647_v4 }
  0x71   : > { %3389 = vmatpush1.bf16.msra.mxu0 %v4514_v19  ;;  %v375_v11 = vld [vmem:[%s7012_s1 + $0x4c8] sm:$0xff] }
  0x72   : > { %3390 = vmatprep.subr.bf16.mxu0 %v4499_v21  ;;  %v623_v13 = vld [vmem:[%s7012_s1 + $0xc88] sm:$0xff]  ;;  %v4643_v18 = vcombine.high %v367_v10, %v375_v11  ;;  %v4642_v24 = vcombine.low %v367_v10, %v375_v11  ;;  %v520_v10 = vld [vmem:[%s7012_s1 + $0x950] sm:$0xff] }
  0x73   : > { %3430 = vmatpush1.bf16.msra.mxu1 %v4770_v20  ;;  %v631_v14 = vld [vmem:[%s7012_s1 + $0xcc8] sm:$0xff] }
  0x74   : > { %3431 = vmatprep.subr.bf16.mxu1 %v4755_v22  ;;  %v4899_v19 = vcombine.high %v623_v13, %v631_v14  ;;  %v351_v20 = vld [vmem:[%s7012_s1 + $0x408] sm:$0xff]  ;;  %v4898_v25 = vcombine.low %v623_v13, %v631_v14 }
  0x75   : > { %3391 = vmatpush1.bf16.msra.mxu0 %v4498_v27  ;;  %v359_v21 = vld [vmem:[%s7012_s1 + $0x448] sm:$0xff] }
  0x76   : > { %3392 = vmatprep.subr.bf16.mxu0 %v4739_v30  ;;  %v607_v22 = vld [vmem:[%s7012_s1 + $0xc08] sm:$0xff]  ;;  %v4627_v26 = vcombine.high %v351_v20, %v359_v21  ;;  %v344_v30 = vld [vmem:[%s7012_s1 + $0x3d0] sm:$0xff]  ;;  %v4626_v34 = vcombine.low %v351_v20, %v359_v21 }
  0x77   : > { %3432 = vmatpush1.bf16.msra.mxu1 %v4754_v29  ;;  %v615_v23 = vld [vmem:[%s7012_s1 + $0xc48] sm:$0xff]  ;;  %v336_v29 = vld [vmem:[%s7012_s1 + $0x390] sm:$0xff] }
  0x78   : > { %3433 = vmatprep.subr.bf16.mxu1 %v4995_v32  ;;  %v4883_v27 = vcombine.high %v607_v22, %v615_v23  ;;  %v592_v32 = vld [vmem:[%s7012_s1 + $0xb90] sm:$0xff]  ;;  %v4882_v0 = vcombine.low %v607_v22, %v615_v23  ;;  %v4613_v35 = vcombine.high %v336_v29, %v344_v30  ;;  %v4612_v40 = vcombine.low %v336_v29, %v344_v30 }
  0x79   : > { %3393 = vmatpush2.bf16.msra.mxu0 %v4738_v36  ;;  %v4869_v36 = vcombine.high %v592_v32, %v600_v33  ;;  %v4868_v41 = vcombine.low %v592_v32, %v600_v33  ;;  %v504_v20 = vld [vmem:[%s7012_s1 + $0x8d0] sm:$0xff] }
  0x7a   : > { %3394 = vmatprep.subr.bf16.mxu0 %v4723_v37  ;;  %v328_v37 = vld [vmem:[%s7012_s1 + $0x350] sm:$0xff] }
  0x7b   : > { %3434 = vmatpush2.bf16.msra.mxu1 %v4994_v6  ;;  %v320_v6 = vld [vmem:[%s7012_s1 + $0x310] sm:$0xff] }
  0x7c   : > { %3435 = vmatprep.subr.bf16.mxu1 %v4979_v38  ;;  %v576_v38 = vld [vmem:[%s7012_s1 + $0xb10] sm:$0xff]  ;;  %v4597_v42 = vcombine.high %v320_v6, %v328_v37  ;;  %v4596_v48 = vcombine.low %v320_v6, %v328_v37 }
  0x7d   : > { %3395 = vmatpush2.bf16.msra.mxu0 %v4722_v43  ;;  %v4853_v43 = vcombine.high %v576_v38, %v584_v39  ;;  %v4852_v49 = vcombine.low %v576_v38, %v584_v39  ;;  %v488_v29 = vld [vmem:[%s7012_s1 + $0x850] sm:$0xff] }
  0x7e   : > { %3396 = vmatprep.subr.bf16.mxu0 %v4707_v45  ;;  %v312_v45 = vld [vmem:[%s7012_s1 + $0x2d0] sm:$0xff] }
  0x7f   : > { %3436 = vmatpush2.bf16.msra.mxu1 %v4978_v44  ;;  %v304_v44 = vld [vmem:[%s7012_s1 + $0x290] sm:$0xff] }
  0x80   : > { %3437 = vmatprep.subr.bf16.mxu1 %v4963_v46  ;;  %v560_v46 = vld [vmem:[%s7012_s1 + $0xa90] sm:$0xff]  ;;  %v4581_v50 = vcombine.high %v304_v44, %v312_v45  ;;  %v4580_v57 = vcombine.low %v304_v44, %v312_v45 }
  0x81   : > { %3397 = vmatpush2.bf16.msra.mxu0 %v4706_v51  ;;  %v4837_v51 = vcombine.high %v560_v46, %v568_v47  ;;  %v4836_v58 = vcombine.low %v560_v46, %v568_v47  ;;  %v728_v6 = vld [vmem:[%s7012_s1 + $0xfd0] sm:$0xff] }
  0x82   : > { %3398 = vmatprep.subr.bf16.mxu0 %v4691_v53  ;;  %v296_v53 = vld [vmem:[%s7012_s1 + $0x250] sm:$0xff] }
  0x83   : > { %3438 = vmatpush2.bf16.msra.mxu1 %v4962_v52  ;;  %v288_v52 = vld [vmem:[%s7012_s1 + $0x210] sm:$0xff] }
  0x84   : > { %3439 = vmatprep.subr.bf16.mxu1 %v4947_v55  ;;  %v544_v55 = vld [vmem:[%s7012_s1 + $0xa10] sm:$0xff]  ;;  %v4565_v59 = vcombine.high %v288_v52, %v296_v53  ;;  %v4564_v2 = vcombine.low %v288_v52, %v296_v53 }
  0x85   : > { %3399 = vmatpush2.bf16.msra.mxu0 %v4690_v60  ;;  %v4821_v60 = vcombine.high %v544_v55, %v552_v56  ;;  %v4820_v3 = vcombine.low %v544_v55, %v552_v56  ;;  %v712_v44 = vld [vmem:[%s7012_s1 + $0xf50] sm:$0xff] }
  0x86   : > { %3400 = vmatprep.subr.bf16.mxu0 %v4675_v62  ;;  %v280_v62 = vld [vmem:[%s7012_s1 + $0x1d0] sm:$0xff] }
  0x87   : > { %3440 = vmatpush2.bf16.msra.mxu1 %v4946_v61  ;;  %v272_v61 = vld [vmem:[%s7012_s1 + $0x190] sm:$0xff] }
  0x88   : > { %3441 = vmatprep.subr.bf16.mxu1 %v4931_v63  ;;  %v528_v63 = vld [vmem:[%s7012_s1 + $0x990] sm:$0xff]  ;;  %v4549_v4 = vcombine.high %v272_v61, %v280_v62  ;;  %v4548_v11 = vcombine.low %v272_v61, %v280_v62 }
  0x89   : > { %3401 = vmatpush2.bf16.msra.mxu0 %v4674_v5  ;;  %v4805_v5 = vcombine.high %v528_v63, %v536_v1  ;;  %v4804_v13 = vcombine.low %v528_v63, %v536_v1  ;;  %v696_v52 = vld [vmem:[%s7012_s1 + $0xed0] sm:$0xff] }
  0x8a   : > { %3402 = vmatprep.subr.bf16.mxu0 %v4659_v8  ;;  %v264_v8 = vld [vmem:[%s7012_s1 + $0x150] sm:$0xff] }
  0x8b   : > { %3442 = vmatpush2.bf16.msra.mxu1 %v4930_v7  ;;  %v256_v7 = vld [vmem:[%s7012_s1 + $0x110] sm:$0xff] }
  0x8c   : > { %3443 = vmatprep.subr.bf16.mxu1 %v4915_v9  ;;  %v512_v9 = vld [vmem:[%s7012_s1 + $0x910] sm:$0xff]  ;;  %v4533_v14 = vcombine.high %v256_v7, %v264_v8  ;;  %v4532_v21 = vcombine.low %v256_v7, %v264_v8 }
  0x8d   : > { %3403 = vmatpush2.bf16.msra.mxu0 %v4658_v15  ;;  %v4789_v15 = vcombine.high %v512_v9, %v520_v10  ;;  %v4788_v22 = vcombine.low %v512_v9, %v520_v10  ;;  %v680_v61 = vld [vmem:[%s7012_s1 + $0xe50] sm:$0xff] }
  0x8e   : > { %3404 = vmatprep.subr.bf16.mxu0 %v4643_v18  ;;  %v248_v18 = vld [vmem:[%s7012_s1 + $0xd0] sm:$0xff] }
  0x8f   : > { %3444 = vmatpush2.bf16.msra.mxu1 %v4914_v16  ;;  %v240_v16 = vld [vmem:[%s7012_s1 + $0x90] sm:$0xff] }
  0x90   : > { %3445 = vmatprep.subr.bf16.mxu1 %v4899_v19  ;;  %v496_v19 = vld [vmem:[%s7012_s1 + $0x890] sm:$0xff]  ;;  %v4517_v23 = vcombine.high %v240_v16, %v248_v18  ;;  %v4516_v30 = vcombine.low %v240_v16, %v248_v18 }
  0x91   : > { %3405 = vmatpush2.bf16.msra.mxu0 %v4642_v24  ;;  %v4773_v24 = vcombine.high %v496_v19, %v504_v20  ;;  %v4772_v32 = vcombine.low %v496_v19, %v504_v20  ;;  %v664_v7 = vld [vmem:[%s7012_s1 + $0xdd0] sm:$0xff] }
  0x92   : > { %3406 = vmatprep.subr.bf16.mxu0 %v4627_v26  ;;  %v232_v26 = vld [vmem:[%s7012_s1 + $0x50] sm:$0xff] }
  0x93   : > { %3446 = vmatpush2.bf16.msra.mxu1 %v4898_v25  ;;  %v224_v25 = vld [vmem:[%s7012_s1 + $0x10] sm:$0xff] }
  0x94   : > { %3447 = vmatprep.subr.bf16.mxu1 %v4883_v27  ;;  %v480_v27 = vld [vmem:[%s7012_s1 + $0x810] sm:$0xff]  ;;  %v4501_v33 = vcombine.high %v224_v25, %v232_v26  ;;  %v4500_v37 = vcombine.low %v224_v25, %v232_v26 }
  0x95   : > { %3407 = vmatpush2.bf16.msra.mxu0 %v4626_v34  ;;  %v4757_v34 = vcombine.high %v480_v27, %v488_v29  ;;  %v4756_v38 = vcombine.low %v480_v27, %v488_v29  ;;  %v648_v16 = vld [vmem:[%s7012_s1 + $0xd50] sm:$0xff] }
  0x96   : > { %3458 = vmatprep.subr.bf16.mxu0 %v4613_v35  ;;  %v472_v35 = vld [vmem:[%s7012_s1 + $0x7d0] sm:$0xff] }
  0x97   : > { %3448 = vmatpush2.bf16.msra.mxu1 %v4882_v0  ;;  %v464_v0 = vld [vmem:[%s7012_s1 + $0x790] sm:$0xff] }
  0x98   : > { %3499 = vmatprep.subr.bf16.mxu1 %v4869_v36  ;;  %3409 = vmatmul.mubr.bf16.vlgmr.msra.gmra.mxu0 %v5472_v28  ;;  %v720_v36 = vld [vmem:[%s7012_s1 + $0xf90] sm:$0xff]  ;;  %v4741_v39 = vcombine.high %v464_v0, %v472_v35  ;;  %v4740_v45 = vcombine.low %v464_v0, %v472_v35 }
  0x99   : > { %3459 = vmatpush1.bf16.msra.mxu0 %v4612_v40  ;;  %3490 = vmatprep.mubr.bf16.mxu0 %v5354_v12  ;;  %v4997_v40 = vcombine.high %v720_v36, %v728_v6  ;;  %v4996_v46 = vcombine.low %v720_v36, %v728_v6  ;;  %v632_v25 = vld [vmem:[%s7012_s1 + $0xcd0] sm:$0xff] }
  0x9a   : > { %3450 = vmatmul.mubr.bf16.vlgmr.msra.gmra.mxu1 %v5482_v31  ;;  %3460 = vmatprep.subr.bf16.mxu0 %v4597_v42  ;;  %v456_v42 = vld [vmem:[%s7012_s1 + $0x750] sm:$0xff] }
  0x9b   : > { %3500 = vmatpush1.bf16.msra.mxu1 %v4868_v41  ;;  %3531 = vmatprep.mubr.bf16.mxu1 %v5365_v17  ;;  %v448_v41 = vld [vmem:[%s7012_s1 + $0x710] sm:$0xff] }
  0x9c   : > { %3501 = vmatprep.subr.bf16.mxu1 %v4853_v43  ;;  %v704_v43 = vld [vmem:[%s7012_s1 + $0xf10] sm:$0xff]  ;;  %v4725_v47 = vcombine.high %v448_v41, %v456_v42  ;;  %v4724_v53 = vcombine.low %v448_v41, %v456_v42  ;;  %v601_v41 = vld [vmem:[%s7012_s1 + $0xbd8] sm:$0xff] }
  0x9d   : > { %3461 = vmatpush1.bf16.msra.mxu0 %v4596_v48  ;;  %v4981_v48 = vcombine.high %v704_v43, %v712_v44  ;;  %v4980_v55 = vcombine.low %v704_v43, %v712_v44  ;;  %v616_v0 = vld [vmem:[%s7012_s1 + $0xc50] sm:$0xff] }
  0x9e   : > { %3462 = vmatprep.subr.bf16.mxu0 %v4581_v50  ;;  %v440_v50 = vld [vmem:[%s7012_s1 + $0x6d0] sm:$0xff] }
  0x9f   : > { %3502 = vmatpush1.bf16.msra.mxu1 %v4852_v49  ;;  %v432_v49 = vld [vmem:[%s7012_s1 + $0x690] sm:$0xff] }
  0xa0   : > { %3503 = vmatprep.subr.bf16.mxu1 %v4837_v51  ;;  %v688_v51 = vld [vmem:[%s7012_s1 + $0xe90] sm:$0xff]  ;;  %v4709_v56 = vcombine.high %v432_v49, %v440_v50  ;;  %v4708_v62 = vcombine.low %v432_v49, %v440_v50  ;;  %v585_v49 = vld [vmem:[%s7012_s1 + $0xb58] sm:$0xff] }
  0xa1   : > { %3463 = vmatpush1.bf16.msra.mxu0 %v4580_v57  ;;  %v4965_v57 = vcombine.high %v688_v51, %v696_v52  ;;  %v4964_v63 = vcombine.low %v688_v51, %v696_v52 }
  0xa2   : > { %3464 = vmatprep.subr.bf16.mxu0 %v4565_v59  ;;  %v424_v59 = vld [vmem:[%s7012_s1 + $0x650] sm:$0xff] }
  0xa3   : > { %3504 = vmatpush1.bf16.msra.mxu1 %v4836_v58  ;;  %v416_v58 = vld [vmem:[%s7012_s1 + $0x610] sm:$0xff] }
  0xa4   : > { %3505 = vmatprep.subr.bf16.mxu1 %v4821_v60  ;;  %v672_v60 = vld [vmem:[%s7012_s1 + $0xe10] sm:$0xff]  ;;  %v4693_v1 = vcombine.high %v416_v58, %v424_v59  ;;  %v4692_v8 = vcombine.low %v416_v58, %v424_v59  ;;  %v569_v58 = vld [vmem:[%s7012_s1 + $0xad8] sm:$0xff] }
  0xa5   : > { %3465 = vmatpush1.bf16.msra.mxu0 %v4564_v2  ;;  %v4949_v2 = vcombine.high %v672_v60, %v680_v61  ;;  %v4948_v9 = vcombine.low %v672_v60, %v680_v61 }
  0xa6   : > { %3466 = vmatprep.subr.bf16.mxu0 %v4549_v4  ;;  %v408_v4 = vld [vmem:[%s7012_s1 + $0x5d0] sm:$0xff] }
  0xa7   : > { %3506 = vmatpush1.bf16.msra.mxu1 %v4820_v3  ;;  %v400_v3 = vld [vmem:[%s7012_s1 + $0x590] sm:$0xff] }
  0xa8   : > { %3507 = vmatprep.subr.bf16.mxu1 %v4805_v5  ;;  %v656_v5 = vld [vmem:[%s7012_s1 + $0xd90] sm:$0xff]  ;;  %v4677_v10 = vcombine.high %v400_v3, %v408_v4  ;;  %v4676_v18 = vcombine.low %v400_v3, %v408_v4  ;;  %v553_v3 = vld [vmem:[%s7012_s1 + $0xa58] sm:$0xff] }
  0xa9   : > { %3467 = vmatpush1.bf16.msra.mxu0 %v4548_v11  ;;  %v4933_v11 = vcombine.high %v656_v5, %v664_v7  ;;  %v4932_v19 = vcombine.low %v656_v5, %v664_v7 }
  0xaa   : > { %3468 = vmatprep.subr.bf16.mxu0 %v4533_v14  ;;  %v392_v14 = vld [vmem:[%s7012_s1 + $0x550] sm:$0xff] }
  0xab   : > { %3508 = vmatpush1.bf16.msra.mxu1 %v4804_v13  ;;  %v384_v13 = vld [vmem:[%s7012_s1 + $0x510] sm:$0xff] }
  0xac   : > { %3509 = vmatprep.subr.bf16.mxu1 %v4789_v15  ;;  %v640_v15 = vld [vmem:[%s7012_s1 + $0xd10] sm:$0xff]  ;;  %v4661_v20 = vcombine.high %v384_v13, %v392_v14  ;;  %v4660_v26 = vcombine.low %v384_v13, %v392_v14  ;;  %v537_v13 = vld [vmem:[%s7012_s1 + $0x9d8] sm:$0xff] }
  0xad   : > { %3469 = vmatpush1.bf16.msra.mxu0 %v4532_v21  ;;  %v4917_v21 = vcombine.high %v640_v15, %v648_v16  ;;  %v4916_v27 = vcombine.low %v640_v15, %v648_v16 }
  0xae   : > { %3470 = vmatprep.subr.bf16.mxu0 %v4517_v23  ;;  %v376_v23 = vld [vmem:[%s7012_s1 + $0x4d0] sm:$0xff] }
  0xaf   : > { %3510 = vmatpush1.bf16.msra.mxu1 %v4788_v22  ;;  %v368_v22 = vld [vmem:[%s7012_s1 + $0x490] sm:$0xff] }
  0xb0   : > { %3511 = vmatprep.subr.bf16.mxu1 %v4773_v24  ;;  %v624_v24 = vld [vmem:[%s7012_s1 + $0xc90] sm:$0xff]  ;;  %v4645_v29 = vcombine.high %v368_v22, %v376_v23  ;;  %v4644_v35 = vcombine.low %v368_v22, %v376_v23  ;;  %v521_v22 = vld [vmem:[%s7012_s1 + $0x958] sm:$0xff] }
  0xb1   : > { %3471 = vmatpush1.bf16.msra.mxu0 %v4516_v30  ;;  %v4901_v30 = vcombine.high %v624_v24, %v632_v25  ;;  %v4900_v36 = vcombine.low %v624_v24, %v632_v25 }
  0xb2   : > { %3472 = vmatprep.subr.bf16.mxu0 %v4501_v33  ;;  %v360_v33 = vld [vmem:[%s7012_s1 + $0x450] sm:$0xff] }
  0xb3   : > { %3512 = vmatpush1.bf16.msra.mxu1 %v4772_v32  ;;  %v352_v32 = vld [vmem:[%s7012_s1 + $0x410] sm:$0xff] }
  0xb4   : > { %3513 = vmatprep.subr.bf16.mxu1 %v4757_v34  ;;  %v608_v34 = vld [vmem:[%s7012_s1 + $0xc10] sm:$0xff]  ;;  %v4629_v6 = vcombine.high %v352_v32, %v360_v33  ;;  %v4628_v42 = vcombine.low %v352_v32, %v360_v33  ;;  %v505_v32 = vld [vmem:[%s7012_s1 + $0x8d8] sm:$0xff] }
  0xb5   : > { %3473 = vmatpush1.bf16.msra.mxu0 %v4500_v37  ;;  %v4885_v37 = vcombine.high %v608_v34, %v616_v0  ;;  %v4884_v43 = vcombine.low %v608_v34, %v616_v0 }
  0xb6   : > { %3474 = vmatprep.subr.bf16.mxu0 %v4741_v39  ;;  %v345_v39 = vld [vmem:[%s7012_s1 + $0x3d8] sm:$0xff] }
  0xb7   : > { %3514 = vmatpush1.bf16.msra.mxu1 %v4756_v38  ;;  %v337_v38 = vld [vmem:[%s7012_s1 + $0x398] sm:$0xff] }
  0xb8   : > { %3515 = vmatprep.subr.bf16.mxu1 %v4997_v40  ;;  %v593_v40 = vld [vmem:[%s7012_s1 + $0xb98] sm:$0xff]  ;;  %v4615_v44 = vcombine.high %v337_v38, %v345_v39  ;;  %v4614_v50 = vcombine.low %v337_v38, %v345_v39 }
  0xb9   : > { %3475 = vmatpush2.bf16.msra.mxu0 %v4740_v45  ;;  %v4871_v45 = vcombine.high %v593_v40, %v601_v41  ;;  %v4870_v51 = vcombine.low %v593_v40, %v601_v41  ;;  %v489_v38 = vld [vmem:[%s7012_s1 + $0x858] sm:$0xff] }
  0xba   : > { %3476 = vmatprep.subr.bf16.mxu0 %v4725_v47  ;;  %v329_v47 = vld [vmem:[%s7012_s1 + $0x358] sm:$0xff] }
  0xbb   : > { %3516 = vmatpush2.bf16.msra.mxu1 %v4996_v46  ;;  %v321_v46 = vld [vmem:[%s7012_s1 + $0x318] sm:$0xff] }
  0xbc   : > { %3517 = vmatprep.subr.bf16.mxu1 %v4981_v48  ;;  %v577_v48 = vld [vmem:[%s7012_s1 + $0xb18] sm:$0xff]  ;;  %v4599_v52 = vcombine.high %v321_v46, %v329_v47  ;;  %v4598_v59 = vcombine.low %v321_v46, %v329_v47 }
  0xbd   : > { %3477 = vmatpush2.bf16.msra.mxu0 %v4724_v53  ;;  %v4855_v53 = vcombine.high %v577_v48, %v585_v49  ;;  %v4854_v60 = vcombine.low %v577_v48, %v585_v49  ;;  %v729_v46 = vld [vmem:[%s7012_s1 + $0xfd8] sm:$0xff] }
  0xbe   : > { %3478 = vmatprep.subr.bf16.mxu0 %v4709_v56  ;;  %v313_v56 = vld [vmem:[%s7012_s1 + $0x2d8] sm:$0xff] }
  0xbf   : > { %3518 = vmatpush2.bf16.msra.mxu1 %v4980_v55  ;;  %v305_v55 = vld [vmem:[%s7012_s1 + $0x298] sm:$0xff] }
  0xc0   : > { %3519 = vmatprep.subr.bf16.mxu1 %v4965_v57  ;;  %v561_v57 = vld [vmem:[%s7012_s1 + $0xa98] sm:$0xff]  ;;  %v4583_v61 = vcombine.high %v305_v55, %v313_v56  ;;  %v4582_v4 = vcombine.low %v305_v55, %v313_v56 }
  0xc1   : > { %3479 = vmatpush2.bf16.msra.mxu0 %v4708_v62  ;;  %v4839_v62 = vcombine.high %v561_v57, %v569_v58  ;;  %v4838_v5 = vcombine.low %v561_v57, %v569_v58  ;;  %v713_v55 = vld [vmem:[%s7012_s1 + $0xf58] sm:$0xff] }
  0xc2   : > { %3480 = vmatprep.subr.bf16.mxu0 %v4693_v1  ;;  %v297_v1 = vld [vmem:[%s7012_s1 + $0x258] sm:$0xff] }
  0xc3   : > { %3520 = vmatpush2.bf16.msra.mxu1 %v4964_v63  ;;  %v289_v63 = vld [vmem:[%s7012_s1 + $0x218] sm:$0xff] }
  0xc4   : > { %3521 = vmatprep.subr.bf16.mxu1 %v4949_v2  ;;  %v545_v2 = vld [vmem:[%s7012_s1 + $0xa18] sm:$0xff]  ;;  %v4567_v7 = vcombine.high %v289_v63, %v297_v1  ;;  %v4566_v14 = vcombine.low %v289_v63, %v297_v1 }
  0xc5   : > { %3481 = vmatpush2.bf16.msra.mxu0 %v4692_v8  ;;  %v4823_v8 = vcombine.high %v545_v2, %v553_v3  ;;  %v4822_v15 = vcombine.low %v545_v2, %v553_v3  ;;  %v697_v63 = vld [vmem:[%s7012_s1 + $0xed8] sm:$0xff] }
  0xc6   : > { %3482 = vmatprep.subr.bf16.mxu0 %v4677_v10  ;;  %v281_v10 = vld [vmem:[%s7012_s1 + $0x1d8] sm:$0xff] }
  0xc7   : > { %3522 = vmatpush2.bf16.msra.mxu1 %v4948_v9  ;;  %v273_v9 = vld [vmem:[%s7012_s1 + $0x198] sm:$0xff] }
  0xc8   : > { %3523 = vmatprep.subr.bf16.mxu1 %v4933_v11  ;;  %v529_v11 = vld [vmem:[%s7012_s1 + $0x998] sm:$0xff]  ;;  %v4551_v16 = vcombine.high %v273_v9, %v281_v10  ;;  %v4550_v23 = vcombine.low %v273_v9, %v281_v10 }
  0xc9   : > { %3483 = vmatpush2.bf16.msra.mxu0 %v4676_v18  ;;  %v4807_v18 = vcombine.high %v529_v11, %v537_v13  ;;  %v4806_v24 = vcombine.low %v529_v11, %v537_v13  ;;  %v681_v9 = vld [vmem:[%s7012_s1 + $0xe58] sm:$0xff] }
  0xca   : > { %3484 = vmatprep.subr.bf16.mxu0 %v4661_v20  ;;  %v265_v20 = vld [vmem:[%s7012_s1 + $0x158] sm:$0xff] }
  0xcb   : > { %3524 = vmatpush2.bf16.msra.mxu1 %v4932_v19  ;;  %v257_v19 = vld [vmem:[%s7012_s1 + $0x118] sm:$0xff] }
  0xcc   : > { %3525 = vmatprep.subr.bf16.mxu1 %v4917_v21  ;;  %v513_v21 = vld [vmem:[%s7012_s1 + $0x918] sm:$0xff]  ;;  %v4535_v25 = vcombine.high %v257_v19, %v265_v20  ;;  %v4534_v33 = vcombine.low %v257_v19, %v265_v20 }
  0xcd   : > { %3485 = vmatpush2.bf16.msra.mxu0 %v4660_v26  ;;  %v4791_v26 = vcombine.high %v513_v21, %v521_v22  ;;  %v4790_v34 = vcombine.low %v513_v21, %v521_v22  ;;  %v665_v19 = vld [vmem:[%s7012_s1 + $0xdd8] sm:$0xff] }
  0xce   : > { %3486 = vmatprep.subr.bf16.mxu0 %v4645_v29  ;;  %v249_v29 = vld [vmem:[%s7012_s1 + $0xd8] sm:$0xff] }
  0xcf   : > { %3526 = vmatpush2.bf16.msra.mxu1 %v4916_v27  ;;  %v241_v27 = vld [vmem:[%s7012_s1 + $0x98] sm:$0xff] }
  0xd0   : > { %3527 = vmatprep.subr.bf16.mxu1 %v4901_v30  ;;  %v497_v30 = vld [vmem:[%s7012_s1 + $0x898] sm:$0xff]  ;;  %v4519_v0 = vcombine.high %v241_v27, %v249_v29  ;;  %v4518_v39 = vcombine.low %v241_v27, %v249_v29 }
  0xd1   : > { %3487 = vmatpush2.bf16.msra.mxu0 %v4644_v35  ;;  %v4775_v35 = vcombine.high %v497_v30, %v505_v32  ;;  %v4774_v40 = vcombine.low %v497_v30, %v505_v32  ;;  %v649_v27 = vld [vmem:[%s7012_s1 + $0xd58] sm:$0xff] }
  0xd2   : > { %3488 = vmatprep.subr.bf16.mxu0 %v4629_v6  ;;  %v233_v6 = vld [vmem:[%s7012_s1 + $0x58] sm:$0xff] }
  0xd3   : > { %3528 = vmatpush2.bf16.msra.mxu1 %v4900_v36  ;;  %v225_v36 = vld [vmem:[%s7012_s1 + $0x18] sm:$0xff] }
  0xd4   : > { %3529 = vmatprep.subr.bf16.mxu1 %v4885_v37  ;;  %v481_v37 = vld [vmem:[%s7012_s1 + $0x818] sm:$0xff]  ;;  %v4503_v41 = vcombine.high %v225_v36, %v233_v6  ;;  %v4502_v47 = vcombine.low %v225_v36, %v233_v6 }
  0xd5   : > { %3489 = vmatpush2.bf16.msra.mxu0 %v4628_v42  ;;  %v4759_v42 = vcombine.high %v481_v37, %v489_v38  ;;  %v4758_v48 = vcombine.low %v481_v37, %v489_v38  ;;  %v633_v36 = vld [vmem:[%s7012_s1 + $0xcd8] sm:$0xff] }
  0xd6   : > { %3540 = vmatprep.subr.bf16.mxu0 %v4615_v44  ;;  %v473_v44 = vld [vmem:[%s7012_s1 + $0x7d8] sm:$0xff] }
  0xd7   : > { %3530 = vmatpush2.bf16.msra.mxu1 %v4884_v43  ;;  %v465_v43 = vld [vmem:[%s7012_s1 + $0x798] sm:$0xff] }
  0xd8   : > { %3581 = vmatprep.subr.bf16.mxu1 %v4871_v45  ;;  %3491 = vmatmul.mubr.bf16.vlgmr.msra.gmra.mxu0 %v5472_v28  ;;  %v721_v45 = vld [vmem:[%s7012_s1 + $0xf98] sm:$0xff]  ;;  %v4743_v49 = vcombine.high %v465_v43, %v473_v44  ;;  %v4742_v56 = vcombine.low %v465_v43, %v473_v44 }
  0xd9   : > { %3541 = vmatpush1.bf16.msra.mxu0 %v4614_v50  ;;  %3572 = vmatprep.mubr.bf16.mxu0 %v5354_v12  ;;  %v4999_v50 = vcombine.high %v721_v45, %v729_v46  ;;  %v4998_v57 = vcombine.low %v721_v45, %v729_v46  ;;  %v617_v43 = vld [vmem:[%s7012_s1 + $0xc58] sm:$0xff] }
  0xda   : > { %3532 = vmatmul.mubr.bf16.vlgmr.msra.gmra.mxu1 %v5482_v31  ;;  %3542 = vmatprep.subr.bf16.mxu0 %v4599_v52  ;;  %v457_v52 = vld [vmem:[%s7012_s1 + $0x758] sm:$0xff] }
  0xdb   : > { %3582 = vmatpush1.bf16.msra.mxu1 %v4870_v51  ;;  %3613 = vmatprep.mubr.bf16.mxu1 %v5365_v17  ;;  %v449_v51 = vld [vmem:[%s7012_s1 + $0x718] sm:$0xff] }
  0xdc   : > { %3583 = vmatprep.subr.bf16.mxu1 %v4855_v53  ;;  %v705_v53 = vld [vmem:[%s7012_s1 + $0xf18] sm:$0xff]  ;;  %v4727_v58 = vcombine.high %v449_v51, %v457_v52  ;;  %v4726_v1 = vcombine.low %v449_v51, %v457_v52  ;;  %v602_v51 = vld [vmem:[%s7012_s1 + $0xbe0] sm:$0xff] }
  0xdd   : > { %3543 = vmatpush1.bf16.msra.mxu0 %v4598_v59  ;;  %v4983_v59 = vcombine.high %v705_v53, %v713_v55  ;;  %v4982_v2 = vcombine.low %v705_v53, %v713_v55 }
  0xde   : > { %3544 = vmatprep.subr.bf16.mxu0 %v4583_v61  ;;  %v441_v61 = vld [vmem:[%s7012_s1 + $0x6d8] sm:$0xff] }
  0xdf   : > { %3584 = vmatpush1.bf16.msra.mxu1 %v4854_v60  ;;  %v433_v60 = vld [vmem:[%s7012_s1 + $0x698] sm:$0xff] }
  0xe0   : > { %3585 = vmatprep.subr.bf16.mxu1 %v4839_v62  ;;  %v689_v62 = vld [vmem:[%s7012_s1 + $0xe98] sm:$0xff]  ;;  %v4711_v3 = vcombine.high %v433_v60, %v441_v61  ;;  %v4710_v10 = vcombine.low %v433_v60, %v441_v61  ;;  %v586_v60 = vld [vmem:[%s7012_s1 + $0xb60] sm:$0xff] }
  0xe1   : > { %3545 = vmatpush1.bf16.msra.mxu0 %v4582_v4  ;;  %v4967_v4 = vcombine.high %v689_v62, %v697_v63  ;;  %v4966_v11 = vcombine.low %v689_v62, %v697_v63 }
  0xe2   : > { %3546 = vmatprep.subr.bf16.mxu0 %v4567_v7  ;;  %v425_v7 = vld [vmem:[%s7012_s1 + $0x658] sm:$0xff] }
  0xe3   : > { %3586 = vmatpush1.bf16.msra.mxu1 %v4838_v5  ;;  %v417_v5 = vld [vmem:[%s7012_s1 + $0x618] sm:$0xff] }
  0xe4   : > { %3587 = vmatprep.subr.bf16.mxu1 %v4823_v8  ;;  %v673_v8 = vld [vmem:[%s7012_s1 + $0xe18] sm:$0xff]  ;;  %v4695_v13 = vcombine.high %v417_v5, %v425_v7  ;;  %v4694_v20 = vcombine.low %v417_v5, %v425_v7  ;;  %v562_v5 = vld [vmem:[%s7012_s1 + $0xaa0] sm:$0xff] }
  0xe5   : > { %3547 = vmatpush1.bf16.msra.mxu0 %v4566_v14  ;;  %v4951_v14 = vcombine.high %v673_v8, %v681_v9  ;;  %v4950_v21 = vcombine.low %v673_v8, %v681_v9  ;;  %v570_v7 = vld [vmem:[%s7012_s1 + $0xae0] sm:$0xff] }
  0xe6   : > { %3548 = vmatprep.subr.bf16.mxu0 %v4551_v16  ;;  %v409_v16 = vld [vmem:[%s7012_s1 + $0x5d8] sm:$0xff] }
  0xe7   : > { %3588 = vmatpush1.bf16.msra.mxu1 %v4822_v15  ;;  %v401_v15 = vld [vmem:[%s7012_s1 + $0x598] sm:$0xff] }
  0xe8   : > { %3589 = vmatprep.subr.bf16.mxu1 %v4807_v18  ;;  %v657_v18 = vld [vmem:[%s7012_s1 + $0xd98] sm:$0xff]  ;;  %v4679_v22 = vcombine.high %v401_v15, %v409_v16  ;;  %v4678_v29 = vcombine.low %v401_v15, %v409_v16  ;;  %v4841_v16 = vcombine.high %v562_v5, %v570_v7 }
  0xe9   : > { %3549 = vmatpush1.bf16.msra.mxu0 %v4550_v23  ;;  %v4935_v23 = vcombine.high %v657_v18, %v665_v19  ;;  %v4934_v30 = vcombine.low %v657_v18, %v665_v19  ;;  %v290_v18 = vld [vmem:[%s7012_s1 + $0x220] sm:$0xff] }
  0xea   : > { %3550 = vmatprep.subr.bf16.mxu0 %v4535_v25  ;;  %v393_v25 = vld [vmem:[%s7012_s1 + $0x558] sm:$0xff]  ;;  %v298_v19 = vld [vmem:[%s7012_s1 + $0x260] sm:$0xff] }
  0xeb   : > { %3590 = vmatpush1.bf16.msra.mxu1 %v4806_v24  ;;  %v385_v24 = vld [vmem:[%s7012_s1 + $0x518] sm:$0xff] }
  0xec   : > { %3591 = vmatprep.subr.bf16.mxu1 %v4791_v26  ;;  %v641_v26 = vld [vmem:[%s7012_s1 + $0xd18] sm:$0xff]  ;;  %v4663_v32 = vcombine.high %v385_v24, %v393_v25  ;;  %v4662_v6 = vcombine.low %v385_v24, %v393_v25 }
  0xed   : > { %3551 = vmatpush1.bf16.msra.mxu0 %v4534_v33  ;;  %v4919_v33 = vcombine.high %v641_v26, %v649_v27  ;;  %v4918_v37 = vcombine.low %v641_v26, %v649_v27 }
  0xee   : > { %3552 = vmatprep.subr.bf16.mxu0 %v4519_v0  ;;  %v377_v0 = vld [vmem:[%s7012_s1 + $0x4d8] sm:$0xff] }
  0xef   : > { %3592 = vmatpush1.bf16.msra.mxu1 %v4790_v34  ;;  %v369_v34 = vld [vmem:[%s7012_s1 + $0x498] sm:$0xff] }
  0xf0   : > { %3593 = vmatprep.subr.bf16.mxu1 %v4775_v35  ;;  %v625_v35 = vld [vmem:[%s7012_s1 + $0xc98] sm:$0xff]  ;;  %v4647_v38 = vcombine.high %v369_v34, %v377_v0  ;;  %v4646_v44 = vcombine.low %v369_v34, %v377_v0  ;;  %v274_v34 = vld [vmem:[%s7012_s1 + $0x1a0] sm:$0xff] }
  0xf1   : > { %3553 = vmatpush1.bf16.msra.mxu0 %v4518_v39  ;;  %v4903_v39 = vcombine.high %v625_v35, %v633_v36  ;;  %v4902_v45 = vcombine.low %v625_v35, %v633_v36  ;;  %v282_v0 = vld [vmem:[%s7012_s1 + $0x1e0] sm:$0xff] }
  0xf2   : > { %3554 = vmatprep.subr.bf16.mxu0 %v4503_v41  ;;  %v361_v41 = vld [vmem:[%s7012_s1 + $0x458] sm:$0xff]  ;;  %v530_v35 = vld [vmem:[%s7012_s1 + $0x9a0] sm:$0xff] }
  0xf3   : > { %3594 = vmatpush1.bf16.msra.mxu1 %v4774_v40  ;;  %v353_v40 = vld [vmem:[%s7012_s1 + $0x418] sm:$0xff]  ;;  %v538_v36 = vld [vmem:[%s7012_s1 + $0x9e0] sm:$0xff] }
  0xf4   : > { %3595 = vmatprep.subr.bf16.mxu1 %v4759_v42  ;;  %v609_v42 = vld [vmem:[%s7012_s1 + $0xc18] sm:$0xff]  ;;  %v4631_v46 = vcombine.high %v353_v40, %v361_v41  ;;  %v4630_v52 = vcombine.low %v353_v40, %v361_v41  ;;  %v258_v40 = vld [vmem:[%s7012_s1 + $0x120] sm:$0xff] }
  0xf5   : > { %3555 = vmatpush1.bf16.msra.mxu0 %v4502_v47  ;;  %v4887_v47 = vcombine.high %v609_v42, %v617_v43  ;;  %v4886_v53 = vcombine.low %v609_v42, %v617_v43  ;;  %v266_v41 = vld [vmem:[%s7012_s1 + $0x160] sm:$0xff] }
  0xf6   : > { %3556 = vmatprep.subr.bf16.mxu0 %v4743_v49  ;;  %v346_v49 = vld [vmem:[%s7012_s1 + $0x3e0] sm:$0xff] }
  0xf7   : > { %3596 = vmatpush1.bf16.msra.mxu1 %v4758_v48  ;;  %v338_v48 = vld [vmem:[%s7012_s1 + $0x3a0] sm:$0xff] }
  0xf8   : > { %3597 = vmatprep.subr.bf16.mxu1 %v4999_v50  ;;  %v594_v50 = vld [vmem:[%s7012_s1 + $0xba0] sm:$0xff]  ;;  %v4617_v55 = vcombine.high %v338_v48, %v346_v49  ;;  %v4616_v61 = vcombine.low %v338_v48, %v346_v49 }
  0xf9   : > { %3557 = vmatpush2.bf16.msra.mxu0 %v4742_v56  ;;  %v4873_v56 = vcombine.high %v594_v50, %v602_v51  ;;  %v4872_v62 = vcombine.low %v594_v50, %v602_v51  ;;  %v514_v42 = vld [vmem:[%s7012_s1 + $0x920] sm:$0xff] }
  0xfa   : > { %3558 = vmatprep.subr.bf16.mxu0 %v4727_v58  ;;  %v330_v58 = vld [vmem:[%s7012_s1 + $0x360] sm:$0xff] }
  0xfb   : > { %3598 = vmatpush2.bf16.msra.mxu1 %v4998_v57  ;;  %v322_v57 = vld [vmem:[%s7012_s1 + $0x320] sm:$0xff] }
  0xfc   : > { %3599 = vmatprep.subr.bf16.mxu1 %v4983_v59  ;;  %v578_v59 = vld [vmem:[%s7012_s1 + $0xb20] sm:$0xff]  ;;  %v4601_v63 = vcombine.high %v322_v57, %v330_v58  ;;  %v4600_v9 = vcombine.low %v322_v57, %v330_v58 }
  0xfd   : > { %3559 = vmatpush2.bf16.msra.mxu0 %v4726_v1  ;;  %v4857_v1 = vcombine.high %v578_v59, %v586_v60  ;;  %v522_v43 = vld [vmem:[%s7012_s1 + $0x960] sm:$0xff] }
  0xfe   : > { %3560 = vmatprep.subr.bf16.mxu0 %v4711_v3  ;;  %v314_v3 = vld [vmem:[%s7012_s1 + $0x2e0] sm:$0xff] }
  0xff   : > { %3600 = vmatpush2.bf16.msra.mxu1 %v4982_v2  ;;  %v306_v2 = vld [vmem:[%s7012_s1 + $0x2a0] sm:$0xff] }
 0x100   : > { %3601 = vmatprep.subr.bf16.mxu1 %v4967_v4  ;;  %v4584_v25 = vcombine.low %v306_v2, %v314_v3  ;;  %v242_v48 = vld [vmem:[%s7012_s1 + $0xa0] sm:$0xff] }
 0x101   : > { %3561 = vmatpush2.bf16.msra.mxu0 %v4710_v10  ;;  %v250_v49 = vld [vmem:[%s7012_s1 + $0xe0] sm:$0xff] }
 0x102   : > { %3562 = vmatprep.subr.bf16.mxu0 %v4695_v13  ;;  %v4856_v13 = vcombine.low %v578_v59, %v586_v60  ;;  %v498_v50 = vld [vmem:[%s7012_s1 + $0x8a0] sm:$0xff] }
 0x103   : > { %3602 = vmatpush2.bf16.msra.mxu1 %v4966_v11  ;;  %v506_v51 = vld [vmem:[%s7012_s1 + $0x8e0] sm:$0xff] }
 0x104   : > { %3603 = vmatprep.subr.bf16.mxu1 %v4951_v14  ;;  %v4585_v14 = vcombine.high %v306_v2, %v314_v3  ;;  %v226_v57 = vld [vmem:[%s7012_s1 + $0x20] sm:$0xff] }
 0x105   : > { %3563 = vmatpush2.bf16.msra.mxu0 %v4694_v20  ;;  %v234_v58 = vld [vmem:[%s7012_s1 + $0x60] sm:$0xff] }
 0x106   : > { %3564 = vmatprep.subr.bf16.mxu0 %v4679_v22  ;;  %v546_v22 = vld [vmem:[%s7012_s1 + $0xa20] sm:$0xff] }
 0x107   : > { %3604 = vmatpush2.bf16.msra.mxu1 %v4950_v21  ;;  %v482_v59 = vld [vmem:[%s7012_s1 + $0x820] sm:$0xff] }
 0x108   : > { %3605 = vmatprep.subr.bf16.mxu1 %v4935_v23  ;;  %v554_v23 = vld [vmem:[%s7012_s1 + $0xa60] sm:$0xff] }
 0x109   : > { %3565 = vmatpush2.bf16.msra.mxu0 %v4678_v29  ;;  %v4840_v29 = vcombine.low %v562_v5, %v570_v7  ;;  %v490_v60 = vld [vmem:[%s7012_s1 + $0x860] sm:$0xff]  ;;  %v4504_v7 = vcombine.low %v226_v57, %v234_v58 }
 0x10a   : > { %3566 = vmatprep.subr.bf16.mxu0 %v4663_v32  ;;  %v466_v2 = vld [vmem:[%s7012_s1 + $0x7a0] sm:$0xff] }
 0x10b   : > { %3606 = vmatpush2.bf16.msra.mxu1 %v4934_v30  ;;  %v4569_v30 = vcombine.high %v290_v18, %v298_v19  ;;  %v474_v3 = vld [vmem:[%s7012_s1 + $0x7e0] sm:$0xff] }
 0x10c   : > { %3607 = vmatprep.subr.bf16.mxu1 %v4919_v33  ;;  %v4825_v33 = vcombine.high %v546_v22, %v554_v23  ;;  %v730_v5 = vld [vmem:[%s7012_s1 + $0xfe0] sm:$0xff] }
 0x10d   : > { %3567 = vmatpush2.bf16.msra.mxu0 %v4662_v6  ;;  %v4568_v6 = vcombine.low %v290_v18, %v298_v19  ;;  %v4744_v18 = vcombine.low %v466_v2, %v474_v3 }
 0x10e   : > { %3568 = vmatprep.subr.bf16.mxu0 %v4647_v38  ;;  %v4553_v38 = vcombine.high %v274_v34, %v282_v0 }
 0x10f   : > { %3608 = vmatpush2.bf16.msra.mxu1 %v4918_v37  ;;  %v4824_v37 = vcombine.low %v546_v22, %v554_v23  ;;  %v434_v23 = vld [vmem:[%s7012_s1 + $0x6a0] sm:$0xff] }
 0x110   : > { %3609 = vmatprep.subr.bf16.mxu1 %v4903_v39  ;;  %v4809_v39 = vcombine.high %v530_v35, %v538_v36 }
 0x111   : > { %3569 = vmatpush2.bf16.msra.mxu0 %v4646_v44  ;;  %v4552_v44 = vcombine.low %v274_v34, %v282_v0  ;;  %v418_v34 = vld [vmem:[%s7012_s1 + $0x620] sm:$0xff] }
 0x112   : > { %3570 = vmatprep.subr.bf16.mxu0 %v4631_v46  ;;  %v4537_v46 = vcombine.high %v258_v40, %v266_v41  ;;  %v426_v0 = vld [vmem:[%s7012_s1 + $0x660] sm:$0xff] }
 0x113   : > { %3610 = vmatpush2.bf16.msra.mxu1 %v4902_v45  ;;  %v4808_v45 = vcombine.low %v530_v35, %v538_v36  ;;  %v674_v35 = vld [vmem:[%s7012_s1 + $0xe20] sm:$0xff] }
 0x114   : > { %3611 = vmatprep.subr.bf16.mxu1 %v4887_v47  ;;  %v4793_v47 = vcombine.high %v514_v42, %v522_v43  ;;  %v682_v36 = vld [vmem:[%s7012_s1 + $0xe60] sm:$0xff] }
 0x115   : > { %3571 = vmatpush2.bf16.msra.mxu0 %v4630_v52  ;;  %v4536_v52 = vcombine.low %v258_v40, %v266_v41  ;;  %v402_v40 = vld [vmem:[%s7012_s1 + $0x5a0] sm:$0xff] }
 0x116   : > { %3622 = vmatprep.subr.bf16.mxu0 %v4617_v55  ;;  %v4521_v55 = vcombine.high %v242_v48, %v250_v49  ;;  %v410_v41 = vld [vmem:[%s7012_s1 + $0x5e0] sm:$0xff] }
 0x117   : > { %3612 = vmatpush2.bf16.msra.mxu1 %v4886_v53  ;;  %v4792_v53 = vcombine.low %v514_v42, %v522_v43  ;;  %v658_v42 = vld [vmem:[%s7012_s1 + $0xda0] sm:$0xff] }
 0x118   : > { %3663 = vmatprep.subr.bf16.mxu1 %v4873_v56  ;;  %v3328_v4 = vpop.f32.mrf.mxu0  ;;  %3573 = vmatmul.mubr.bf16.vlgmr.msra.gmra.mxu0 %v5472_v28  ;;  %v4777_v56 = vcombine.high %v498_v50, %v506_v51  ;;  %v666_v43 = vld [vmem:[%s7012_s1 + $0xde0] sm:$0xff] }
 0x119   : > { %3623 = vmatpush1.bf16.msra.mxu0 %v4616_v61  ;;  %3654 = vmatprep.mubr.bf16.mxu0 %v5354_v12  ;;  %v4520_v61 = vcombine.low %v242_v48, %v250_v49  ;;  %v386_v48 = vld [vmem:[%s7012_s1 + $0x520] sm:$0xff] }
 0x11a   : > { %v3369_v8 = vpop.f32.mrf.mxu1  ;;  %3614 = vmatmul.mubr.bf16.vlgmr.msra.gmra.mxu1 %v5482_v31  ;;  %v3330_v11 = vpop.f32.mrf.mxu0  ;;  %3624 = vmatprep.subr.bf16.mxu0 %v4601_v63  ;;  %v4505_v63 = vcombine.high %v226_v57, %v234_v58  ;;  %v394_v49 = vld [vmem:[%s7012_s1 + $0x560] sm:$0xff] }
 0x11b   : > { %v6086_v10 = vadd.f32 %v3369_v8, %v3328_v4  ;;  %3664 = vmatpush1.bf16.msra.mxu1 %v4872_v62  ;;  %3695 = vmatprep.mubr.bf16.mxu1 %v5365_v17  ;;  %v4776_v62 = vcombine.low %v498_v50, %v506_v51  ;;  %v722_v4 = vld [vmem:[%s7012_s1 + $0xfa0] sm:$0xff]  ;;  %v4760_v8 = vcombine.low %v482_v59, %v490_v60 }
 0x11c   : > { %v3371_v15 = vpop.f32.mrf.mxu1  ;;  %3665 = vmatprep.subr.bf16.mxu1 %v4857_v1  ;;  %v3332_v21 = vpop.f32.mrf.mxu0  ;;  %v4761_v1 = vcombine.high %v482_v59, %v490_v60  ;;  %v5000_v19 = vcombine.low %v722_v4, %v730_v5  ;;  %v642_v50 = vld [vmem:[%s7012_s1 + $0xd20] sm:$0xff] }
 0x11d   : > { %v6095_v20 = vadd.f32 %v3371_v15, %v3330_v11  ;;  %3625 = vmatpush1.bf16.msra.mxu0 %v4600_v9  ;;  %v4745_v9 = vcombine.high %v466_v2, %v474_v3  ;;  %v5001_v11 = vcombine.high %v722_v4, %v730_v5  ;;  %v706_v15 = vld [vmem:[%s7012_s1 + $0xf20] sm:$0xff] }
 0x11e   : > { %v3373_v24 = vpop.f32.mrf.mxu1  ;;  %v3333_v27 = vpop.f32.mrf.mxu0  ;;  %3626 = vmatprep.subr.bf16.mxu0 %v4585_v14  ;;  %v458_v14 = vld [vmem:[%s7012_s1 + $0x760] sm:$0xff] }
 0x11f   : > { %v3966_v26 = vcombine.low %v6086_v10, %v6095_v20  ;;  %3666 = vmatpush1.bf16.msra.mxu1 %v4856_v13  ;;  %v450_v13 = vld [vmem:[%s7012_s1 + $0x720] sm:$0xff] }
 0x120   : > { %v3374_v32 = vpop.f32.mrf.mxu1  ;;  %3667 = vmatprep.subr.bf16.mxu1 %v4841_v16  ;;  %v714_v16 = vld [vmem:[%s7012_s1 + $0xf60] sm:$0xff]  ;;  %v4729_v21 = vcombine.high %v450_v13, %v458_v14 }
 0x121   : > { %3627 = vmatpush1.bf16.msra.mxu0 %v4584_v25  ;;  %v4985_v22 = vcombine.high %v706_v15, %v714_v16  ;;  %v442_v24 = vld [vmem:[%s7012_s1 + $0x6e0] sm:$0xff] }
 0x122   : > { %3628 = vmatprep.subr.bf16.mxu0 %v4569_v30  ;;  %v690_v25 = vld [vmem:[%s7012_s1 + $0xea0] sm:$0xff]  ;;  %v4984_v30 = vcombine.low %v706_v15, %v714_v16  ;;  %v4713_v32 = vcombine.high %v434_v23, %v442_v24  ;;  %v595_v15 = vld [vmem:[%s7012_s1 + $0xba8] sm:$0xff] }
 0x123   : > { %3668 = vmatpush1.bf16.msra.mxu1 %v4840_v29  ;;  %v698_v27 = vld [vmem:[%s7012_s1 + $0xee0] sm:$0xff]  ;;  %v4728_v29 = vcombine.low %v450_v13, %v458_v14  ;;  %v339_v13 = vld [vmem:[%s7012_s1 + $0x3a8] sm:$0xff] }
 0x124   : > { %3669 = vmatprep.subr.bf16.mxu1 %v4825_v33  ;;  %v4969_v33 = vcombine.high %v690_v25, %v698_v27  ;;  %v650_v51 = vld [vmem:[%s7012_s1 + $0xd60] sm:$0xff]  ;;  %v347_v14 = vld [vmem:[%s7012_s1 + $0x3e8] sm:$0xff] }
 0x125   : > { %3629 = vmatpush1.bf16.msra.mxu0 %v4568_v6  ;;  %v4712_v6 = vcombine.low %v434_v23, %v442_v24  ;;  %v370_v57 = vld [vmem:[%s7012_s1 + $0x4a0] sm:$0xff]  ;;  %v603_v16 = vld [vmem:[%s7012_s1 + $0xbe8] sm:$0xff] }
 0x126   : > { %3630 = vmatprep.subr.bf16.mxu0 %v4553_v38  ;;  %v4697_v38 = vcombine.high %v418_v34, %v426_v0  ;;  %v378_v58 = vld [vmem:[%s7012_s1 + $0x4e0] sm:$0xff]  ;;  %v323_v23 = vld [vmem:[%s7012_s1 + $0x328] sm:$0xff] }
 0x127   : > { %3670 = vmatpush1.bf16.msra.mxu1 %v4824_v37  ;;  %v4968_v37 = vcombine.low %v690_v25, %v698_v27  ;;  %v626_v59 = vld [vmem:[%s7012_s1 + $0xca0] sm:$0xff]  ;;  %v331_v24 = vld [vmem:[%s7012_s1 + $0x368] sm:$0xff] }
 0x128   : > { %3671 = vmatprep.subr.bf16.mxu1 %v4809_v39  ;;  %v4953_v39 = vcombine.high %v674_v35, %v682_v36  ;;  %v634_v60 = vld [vmem:[%s7012_s1 + $0xce0] sm:$0xff]  ;;  %v579_v25 = vld [vmem:[%s7012_s1 + $0xb28] sm:$0xff] }
 0x129   : > { %3631 = vmatpush1.bf16.msra.mxu0 %v4552_v44  ;;  %v4696_v44 = vcombine.low %v418_v34, %v426_v0  ;;  %v354_v2 = vld [vmem:[%s7012_s1 + $0x420] sm:$0xff]  ;;  %v587_v27 = vld [vmem:[%s7012_s1 + $0xb68] sm:$0xff] }
 0x12a   : > { %3632 = vmatprep.subr.bf16.mxu0 %v4537_v46  ;;  %v4681_v46 = vcombine.high %v402_v40, %v410_v41  ;;  %v362_v3 = vld [vmem:[%s7012_s1 + $0x460] sm:$0xff]  ;;  %v307_v34 = vld [vmem:[%s7012_s1 + $0x2a8] sm:$0xff] }
 0x12b   : > { %3672 = vmatpush1.bf16.msra.mxu1 %v4808_v45  ;;  %v4952_v45 = vcombine.low %v674_v35, %v682_v36  ;;  %v610_v4 = vld [vmem:[%s7012_s1 + $0xc20] sm:$0xff]  ;;  %v315_v0 = vld [vmem:[%s7012_s1 + $0x2e8] sm:$0xff] }
 0x12c   : > { %3673 = vmatprep.subr.bf16.mxu1 %v4793_v47  ;;  %v4937_v47 = vcombine.high %v658_v42, %v666_v43  ;;  %v618_v5 = vld [vmem:[%s7012_s1 + $0xc60] sm:$0xff]  ;;  %v563_v36 = vld [vmem:[%s7012_s1 + $0xaa8] sm:$0xff] }
 0x12d   : > { %3633 = vmatpush1.bf16.msra.mxu0 %v4536_v52  ;;  %v4680_v52 = vcombine.low %v402_v40, %v410_v41  ;;  %v4858_v41 = vcombine.low %v579_v25, %v587_v27 }
 0x12e   : > { %3634 = vmatprep.subr.bf16.mxu0 %v4521_v55  ;;  %v4665_v55 = vcombine.high %v386_v48, %v394_v49 }
 0x12f   : > { %3674 = vmatpush1.bf16.msra.mxu1 %v4792_v53  ;;  %v4936_v53 = vcombine.low %v658_v42, %v666_v43  ;;  %v4587_v42 = vcombine.high %v307_v34, %v315_v0 }
 0x130   : > { %3675 = vmatprep.subr.bf16.mxu1 %v4777_v56  ;;  %v4921_v56 = vcombine.high %v642_v50, %v650_v51 }
 0x131   : > { %3635 = vmatpush1.bf16.msra.mxu0 %v4520_v61  ;;  %v4664_v61 = vcombine.low %v386_v48, %v394_v49  ;;  %v547_v49 = vld [vmem:[%s7012_s1 + $0xa28] sm:$0xff] }
 0x132   : > { %3636 = vmatprep.subr.bf16.mxu0 %v4505_v63  ;;  %v4649_v63 = vcombine.high %v370_v57, %v378_v58 }
 0x133   : > { %3676 = vmatpush1.bf16.msra.mxu1 %v4776_v62  ;;  %v4920_v62 = vcombine.low %v642_v50, %v650_v51  ;;  %v555_v50 = vld [vmem:[%s7012_s1 + $0xa68] sm:$0xff] }
 0x134   : > { %3677 = vmatprep.subr.bf16.mxu1 %v4761_v1  ;;  %v4905_v1 = vcombine.high %v626_v59, %v634_v60  ;;  %v4826_v10 = vcombine.low %v547_v49, %v555_v50 }
 0x135   : > { %3637 = vmatpush1.bf16.msra.mxu0 %v4504_v7  ;;  %v4648_v7 = vcombine.low %v370_v57, %v378_v58 }
 0x136   : > { %3638 = vmatprep.subr.bf16.mxu0 %v4745_v9  ;;  %v4633_v9 = vcombine.high %v354_v2, %v362_v3 }
 0x137   : > { %3678 = vmatpush1.bf16.msra.mxu1 %v4760_v8  ;;  %v4904_v8 = vcombine.low %v626_v59, %v634_v60  ;;  %v4827_v59 = vcombine.high %v547_v49, %v555_v50  ;;  %v275_v60 = vld [vmem:[%s7012_s1 + $0x1a8] sm:$0xff] }
 0x138   : > { %3679 = vmatprep.subr.bf16.mxu1 %v5001_v11  ;;  %v4889_v11 = vcombine.high %v610_v4, %v618_v5 }
 0x139   : > { %3639 = vmatpush2.bf16.msra.mxu0 %v4744_v18  ;;  %v4632_v18 = vcombine.low %v354_v2, %v362_v3  ;;  %v539_v2 = vld [vmem:[%s7012_s1 + $0x9e8] sm:$0xff] }
 0x13a   : > { %3640 = vmatprep.subr.bf16.mxu0 %v4729_v21  ;;  %v4619_v21 = vcombine.high %v339_v13, %v347_v14 }
 0x13b   : > { %3680 = vmatpush2.bf16.msra.mxu1 %v5000_v19  ;;  %v4888_v19 = vcombine.low %v610_v4, %v618_v5  ;;  %v259_v5 = vld [vmem:[%s7012_s1 + $0x128] sm:$0xff] }
 0x13c   : > { %3681 = vmatprep.subr.bf16.mxu1 %v4985_v22  ;;  %v4875_v22 = vcombine.high %v595_v15, %v603_v16 }
 0x13d   : > { %3641 = vmatpush2.bf16.msra.mxu0 %v4728_v29  ;;  %v4618_v29 = vcombine.low %v339_v13, %v347_v14 }
 0x13e   : > { %3642 = vmatprep.subr.bf16.mxu0 %v4713_v32  ;;  %v4603_v32 = vcombine.high %v323_v23, %v331_v24 }
 0x13f   : > { %3682 = vmatpush2.bf16.msra.mxu1 %v4984_v30  ;;  %v4874_v30 = vcombine.low %v595_v15, %v603_v16  ;;  %v243_v16 = vld [vmem:[%s7012_s1 + $0xa8] sm:$0xff] }
 0x140   : > { %3683 = vmatprep.subr.bf16.mxu1 %v4969_v33  ;;  %v4859_v33 = vcombine.high %v579_v25, %v587_v27  ;;  %v227_v27 = vld [vmem:[%s7012_s1 + $0x28] sm:$0xff] }
 0x141   : > { %3643 = vmatpush2.bf16.msra.mxu0 %v4712_v6  ;;  %v571_v6 = vld [vmem:[%s7012_s1 + $0xae8] sm:$0xff] }
 0x142   : > { %3644 = vmatprep.subr.bf16.mxu0 %v4697_v38  ;;  %v4602_v38 = vcombine.low %v323_v23, %v331_v24 }
 0x143   : > { %3684 = vmatpush2.bf16.msra.mxu1 %v4968_v37 }
 0x144   : > { %3685 = vmatprep.subr.bf16.mxu1 %v4953_v39 }
 0x145   : > { %3645 = vmatpush2.bf16.msra.mxu0 %v4696_v44  ;;  %v4843_v44 = vcombine.high %v563_v36, %v571_v6 }
 0x146   : > { %3646 = vmatprep.subr.bf16.mxu0 %v4681_v46  ;;  %v299_v46 = vld [vmem:[%s7012_s1 + $0x268] sm:$0xff] }
 0x147   : > { %3686 = vmatpush2.bf16.msra.mxu1 %v4952_v45  ;;  %v291_v45 = vld [vmem:[%s7012_s1 + $0x228] sm:$0xff] }
 0x148   : > { %3687 = vmatprep.subr.bf16.mxu1 %v4937_v47  ;;  %v4571_v57 = vcombine.high %v291_v45, %v299_v46  ;;  %v4570_v3 = vcombine.low %v291_v45, %v299_v46  ;;  %v707_v45 = vld [vmem:[%s7012_s1 + $0xf28] sm:$0xff] }
 0x149   : > { %3647 = vmatpush2.bf16.msra.mxu0 %v4680_v52  ;;  %v4586_v52 = vcombine.low %v307_v34, %v315_v0  ;;  %v715_v46 = vld [vmem:[%s7012_s1 + $0xf68] sm:$0xff] }
 0x14a   : > { %3648 = vmatprep.subr.bf16.mxu0 %v4665_v55  ;;  %v4987_v50 = vcombine.high %v707_v45, %v715_v46 }
 0x14b   : > { %3688 = vmatpush2.bf16.msra.mxu1 %v4936_v53 }
 0x14c   : > { %3689 = vmatprep.subr.bf16.mxu1 %v4921_v56  ;;  %v4842_v56 = vcombine.low %v563_v36, %v571_v6  ;;  %v467_v36 = vld [vmem:[%s7012_s1 + $0x7a8] sm:$0xff] }
 0x14d   : > { %3649 = vmatpush2.bf16.msra.mxu0 %v4664_v61  ;;  %v283_v61 = vld [vmem:[%s7012_s1 + $0x1e8] sm:$0xff] }
 0x14e   : > { %3650 = vmatprep.subr.bf16.mxu0 %v4649_v63  ;;  %v4555_v20 = vcombine.high %v275_v60, %v283_v61  ;;  %v475_v6 = vld [vmem:[%s7012_s1 + $0x7e8] sm:$0xff] }
 0x14f   : > { %3690 = vmatpush2.bf16.msra.mxu1 %v4920_v62  ;;  %v6312_v62 = vrot.slane %v3966_v26, %v5320_v54 }
 0x150   : > { %3691 = vmatprep.subr.bf16.mxu1 %v4905_v1  ;;  %v531_v1 = vld [vmem:[%s7012_s1 + $0x9a8] sm:$0xff] }
 0x151   : > { %3651 = vmatpush2.bf16.msra.mxu0 %v4648_v7  ;;  %v4811_v26 = vcombine.high %v531_v1, %v539_v2  ;;  %v267_v7 = vld [vmem:[%s7012_s1 + $0x168] sm:$0xff]  ;;  %v4810_v13 = vcombine.low %v531_v1, %v539_v2 }
 0x152   : > { %3652 = vmatprep.subr.bf16.mxu0 %v4633_v9  ;;  %v523_v9 = vld [vmem:[%s7012_s1 + $0x968] sm:$0xff]  ;;  %v4539_v14 = vcombine.high %v259_v5, %v267_v7 }
 0x153   : > { %3692 = vmatpush2.bf16.msra.mxu1 %v4904_v8  ;;  %v515_v8 = vld [vmem:[%s7012_s1 + $0x928] sm:$0xff] }
 0x154   : > { %3693 = vmatprep.subr.bf16.mxu1 %v4889_v11  ;;  %v4554_v11 = vcombine.low %v275_v60, %v283_v61  ;;  %v4795_v15 = vcombine.high %v515_v8, %v523_v9  ;;  %v4794_v23 = vcombine.low %v515_v8, %v523_v9  ;;  %v419_v60 = vld [vmem:[%s7012_s1 + $0x628] sm:$0xff] }
 0x155   : > { %3653 = vmatpush2.bf16.msra.mxu0 %v4632_v18  ;;  %v251_v18 = vld [vmem:[%s7012_s1 + $0xe8] sm:$0xff] }
 0x156   : > { %3704 = vmatprep.subr.bf16.mxu0 %v4619_v21  ;;  %v507_v21 = vld [vmem:[%s7012_s1 + $0x8e8] sm:$0xff]  ;;  %v4523_v24 = vcombine.high %v243_v16, %v251_v18 }
 0x157   : > { %3694 = vmatpush2.bf16.msra.mxu1 %v4888_v19  ;;  %v499_v19 = vld [vmem:[%s7012_s1 + $0x8a8] sm:$0xff] }
 0x158   : > { %3745 = vmatprep.subr.bf16.mxu1 %v4875_v22  ;;  %v3410_v35 = vpop.f32.mrf.mxu0  ;;  %3655 = vmatmul.mubr.bf16.vlgmr.msra.gmra.mxu0 %v5472_v28  ;;  %v4538_v22 = vcombine.low %v259_v5, %v267_v7  ;;  %v4779_v25 = vcombine.high %v499_v19, %v507_v21  ;;  %v4778_v34 = vcombine.low %v499_v19, %v507_v21  ;;  %v427_v61 = vld [vmem:[%s7012_s1 + $0x668] sm:$0xff] }
 0x159   : > { %3705 = vmatpush1.bf16.msra.mxu0 %v4618_v29  ;;  %3736 = vmatprep.mubr.bf16.mxu0 %v5354_v12  ;;  %v235_v29 = vld [vmem:[%s7012_s1 + $0x68] sm:$0xff] }
 0x15a   : > { %v3451_v37 = vpop.f32.mrf.mxu1  ;;  %3696 = vmatmul.mubr.bf16.vlgmr.msra.gmra.mxu1 %v5482_v31  ;;  %v3412_v40 = vpop.f32.mrf.mxu0  ;;  %3706 = vmatprep.subr.bf16.mxu0 %v4603_v32  ;;  %v491_v32 = vld [vmem:[%s7012_s1 + $0x868] sm:$0xff]  ;;  %v4507_v0 = vcombine.high %v227_v27, %v235_v29 }
 0x15b   : > { %v3452_v39 = vadd.f32 %v3451_v37, %v3410_v35  ;;  %3746 = vmatpush1.bf16.msra.mxu1 %v4874_v30  ;;  %3777 = vmatprep.mubr.bf16.mxu1 %v5365_v17  ;;  %v483_v30 = vld [vmem:[%s7012_s1 + $0x828] sm:$0xff] }
 0x15c   : > { %v3453_v43 = vpop.f32.mrf.mxu1  ;;  %3747 = vmatprep.subr.bf16.mxu1 %v4859_v33  ;;  %v3414_v48 = vpop.f32.mrf.mxu0  ;;  %v4522_v33 = vcombine.low %v243_v16, %v251_v18  ;;  %v4763_v35 = vcombine.high %v483_v30, %v491_v32  ;;  %v723_v37 = vld [vmem:[%s7012_s1 + $0xfa8] sm:$0xff] }
 0x15d   : > { %v3454_v47 = vadd.f32 %v3453_v43, %v3412_v40  ;;  %3707 = vmatpush1.bf16.msra.mxu0 %v4602_v38  ;;  %v731_v38 = vld [vmem:[%s7012_s1 + $0xfe8] sm:$0xff]  ;;  %v4762_v40 = vcombine.low %v483_v30, %v491_v32 }
 0x15e   : > { %v3455_v51 = vpop.f32.mrf.mxu1  ;;  %v3415_v55 = vpop.f32.mrf.mxu0  ;;  %3708 = vmatprep.subr.bf16.mxu0 %v4587_v42  ;;  %v5003_v42 = vcombine.high %v723_v37, %v731_v38  ;;  %v451_v43 = vld [vmem:[%s7012_s1 + $0x728] sm:$0xff]  ;;  %v5002_v48 = vcombine.low %v723_v37, %v731_v38 }
 0x15f   : > { %v3967_v53 = vcombine.low %v3452_v39, %v3454_v47  ;;  %3748 = vmatpush1.bf16.msra.mxu1 %v4858_v41  ;;  %v4506_v39 = vcombine.low %v227_v27, %v235_v29  ;;  %v4747_v41 = vcombine.high %v467_v36, %v475_v6  ;;  %v4746_v47 = vcombine.low %v467_v36, %v475_v6  ;;  %v435_v51 = vld [vmem:[%s7012_s1 + $0x6a8] sm:$0xff] }
 0x160   : > { %v3456_v58 = vpop.f32.mrf.mxu1  ;;  %3749 = vmatprep.subr.bf16.mxu1 %v4843_v44  ;;  %v459_v44 = vld [vmem:[%s7012_s1 + $0x768] sm:$0xff] }
 0x161   : > { %v6315_v63 = vrot.slane %v3967_v53, %v5320_v54  ;;  %3709 = vmatpush1.bf16.msra.mxu0 %v4586_v52  ;;  %v4731_v49 = vcombine.high %v451_v43, %v459_v44  ;;  %v443_v52 = vld [vmem:[%s7012_s1 + $0x6e8] sm:$0xff] }
 0x162   : > { %3710 = vmatprep.subr.bf16.mxu0 %v4571_v57  ;;  %v691_v53 = vld [vmem:[%s7012_s1 + $0xea8] sm:$0xff]  ;;  %v4986_v57 = vcombine.low %v707_v45, %v715_v46  ;;  %v4715_v58 = vcombine.high %v435_v51, %v443_v52  ;;  %v596_v45 = vld [vmem:[%s7012_s1 + $0xbb0] sm:$0xff] }
 0x163   : > { %v3982_v4 = vcombine.low %v6312_v62, %v6315_v63  ;;  %3750 = vmatpush1.bf16.msra.mxu1 %v4842_v56  ;;  %v699_v55 = vld [vmem:[%s7012_s1 + $0xee8] sm:$0xff]  ;;  %v4730_v56 = vcombine.low %v451_v43, %v459_v44  ;;  %v340_v43 = vld [vmem:[%s7012_s1 + $0x3b0] sm:$0xff] }
 0x164   : > { %3751 = vmatprep.subr.bf16.mxu1 %v4827_v59  ;;  %v4971_v59 = vcombine.high %v691_v53, %v699_v55  ;;  %v675_v1 = vld [vmem:[%s7012_s1 + $0xe28] sm:$0xff]  ;;  %v348_v44 = vld [vmem:[%s7012_s1 + $0x3f0] sm:$0xff] }
 0x165   : > { %3711 = vmatpush1.bf16.msra.mxu0 %v4570_v3  ;;  %v683_v2 = vld [vmem:[%s7012_s1 + $0xe68] sm:$0xff]  ;;  %v4714_v3 = vcombine.low %v435_v51, %v443_v52  ;;  %v604_v46 = vld [vmem:[%s7012_s1 + $0xbf0] sm:$0xff] }
 0x166   : > { %3712 = vmatprep.subr.bf16.mxu0 %v4555_v20  ;;  %v4699_v20 = vcombine.high %v419_v60, %v427_v61  ;;  %v403_v5 = vld [vmem:[%s7012_s1 + $0x5a8] sm:$0xff]  ;;  %v324_v51 = vld [vmem:[%s7012_s1 + $0x330] sm:$0xff] }
 0x167   : > { %3752 = vmatpush1.bf16.msra.mxu1 %v4826_v10  ;;  %v4970_v10 = vcombine.low %v691_v53, %v699_v55  ;;  %v411_v7 = vld [vmem:[%s7012_s1 + $0x5e8] sm:$0xff]  ;;  %v332_v52 = vld [vmem:[%s7012_s1 + $0x370] sm:$0xff] }
 0x168   : > { %3753 = vmatprep.subr.bf16.mxu1 %v4811_v26  ;;  %v4955_v26 = vcombine.high %v675_v1, %v683_v2  ;;  %v659_v8 = vld [vmem:[%s7012_s1 + $0xda8] sm:$0xff]  ;;  %v580_v53 = vld [vmem:[%s7012_s1 + $0xb30] sm:$0xff] }
 0x169   : > { %3713 = vmatpush1.bf16.msra.mxu0 %v4554_v11  ;;  %v667_v9 = vld [vmem:[%s7012_s1 + $0xde8] sm:$0xff]  ;;  %v4698_v11 = vcombine.low %v419_v60, %v427_v61  ;;  %v588_v55 = vld [vmem:[%s7012_s1 + $0xb70] sm:$0xff] }
 0x16a   : > { %3714 = vmatprep.subr.bf16.mxu0 %v4539_v14  ;;  %v4683_v14 = vcombine.high %v403_v5, %v411_v7  ;;  %v387_v16 = vld [vmem:[%s7012_s1 + $0x528] sm:$0xff]  ;;  %v308_v60 = vld [vmem:[%s7012_s1 + $0x2b0] sm:$0xff] }
 0x16b   : > { %3754 = vmatpush1.bf16.msra.mxu1 %v4810_v13  ;;  %v4954_v13 = vcombine.low %v675_v1, %v683_v2  ;;  %v395_v18 = vld [vmem:[%s7012_s1 + $0x568] sm:$0xff]  ;;  %v316_v61 = vld [vmem:[%s7012_s1 + $0x2f0] sm:$0xff] }
 0x16c   : > { %3755 = vmatprep.subr.bf16.mxu1 %v4795_v15  ;;  %v4939_v15 = vcombine.high %v659_v8, %v667_v9  ;;  %v643_v19 = vld [vmem:[%s7012_s1 + $0xd28] sm:$0xff]  ;;  %v564_v2 = vld [vmem:[%s7012_s1 + $0xab0] sm:$0xff] }
 0x16d   : > { %3715 = vmatpush1.bf16.msra.mxu0 %v4538_v22  ;;  %v651_v21 = vld [vmem:[%s7012_s1 + $0xd68] sm:$0xff]  ;;  %v4682_v22 = vcombine.low %v403_v5, %v411_v7  ;;  %v4860_v7 = vcombine.low %v580_v53, %v588_v55 }
 0x16e   : > { %3716 = vmatprep.subr.bf16.mxu0 %v4523_v24  ;;  %v4667_v24 = vcombine.high %v387_v16, %v395_v18  ;;  %v371_v27 = vld [vmem:[%s7012_s1 + $0x4a8] sm:$0xff] }
 0x16f   : > { %3756 = vmatpush1.bf16.msra.mxu1 %v4794_v23  ;;  %v4938_v23 = vcombine.low %v659_v8, %v667_v9  ;;  %v379_v29 = vld [vmem:[%s7012_s1 + $0x4e8] sm:$0xff]  ;;  %v4589_v8 = vcombine.high %v308_v60, %v316_v61 }
 0x170   : > { %3757 = vmatprep.subr.bf16.mxu1 %v4779_v25  ;;  %v4923_v25 = vcombine.high %v643_v19, %v651_v21  ;;  %v627_v30 = vld [vmem:[%s7012_s1 + $0xca8] sm:$0xff] }
 0x171   : > { %3717 = vmatpush1.bf16.msra.mxu0 %v4522_v33  ;;  %v635_v32 = vld [vmem:[%s7012_s1 + $0xce8] sm:$0xff]  ;;  %v4666_v33 = vcombine.low %v387_v16, %v395_v18  ;;  %v548_v18 = vld [vmem:[%s7012_s1 + $0xa30] sm:$0xff] }
 0x172   : > { %3718 = vmatprep.subr.bf16.mxu0 %v4507_v0  ;;  %v4651_v0 = vcombine.high %v371_v27, %v379_v29  ;;  %v355_v36 = vld [vmem:[%s7012_s1 + $0x428] sm:$0xff] }
 0x173   : > { %3758 = vmatpush1.bf16.msra.mxu1 %v4778_v34  ;;  %v4922_v34 = vcombine.low %v643_v19, %v651_v21  ;;  %v363_v6 = vld [vmem:[%s7012_s1 + $0x468] sm:$0xff]  ;;  %v556_v19 = vld [vmem:[%s7012_s1 + $0xa70] sm:$0xff] }
 0x174   : > { %3759 = vmatprep.subr.bf16.mxu1 %v4763_v35  ;;  %v4907_v35 = vcombine.high %v627_v30, %v635_v32  ;;  %v611_v37 = vld [vmem:[%s7012_s1 + $0xc28] sm:$0xff] }
 0x175   : > { %3719 = vmatpush1.bf16.msra.mxu0 %v4506_v39  ;;  %v619_v38 = vld [vmem:[%s7012_s1 + $0xc68] sm:$0xff]  ;;  %v4650_v39 = vcombine.low %v371_v27, %v379_v29 }
 0x176   : > { %3720 = vmatprep.subr.bf16.mxu0 %v4747_v41  ;;  %v4635_v41 = vcombine.high %v355_v36, %v363_v6 }
 0x177   : > { %3760 = vmatpush1.bf16.msra.mxu1 %v4762_v40  ;;  %v4906_v40 = vcombine.low %v627_v30, %v635_v32  ;;  %v4829_v30 = vcombine.high %v548_v18, %v556_v19  ;;  %v276_v32 = vld [vmem:[%s7012_s1 + $0x1b0] sm:$0xff] }
 0x178   : > { %3761 = vmatprep.subr.bf16.mxu1 %v5003_v42  ;;  %v4891_v42 = vcombine.high %v611_v37, %v619_v38 }
 0x179   : > { %3721 = vmatpush2.bf16.msra.mxu0 %v4746_v47  ;;  %v4634_v47 = vcombine.low %v355_v36, %v363_v6  ;;  %v4828_v36 = vcombine.low %v548_v18, %v556_v19 }
 0x17a   : > { %3722 = vmatprep.subr.bf16.mxu0 %v4731_v49  ;;  %v4621_v49 = vcombine.high %v340_v43, %v348_v44 }
 0x17b   : > { %3762 = vmatpush2.bf16.msra.mxu1 %v5002_v48  ;;  %v4890_v48 = vcombine.low %v611_v37, %v619_v38  ;;  %v260_v38 = vld [vmem:[%s7012_s1 + $0x130] sm:$0xff] }
 0x17c   : > { %3763 = vmatprep.subr.bf16.mxu1 %v4987_v50  ;;  %v4877_v50 = vcombine.high %v596_v45, %v604_v46 }
 0x17d   : > { %3723 = vmatpush2.bf16.msra.mxu0 %v4730_v56  ;;  %v4620_v56 = vcombine.low %v340_v43, %v348_v44 }
 0x17e   : > { %3724 = vmatprep.subr.bf16.mxu0 %v4715_v58  ;;  %v4605_v58 = vcombine.high %v324_v51, %v332_v52 }
 0x17f   : > { %3764 = vmatpush2.bf16.msra.mxu1 %v4986_v57  ;;  %v4876_v57 = vcombine.low %v596_v45, %v604_v46  ;;  %v244_v46 = vld [vmem:[%s7012_s1 + $0xb0] sm:$0xff] }
 0x180   : > { %3765 = vmatprep.subr.bf16.mxu1 %v4971_v59  ;;  %v4861_v59 = vcombine.high %v580_v53, %v588_v55  ;;  %v228_v55 = vld [vmem:[%s7012_s1 + $0x30] sm:$0xff] }
 0x181   : > { %3725 = vmatpush2.bf16.msra.mxu0 %v4714_v3  ;;  %v572_v3 = vld [vmem:[%s7012_s1 + $0xaf0] sm:$0xff] }
 0x182   : > { %3726 = vmatprep.subr.bf16.mxu0 %v4699_v20  ;;  %v4604_v20 = vcombine.low %v324_v51, %v332_v52 }
 0x183   : > { %3766 = vmatpush2.bf16.msra.mxu1 %v4970_v10 }
 0x184   : > { %3767 = vmatprep.subr.bf16.mxu1 %v4955_v26 }
 0x185   : > { %3727 = vmatpush2.bf16.msra.mxu0 %v4698_v11  ;;  %v4845_v11 = vcombine.high %v564_v2, %v572_v3 }
 0x186   : > { %3728 = vmatprep.subr.bf16.mxu0 %v4683_v14  ;;  %v300_v14 = vld [vmem:[%s7012_s1 + $0x270] sm:$0xff] }
 0x187   : > { %3768 = vmatpush2.bf16.msra.mxu1 %v4954_v13  ;;  %v292_v13 = vld [vmem:[%s7012_s1 + $0x230] sm:$0xff] }
 0x188   : > { %3769 = vmatprep.subr.bf16.mxu1 %v4939_v15  ;;  %v4573_v27 = vcombine.high %v292_v13, %v300_v14 }
 0x189   : > { %3729 = vmatpush2.bf16.msra.mxu0 %v4682_v22  ;;  %v4588_v22 = vcombine.low %v308_v60, %v316_v61 }
 0x18a   : > { %3730 = vmatprep.subr.bf16.mxu0 %v4667_v24 }
 0x18b   : > { %3770 = vmatpush2.bf16.msra.mxu1 %v4938_v23 }
 0x18c   : > { %3771 = vmatprep.subr.bf16.mxu1 %v4923_v25  ;;  %v4844_v25 = vcombine.low %v564_v2, %v572_v3  ;;  %v468_v2 = vld [vmem:[%s7012_s1 + $0x7b0] sm:$0xff] }
 0x18d   : > { %3731 = vmatpush2.bf16.msra.mxu0 %v4666_v33  ;;  %v284_v33 = vld [vmem:[%s7012_s1 + $0x1f0] sm:$0xff] }
 0x18e   : > { %3732 = vmatprep.subr.bf16.mxu0 %v4651_v0  ;;  %v540_v0 = vld [vmem:[%s7012_s1 + $0x9f0] sm:$0xff]  ;;  %v4557_v6 = vcombine.high %v276_v32, %v284_v33 }
 0x18f   : > { %3772 = vmatpush2.bf16.msra.mxu1 %v4922_v34  ;;  %v532_v34 = vld [vmem:[%s7012_s1 + $0x9b0] sm:$0xff] }
 0x190   : > { %3773 = vmatprep.subr.bf16.mxu1 %v4907_v35  ;;  %v4572_v35 = vcombine.low %v292_v13, %v300_v14  ;;  %v4813_v37 = vcombine.high %v532_v34, %v540_v0  ;;  %v4812_v43 = vcombine.low %v532_v34, %v540_v0  ;;  %v476_v3 = vld [vmem:[%s7012_s1 + $0x7f0] sm:$0xff] }
 0x191   : > { %3733 = vmatpush2.bf16.msra.mxu0 %v4650_v39  ;;  %v268_v39 = vld [vmem:[%s7012_s1 + $0x170] sm:$0xff]  ;;  %v4748_v18 = vcombine.low %v468_v2, %v476_v3 }
 0x192   : > { %3734 = vmatprep.subr.bf16.mxu0 %v4635_v41  ;;  %v524_v41 = vld [vmem:[%s7012_s1 + $0x970] sm:$0xff]  ;;  %v4541_v44 = vcombine.high %v260_v38, %v268_v39 }
 0x193   : > { %3774 = vmatpush2.bf16.msra.mxu1 %v4906_v40  ;;  %v516_v40 = vld [vmem:[%s7012_s1 + $0x930] sm:$0xff] }
 0x194   : > { %3775 = vmatprep.subr.bf16.mxu1 %v4891_v42  ;;  %v4556_v42 = vcombine.low %v276_v32, %v284_v33  ;;  %v4797_v45 = vcombine.high %v516_v40, %v524_v41  ;;  %v4796_v51 = vcombine.low %v516_v40, %v524_v41  ;;  %v460_v13 = vld [vmem:[%s7012_s1 + $0x770] sm:$0xff] }
 0x195   : > { %3735 = vmatpush2.bf16.msra.mxu0 %v4634_v47  ;;  %v252_v47 = vld [vmem:[%s7012_s1 + $0xf0] sm:$0xff] }
 0x196   : > { %3786 = vmatprep.subr.bf16.mxu0 %v4621_v49  ;;  %v508_v49 = vld [vmem:[%s7012_s1 + $0x8f0] sm:$0xff]  ;;  %v4525_v52 = vcombine.high %v244_v46, %v252_v47 }
 0x197   : > { %3776 = vmatpush2.bf16.msra.mxu1 %v4890_v48  ;;  %v500_v48 = vld [vmem:[%s7012_s1 + $0x8b0] sm:$0xff] }
 0x198   : > { %3827 = vmatprep.subr.bf16.mxu1 %v4877_v50  ;;  %v3492_v1 = vpop.f32.mrf.mxu0  ;;  %3737 = vmatmul.mubr.bf16.vlgmr.msra.gmra.mxu0 %v5472_v28  ;;  %v4540_v50 = vcombine.low %v260_v38, %v268_v39  ;;  %v4781_v53 = vcombine.high %v500_v48, %v508_v49  ;;  %v4780_v60 = vcombine.low %v500_v48, %v508_v49  ;;  %v708_v14 = vld [vmem:[%s7012_s1 + $0xf30] sm:$0xff] }
 0x199   : > { %3787 = vmatpush1.bf16.msra.mxu0 %v4620_v56  ;;  %3818 = vmatprep.mubr.bf16.mxu0 %v5354_v12  ;;  %v236_v56 = vld [vmem:[%s7012_s1 + $0x70] sm:$0xff] }
 0x19a   : > { %v3533_v10 = vpop.f32.mrf.mxu1  ;;  %3778 = vmatmul.mubr.bf16.vlgmr.msra.gmra.mxu1 %v5482_v31  ;;  %v3494_v5 = vpop.f32.mrf.mxu0  ;;  %3788 = vmatprep.subr.bf16.mxu0 %v4605_v58  ;;  %v492_v58 = vld [vmem:[%s7012_s1 + $0x870] sm:$0xff]  ;;  %v4509_v61 = vcombine.high %v228_v55, %v236_v56 }
 0x19b   : > { %v6495_v26 = vadd.f32 %v3533_v10, %v3492_v1  ;;  %3828 = vmatpush1.bf16.msra.mxu1 %v4876_v57  ;;  %3859 = vmatprep.mubr.bf16.mxu1 %v5365_v17  ;;  %v484_v57 = vld [vmem:[%s7012_s1 + $0x830] sm:$0xff] }
 0x19c   : > { %v3535_v9 = vpop.f32.mrf.mxu1  ;;  %3829 = vmatprep.subr.bf16.mxu1 %v4861_v59  ;;  %v3496_v16 = vpop.f32.mrf.mxu0  ;;  %v4524_v59 = vcombine.low %v244_v46, %v252_v47  ;;  %v4765_v1 = vcombine.high %v484_v57, %v492_v58  ;;  %v724_v10 = vld [vmem:[%s7012_s1 + $0xfb0] sm:$0xff] }
 0x19d   : > { %v6504_v15 = vadd.f32 %v3535_v9, %v3494_v5  ;;  %3789 = vmatpush1.bf16.msra.mxu0 %v4604_v20  ;;  %v732_v20 = vld [vmem:[%s7012_s1 + $0xff0] sm:$0xff]  ;;  %v4508_v5 = vcombine.low %v228_v55, %v236_v56 }
 0x19e   : > { %v3537_v21 = vpop.f32.mrf.mxu1  ;;  %v3497_v24 = vpop.f32.mrf.mxu0  ;;  %3790 = vmatprep.subr.bf16.mxu0 %v4589_v8  ;;  %v4749_v8 = vcombine.high %v468_v2, %v476_v3  ;;  %v5005_v9 = vcombine.high %v724_v10, %v732_v20  ;;  %v716_v16 = vld [vmem:[%s7012_s1 + $0xf70] sm:$0xff]  ;;  %v5004_v19 = vcombine.low %v724_v10, %v732_v20 }
 0x19f   : > { %v3983_v23 = vcombine.low %v6495_v26, %v6504_v15  ;;  %3830 = vmatpush1.bf16.msra.mxu1 %v4860_v7  ;;  %v4764_v7 = vcombine.low %v484_v57, %v492_v58  ;;  %v436_v24 = vld [vmem:[%s7012_s1 + $0x6b0] sm:$0xff]  ;;  %v4988_v32 = vcombine.low %v708_v14, %v716_v16 }
 0x1a0   : > { %v3538_v29 = vpop.f32.mrf.mxu1  ;;  %3831 = vmatprep.subr.bf16.mxu1 %v4845_v11  ;;  %v452_v11 = vld [vmem:[%s7012_s1 + $0x730] sm:$0xff] }
 0x1a1   : > { %3791 = vmatpush1.bf16.msra.mxu0 %v4588_v22  ;;  %v4733_v21 = vcombine.high %v452_v11, %v460_v13  ;;  %v4989_v22 = vcombine.high %v708_v14, %v716_v16  ;;  %v700_v29 = vld [vmem:[%s7012_s1 + $0xef0] sm:$0xff]  ;;  %v341_v16 = vld [vmem:[%s7012_s1 + $0x3b8] sm:$0xff] }
 0x1a2   : > { %3792 = vmatprep.subr.bf16.mxu0 %v4573_v27  ;;  %v692_v27 = vld [vmem:[%s7012_s1 + $0xeb0] sm:$0xff] }
 0x1a3   : > { %3832 = vmatpush1.bf16.msra.mxu1 %v4844_v25  ;;  %v444_v25 = vld [vmem:[%s7012_s1 + $0x6f0] sm:$0xff]  ;;  %v4973_v34 = vcombine.high %v692_v27, %v700_v29  ;;  %v4972_v38 = vcombine.low %v692_v27, %v700_v29  ;;  %v325_v29 = vld [vmem:[%s7012_s1 + $0x338] sm:$0xff] }
 0x1a4   : > { %3833 = vmatprep.subr.bf16.mxu1 %v4829_v30  ;;  %v4732_v30 = vcombine.low %v452_v11, %v460_v13  ;;  %v4717_v33 = vcombine.high %v436_v24, %v444_v25  ;;  %v420_v0 = vld [vmem:[%s7012_s1 + $0x630] sm:$0xff] }
 0x1a5   : > { %3793 = vmatpush1.bf16.msra.mxu0 %v4572_v35  ;;  %v428_v35 = vld [vmem:[%s7012_s1 + $0x670] sm:$0xff] }
 0x1a6   : > { %3794 = vmatprep.subr.bf16.mxu0 %v4557_v6  ;;  %v684_v6 = vld [vmem:[%s7012_s1 + $0xe70] sm:$0xff]  ;;  %v4701_v39 = vcombine.high %v420_v0, %v428_v35 }
 0x1a7   : > { %3834 = vmatpush1.bf16.msra.mxu1 %v4828_v36  ;;  %v676_v36 = vld [vmem:[%s7012_s1 + $0xe30] sm:$0xff] }
 0x1a8   : > { %3835 = vmatprep.subr.bf16.mxu1 %v4813_v37  ;;  %v4716_v37 = vcombine.low %v436_v24, %v444_v25  ;;  %v4957_v40 = vcombine.high %v676_v36, %v684_v6  ;;  %v404_v41 = vld [vmem:[%s7012_s1 + $0x5b0] sm:$0xff]  ;;  %v4956_v46 = vcombine.low %v676_v36, %v684_v6  ;;  %v309_v6 = vld [vmem:[%s7012_s1 + $0x2b8] sm:$0xff] }
 0x1a9   : > { %3795 = vmatpush1.bf16.msra.mxu0 %v4556_v42  ;;  %v412_v42 = vld [vmem:[%s7012_s1 + $0x5f0] sm:$0xff] }
 0x1aa   : > { %3796 = vmatprep.subr.bf16.mxu0 %v4541_v44  ;;  %v668_v44 = vld [vmem:[%s7012_s1 + $0xdf0] sm:$0xff]  ;;  %v4685_v47 = vcombine.high %v404_v41, %v412_v42 }
 0x1ab   : > { %3836 = vmatpush1.bf16.msra.mxu1 %v4812_v43  ;;  %v660_v43 = vld [vmem:[%s7012_s1 + $0xdb0] sm:$0xff] }
 0x1ac   : > { %3837 = vmatprep.subr.bf16.mxu1 %v4797_v45  ;;  %v4700_v45 = vcombine.low %v420_v0, %v428_v35  ;;  %v4941_v48 = vcombine.high %v660_v43, %v668_v44  ;;  %v388_v49 = vld [vmem:[%s7012_s1 + $0x530] sm:$0xff]  ;;  %v4940_v55 = vcombine.low %v660_v43, %v668_v44 }
 0x1ad   : > { %3797 = vmatpush1.bf16.msra.mxu0 %v4540_v50  ;;  %v396_v50 = vld [vmem:[%s7012_s1 + $0x570] sm:$0xff] }
 0x1ae   : > { %3798 = vmatprep.subr.bf16.mxu0 %v4525_v52  ;;  %v652_v52 = vld [vmem:[%s7012_s1 + $0xd70] sm:$0xff]  ;;  %v4669_v56 = vcombine.high %v388_v49, %v396_v50 }
 0x1af   : > { %3838 = vmatpush1.bf16.msra.mxu1 %v4796_v51  ;;  %v644_v51 = vld [vmem:[%s7012_s1 + $0xd30] sm:$0xff] }
 0x1b0   : > { %3839 = vmatprep.subr.bf16.mxu1 %v4781_v53  ;;  %v4684_v53 = vcombine.low %v404_v41, %v412_v42  ;;  %v4925_v57 = vcombine.high %v644_v51, %v652_v52  ;;  %v372_v58 = vld [vmem:[%s7012_s1 + $0x4b0] sm:$0xff]  ;;  %v4924_v2 = vcombine.low %v644_v51, %v652_v52 }
 0x1b1   : > { %3799 = vmatpush1.bf16.msra.mxu0 %v4524_v59  ;;  %v380_v59 = vld [vmem:[%s7012_s1 + $0x4f0] sm:$0xff] }
 0x1b2   : > { %3800 = vmatprep.subr.bf16.mxu0 %v4509_v61  ;;  %v636_v61 = vld [vmem:[%s7012_s1 + $0xcf0] sm:$0xff]  ;;  %v4653_v3 = vcombine.high %v372_v58, %v380_v59 }
 0x1b3   : > { %3840 = vmatpush1.bf16.msra.mxu1 %v4780_v60  ;;  %v628_v60 = vld [vmem:[%s7012_s1 + $0xcb0] sm:$0xff] }
 0x1b4   : > { %3841 = vmatprep.subr.bf16.mxu1 %v4765_v1  ;;  %v4668_v1 = vcombine.low %v388_v49, %v396_v50  ;;  %v4909_v10 = vcombine.high %v628_v60, %v636_v61  ;;  %v356_v20 = vld [vmem:[%s7012_s1 + $0x430] sm:$0xff]  ;;  %v4908_v11 = vcombine.low %v628_v60, %v636_v61  ;;  %v293_v49 = vld [vmem:[%s7012_s1 + $0x238] sm:$0xff] }
 0x1b5   : > { %3801 = vmatpush1.bf16.msra.mxu0 %v4508_v5  ;;  %v364_v5 = vld [vmem:[%s7012_s1 + $0x470] sm:$0xff]  ;;  %v301_v50 = vld [vmem:[%s7012_s1 + $0x278] sm:$0xff] }
 0x1b6   : > { %3802 = vmatprep.subr.bf16.mxu0 %v4749_v8  ;;  %v620_v8 = vld [vmem:[%s7012_s1 + $0xc70] sm:$0xff]  ;;  %v4637_v13 = vcombine.high %v356_v20, %v364_v5  ;;  %v4575_v60 = vcombine.high %v293_v49, %v301_v50 }
 0x1b7   : > { %3842 = vmatpush1.bf16.msra.mxu1 %v4764_v7  ;;  %v612_v7 = vld [vmem:[%s7012_s1 + $0xc30] sm:$0xff] }
 0x1b8   : > { %3843 = vmatprep.subr.bf16.mxu1 %v5005_v9  ;;  %v4652_v9 = vcombine.low %v372_v58, %v380_v59  ;;  %v4893_v14 = vcombine.high %v612_v7, %v620_v8  ;;  %v4892_v24 = vcombine.low %v612_v7, %v620_v8  ;;  %v4574_v7 = vcombine.low %v293_v49, %v301_v50  ;;  %v461_v49 = vld [vmem:[%s7012_s1 + $0x778] sm:$0xff] }
 0x1b9   : > { %3803 = vmatpush2.bf16.msra.mxu0 %v4748_v18  ;;  %v349_v18 = vld [vmem:[%s7012_s1 + $0x3f8] sm:$0xff] }
 0x1ba   : > { %3804 = vmatprep.subr.bf16.mxu0 %v4733_v21  ;;  %v605_v21 = vld [vmem:[%s7012_s1 + $0xbf8] sm:$0xff]  ;;  %v4623_v25 = vcombine.high %v341_v16, %v349_v18 }
 0x1bb   : > { %3844 = vmatpush2.bf16.msra.mxu1 %v5004_v19  ;;  %v597_v19 = vld [vmem:[%s7012_s1 + $0xbb8] sm:$0xff] }
 0x1bc   : > { %3845 = vmatprep.subr.bf16.mxu1 %v4989_v22  ;;  %v4636_v22 = vcombine.low %v356_v20, %v364_v5  ;;  %v4879_v27 = vcombine.high %v597_v19, %v605_v21  ;;  %v4878_v0 = vcombine.low %v597_v19, %v605_v21  ;;  %v533_v20 = vld [vmem:[%s7012_s1 + $0x9b8] sm:$0xff] }
 0x1bd   : > { %3805 = vmatpush2.bf16.msra.mxu0 %v4732_v30  ;;  %v333_v30 = vld [vmem:[%s7012_s1 + $0x378] sm:$0xff] }
 0x1be   : > { %3806 = vmatprep.subr.bf16.mxu0 %v4717_v33  ;;  %v589_v33 = vld [vmem:[%s7012_s1 + $0xb78] sm:$0xff]  ;;  %v4607_v35 = vcombine.high %v325_v29, %v333_v30  ;;  %v4606_v42 = vcombine.low %v325_v29, %v333_v30 }
 0x1bf   : > { %3846 = vmatpush2.bf16.msra.mxu1 %v4988_v32  ;;  %v581_v32 = vld [vmem:[%s7012_s1 + $0xb38] sm:$0xff] }
 0x1c0   : > { %3847 = vmatprep.subr.bf16.mxu1 %v4973_v34  ;;  %v4622_v34 = vcombine.low %v341_v16, %v349_v18  ;;  %v4863_v36 = vcombine.high %v581_v32, %v589_v33  ;;  %v541_v5 = vld [vmem:[%s7012_s1 + $0x9f8] sm:$0xff] }
 0x1c1   : > { %3807 = vmatpush2.bf16.msra.mxu0 %v4716_v37  ;;  %v317_v37 = vld [vmem:[%s7012_s1 + $0x2f8] sm:$0xff]  ;;  %v4814_v18 = vcombine.low %v533_v20, %v541_v5 }
 0x1c2   : > { %3808 = vmatprep.subr.bf16.mxu0 %v4701_v39  ;;  %v565_v39 = vld [vmem:[%s7012_s1 + $0xab8] sm:$0xff] }
 0x1c3   : > { %3848 = vmatpush2.bf16.msra.mxu1 %v4972_v38  ;;  %v709_v50 = vld [vmem:[%s7012_s1 + $0xf38] sm:$0xff] }
 0x1c4   : > { %3849 = vmatprep.subr.bf16.mxu1 %v4957_v40  ;;  %v573_v40 = vld [vmem:[%s7012_s1 + $0xaf8] sm:$0xff] }
 0x1c5   : > { %3809 = vmatpush2.bf16.msra.mxu0 %v4700_v45  ;;  %v4862_v45 = vcombine.low %v581_v32, %v589_v33 }
 0x1c6   : > { %3810 = vmatprep.subr.bf16.mxu0 %v4685_v47 }
 0x1c7   : > { %3850 = vmatpush2.bf16.msra.mxu1 %v4956_v46  ;;  %v4591_v46 = vcombine.high %v309_v6, %v317_v37 }
 0x1c8   : > { %3851 = vmatprep.subr.bf16.mxu1 %v4941_v48  ;;  %v4847_v48 = vcombine.high %v565_v39, %v573_v40 }
 0x1c9   : > { %3811 = vmatpush2.bf16.msra.mxu0 %v4684_v53  ;;  %v549_v53 = vld [vmem:[%s7012_s1 + $0xa38] sm:$0xff] }
 0x1ca   : > { %3812 = vmatprep.subr.bf16.mxu0 %v4669_v56 }
 0x1cb   : > { %3852 = vmatpush2.bf16.msra.mxu1 %v4940_v55  ;;  %v557_v55 = vld [vmem:[%s7012_s1 + $0xa78] sm:$0xff] }
 0x1cc   : > { %3853 = vmatprep.subr.bf16.mxu1 %v4925_v57  ;;  %v4590_v57 = vcombine.low %v309_v6, %v317_v37  ;;  %v4830_v26 = vcombine.low %v549_v53, %v557_v55 }
 0x1cd   : > { %3813 = vmatpush2.bf16.msra.mxu0 %v4668_v1  ;;  %v4831_v1 = vcombine.high %v549_v53, %v557_v55 }
 0x1ce   : > { %3814 = vmatprep.subr.bf16.mxu0 %v4653_v3  ;;  %v6721_v3 = vrot.slane %v3983_v23, %v5320_v54  ;;  %v4815_v23 = vcombine.high %v533_v20, %v541_v5  ;;  %v429_v20 = vld [vmem:[%s7012_s1 + $0x678] sm:$0xff] }
 0x1cf   : > { %3854 = vmatpush2.bf16.msra.mxu1 %v4924_v2  ;;  %v277_v2 = vld [vmem:[%s7012_s1 + $0x1b8] sm:$0xff] }
 0x1d0   : > { %3855 = vmatprep.subr.bf16.mxu1 %v4909_v10  ;;  %v677_v5 = vld [vmem:[%s7012_s1 + $0xe38] sm:$0xff] }
 0x1d1   : > { %3815 = vmatpush2.bf16.msra.mxu0 %v4652_v9  ;;  %v261_v9 = vld [vmem:[%s7012_s1 + $0x138] sm:$0xff] }
 0x1d2   : > { %3816 = vmatprep.subr.bf16.mxu0 %v4637_v13  ;;  %v517_v13 = vld [vmem:[%s7012_s1 + $0x938] sm:$0xff] }
 0x1d3   : > { %3856 = vmatpush2.bf16.msra.mxu1 %v4908_v11  ;;  %v269_v11 = vld [vmem:[%s7012_s1 + $0x178] sm:$0xff] }
 0x1d4   : > { %3857 = vmatprep.subr.bf16.mxu1 %v4893_v14  ;;  %v525_v14 = vld [vmem:[%s7012_s1 + $0x978] sm:$0xff]  ;;  %v4543_v19 = vcombine.high %v261_v9, %v269_v11  ;;  %v4542_v29 = vcombine.low %v261_v9, %v269_v11 }
 0x1d5   : > { %3817 = vmatpush2.bf16.msra.mxu0 %v4636_v22  ;;  %v4799_v21 = vcombine.high %v517_v13, %v525_v14  ;;  %v245_v22 = vld [vmem:[%s7012_s1 + $0xb8] sm:$0xff]  ;;  %v4798_v30 = vcombine.low %v517_v13, %v525_v14 }
 0x1d6   : > { %3868 = vmatprep.subr.bf16.mxu0 %v4623_v25  ;;  %v501_v25 = vld [vmem:[%s7012_s1 + $0x8b8] sm:$0xff] }
 0x1d7   : > { %3858 = vmatpush2.bf16.msra.mxu1 %v4892_v24  ;;  %v253_v24 = vld [vmem:[%s7012_s1 + $0xf8] sm:$0xff] }
 0x1d8   : > { %3909 = vmatprep.subr.bf16.mxu1 %v4879_v27  ;;  %v3574_v38 = vpop.f32.mrf.mxu0  ;;  %3819 = vmatmul.mubr.bf16.vlgmr.msra.gmra.mxu0 %v5472_v28  ;;  %v509_v27 = vld [vmem:[%s7012_s1 + $0x8f8] sm:$0xff]  ;;  %v4527_v32 = vcombine.high %v245_v22, %v253_v24  ;;  %v4526_v6 = vcombine.low %v245_v22, %v253_v24 }
 0x1d9   : > { %3869 = vmatpush1.bf16.msra.mxu0 %v4622_v34  ;;  %3900 = vmatprep.mubr.bf16.mxu0 %v5354_v12  ;;  %v4846_v12 = vcombine.low %v565_v39, %v573_v40  ;;  %v4783_v33 = vcombine.high %v501_v25, %v509_v27  ;;  %v229_v34 = vld [vmem:[%s7012_s1 + $0x38] sm:$0xff]  ;;  %v4782_v37 = vcombine.low %v501_v25, %v509_v27 }
 0x1da   : > { %v3615_v41 = vpop.f32.mrf.mxu1  ;;  %3860 = vmatmul.mubr.bf16.vlgmr.msra.gmra.mxu1 %v5482_v31  ;;  %v3576_v44 = vpop.f32.mrf.mxu0  ;;  %3870 = vmatprep.subr.bf16.mxu0 %v4607_v35  ;;  %v485_v35 = vld [vmem:[%s7012_s1 + $0x838] sm:$0xff] }
 0x1db   : > { %v3616_v43 = vadd.f32 %v3615_v41, %v3574_v38  ;;  %3910 = vmatpush1.bf16.msra.mxu1 %v4878_v0  ;;  %3941 = vmatprep.mubr.bf16.mxu1 %v5365_v17  ;;  %v285_v17 = vld [vmem:[%s7012_s1 + $0x1f8] sm:$0xff] }
 0x1dc   : > { %v3617_v47 = vpop.f32.mrf.mxu1  ;;  %3911 = vmatprep.subr.bf16.mxu1 %v4863_v36  ;;  %v3578_v52 = vpop.f32.mrf.mxu0  ;;  %v4559_v15 = vcombine.high %v277_v2, %v285_v17  ;;  %v4558_v16 = vcombine.low %v277_v2, %v285_v17  ;;  %v237_v0 = vld [vmem:[%s7012_s1 + $0x78] sm:$0xff] }
 0x1dd   : > { %v3618_v51 = vadd.f32 %v3617_v47, %v3576_v44  ;;  %3871 = vmatpush1.bf16.msra.mxu0 %v4606_v42  ;;  %v493_v36 = vld [vmem:[%s7012_s1 + $0x878] sm:$0xff]  ;;  %v4511_v38 = vcombine.high %v229_v34, %v237_v0  ;;  %v4510_v44 = vcombine.low %v229_v34, %v237_v0 }
 0x1de   : > { %v3619_v56 = vpop.f32.mrf.mxu1  ;;  %v3579_v59 = vpop.f32.mrf.mxu0  ;;  %3872 = vmatprep.subr.bf16.mxu0 %v4591_v46  ;;  %v4767_v39 = vcombine.high %v485_v35, %v493_v36  ;;  %v469_v40 = vld [vmem:[%s7012_s1 + $0x7b8] sm:$0xff] }
 0x1df   : > { %v3984_v58 = vcombine.low %v3616_v43, %v3618_v51  ;;  %3912 = vmatpush1.bf16.msra.mxu1 %v4862_v45  ;;  %v477_v41 = vld [vmem:[%s7012_s1 + $0x7f8] sm:$0xff]  ;;  %v4766_v45 = vcombine.low %v485_v35, %v493_v36 }
 0x1e0   : > { %v3620_v61 = vpop.f32.mrf.mxu1  ;;  %3913 = vmatprep.subr.bf16.mxu1 %v4847_v48  ;;  %v725_v42 = vld [vmem:[%s7012_s1 + $0xfb8] sm:$0xff]  ;;  %v4751_v46 = vcombine.high %v469_v40, %v477_v41  ;;  %v4750_v52 = vcombine.low %v469_v40, %v477_v41 }
 0x1e1   : > { %v6724_v10 = vrot.slane %v3984_v58, %v5320_v54  ;;  %3873 = vmatpush1.bf16.msra.mxu0 %v4590_v57  ;;  %v733_v43 = vld [vmem:[%s7012_s1 + $0xff8] sm:$0xff] }
 0x1e2   : > { %3874 = vmatprep.subr.bf16.mxu0 %v4575_v60  ;;  %v5007_v47 = vcombine.high %v725_v42, %v733_v43  ;;  %v453_v48 = vld [vmem:[%s7012_s1 + $0x738] sm:$0xff]  ;;  %v5006_v53 = vcombine.low %v725_v42, %v733_v43 }
 0x1e3   : > { %v3999_v8 = vcombine.low %v6721_v3, %v6724_v10  ;;  %3914 = vmatpush1.bf16.msra.mxu1 %v4846_v12  ;;  %v717_v51 = vld [vmem:[%s7012_s1 + $0xf78] sm:$0xff]  ;;  %v4735_v55 = vcombine.high %v453_v48, %v461_v49  ;;  %v4734_v60 = vcombine.low %v453_v48, %v461_v49 }
 0x1e4   : > { %3915 = vmatprep.subr.bf16.mxu1 %v4831_v1  ;;  %v4991_v56 = vcombine.high %v709_v50, %v717_v51  ;;  %v437_v57 = vld [vmem:[%s7012_s1 + $0x6b8] sm:$0xff]  ;;  %v4990_v61 = vcombine.low %v709_v50, %v717_v51 }
 0x1e5   : > { %3875 = vmatpush1.bf16.msra.mxu0 %v4574_v7  ;;  %v445_v58 = vld [vmem:[%s7012_s1 + $0x6f8] sm:$0xff] }
 0x1e6   : > { %3876 = vmatprep.subr.bf16.mxu0 %v4559_v15  ;;  %v693_v59 = vld [vmem:[%s7012_s1 + $0xeb8] sm:$0xff]  ;;  %v4719_v1 = vcombine.high %v437_v57, %v445_v58 }
 0x1e7   : > { %3916 = vmatpush1.bf16.msra.mxu1 %v4830_v26  ;;  %v701_v12 = vld [vmem:[%s7012_s1 + $0xef8] sm:$0xff]  ;;  %v4718_v26 = vcombine.low %v437_v57, %v445_v58 }
 0x1e8   : > { %3917 = vmatprep.subr.bf16.mxu1 %v4815_v23  ;;  %v4975_v2 = vcombine.high %v693_v59, %v701_v12  ;;  %v421_v17 = vld [vmem:[%s7012_s1 + $0x638] sm:$0xff]  ;;  %v4974_v15 = vcombine.low %v693_v59, %v701_v12 }
 0x1e9   : > { %3877 = vmatpush1.bf16.msra.mxu0 %v4558_v16  ;;  %v685_v7 = vld [vmem:[%s7012_s1 + $0xe78] sm:$0xff]  ;;  %v4703_v23 = vcombine.high %v421_v17, %v429_v20 }
 0x1ea   : > { %3878 = vmatprep.subr.bf16.mxu0 %v4543_v19  ;;  %v4959_v9 = vcombine.high %v677_v5, %v685_v7  ;;  %v405_v11 = vld [vmem:[%s7012_s1 + $0x5b8] sm:$0xff]  ;;  %v4958_v19 = vcombine.low %v677_v5, %v685_v7 }
 0x1eb   : > { %3918 = vmatpush1.bf16.msra.mxu1 %v4814_v18  ;;  %v413_v13 = vld [vmem:[%s7012_s1 + $0x5f8] sm:$0xff]  ;;  %v4702_v18 = vcombine.low %v421_v17, %v429_v20 }
 0x1ec   : > { %3919 = vmatprep.subr.bf16.mxu1 %v4799_v21  ;;  %v661_v14 = vld [vmem:[%s7012_s1 + $0xdb8] sm:$0xff]  ;;  %v4687_v21 = vcombine.high %v405_v11, %v413_v13 }
 0x1ed   : > { %3879 = vmatpush1.bf16.msra.mxu0 %v4542_v29  ;;  %v669_v16 = vld [vmem:[%s7012_s1 + $0xdf8] sm:$0xff] }
 0x1ee   : > { %3880 = vmatprep.subr.bf16.mxu0 %v4527_v32  ;;  %v4943_v22 = vcombine.high %v661_v14, %v669_v16  ;;  %v389_v24 = vld [vmem:[%s7012_s1 + $0x538] sm:$0xff]  ;;  %v4942_v32 = vcombine.low %v661_v14, %v669_v16 }
 0x1ef   : > { %3920 = vmatpush1.bf16.msra.mxu1 %v4798_v30  ;;  %v397_v25 = vld [vmem:[%s7012_s1 + $0x578] sm:$0xff]  ;;  %v4686_v30 = vcombine.low %v405_v11, %v413_v13 }
 0x1f0   : > { %3921 = vmatprep.subr.bf16.mxu1 %v4783_v33  ;;  %v645_v27 = vld [vmem:[%s7012_s1 + $0xd38] sm:$0xff]  ;;  %v4671_v33 = vcombine.high %v389_v24, %v397_v25 }
 0x1f1   : > { %3881 = vmatpush1.bf16.msra.mxu0 %v4526_v6  ;;  %v653_v29 = vld [vmem:[%s7012_s1 + $0xd78] sm:$0xff] }
 0x1f2   : > { %3882 = vmatprep.subr.bf16.mxu0 %v4511_v38  ;;  %v4927_v34 = vcombine.high %v645_v27, %v653_v29  ;;  %v373_v0 = vld [vmem:[%s7012_s1 + $0x4b8] sm:$0xff]  ;;  %v4926_v38 = vcombine.low %v645_v27, %v653_v29 }
 0x1f3   : > { %3922 = vmatpush1.bf16.msra.mxu1 %v4782_v37  ;;  %v381_v35 = vld [vmem:[%s7012_s1 + $0x4f8] sm:$0xff]  ;;  %v4670_v37 = vcombine.low %v389_v24, %v397_v25  ;;  %v4061_v25 = vld [vmem:[#allocation3] sm:$0xff] }
 0x1f4   : > { %3923 = vmatprep.subr.bf16.mxu1 %v4767_v39  ;;  %v629_v36 = vld [vmem:[%s7012_s1 + $0xcb8] sm:$0xff]  ;;  %v4655_v39 = vcombine.high %v373_v0, %v381_v35 }
 0x1f5   : > { %3883 = vmatpush1.bf16.msra.mxu0 %v4510_v44  ;;  %v637_v6 = vld [vmem:[%s7012_s1 + $0xcf8] sm:$0xff] }
 0x1f6   : > { %3884 = vmatprep.subr.bf16.mxu0 %v4751_v46  ;;  %v4911_v40 = vcombine.high %v629_v36, %v637_v6  ;;  %v357_v41 = vld [vmem:[%s7012_s1 + $0x438] sm:$0xff]  ;;  %v4910_v46 = vcombine.low %v629_v36, %v637_v6 }
 0x1f7   : > { %3924 = vmatpush1.bf16.msra.mxu1 %v4766_v45  ;;  %v365_v42 = vld [vmem:[%s7012_s1 + $0x478] sm:$0xff]  ;;  %v4654_v45 = vcombine.low %v373_v0, %v381_v35 }
 0x1f8   : > { %3925 = vmatprep.subr.bf16.mxu1 %v5007_v47  ;;  %v613_v43 = vld [vmem:[%s7012_s1 + $0xc38] sm:$0xff]  ;;  %v4639_v47 = vcombine.high %v357_v41, %v365_v42  ;;  %v4638_v49 = vcombine.low %v357_v41, %v365_v42 }
 0x1f9   : > { %3885 = vmatpush2.bf16.msra.mxu0 %v4750_v52  ;;  %v621_v44 = vld [vmem:[%s7012_s1 + $0xc78] sm:$0xff] }
 0x1fa   : > { %3886 = vmatprep.subr.bf16.mxu0 %v4735_v55  ;;  %v4895_v48 = vcombine.high %v613_v43, %v621_v44  ;;  %v4894_v50 = vcombine.low %v613_v43, %v621_v44 }
 0x1fb   : > { %3926 = vmatpush2.bf16.msra.mxu1 %v5006_v53 }
 0x1fc   : > { %3927 = vmatprep.subr.bf16.mxu1 %v4991_v56 }
 0x1fd   : > { %3887 = vmatpush2.bf16.msra.mxu0 %v4734_v60 }
 0x1fe   : > { %3888 = vmatprep.subr.bf16.mxu0 %v4719_v1  ;;  %v192_v1 = vld [vmem:[%s5239_s21 + $0x8] sm:$0xff] }
 0x1ff   : > { %3928 = vmatpush2.bf16.msra.mxu1 %v4990_v61  ;;  %v4039_v17 = vadd.f32 %v3999_v8, %v192_v1 }
 0x200   : > { %3929 = vmatprep.subr.bf16.mxu1 %v4975_v2  ;;  %v191_v2 = vld [vmem:[%s5239_s21] sm:$0xff] }
 0x201   : > { %3889 = vmatpush2.bf16.msra.mxu0 %v4718_v26 }
 0x202   : > { %3890 = vmatprep.subr.bf16.mxu0 %v4703_v23 }
 0x203   : > { %3930 = vmatpush2.bf16.msra.mxu1 %v4974_v15 }
 0x204   : > { %3931 = vmatprep.subr.bf16.mxu1 %v4959_v9 }
 0x205   : > { %3891 = vmatpush2.bf16.msra.mxu0 %v4702_v18 }
 0x206   : > { %3892 = vmatprep.subr.bf16.mxu0 %v4687_v21 }
 0x207   : > { %3932 = vmatpush2.bf16.msra.mxu1 %v4958_v19  ;;  %v193_v19 = vld [vmem:[%s5239_s21 + $0x10] sm:$0xff] }
 0x208   : > { %3933 = vmatprep.subr.bf16.mxu1 %v4943_v22 }
 0x209   : > { %3893 = vmatpush2.bf16.msra.mxu0 %v4686_v30 }
 0x20a   : > { %3894 = vmatprep.subr.bf16.mxu0 %v4671_v33 }
 0x20b   : > { %3934 = vmatpush2.bf16.msra.mxu1 %v4942_v32 }
 0x20c   : > { %3935 = vmatprep.subr.bf16.mxu1 %v4927_v34 }
 0x20d   : > { %3895 = vmatpush2.bf16.msra.mxu0 %v4670_v37 }
 0x20e   : > { %3896 = vmatprep.subr.bf16.mxu0 %v4655_v39 }
 0x20f   : > { %3936 = vmatpush2.bf16.msra.mxu1 %v4926_v38 }
 0x210   : > { %3937 = vmatprep.subr.bf16.mxu1 %v4911_v40 }
 0x211   : > { %3897 = vmatpush2.bf16.msra.mxu0 %v4654_v45 }
 0x212   : > { %3898 = vmatprep.subr.bf16.mxu0 %v4639_v47 }
 0x213   : > { %3938 = vmatpush2.bf16.msra.mxu1 %v4910_v46 }
 0x214   : > { %3939 = vmatprep.subr.bf16.mxu1 %v4895_v48 }
 0x215   : > { %3899 = vmatpush2.bf16.msra.mxu0 %v4638_v49 }
 0x217   : > { %3940 = vmatpush2.bf16.msra.mxu1 %v4894_v50 }
 0x218   : > { %v3656_v51 = vpop.f32.mrf.mxu0  ;;  %3901 = vmatmul.mubr.bf16.vlgmr.msra.gmra.mxu0 %v5472_v28  ;;  %v4038_v28 = vadd.f32 %v3982_v4, %v191_v2 }
 0x21a   : > { %v3697_v52 = vpop.f32.mrf.mxu1  ;;  %3942 = vmatmul.mubr.bf16.vlgmr.msra.gmra.mxu1 %v5482_v31  ;;  %v3658_v55 = vpop.f32.mrf.mxu0  ;;  %v5009_v31 = vmul.f32 -1.442695, %v4039_v17  ;;  %v5008_v20 = vmul.f32 -1.442695, %v4038_v28 }
 0x21b   : > { %v3698_v53 = vadd.f32 %v3697_v52, %v3656_v51 }
 0x21c   : > { %v3699_v56 = vpop.f32.mrf.mxu1  ;;  %v3660_v58 = vpop.f32.mrf.mxu0  ;;  %5112 = vpow2.f32 %v5009_v31 }
 0x21d   : > { %v3700_v57 = vadd.f32 %v3699_v56, %v3658_v55  ;;  %5114 = vpow2.f32 %v5008_v20 }
 0x21e   : > { %v3701_v59 = vpop.f32.mrf.mxu1  ;;  %v3661_v60 = vpop.f32.mrf.mxu0 }
 0x21f   : > { %v4000_v12 = vcombine.low %v3698_v53, %v3700_v57  ;;  %v194_v57 = vld [vmem:[%s5239_s21 + $0x18] sm:$0xff] }
 0x220   : > { %v3702_v61 = vpop.f32.mrf.mxu1 }
 0x221   : > { %v4008_v63 = vrot.slane %v4000_v12, %v5320_v54 }
 0x229   : > { %v5113_v13 = vpop.eup %5112 }
 0x22a   : > { %v5115_v3 = vpop.eup %5114  ;;  %v4051_v62 = vadd.f32 1.0, %v5113_v13 }
 0x22b   : > { %v4045_v18 = vadd.f32 1.0, %v5115_v3 }
 0x22c   : > { %5116 = vrcp.f32 %v4051_v62 }
 0x22d   : > { %5118 = vrcp.f32 %v4045_v18 }
 0x239   : > { %v5117_v24 = vpop.eup %5116 }
 0x23a   : > { %v5119_v27 = vpop.eup %5118  ;;  %v4062_v30 = vmul.f32 %v5117_v24, %v4061_v25 }
 0x258   : > { %v3738_v5 = vpop.f32.mrf.mxu0 }
 0x25a   : > { %v3779_v7 = vpop.f32.mrf.mxu1  ;;  %v3740_v15 = vpop.f32.mrf.mxu0 }
 0x25b   : > { %v3780_v26 = vadd.f32 %v3779_v7, %v3738_v5 }
 0x25c   : > { %v3781_v23 = vpop.f32.mrf.mxu1  ;;  %v3742_v11 = vpop.f32.mrf.mxu0 }
 0x25d   : > { %v3782_v9 = vadd.f32 %v3781_v23, %v3740_v15 }
 0x25e   : > { %v3783_v14 = vpop.f32.mrf.mxu1  ;;  %v3743_v8 = vpop.f32.mrf.mxu0 }
 0x25f   : > { %v4001_v10 = vcombine.low %v3780_v26, %v3782_v9 }
 0x260   : > { %v3784_v16 = vpop.f32.mrf.mxu1 }
 0x261   : > { %v4015_v4 = vrot.slane %v4001_v10, %v5320_v54 }
 0x263   : > { %v4016_v21 = vcombine.low %v4008_v63, %v4015_v4 }
 0x265   : > { %v4040_v22 = vadd.f32 %v4016_v21, %v193_v19 }
 0x267   : > { %5120 = vtanh.f32 %v4040_v22 }
 0x274   : > { %v5121_v29 = vpop.eup %5120 }
 0x275   : > { %v4063_v32 = vmul.f32 %v5121_v29, %v5119_v27 }
 0x277   : > { %v4064_v33 = vadd.f32 %v4063_v32, %v4062_v30 }
 0x279   : > { %4067 = vst [vmem:[#allocation3] sm:$0xff] %v4064_v33 }
 0x298   : > { %v3820_v34 = vpop.f32.mrf.mxu0 }
 0x29a   : > { %v3861_v0 = vpop.f32.mrf.mxu1  ;;  %v3822_v36 = vpop.f32.mrf.mxu0 }
 0x29b   : > { %v3862_v35 = vadd.f32 %v3861_v0, %v3820_v34 }
 0x29c   : > { %v3863_v6 = vpop.f32.mrf.mxu1  ;;  %v3824_v38 = vpop.f32.mrf.mxu0 }
 0x29d   : > { %v3864_v37 = vadd.f32 %v3863_v6, %v3822_v36 }
 0x29e   : > { %v3865_v39 = vpop.f32.mrf.mxu1  ;;  %v3825_v41 = vpop.f32.mrf.mxu0 }
 0x29f   : > { %v4017_v40 = vcombine.low %v3862_v35, %v3864_v37 }
 0x2a0   : > { %v3866_v42 = vpop.f32.mrf.mxu1 }
 0x2a1   : > { %v4025_v55 = vrot.slane %v4017_v40, %v5320_v54 }
 0x2d8   : > { %v3902_v43 = vpop.f32.mrf.mxu0 }
 0x2da   : > { %v3943_v44 = vpop.f32.mrf.mxu1  ;;  %v3904_v45 = vpop.f32.mrf.mxu0 }
 0x2db   : > { %v3944_v47 = vadd.f32 %v3943_v44, %v3902_v43 }
 0x2dc   : > { %v3945_v46 = vpop.f32.mrf.mxu1  ;;  %v3906_v49 = vpop.f32.mrf.mxu0 }
 0x2dd   : > { %v3946_v48 = vadd.f32 %v3945_v46, %v3904_v45 }
 0x2de   : > { %v3947_v50 = vpop.f32.mrf.mxu1  ;;  %v3907_v52 = vpop.f32.mrf.mxu0 }
 0x2df   : > { %v4018_v51 = vcombine.low %v3944_v47, %v3946_v48 }
 0x2e0   : > { %v3948_v53 = vpop.f32.mrf.mxu1 }
 0x2e1   : > { %v4032_v56 = vrot.slane %v4018_v51, %v5320_v54 }
 0x2e3   : > { %v4033_v58 = vcombine.low %v4025_v55, %v4032_v56 }
 0x2e5   : > { %v4041_v59 = vadd.f32 %v4033_v58, %v194_v57 }
 0x2e7   : > { %v5010_v12 = vmul.f32 -1.442695, %v4041_v59 }
 0x2e9   : > { %5122 = vpow2.f32 %v5010_v12 }
 0x2ea   : > { %5124 = vtanh.f32 %v4064_v33 }
 0x2f6   : > { %v5123_v60 = vpop.eup %5122 }
 0x2f7   : > { %v4058_v61 = vadd.f32 1.0, %v5123_v60  ;;  %v5125_v1 = vpop.eup %5124 }
 0x2f9   : > { %5126 = vrcp.f32 %v4058_v61 }
 0x305   : > { %4072 = sbr.rel (%p5011_p5) target bundleno = 1014 (0x3f6), region = 44 }
 0x306   : > { %v5127_v2 = vpop.eup %5126 }
 0x307   : > { %v4066_v17 = vmul.f32 %v5127_v2, %v5125_v1 }
 0x309   : > { %4068 = vst [vmem:[#allocation2] sm:$0xff] %v4066_v17 }
 0x30a   : > { %v5128_v28 = vld [vmem:[%s7013_s2 + $0x78] sm:$0xff]   ;;  %v6887_v31 = vrot.slane %v4066_v17, %v5320_v54  ;;  %v4074_v20 = vcombine.high %v4066_v17, %v4066_v17  ;;  %v5132_v9 = vld [vmem:[%s7013_s2 + $0x70] sm:$0xff]   ;;  %v5136_v8 = vld [vmem:[%s7013_s2 + $0x68] sm:$0xff]  }
 0x30b   : > { %v5129_v5 = vld [vmem:[%s7013_s2 + $0xf8] sm:$0xff]   ;;  %5050 = vmatprep.subr.bf16.mxu0 %v5128_v28  ;;  %v5134_v14 = vld [vmem:[%s7013_s2 + $0x30] sm:$0xff]   ;;  %v5137_v16 = vld [vmem:[%s7013_s2 + $0xe8] sm:$0xff]  }
 0x30c   : > { %v5130_v7 = vld [vmem:[%s7013_s2 + $0x38] sm:$0xff]   ;;  %v4089_v26 = vcombine.high %v6887_v31, %v6887_v31  ;;  %v6898_v15 = vrot.slane %v4074_v20, %v5320_v54  ;;  %5072 = vmatprep.subr.bf16.mxu1 %v5129_v5  ;;  %v5133_v54 = vld [vmem:[%s7013_s2 + $0xf0] sm:$0xff]   ;;  %v5138_v62 = vld [vmem:[%s7013_s2 + $0x28] sm:$0xff]   ;;  %v4095_v40 = vpack.c.bf16 %v6887_v31, %v6887_v31 }
 0x30d   : > { %v5131_v23 = vld [vmem:[%s7013_s2 + $0xb8] sm:$0xff]   ;;  %5051 = vmatpush3.bf16.msra.mxu0 %v5130_v7  ;;  %v5135_v10 = vld [vmem:[%s7013_s2 + $0xb0] sm:$0xff]   ;;  %v5139_v63 = vld [vmem:[%s7013_s2 + $0xa8] sm:$0xff]  }
 0x30e   : > { %v4096_v11 = vpack.c.bf16 %v4089_v26, %v4089_v26  ;;  %v4090_v13 = vcombine.high %v6898_v15, %v6898_v15  ;;  %5073 = vmatpush3.bf16.msra.mxu1 %v5131_v23  ;;  %5052 = vmatprep.subr.bf16.mxu0 %v5132_v9  ;;  %v5140_v4 = vld [vmem:[%s7013_s2 + $0x60] sm:$0xff]   ;;  %v5144_v22 = vld [vmem:[%s7013_s2 + $0x58] sm:$0xff]   ;;  %v5148_v29 = vld [vmem:[%s7013_s2 + $0x50] sm:$0xff]   ;;  %v4097_v41 = vpack.c.bf16 %v6898_v15, %v6898_v15 }
 0x30f   : > { %5074 = vmatprep.subr.bf16.mxu1 %v5133_v54  ;;  %v5141_v18 = vld [vmem:[%s7013_s2 + $0xe0] sm:$0xff]   ;;  %v5145_v24 = vld [vmem:[%s7013_s2 + $0xd8] sm:$0xff]   ;;  %v5149_v30 = vld [vmem:[%s7013_s2 + $0xd0] sm:$0xff]  }
 0x310   : > { %4394 = vmatprep.mubr.bf16.mxu0 %v4096_v11  ;;  %v4098_v3 = vpack.c.bf16 %v4090_v13, %v4090_v13  ;;  %v5142_v19 = vld [vmem:[%s7013_s2 + $0x20] sm:$0xff]   ;;  %v5146_v25 = vld [vmem:[%s7013_s2 + $0x18] sm:$0xff]   ;;  %v5150_v32 = vld [vmem:[%s7013_s2 + $0x10] sm:$0xff]  }
 0x311   : > { %5053 = vmatpush3.bf16.msra.mxu0 %v5134_v14  ;;  %v5143_v21 = vld [vmem:[%s7013_s2 + $0xa0] sm:$0xff]   ;;  %v5147_v27 = vld [vmem:[%s7013_s2 + $0x98] sm:$0xff]   ;;  %v5151_v33 = vld [vmem:[%s7013_s2 + $0x90] sm:$0xff]  }
 0x312   : > { %4434 = vmatprep.mubr.bf16.mxu1 %v4098_v3  ;;  %5075 = vmatpush3.bf16.msra.mxu1 %v5135_v10  ;;  %v5152_v34 = vld [vmem:[%s7013_s2 + $0x48] sm:$0xff]   ;;  %v5156_v6 = vld [vmem:[%s7013_s2 + $0x40] sm:$0xff]  }
 0x313   : > { %5054 = vmatprep.subr.bf16.mxu0 %v5136_v8  ;;  %5076 = vmatprep.subr.bf16.mxu1 %v5137_v16  ;;  %v5153_v0 = vld [vmem:[%s7013_s2 + $0xc8] sm:$0xff]   ;;  %v5157_v37 = vld [vmem:[%s7013_s2 + $0xc0] sm:$0xff]  }
 0x314   : > { %v5154_v35 = vld [vmem:[%s7013_s2 + $0x8] sm:$0xff]   ;;  %v5158_v38 = vld [vmem:[%s7013_s2] sm:$0xff]  }
 0x315   : > { %5055 = vmatpush3.bf16.msra.mxu0 %v5138_v62  ;;  %v5155_v36 = vld [vmem:[%s7013_s2 + $0x88] sm:$0xff]   ;;  %v5159_v39 = vld [vmem:[%s7013_s2 + $0x80] sm:$0xff]  }
 0x316   : > { %5077 = vmatpush3.bf16.msra.mxu1 %v5139_v63  ;;  %5056 = vmatprep.subr.bf16.mxu0 %v5140_v4  ;;  %v5012_v44 = vld [vmem:[%s7014_s3] ss:$0 sm:$0xff] }
 0x317   : > { %5078 = vmatprep.subr.bf16.mxu1 %v5141_v18 }
 0x319   : > { %5057 = vmatpush3.bf16.msra.mxu0 %v5142_v19 }
 0x31a   : > { %5079 = vmatpush3.bf16.msra.mxu1 %v5143_v21  ;;  %5058 = vmatprep.subr.bf16.mxu0 %v5144_v22 }
 0x31b   : > { %5080 = vmatprep.subr.bf16.mxu1 %v5145_v24 }
 0x31d   : > { %5059 = vmatpush3.bf16.msra.mxu0 %v5146_v25 }
 0x31e   : > { %5081 = vmatpush3.bf16.msra.mxu1 %v5147_v27  ;;  %5060 = vmatprep.subr.bf16.mxu0 %v5148_v29 }
 0x31f   : > { %5082 = vmatprep.subr.bf16.mxu1 %v5149_v30 }
 0x321   : > { %5061 = vmatpush3.bf16.msra.mxu0 %v5150_v32 }
 0x322   : > { %5083 = vmatpush3.bf16.msra.mxu1 %v5151_v33  ;;  %5062 = vmatprep.subr.bf16.mxu0 %v5152_v34 }
 0x323   : > { %5084 = vmatprep.subr.bf16.mxu1 %v5153_v0 }
 0x325   : > { %5063 = vmatpush3.bf16.msra.mxu0 %v5154_v35 }
 0x326   : > { %5085 = vmatpush3.bf16.msra.mxu1 %v5155_v36  ;;  %5064 = vmatprep.subr.bf16.mxu0 %v5156_v6 }
 0x327   : > { %5086 = vmatprep.subr.bf16.mxu1 %v5157_v37 }
 0x329   : > { %5065 = vmatpush3.bf16.msra.mxu0 %v5158_v38 }
 0x32a   : > { %5087 = vmatpush3.bf16.msra.mxu1 %v5159_v39 }
 0x32c   : > { %4395 = vmatmul.mubr.bf16.vlgmr.msra.gmra.mxu0 %v4095_v40 }
 0x32d   : > { %4435 = vmatmul.mubr.bf16.vlgmr.msra.gmra.mxu1 %v4097_v41 }
 0x3ec   : > { %v5066_v42 = vpop.f32.mrf.mxu0 }
 0x3ed   : > { %v5088_v43 = vpop.f32.mrf.mxu1 }
 0x3ee   : > { %v5067_v45 = vpop.f32.mrf.mxu0 }
 0x3ef   : > { %v5068_v46 = vadd.f32 %v5067_v45, %v5066_v42  ;;  %v5089_v47 = vpop.f32.mrf.mxu1 }
 0x3f0   : > { %v5069_v48 = vpop.f32.mrf.mxu0  ;;  %v5090_v50 = vadd.f32 %v5089_v47, %v5088_v43 }
 0x3f1   : > { %v4397_v49 = vadd.f32 %v5068_v46, %v5012_v44  ;;  %v5091_v51 = vpop.f32.mrf.mxu1 }
 0x3f2   : > { %v5070_v52 = vpop.f32.mrf.mxu0 }
 0x3f3   : > { %v4437_v53 = vadd.f32 %v5090_v50, %v4397_v49  ;;  %v5092_v55 = vpop.f32.mrf.mxu1 }
 0x3f5   : > { %4442 = vst [vmem:[#allocation4] sm:$0x3] %v4437_v53 }
 0x3f6 PF: > { %p5098_p6 = scmp.eq.s32.totalorder %s5230_s16, 7  ;;  %s5198_s28 = smov [#allocation4]  }
 0x3f7   : > { %s4450_s29 = sshll.u32 %s5198_s28, 4  ;;  %s4451_s29 = int_to_ptr.vmem [resolvable:$true] %s4450_s29 }
 0x3f8   : > { %s5160_s30 = scalar_lea.vmem %s4451_s29, 32  ;;  %p5167_p10 = scmp.lt.s32.totalorder %s4451_s29, %s4451_s29 }
 0x3f9   : > { %p5161_p7 = scmp.ne.s32.totalorder %s4451_s29, %s5160_s30  ;;  %p5168_p11 = scmp.lt.s32.totalorder %s5160_s30, %s5160_s30 }
 0x3fb   : > { %p5162_p8 = pnand %p5161_p7, %p5098_p6  ;;  %p5169_p12 = por %p5168_p11, %p5167_p10 }
 0x3fd   : > { %p5163_p9 = pneg %p5162_p8 }
 0x3ff   : > { %p5170_p13 = pnand %p5169_p12, %p5163_p9 }
 0x401   : > { %5173 = shalt.err (!%p5170_p13)
}
 0x402   : > { %5095 = dma.vmem_to_hbm [thread:$0]  (%p5098_p6), %s4451_s29, 32, %s7015_s4, [#allocation5]  }
 0x403   : > { %5189 = dma.done.wait (%p5098_p6), [#allocation5], 32  }
 0x404   : > { %5191 = vsyncadd (%p5098_p6), [#allocation5], 4294967264 }
 0x405 PF: > { %s15_s15 = sadd.s32 1, %s5194_s15  }
 0x406   : > { %p12_p0 = scmp.ge.s32.totalorder %s15_s15, 10  }
 0x408   :  { %14 = sbr.rel (!%p12_p0) target bundleno = 1 (0x1), region = 71 }
 0x40d   :  { %4463 = vsyncpa [#allocation5], 1 }
 0x40e   :  { %4465 = vsyncpa [#allocation5 + $0x1], 1 }

// kernel: video_classifier_forward.2
= control target key start
LH: loop header
LB: loop body
LE: loop exit
PB: predicated region body
PF: predicated region fallthrough
CT: control target
= control target key end

     0   :  { %s13677_s27 = smov 0   ;;  %s18679_s0 = inlined_call_operand.vmem [shape: bf16[16,64,32], index: 0, kind: input, shape index: {}]   ;;  %s18680_s1 = inlined_call_operand.vmem [shape: bf16[32,32], index: 1, kind: input, shape index: {}]   ;;  %s18681_s2 = inlined_call_operand.vmem [shape: f32[1,32], index: 2, kind: input, shape index: {}]   ;;  %s18682_s3 = inlined_call_operand.vmem [shape: f32[1,32], index: 3, kind: input, shape index: {}]   ;;  %s18683_s4 = inlined_call_operand.vmem [shape: bf16[32,1280], index: 4, kind: input, shape index: {}]   ;;  %s18684_s5 = inlined_call_operand.vmem [shape: f32[1,1280], index: 5, kind: input, shape index: {}]   ;;  %s18685_s6 = inlined_call_operand.vmem [shape: bf16[1280,2048], index: 6, kind: input, shape index: {}]   ;;  %s18686_s7 = inlined_call_operand.vmem [shape: f32[1,2048], index: 7, kind: input, shape index: {}]   ;;  %s18687_s8 = inlined_call_operand.vmem [shape: f32[16,2048], index: 8, kind: output, shape index: {}]  }
   0x1 LB: > { %s13683_s28 = sadd.s32 4294967295, %s13629_s27   ;;  %p11685_p0 = scmp.ge.s32.totalorder %s13629_s27, 1  ;;  %s13629_s27 = sphi %s13677_s27, %s18_s27  }
   0x2   : > { %p264_p1 = scmp.lt.s32.totalorder %s13629_s27, 3 }
   0x4   : > { %p265_p2 = pnand %p11685_p0, %p264_p1 }
   0x6   : > { %268 = sbr.rel (%p265_p2) target bundleno = 2081 (0x821), region = 52 }
   0xb   : > { %v13257_v0 = vld [vmem:[%s18680_s1 + $0x8] sm:$0xff]   ;;  %s11686_s9 = sshll.u32 %s13683_s28, 3  ;;  %v13258_v1 = vld [vmem:[%s18680_s1] sm:$0xff]   ;;  %vm552_vm0 = vcmask 261120   ;;  %vm1803_vm1 = vcmask 1041409   ;;  %vm1805_vm2 = vcmask 1042434  }
   0xc   : > { %p300_p3 = scmp.lt.s32.totalorder %s11686_s9, 15  ;;  %13176 = vmatprep.subr.bf16.mxu0 %v13257_v0  ;;  %13244 = vmatprep.subr.bf16.mxu1 %v13257_v0  ;;  %v13766_v34 = vld [vmem:[%s18681_s2] ss:$0 sm:$0xff]  ;;  %vm1807_vm3 = vcmask 1043459   ;;  %vm1809_vm4 = vcmask 1044484   ;;  %vm1811_vm5 = vcmask 1045509  }
   0xd   : > { %13177 = vmatpush3.bf16.msra.mxu0 %v13257_v0  ;;  %13246 = vmatpush3.bf16.msra.mxu1 %v13257_v0  ;;  %v13771_v36 = vld [vmem:[%s18682_s3] ss:$0 sm:$0xff]  ;;  %vm1813_vm6 = vcmask 1046534   ;;  %vm1815_vm7 = vcmask 1047559   ;;  %p306_p4 = scmp.lt.s32.totalorder %s13683_s28, 1 }
   0xe   : > { %s18691_s9 = smov (!%p300_p3, %s11686_s9), 15  ;;  %13178 = vmatprep.subr.bf16.mxu0 %v13258_v1  ;;  %13245 = vmatprep.subr.bf16.mxu1 %v13258_v1 }
   0xf   : > { %s13140_s12 = sshll.u32 %s18691_s9, 5  ;;  %s18693_s28 = smov (!%p306_p4, %s13683_s28), 1 }
  0x10   : > { %s13697_s15 = scalar_lea.vmem %s18679_s0, %s13140_s12  ;;  %s13141_s26 = sshll.u32 %s18693_s28, 7 }
  0x11   : > { %13179 = vmatpush3.bf16.msra.mxu0 %v13258_v1  ;;  %v13259_v2 = vld [vmem:[%s13697_s15] sm:$0xff]   ;;  %13247 = vmatpush3.bf16.msra.mxu1 %v13258_v1  ;;  %v13260_v3 = vld [vmem:[%s13697_s15 + $0x8] sm:$0xff]   ;;  %v13261_v4 = vld [vmem:[%s13697_s15 + $0x10] sm:$0xff]   ;;  %s15798_s16 = scalar_lea.vmem %s18687_s8, %s13141_s26 }
  0x12   : > { %13180 = vmatprep.mubr.msk.bf16.mxu0 %vm552_vm0, %v13259_v2  ;;  %v13262_v5 = vld [vmem:[%s13697_s15 + $0x18] sm:$0xff]   ;;  %v13263_v6 = vld [vmem:[%s13697_s15 + $0x20] sm:$0xff]   ;;  %v13264_v7 = vld [vmem:[%s13697_s15 + $0x28] sm:$0xff]  }
  0x13   : > { %v13273_v8 = vld [vmem:[%s13697_s15 + $0xe0] sm:$0xff]   ;;  %v13274_v9 = vld [vmem:[%s13697_s15 + $0xe8] sm:$0xff]   ;;  %v13265_v10 = vld [vmem:[%s13697_s15 + $0x30] sm:$0xff]  }
  0x14   : > { %13181 = vmatmul.mubr.msk.bf16.vlgmr.msra.gmra.mxu0 %vm552_vm0, %v13260_v3  ;;  %13236 = vmatprep.mubr.msk.bf16.mxu1 %vm552_vm0, %v13273_v8  ;;  %v13277_v11 = vld [vmem:[%s13697_s15 + $0xf0] sm:$0xff]   ;;  %v13278_v12 = vld [vmem:[%s13697_s15 + $0xf8] sm:$0xff]   ;;  %v13267_v14 = vld [vmem:[%s13697_s15 + $0x40] sm:$0xff]  }
  0x15   : > { %13184 = vmatprep.mubr.msk.bf16.mxu0 %vm552_vm0, %v13261_v4  ;;  %13237 = vmatmul.mubr.msk.bf16.vlgmr.msra.gmra.mxu1 %vm552_vm0, %v13274_v9  ;;  %v13266_v13 = vld [vmem:[%s13697_s15 + $0x38] sm:$0xff]   ;;  %v13268_v15 = vld [vmem:[%s13697_s15 + $0x48] sm:$0xff]   ;;  %v13269_v16 = vld [vmem:[%s13697_s15 + $0x50] sm:$0xff]  }
  0x16   : > { %13240 = vmatprep.mubr.msk.bf16.mxu1 %vm552_vm0, %v13277_v11  ;;  %v13270_v17 = vld [vmem:[%s13697_s15 + $0x58] sm:$0xff]   ;;  %v13271_v18 = vld [vmem:[%s13697_s15 + $0x60] sm:$0xff]   ;;  %v13272_v19 = vld [vmem:[%s13697_s15 + $0x68] sm:$0xff]  }
  0x17   : > { %v13275_v20 = vld [vmem:[%s13697_s15 + $0x70] sm:$0xff]   ;;  %v13276_v21 = vld [vmem:[%s13697_s15 + $0x78] sm:$0xff]   ;;  %v13279_v22 = vld [vmem:[%s13697_s15 + $0x80] sm:$0xff]  }
  0x18   : > { %v13280_v23 = vld [vmem:[%s13697_s15 + $0x88] sm:$0xff]   ;;  %v13281_v24 = vld [vmem:[%s13697_s15 + $0x90] sm:$0xff]   ;;  %v13282_v25 = vld [vmem:[%s13697_s15 + $0x98] sm:$0xff]  }
  0x19   : > { %v13283_v26 = vld [vmem:[%s13697_s15 + $0xa0] sm:$0xff]   ;;  %v13284_v27 = vld [vmem:[%s13697_s15 + $0xa8] sm:$0xff]   ;;  %v13285_v28 = vld [vmem:[%s13697_s15 + $0xb0] sm:$0xff]  }
  0x1a   : > { %v13286_v29 = vld [vmem:[%s13697_s15 + $0xb8] sm:$0xff]   ;;  %v13287_v30 = vld [vmem:[%s13697_s15 + $0xc0] sm:$0xff]   ;;  %v13288_v31 = vld [vmem:[%s13697_s15 + $0xc8] sm:$0xff]  }
  0x1b   : > { %v13289_v32 = vld [vmem:[%s13697_s15 + $0xd0] sm:$0xff]   ;;  %v13290_v33 = vld [vmem:[%s13697_s15 + $0xd8] sm:$0xff]  }
  0x1c   : > { %13185 = vmatmul.mubr.msk.bf16.gmra.mxu0 %vm552_vm0, %v13262_v5 }
  0x1d   : > { %13188 = vmatprep.mubr.msk.bf16.mxu0 %vm552_vm0, %v13263_v6  ;;  %13241 = vmatmul.mubr.msk.bf16.gmra.mxu1 %vm552_vm0, %v13278_v12 }
  0x24   : > { %13189 = vmatmul.mubr.msk.bf16.gmra.mxu0 %vm552_vm0, %v13264_v7 }
  0x25   : > { %13192 = vmatprep.mubr.msk.bf16.mxu0 %vm552_vm0, %v13265_v10 }
  0x2c   : > { %13193 = vmatmul.mubr.msk.bf16.gmra.mxu0 %vm552_vm0, %v13266_v13 }
  0x2d   : > { %13196 = vmatprep.mubr.msk.bf16.mxu0 %vm552_vm0, %v13267_v14 }
  0x34   : > { %13197 = vmatmul.mubr.msk.bf16.gmra.mxu0 %vm552_vm0, %v13268_v15 }
  0x35   : > { %13200 = vmatprep.mubr.msk.bf16.mxu0 %vm552_vm0, %v13269_v16 }
  0x3c   : > { %13201 = vmatmul.mubr.msk.bf16.gmra.mxu0 %vm552_vm0, %v13270_v17 }
  0x3d   : > { %13204 = vmatprep.mubr.msk.bf16.mxu0 %vm552_vm0, %v13271_v18 }
  0x44   : > { %13205 = vmatmul.mubr.msk.bf16.gmra.mxu0 %vm552_vm0, %v13272_v19 }
  0x45   : > { %13208 = vmatprep.mubr.msk.bf16.mxu0 %vm552_vm0, %v13275_v20 }
  0x4c   : > { %13209 = vmatmul.mubr.msk.bf16.gmra.mxu0 %vm552_vm0, %v13276_v21 }
  0x4d   : > { %13212 = vmatprep.mubr.msk.bf16.mxu0 %vm552_vm0, %v13279_v22 }
  0x54   : > { %13213 = vmatmul.mubr.msk.bf16.gmra.mxu0 %vm552_vm0, %v13280_v23 }
  0x55   : > { %13216 = vmatprep.mubr.msk.bf16.mxu0 %vm552_vm0, %v13281_v24 }
  0x5c   : > { %13217 = vmatmul.mubr.msk.bf16.gmra.mxu0 %vm552_vm0, %v13282_v25 }
  0x5d   : > { %13220 = vmatprep.mubr.msk.bf16.mxu0 %vm552_vm0, %v13283_v26 }
  0x64   : > { %13221 = vmatmul.mubr.msk.bf16.gmra.mxu0 %vm552_vm0, %v13284_v27 }
  0x65   : > { %13224 = vmatprep.mubr.msk.bf16.mxu0 %vm552_vm0, %v13285_v28 }
  0x6c   : > { %13225 = vmatmul.mubr.msk.bf16.gmra.mxu0 %vm552_vm0, %v13286_v29 }
  0x6d   : > { %13228 = vmatprep.mubr.msk.bf16.mxu0 %vm552_vm0, %v13287_v30 }
  0x74   : > { %13229 = vmatmul.mubr.msk.bf16.gmra.mxu0 %vm552_vm0, %v13288_v31 }
  0x75   : > { %13232 = vmatprep.mubr.msk.bf16.mxu0 %vm552_vm0, %v13289_v32 }
  0x7c   : > { %13233 = vmatmul.mubr.msk.bf16.gmra.mxu0 %vm552_vm0, %v13290_v33 }
  0xd4   : > { %v13182_v35 = vpop.f32.mrf.mxu0 }
  0xd5   : > { %v947_v37 = vmul.f32 %v13182_v35, %v13766_v34 }
  0xd6   : > { %v683_v38 = vpop.f32.mrf.mxu0 }
  0xd7   : > { %v13775_v39 = vadd.f32 %v13771_v36, %v947_v37  ;;  %v945_v40 = vmul.f32 %v13766_v34, %v683_v38 }
  0xd8   : > { %v13183_v41 = vpop.f32.mrf.mxu0 }
  0xd9   : > { %v11761_v42 = vmul.f32 -1.442695, %v13775_v39  ;;  %v13780_v43 = vadd.f32 %v13771_v36, %v945_v40  ;;  %v948_v44 = vmul.f32 %v13183_v41, %v13766_v34 }
  0xda   : > { %v686_v45 = vpop.f32.mrf.mxu0 }
  0xdb   : > { %13321 = vpow2.f32 %v11761_v42  ;;  %v11759_v46 = vmul.f32 -1.442695, %v13780_v43  ;;  %v13785_v47 = vadd.f32 %v13771_v36, %v948_v44  ;;  %v946_v48 = vmul.f32 %v13766_v34, %v686_v45 }
  0xdc   : > { %v13186_v49 = vpop.f32.mrf.mxu0 }
  0xdd   : > { %13323 = vpow2.f32 %v11759_v46  ;;  %v11762_v50 = vmul.f32 -1.442695, %v13785_v47  ;;  %v13790_v51 = vadd.f32 %v13771_v36, %v946_v48  ;;  %v951_v52 = vmul.f32 %v13186_v49, %v13766_v34 }
  0xde   : > { %v699_v53 = vpop.f32.mrf.mxu0 }
  0xdf   : > { %13325 = vpow2.f32 %v11762_v50  ;;  %v11760_v54 = vmul.f32 -1.442695, %v13790_v51  ;;  %v13795_v55 = vadd.f32 %v13771_v36, %v951_v52  ;;  %v949_v56 = vmul.f32 %v13766_v34, %v699_v53  ;;  %v13238_v53 = vpop.f32.mrf.mxu1 }
  0xe0   : > { %v13187_v57 = vpop.f32.mrf.mxu0 }
  0xe1   : > { %13327 = vpow2.f32 %v11760_v54  ;;  %v11765_v58 = vmul.f32 -1.442695, %v13795_v55  ;;  %v13800_v59 = vadd.f32 %v13771_v36, %v949_v56  ;;  %v952_v60 = vmul.f32 %v13187_v57, %v13766_v34 }
  0xe2   : > { %v702_v61 = vpop.f32.mrf.mxu0 }
  0xe3   : > { %13329 = vpow2.f32 %v11765_v58  ;;  %v11763_v62 = vmul.f32 -1.442695, %v13800_v59  ;;  %v13805_v63 = vadd.f32 %v13771_v36, %v952_v60  ;;  %v950_v0 = vmul.f32 %v13766_v34, %v702_v61 }
  0xe4   : > { %v13190_v1 = vpop.f32.mrf.mxu0 }
  0xe5   : > { %13331 = vpow2.f32 %v11763_v62  ;;  %v11766_v2 = vmul.f32 -1.442695, %v13805_v63  ;;  %v13810_v3 = vadd.f32 %v13771_v36, %v950_v0  ;;  %v955_v4 = vmul.f32 %v13190_v1, %v13766_v34 }
  0xe6   : > { %v715_v5 = vpop.f32.mrf.mxu0 }
  0xe7   : > { %13333 = vpow2.f32 %v11766_v2  ;;  %v11764_v6 = vmul.f32 -1.442695, %v13810_v3  ;;  %v13815_v7 = vadd.f32 %v13771_v36, %v955_v4  ;;  %v953_v8 = vmul.f32 %v13766_v34, %v715_v5 }
  0xe8   : > { %v13322_v9 = vpop.eup %13321  ;;  %v13191_v10 = vpop.f32.mrf.mxu0 }
  0xe9   : > { %v1274_v11 = vadd.f32 1.0, %v13322_v9  ;;  %13335 = vpow2.f32 %v11764_v6  ;;  %v11769_v12 = vmul.f32 -1.442695, %v13815_v7  ;;  %v13820_v13 = vadd.f32 %v13771_v36, %v953_v8  ;;  %v907_v8 = vpop.f32.mrf.mxu1 }
  0xea   : > { %v13324_v14 = vpop.eup %13323  ;;  %v956_v15 = vmul.f32 %v13191_v10, %v13766_v34  ;;  %v718_v16 = vpop.f32.mrf.mxu0  ;;  %v1003_v6 = vmul.f32 %v13238_v53, %v13766_v34 }
  0xeb   : > { %13337 = vrcp.f32 %v1274_v11  ;;  %v1272_v17 = vadd.f32 1.0, %v13324_v14  ;;  %v11767_v18 = vmul.f32 -1.442695, %v13820_v13  ;;  %v954_v19 = vmul.f32 %v13766_v34, %v718_v16 }
  0xec   : > { %v13326_v20 = vpop.eup %13325  ;;  %13339 = vpow2.f32 %v11769_v12  ;;  %v13826_v21 = vadd.f32 %v13771_v36, %v956_v15  ;;  %v13194_v22 = vpop.f32.mrf.mxu0  ;;  %v1001_v12 = vmul.f32 %v13766_v34, %v907_v8 }
  0xed   : > { %13341 = vrcp.f32 %v1272_v17  ;;  %v1275_v23 = vadd.f32 1.0, %v13326_v20  ;;  %v13829_v24 = vadd.f32 %v13771_v36, %v954_v19  ;;  %v959_v25 = vmul.f32 %v13194_v22, %v13766_v34 }
  0xee   : > { %v13328_v26 = vpop.eup %13327  ;;  %13343 = vpow2.f32 %v11767_v18  ;;  %v11770_v27 = vmul.f32 -1.442695, %v13826_v21  ;;  %v731_v28 = vpop.f32.mrf.mxu0 }
  0xef   : > { %13345 = vrcp.f32 %v1275_v23  ;;  %v1273_v29 = vadd.f32 1.0, %v13328_v26  ;;  %v11768_v30 = vmul.f32 -1.442695, %v13829_v24  ;;  %v13835_v31 = vadd.f32 %v13771_v36, %v959_v25 }
  0xf0   : > { %v13330_v32 = vpop.eup %13329  ;;  %13347 = vpow2.f32 %v11770_v27  ;;  %v957_v33 = vmul.f32 %v13766_v34, %v731_v28  ;;  %v13195_v35 = vpop.f32.mrf.mxu0  ;;  %v13872_v28 = vadd.f32 %v13771_v36, %v1003_v6 }
  0xf1   : > { %13349 = vrcp.f32 %v1273_v29  ;;  %v1278_v37 = vadd.f32 1.0, %v13330_v32  ;;  %v11773_v38 = vmul.f32 -1.442695, %v13835_v31  ;;  %v960_v40 = vmul.f32 %v13195_v35, %v13766_v34 }
  0xf2   : > { %v13332_v41 = vpop.eup %13331  ;;  %13351 = vpow2.f32 %v11768_v30  ;;  %v13841_v42 = vadd.f32 %v13771_v36, %v957_v33  ;;  %v734_v44 = vpop.f32.mrf.mxu0  ;;  %v13877_v32 = vadd.f32 %v13771_v36, %v1001_v12 }
  0xf3   : > { %13353 = vrcp.f32 %v1278_v37  ;;  %v1276_v45 = vadd.f32 1.0, %v13332_v41  ;;  %v13844_v46 = vadd.f32 %v13771_v36, %v960_v40  ;;  %v958_v48 = vmul.f32 %v13766_v34, %v734_v44 }
  0xf4   : > { %v13334_v49 = vpop.eup %13333  ;;  %13355 = vpow2.f32 %v11773_v38  ;;  %v11771_v50 = vmul.f32 -1.442695, %v13841_v42  ;;  %v13198_v52 = vpop.f32.mrf.mxu0 }
  0xf5   : > { %13357 = vrcp.f32 %v1276_v45  ;;  %v1279_v54 = vadd.f32 1.0, %v13334_v49  ;;  %v11774_v56 = vmul.f32 -1.442695, %v13844_v46  ;;  %v13850_v57 = vadd.f32 %v13771_v36, %v958_v48 }
  0xf6   : > { %v13336_v58 = vpop.eup %13335  ;;  %13359 = vpow2.f32 %v11771_v50  ;;  %v963_v60 = vmul.f32 %v13198_v52, %v13766_v34  ;;  %v747_v61 = vpop.f32.mrf.mxu0 }
  0xf7   : > { %13361 = vrcp.f32 %v1279_v54  ;;  %v1277_v62 = vadd.f32 1.0, %v13336_v58  ;;  %v11772_v0 = vmul.f32 -1.442695, %v13850_v57  ;;  %v961_v1 = vmul.f32 %v13766_v34, %v747_v61 }
  0xf8   : > { %v13338_v2 = vpop.eup %13337  ;;  %13363 = vpow2.f32 %v11774_v56  ;;  %v13856_v4 = vadd.f32 %v13771_v36, %v963_v60  ;;  %v13199_v5 = vpop.f32.mrf.mxu0 }
  0xf9   : > { %v13340_v9 = vpop.eup %13339  ;;  %13365 = vrcp.f32 %v1277_v62  ;;  %v13860_v10 = vadd.f32 %v13771_v36, %v961_v1  ;;  %v964_v11 = vmul.f32 %v13199_v5, %v13766_v34  ;;  %v1466_v30 = vmul.f32 %v13338_v2, %v13775_v39 }
  0xfa   : > { %v13342_v14 = vpop.eup %13341  ;;  %v1282_v15 = vadd.f32 1.0, %v13340_v9  ;;  %13367 = vpow2.f32 %v11772_v0  ;;  %v11777_v16 = vmul.f32 -1.442695, %v13856_v4  ;;  %v750_v17 = vpop.f32.mrf.mxu0 }
  0xfb   : > { %v13344_v18 = vpop.eup %13343  ;;  %v1464_v19 = vmul.f32 %v13342_v14, %v13780_v43  ;;  %v11775_v20 = vmul.f32 -1.442695, %v13860_v10  ;;  %v13868_v22 = vadd.f32 %v13771_v36, %v964_v11  ;;  %v962_v26 = vmul.f32 %v13766_v34, %v750_v17 }
  0xfc   : > { %v13346_v23 = vpop.eup %13345  ;;  %13369 = vrcp.f32 %v1282_v15  ;;  %v1280_v25 = vadd.f32 1.0, %v13344_v18  ;;  %v13202_v27 = vpop.f32.mrf.mxu0  ;;  %v1531_v5 = vsel %vm552_vm0, %v1466_v30, 0.0 }
  0xfd   : > { %v13348_v29 = vpop.eup %13347  ;;  %13371 = vpow2.f32 %v11777_v16  ;;  %v11778_v43 = vmul.f32 -1.442695, %v13868_v22  ;;  %v13880_v37 = vadd.f32 %v13771_v36, %v962_v26  ;;  %v967_v38 = vmul.f32 %v13202_v27, %v13766_v34 }
  0xfe   : > { %v13350_v33 = vpop.eup %13349  ;;  %13373 = vrcp.f32 %v1280_v25  ;;  %v1283_v35 = vadd.f32 1.0, %v13348_v29  ;;  %v763_v40 = vpop.f32.mrf.mxu0  ;;  %v1528_v44 = vsel %vm552_vm0, %v1464_v19, 0.0  ;;  %v1467_v56 = vmul.f32 %v13346_v23, %v13785_v47 }
  0xff   : > { %v13352_v41 = vpop.eup %13351  ;;  %v1465_v39 = vmul.f32 %v13350_v33, %v13790_v51  ;;  %13375 = vpow2.f32 %v11775_v20  ;;  %v965_v45 = vmul.f32 %v13766_v34, %v763_v40  ;;  %v11776_v50 = vmul.f32 -1.442695, %v13880_v37 }
 0x100   : > { %v13354_v48 = vpop.eup %13353  ;;  %13377 = vrcp.f32 %v1283_v35  ;;  %v1281_v49 = vadd.f32 1.0, %v13352_v41  ;;  %v13888_v52 = vadd.f32 %v13771_v36, %v967_v38  ;;  %v13203_v53 = vpop.f32.mrf.mxu0  ;;  %v1533_v16 = vsel %vm552_vm0, %v1467_v56, 0.0 }
 0x101   : > { %v13356_v54 = vpop.eup %13355  ;;  %v1529_v58 = vsel %vm552_vm0, %v1465_v39, 0.0  ;;  %13379 = vpow2.f32 %v11778_v43  ;;  %v13893_v51 = vadd.f32 %v13771_v36, %v965_v45  ;;  %v968_v12 = vmul.f32 %v13203_v53, %v13766_v34 }
 0x102   : > { %v13358_v60 = vpop.eup %13357  ;;  %v1530_v61 = vadd.f32 %v1529_v58, %v1528_v44  ;;  %13381 = vrcp.f32 %v1281_v49  ;;  %v1286_v62 = vadd.f32 1.0, %v13356_v54  ;;  %v11781_v0 = vmul.f32 -1.442695, %v13888_v52  ;;  %v766_v1 = vpop.f32.mrf.mxu0 }
 0x103   : > { %v13360_v2 = vpop.eup %13359  ;;  %v1468_v6 = vmul.f32 %v13358_v60, %v13800_v59  ;;  %13383 = vpow2.f32 %v11776_v50  ;;  %v11779_v47 = vmul.f32 -1.442695, %v13893_v51  ;;  %v1470_v17 = vmul.f32 %v13354_v48, %v13795_v55 }
 0x104   : > { %v13362_v8 = vpop.eup %13361  ;;  %v1532_v9 = vadd.f32 %v1531_v5, %v1530_v61  ;;  %13385 = vrcp.f32 %v1286_v62  ;;  %v1284_v11 = vadd.f32 1.0, %v13360_v2  ;;  %v13206_v14 = vpop.f32.mrf.mxu0  ;;  %v966_v18 = vmul.f32 %v13766_v34, %v766_v1 }
 0x105   : > { %v13364_v15 = vpop.eup %13363  ;;  %13387 = vpow2.f32 %v11781_v0  ;;  %v13904_v23 = vadd.f32 %v13771_v36, %v968_v12  ;;  %v1535_v27 = vsel %vm552_vm0, %v1468_v6, 0.0  ;;  %v1471_v43 = vmul.f32 %v13362_v8, %v13805_v63 }
 0x106   : > { %v13366_v19 = vpop.eup %13365  ;;  %v1534_v59 = vadd.f32 %v1533_v16, %v1532_v9  ;;  %13389 = vrcp.f32 %v1284_v11  ;;  %v1287_v20 = vadd.f32 1.0, %v13364_v15  ;;  %v779_v25 = vpop.f32.mrf.mxu0  ;;  %v13909_v30 = vadd.f32 %v13771_v36, %v966_v18 }
 0x107   : > { %v13368_v26 = vpop.eup %13367  ;;  %v1469_v29 = vmul.f32 %v13366_v19, %v13810_v3  ;;  %13391 = vpow2.f32 %v11779_v47  ;;  %v11782_v35 = vmul.f32 -1.442695, %v13904_v23  ;;  %v971_v39 = vmul.f32 %v13206_v14, %v13766_v34  ;;  %v13239_v3 = vpop.f32.mrf.mxu1 }
 0x108   : > { %v1536_v55 = vadd.f32 %v1535_v27, %v1534_v59  ;;  %v1285_v33 = vadd.f32 1.0, %v13368_v26  ;;  %v13207_v38 = vpop.f32.mrf.mxu0  ;;  %13393 = vrcp.f32 %v1287_v20  ;;  %v11780_v44 = vmul.f32 -1.442695, %v13909_v30 }
 0x109   : > { %v13370_v40 = vpop.eup %13369  ;;  %v1537_v41 = vsel %vm552_vm0, %v1469_v29, 0.0  ;;  %v11817_v49 = vmul.f32 -1.442695, %v13872_v28  ;;  %v1004_v63 = vmul.f32 %v13239_v3, %v13766_v34  ;;  %v1539_v54 = vsel %vm552_vm0, %v1470_v17, 0.0 }
 0x10a   : > { %v13372_v45 = vpop.eup %13371  ;;  %v1538_v48 = vadd.f32 %v1537_v41, %v1536_v55  ;;  %13395 = vrcp.f32 %v1285_v33  ;;  %v782_v50 = vpop.f32.mrf.mxu0  ;;  %v11815_v56 = vmul.f32 -1.442695, %v13877_v32  ;;  %v969_v62 = vmul.f32 %v13766_v34, %v779_v25 }
 0x10b   : > { %v13374_v53 = vpop.eup %13373  ;;  %13397 = vpow2.f32 %v11782_v35  ;;  %v1290_v61 = vadd.f32 1.0, %v13372_v45  ;;  %v1541_v2 = vsel %vm552_vm0, %v1471_v43, 0.0  ;;  %v13926_v47 = vadd.f32 %v13771_v36, %v971_v39 }
 0x10c   : > { %v13376_v58 = vpop.eup %13375  ;;  %v1540_v60 = vadd.f32 %v1539_v54, %v1538_v48  ;;  %13399 = vpow2.f32 %v11780_v44  ;;  %v13921_v0 = vpop.f32.mrf.mxu0  ;;  %v1472_v5 = vmul.f32 %v13374_v53, %v13820_v13  ;;  %v13929_v11 = vadd.f32 %v13771_v36, %v1004_v63 }
 0x10d   : > { %v13378_v1 = vpop.eup %13377  ;;  %v1288_v6 = vadd.f32 1.0, %v13376_v58  ;;  %13401 = vpow2.f32 %v11817_v49  ;;  %v1474_v15 = vmul.f32 %v13370_v40, %v13815_v7  ;;  %v972_v17 = vmul.f32 %v13207_v38, %v13766_v34 }
 0x10e   : > { %v13380_v8 = vpop.eup %13379  ;;  %v1542_v9 = vadd.f32 %v1541_v2, %v1540_v60  ;;  %v13931_v12 = vpop.f32.mrf.mxu0  ;;  %v13937_v59 = vadd.f32 %v13771_v36, %v969_v62  ;;  %v1549_v26 = vsel %vm552_vm0, %v1472_v5, 0.0  ;;  %v11785_v7 = vmul.f32 -1.442695, %v13926_v47 }
 0x10f   : > { %v13382_v14 = vpop.eup %13381  ;;  %13403 = vrcp.f32 %v1288_v6  ;;  %v1291_v16 = vadd.f32 1.0, %v13380_v8  ;;  %v1475_v43 = vmul.f32 %v13378_v1, %v13826_v21  ;;  %v1552_v40 = vsel %vm552_vm0, %v1474_v15, 0.0 }
 0x110   : > { %v13384_v13 = vpop.eup %13383  ;;  %v1543_v18 = vrot.slane %v1542_v9, 4  ;;  %v1473_v19 = vmul.f32 %v13382_v14, %v13829_v24  ;;  %13405 = vrcp.f32 %v1290_v61  ;;  %v13939_v20 = vpop.f32.mrf.mxu0  ;;  %v13949_v44 = vmul.f32 -1.442695, %v13929_v11 }
 0x111   : > { %v13386_v25 = vpop.eup %13385  ;;  %v1289_v27 = vadd.f32 1.0, %v13384_v13  ;;  %13407 = vpow2.f32 %v11815_v56  ;;  %v910_v24 = vpop.f32.mrf.mxu1  ;;  %v11783_v21 = vmul.f32 -1.442695, %v13937_v59  ;;  %v970_v48 = vmul.f32 %v13766_v34, %v782_v50 }
 0x112   : > { %v13388_v29 = vpop.eup %13387  ;;  %v1544_v55 = vadd.f32 %v1543_v18, %v1542_v9  ;;  %v1550_v33 = vsel %vm552_vm0, %v1473_v19, 0.0  ;;  %13409 = vrcp.f32 %v1291_v16  ;;  %v13945_v35 = vpop.f32.mrf.mxu0  ;;  %v13957_v56 = vadd.f32 %v13771_v36, %v972_v17 }
 0x113   : > { %v13390_v38 = vpop.eup %13389  ;;  %v1551_v41 = vadd.f32 %v1550_v33, %v1549_v26  ;;  %13411 = vrcp.f32 %v1289_v27  ;;  %v1294_v53 = vadd.f32 1.0, %v13388_v29  ;;  %v1554_v61 = vsel %vm552_vm0, %v1475_v43, 0.0 }
 0x114   : > { %v13392_v39 = vpop.eup %13391  ;;  %v1545_v3 = vrot.slane %v1544_v55, 2  ;;  %v1476_v45 = vmul.f32 %v13390_v38, %v13841_v42  ;;  %v13954_v49 = vpop.f32.mrf.mxu0  ;;  %13413 = vpow2.f32 %v11785_v7  ;;  %v1002_v62 = vmul.f32 %v13766_v34, %v910_v24 }
 0x115   : > { %v1553_v63 = vadd.f32 %v1552_v40, %v1551_v41  ;;  %v1292_v54 = vadd.f32 1.0, %v13392_v39  ;;  %v13394_v58 = vpop.eup %13393  ;;  %v13242_v42 = vpop.f32.mrf.mxu1  ;;  %v1478_v50 = vmul.f32 %v13386_v25, %v13835_v31  ;;  %v13968_v15 = vadd.f32 %v13771_v36, %v970_v48 }
 0x116   : > { %v1546_v60 = vadd.f32 %v1545_v3, %v1544_v55  ;;  %v13961_v1 = vpop.f32.mrf.mxu0  ;;  %v1007_v6 = vmul.f32 %v13242_v42, %v13766_v34  ;;  %v1556_v9 = vsel %vm552_vm0, %v1476_v45, 0.0  ;;  %v11786_v31 = vmul.f32 -1.442695, %v13957_v56 }
 0x117   : > { %v13396_v2 = vpop.eup %13395  ;;  %v1555_v5 = vadd.f32 %v1554_v61, %v1553_v63  ;;  %13415 = vrcp.f32 %v1292_v54  ;;  %v1479_v25 = vmul.f32 %v13394_v58, %v13844_v46  ;;  %v13978_v55 = vadd.f32 %v13771_v36, %v1002_v62  ;;  %v923_v40 = vpop.f32.mrf.mxu1 }
 0x118   : > { %v13398_v8 = vpop.eup %13397  ;;  %v1477_v14 = vmul.f32 %v13396_v2, %v13850_v57  ;;  %13417 = vpow2.f32 %v11783_v21  ;;  %v13970_v16 = vpop.f32.mrf.mxu0  ;;  %v1547_v19 = vrot.slane %v1546_v60, 1  ;;  %v13981_v43 = vadd.f32 %v13771_v36, %v1007_v6 }
 0x119   : > { %v13400_v17 = vpop.eup %13399  ;;  %v1557_v13 = vadd.f32 %v1556_v9, %v1555_v5  ;;  %13419 = vrcp.f32 %v1294_v53  ;;  %v1295_v18 = vadd.f32 1.0, %v13398_v8  ;;  %v1560_v24 = vsel %vm552_vm0, %v1478_v50, 0.0 }
 0x11a   : > { %v1558_v26 = vsel %vm552_vm0, %v1477_v14, 0.0  ;;  %v1293_v27 = vadd.f32 1.0, %v13400_v17  ;;  %v13975_v7 = vpop.f32.mrf.mxu0  ;;  %v13402_v57 = vpop.eup %13401  ;;  %v11784_v46 = vmul.f32 -1.442695, %v13968_v15  ;;  %v975_v38 = vmul.f32 %v13921_v0, %v13766_v34  ;;  %v13291_v17 = vld [vmem:[%s18683_s4 + $0x50] ss:$40 sps:$4 sm:$0xff]  }
 0x11b   : > { %v1559_v29 = vadd.f32 %v1558_v26, %v1557_v13  ;;  %13421 = vrcp.f32 %v1295_v18  ;;  %v1005_v45 = vmul.f32 %v13766_v34, %v923_v40  ;;  %v1548_v48 = vadd.f32 %v1547_v19, %v1546_v60  ;;  %v13243_v14 = vpop.f32.mrf.mxu1 }
 0x11c   : > { %v13404_v33 = vpop.eup %13403  ;;  %13423 = vrcp.f32 %v1293_v27  ;;  %v13987_v41 = vpop.f32.mrf.mxu0  ;;  %v1562_v63 = vsel %vm552_vm0, %v1479_v25, 0.0  ;;  %v1330_v53 = vadd.f32 1.0, %v13402_v57  ;;  %v11816_v0 = vmul.f32 -1.442695, %v13978_v55 }
 0x11d   : > { %v13406_v39 = vpop.eup %13405  ;;  %v1561_v3 = vadd.f32 %v1560_v24, %v1559_v29  ;;  %13425 = vpow2.f32 %v11786_v31  ;;  %v1480_v62 = vmul.f32 %v13404_v33, %v13860_v10  ;;  %v13997_v2 = vadd.f32 %v13771_v36, %v975_v38  ;;  %v13293_v10 = vld [vmem:[%s18683_s4 + $0x54] ss:$40 sps:$4 sm:$0xff]   ;;  %v13294_v24 = vld [vmem:[%s18683_s4] ss:$40 sps:$4 sm:$0xff]  }
 0x11e   : > { %v13408_v21 = vpop.eup %13407  ;;  %v13991_v54 = vpop.f32.mrf.mxu0  ;;  %13427 = vpow2.f32 %v13949_v44  ;;  %v11821_v60 = vmul.f32 -1.442695, %v13981_v43  ;;  %v973_v50 = vmul.f32 %v13766_v34, %v13931_v12  ;;  %v1482_v44 = vmul.f32 %v13406_v39, %v13856_v4  ;;  %1933 = vmatprep.subr.bf16.mxu1 %v13293_v10 }
 0x11f   : > { %v13410_v58 = vpop.eup %13409  ;;  %v1563_v61 = vadd.f32 %v1562_v63, %v1561_v3  ;;  %13429 = vpow2.f32 %v11784_v46  ;;  %v14010_v9 = vadd.f32 %v13771_v36, %v1005_v45  ;;  %v1697_v12 = vmul.f32 0.015625, %v1548_v48  ;;  %1934 = vmatpush1.bf16.msra.mxu1 %v13291_v17  ;;  %v13296_v46 = vld [vmem:[%s18683_s4 + $0x4] ss:$40 sps:$4 sm:$0xff]  }
 0x120   : > { %v13412_v42 = vpop.eup %13411  ;;  %v14002_v5 = vpop.f32.mrf.mxu0  ;;  %13431 = vrcp.f32 %v1330_v53  ;;  %v1328_v13 = vadd.f32 1.0, %v13408_v21  ;;  %v1008_v18 = vmul.f32 %v13243_v14, %v13766_v34  ;;  %v1483_v25 = vmul.f32 %v13410_v58, %v13868_v22  ;;  %v13299_v45 = vld [vmem:[%s18683_s4 + $0x5c] ss:$40 sps:$4 sm:$0xff]   ;;  %1935 = vmatprep.subr.bf16.mxu1 %v13296_v46 }
 0x121   : > { %v1564_v6 = vrot.slane %v1563_v61, 4  ;;  %v1481_v8 = vmul.f32 %v13412_v42, %v13880_v37  ;;  %v13414_v19 = vpop.eup %13413  ;;  %v1570_v37 = vsel %vm552_vm0, %v1480_v62, 0.0  ;;  %13433 = vpow2.f32 %v11816_v0 }
 0x122   : > { %v14016_v31 = vpop.f32.mrf.mxu0  ;;  %v11789_v29 = vmul.f32 -1.442695, %v13997_v2  ;;  %v14023_v33 = vadd.f32 %v13771_v36, %v973_v50  ;;  %v1573_v40 = vsel %vm552_vm0, %v1482_v44, 0.0  ;;  %v976_v3 = vmul.f32 %v13939_v20, %v13766_v34  ;;  %v926_v50 = vpop.f32.mrf.mxu1 }
 0x123   : > { %v1565_v4 = vadd.f32 %v1564_v6, %v1563_v61  ;;  %v1571_v26 = vsel %vm552_vm0, %v1481_v8, 0.0  ;;  %13435 = vpow2.f32 %v11821_v60  ;;  %v11819_v63 = vmul.f32 -1.442695, %v14010_v9  ;;  %1936 = vmatpush1.bf16.msra.mxu1 %v13294_v24 }
 0x124   : > { %v13416_v27 = vpop.eup %13415  ;;  %v1572_v57 = vadd.f32 %v1571_v26, %v1570_v37  ;;  %v14040_v53 = vadd.f32 %v13771_v36, %v1008_v18  ;;  %v14042_v58 = vpop.f32.mrf.mxu0  ;;  %v1298_v62 = vadd.f32 1.0, %v13414_v19  ;;  %13437 = vrcp.f32 %v1328_v13  ;;  %1974 = vmatprep.subr.bf16.mxu1 %v13299_v45 }
 0x125   : > { %v13418_v22 = vpop.eup %13417  ;;  %v1566_v38 = vrot.slane %v1565_v4, 2  ;;  %v1484_v39 = vmul.f32 %v13416_v27, %v13893_v51  ;;  %v1575_v51 = vsel %vm552_vm0, %v1483_v25, 0.0  ;;  %v1705_v0 = vpack.c.bf16 %v1697_v12, %v1697_v12 }
 0x126   : > { %v13420_v21 = vpop.eup %13419  ;;  %v1574_v48 = vadd.f32 %v1573_v40, %v1572_v57  ;;  %13439 = vpow2.f32 %v11789_v29  ;;  %v11787_v60 = vmul.f32 -1.442695, %v14023_v33  ;;  %v1296_v8 = vadd.f32 1.0, %v13418_v22  ;;  %v14052_v18 = vpop.f32.mrf.mxu0 }
 0x127   : > { %v1567_v61 = vadd.f32 %v1566_v38, %v1565_v4  ;;  %v1577_v44 = vsel %vm552_vm0, %v1484_v39, 0.0  ;;  %v14048_v14 = vadd.f32 %v13771_v36, %v976_v3  ;;  %v1486_v17 = vmul.f32 %v13420_v21, %v13888_v52 }
 0x128   : > { %v13422_v20 = vpop.eup %13421  ;;  %v1576_v42 = vadd.f32 %v1575_v51, %v1574_v48  ;;  %13441 = vpow2.f32 %v11819_v63  ;;  %v11822_v37 = vmul.f32 -1.442695, %v14040_v53  ;;  %v1006_v25 = vmul.f32 %v13766_v34, %v926_v50  ;;  %v14064_v3 = vpop.f32.mrf.mxu0 }
 0x129   : > { %v13424_v10 = vpop.eup %13423  ;;  %v1568_v6 = vrot.slane %v1567_v61, 1  ;;  %13443 = vrcp.f32 %v1298_v62  ;;  %v1795_v27 = vunpack.c.l.b16 %v1705_v0  ;;  %v1487_v57 = vmul.f32 %v13422_v20, %v13904_v23 }
 0x12a   : > { %v1578_v13 = vadd.f32 %v1577_v44, %v1576_v42  ;;  %v1485_v12 = vmul.f32 %v13424_v10, %v13909_v30  ;;  %v13426_v19 = vpop.eup %13425  ;;  %13445 = vpow2.f32 %v11787_v60  ;;  %v11790_v46 = vmul.f32 -1.442695, %v14048_v14  ;;  %v14081_v50 = vpop.f32.mrf.mxu0 }
 0x12b   : > { %v1569_v4 = vadd.f32 %v1568_v6, %v1567_v61  ;;  %v13428_v26 = vpop.eup %13427  ;;  %v974_v22 = vmul.f32 %v13766_v34, %v13945_v35  ;;  %v1581_v38 = vsel %vm552_vm0, %v1486_v17, 0.0  ;;  %13447 = vrcp.f32 %v1296_v8 }
 0x12c   : > { %v1579_v29 = vsel %vm552_vm0, %v1485_v12, 0.0  ;;  %v13430_v52 = vpop.eup %13429  ;;  %v1299_v40 = vadd.f32 1.0, %v13426_v19  ;;  %v977_v39 = vmul.f32 %v13766_v34, %v13961_v1  ;;  %v1331_v48 = vadd.f32 1.0, %v13428_v26 }
 0x12d   : > { %v1698_v24 = vmul.f32 0.015625, %v1569_v4  ;;  %v1580_v30 = vadd.f32 %v1579_v29, %v1578_v13  ;;  %v14066_v23 = vpop.eup %13431  ;;  %13449 = vpow2.f32 %v11822_v37  ;;  %v1583_v63 = vsel %vm552_vm0, %v1487_v57, 0.0 }
 0x12e   : > { %v1297_v61 = vadd.f32 1.0, %v13430_v52  ;;  %v979_v35 = vmul.f32 %v13954_v49, %v13766_v34  ;;  %v14072_v51 = vadd.f32 %v13771_v36, %v977_v39  ;;  %v13434_v62 = vpop.eup %13433  ;;  %13451 = vpow2.f32 %v11790_v46 }
 0x12f   : > { %v1706_v45 = vpack.c.bf16 %v1698_v24, %v1698_v24  ;;  %v1582_v21 = vadd.f32 %v1581_v38, %v1580_v30  ;;  %v14075_v0 = vadd.f32 %v13771_v36, %v974_v22  ;;  %13453 = vrcp.f32 %v1299_v40 }
 0x130   : > { %v14078_v42 = vadd.f32 %v13771_v36, %v1006_v25  ;;  %v11791_v60 = vmul.f32 -1.442695, %v14072_v51  ;;  %v13436_v10 = vpop.eup %13435  ;;  %13455 = vrcp.f32 %v1331_v48  ;;  %v1329_v8 = vadd.f32 1.0, %v13434_v62 }
 0x131   : > { %v1796_v20 = vunpack.c.l.b16 %v1706_v45  ;;  %v1584_v1 = vadd.f32 %v1583_v63, %v1582_v21  ;;  %v14086_v44 = vpop.eup %13437  ;;  %13457 = vrcp.f32 %v1297_v61  ;;  %v14089_v17 = vadd.f32 %v13771_v36, %v979_v35 }
 0x132   : > { %v11788_v19 = vmul.f32 -1.442695, %v14075_v0  ;;  %v980_v4 = vmul.f32 %v13970_v16, %v13766_v34  ;;  %v978_v37 = vmul.f32 %v13766_v34, %v13975_v7  ;;  %v11820_v25 = vmul.f32 -1.442695, %v14078_v42 }
 0x133   : > { %v14084_v49 = vsel %vm1803_vm1, %v1796_v20, %v1795_v27  ;;  %v1585_v6 = vrot.slane %v1584_v1, 4  ;;  %v13440_v13 = vpop.eup %13439  ;;  %13459 = vpow2.f32 %v11791_v60  ;;  %v983_v26 = vmul.f32 %v13987_v41, %v13766_v34  ;;  %v14099_v27 = vpop.f32.mrf.mxu0 }
 0x134   : > { %v1334_v52 = vadd.f32 1.0, %v13436_v10  ;;  %v14102_v24 = vadd.f32 %v13771_v36, %v978_v37  ;;  %v981_v16 = vmul.f32 %v13766_v34, %v13991_v54  ;;  %13461 = vrcp.f32 %v1329_v8 }
 0x135   : > { %v1586_v12 = vadd.f32 %v1585_v6, %v1584_v1  ;;  %v13442_v57 = vpop.eup %13441  ;;  %v11793_v7 = vmul.f32 -1.442695, %v14089_v17  ;;  %v1302_v38 = vadd.f32 1.0, %v13440_v13  ;;  %13463 = vpow2.f32 %v11788_v19  ;;  %v859_v45 = vpop.f32.mrf.mxu0 }
 0x136   : > { %v14106_v30 = vpop.eup %13443  ;;  %v14110_v41 = vadd.f32 %v13771_v36, %v980_v4  ;;  %v1332_v40 = vadd.f32 1.0, %v13442_v57  ;;  %13465 = vpow2.f32 %v11820_v25  ;;  %v14113_v39 = vadd.f32 %v13771_v36, %v983_v26 }
 0x137   : > { %v1587_v29 = vrot.slane %v1586_v12, 2  ;;  %v13446_v46 = vpop.eup %13445  ;;  %13467 = vrcp.f32 %v1334_v52  ;;  %v11792_v48 = vmul.f32 -1.442695, %v14102_v24  ;;  %v14119_v63 = vadd.f32 %v13771_v36, %v981_v16  ;;  %v14125_v6 = vpop.f32.mrf.mxu0 }
 0x138   : > { %v14115_v21 = vpop.eup %13447  ;;  %v1300_v35 = vadd.f32 1.0, %v13446_v46  ;;  %13469 = vpow2.f32 %v11793_v7  ;;  %v984_v62 = vmul.f32 %v14002_v5, %v13766_v34  ;;  %v11794_v1 = vmul.f32 -1.442695, %v14110_v41 }
 0x139   : > { %v1588_v22 = vadd.f32 %v1587_v29, %v1586_v12  ;;  %13471 = vrcp.f32 %v1302_v38  ;;  %v11797_v10 = vmul.f32 -1.442695, %v14113_v39  ;;  %v11795_v12 = vmul.f32 -1.442695, %v14119_v63  ;;  %v14142_v52 = vpop.f32.mrf.mxu0 }
 0x13a   : > { %v13450_v61 = vpop.eup %13449  ;;  %13473 = vrcp.f32 %v1332_v40  ;;  %v14133_v4 = vadd.f32 %v13771_v36, %v984_v62  ;;  %v982_v37 = vmul.f32 %v13766_v34, %v14016_v31  ;;  %v987_v46 = vmul.f32 %v14042_v58, %v13766_v34 }
 0x13b   : > { %v1589_v54 = vrot.slane %v1588_v22, 1  ;;  %v13452_v60 = vpop.eup %13451  ;;  %13475 = vpow2.f32 %v11792_v48  ;;  %v1335_v5 = vadd.f32 1.0, %v13450_v61  ;;  %v985_v48 = vmul.f32 %v13766_v34, %v14052_v18 }
 0x13c   : > { %v14127_v8 = vpop.eup %13453  ;;  %13477 = vrcp.f32 %v1300_v35  ;;  %v1303_v57 = vadd.f32 1.0, %v13452_v60  ;;  %v14140_v29 = vadd.f32 %v13771_v36, %v982_v37  ;;  %v11798_v31 = vmul.f32 -1.442695, %v14133_v4 }
 0x13d   : > { %v1590_v20 = vadd.f32 %v1589_v54, %v1588_v22  ;;  %v14130_v19 = vpop.eup %13455  ;;  %13479 = vpow2.f32 %v11794_v1  ;;  %v14154_v54 = vadd.f32 %v13771_v36, %v987_v46  ;;  %v988_v58 = vmul.f32 %v14064_v3, %v13766_v34  ;;  %v14173_v3 = vld [vmem:[%s18682_s3] ss:$0 sm:$0xff] }
 0x13e   : > { %v14137_v25 = vpop.eup %13457  ;;  %13481 = vpow2.f32 %v11797_v10  ;;  %v11796_v22 = vmul.f32 -1.442695, %v14140_v29  ;;  %v986_v62 = vmul.f32 %v13766_v34, %v14081_v50  ;;  %v14176_v34 = vadd.f32 %v14173_v3, %v985_v48 }
 0x13f   : > { %v1699_v13 = vmul.f32 0.015625, %v1590_v20  ;;  %13483 = vpow2.f32 %v11795_v12  ;;  %v13230_v20 = vpop.f32.mrf.mxu0  ;;  %v11801_v18 = vmul.f32 -1.442695, %v14154_v54 }
 0x140   : > { %v13460_v16 = vpop.eup %13459  ;;  %13485 = vrcp.f32 %v1335_v5  ;;  %v14185_v10 = vadd.f32 %v14173_v3, %v986_v62  ;;  %v11799_v5 = vmul.f32 -1.442695, %v14176_v34 }
 0x141   : > { %v1707_v26 = vpack.c.bf16 %v1699_v13, %v1699_v13  ;;  %v14148_v38 = vpop.eup %13461  ;;  %13487 = vrcp.f32 %v1303_v57  ;;  %v1304_v35 = vadd.f32 1.0, %v13460_v16  ;;  %v875_v57 = vpop.f32.mrf.mxu0 }
 0x142   : > { %v13464_v61 = vpop.eup %13463  ;;  %13489 = vpow2.f32 %v11796_v22 }
 0x143   : > { %v1797_v7 = vunpack.c.l.b16 %v1707_v26  ;;  %v13466_v1 = vpop.eup %13465  ;;  %13491 = vpow2.f32 %v11798_v31  ;;  %v11800_v26 = vmul.f32 -1.442695, %v14185_v10  ;;  %v1301_v48 = vadd.f32 1.0, %v13464_v61 }
 0x144   : > { %v14179_v60 = vpop.eup %13467  ;;  %13493 = vpow2.f32 %v11801_v18 }
 0x145   : > { %v14151_v40 = vsel %vm1805_vm2, %v1797_v7, %v14084_v49  ;;  %v14165_v49 = vld [vmem:[%s18681_s2] ss:$0 sm:$0xff]  ;;  %v13470_v12 = vpop.eup %13469  ;;  %13495 = vrcp.f32 %v1304_v35  ;;  %v1522_v7 = vmul.f32 %v14066_v23, %v13872_v28  ;;  %v13231_v28 = vpop.f32.mrf.mxu0 }
 0x146   : > { %18688 = vst [vmem:[#allocation2_spill] sm:$0xff] %v14151_v40  ;;  %v991_v36 = vmul.f32 %v14165_v49, %v14099_v27  ;;  %v989_v50 = vmul.f32 %v14165_v49, %v859_v45  ;;  %v14182_v27 = vadd.f32 %v14173_v3, %v988_v58  ;;  %v14191_v37 = vpop.eup %13471  ;;  %13497 = vpow2.f32 %v11799_v5 }
 0x147   : > { %v14195_v16 = vpop.eup %13473  ;;  %v1333_v58 = vadd.f32 1.0, %v13466_v1  ;;  %v1306_v40 = vadd.f32 1.0, %v13470_v12  ;;  %v14208_v5 = vsel %vm552_vm0, %v1522_v7, 0.0  ;;  %v990_v12 = vmul.f32 %v14165_v49, %v14142_v52 }
 0x148   : > { %v14188_v13 = vadd.f32 %v14173_v3, %v991_v36  ;;  %v11802_v45 = vmul.f32 -1.442695, %v14182_v27  ;;  %v14201_v31 = vadd.f32 %v14173_v3, %v989_v50  ;;  %v13476_v22 = vpop.eup %13475  ;;  %v992_v36 = vmul.f32 %v14165_v49, %v14125_v6 }
 0x149   : > { %v14203_v35 = vpop.eup %13477  ;;  %v1305_v62 = vadd.f32 1.0, %v13476_v22  ;;  %v1520_v6 = vmul.f32 %v14086_v44, %v13877_v32  ;;  %v1488_v7 = vmul.f32 %v14115_v21, %v13937_v59  ;;  %v995_v32 = vmul.f32 %v14165_v49, %v13230_v20  ;;  %v878_v44 = vpop.f32.mrf.mxu0 }
 0x14a   : > { %v11805_v46 = vmul.f32 -1.442695, %v14188_v13  ;;  %13499 = vpow2.f32 %v11802_v45  ;;  %v13480_v18 = vpop.eup %13479  ;;  %v11803_v61 = vmul.f32 -1.442695, %v14201_v31  ;;  %v14212_v50 = vadd.f32 %v14173_v3, %v992_v36 }
 0x14b   : > { %13501 = vpow2.f32 %v11800_v26  ;;  %v13482_v23 = vpop.eup %13481  ;;  %v1490_v45 = vmul.f32 %v14106_v30, %v13926_v47  ;;  %v14228_v30 = vadd.f32 %v14173_v3, %v990_v12  ;;  %v1489_v52 = vmul.f32 %v14137_v25, %v13968_v15 }
 0x14c   : > { %13503 = vpow2.f32 %v11805_v46  ;;  %v13484_v1 = vpop.eup %13483  ;;  %v1307_v46 = vadd.f32 1.0, %v13480_v18  ;;  %v11806_v22 = vmul.f32 -1.442695, %v14212_v50  ;;  %v1310_v47 = vadd.f32 1.0, %v13482_v23 }
 0x14d   : > { %13505 = vrcp.f32 %v1305_v62  ;;  %v14220_v26 = vpop.eup %13485  ;;  %v993_v59 = vmul.f32 %v14165_v49, %v875_v57  ;;  %v1521_v36 = vmul.f32 %v14148_v38, %v13978_v55  ;;  %v1594_v20 = vsel %vm552_vm0, %v1490_v45, 0.0 }
 0x14e   : > { %13507 = vrcp.f32 %v1301_v48  ;;  %v14225_v62 = vpop.eup %13487  ;;  %v1308_v48 = vadd.f32 1.0, %v13484_v1  ;;  %v11804_v15 = vmul.f32 -1.442695, %v14228_v30  ;;  %v1591_v57 = vsel %vm552_vm0, %v1488_v7, 0.0 }
 0x14f   : > { %13509 = vrcp.f32 %v1333_v58  ;;  %v13490_v21 = vpop.eup %13489  ;;  %v1675_v58 = vsel %vm552_vm0, %v1520_v6, 0.0  ;;  %v1592_v55 = vsel %vm552_vm0, %v1489_v52, 0.0  ;;  %v14248_v45 = vadd.f32 %v14173_v3, %v993_v59 }
 0x150   : > { %13511 = vrcp.f32 %v1306_v40  ;;  %v1491_v40 = vmul.f32 %v14127_v8, %v13957_v56  ;;  %v13492_v18 = vpop.eup %13491  ;;  %v1309_v23 = vadd.f32 1.0, %v13490_v21  ;;  %v996_v56 = vmul.f32 %v14165_v49, %v13231_v28  ;;  %v13234_v8 = vpop.f32.mrf.mxu0 }
 0x151   : > { %13513 = vpow2.f32 %v11803_v61  ;;  %v13494_v25 = vpop.eup %13493  ;;  %v14243_v61 = vadd.f32 %v14173_v3, %v995_v32  ;;  %v1523_v7 = vmul.f32 %v14130_v19, %v13929_v11  ;;  %v994_v32 = vmul.f32 %v14165_v49, %v878_v44 }
 0x152   : > { %13515 = vpow2.f32 %v11806_v22  ;;  %v13496_v1 = vpop.eup %13495  ;;  %v1314_v38 = vadd.f32 1.0, %v13494_v25  ;;  %v1596_v12 = vsel %vm552_vm0, %v1491_v40, 0.0  ;;  %v891_v40 = vpop.f32.mrf.mxu0  ;;  %v999_v44 = vmul.f32 %v14165_v49, %v13234_v8 }
 0x153   : > { %13517 = vrcp.f32 %v1307_v46  ;;  %v13498_v6 = vpop.eup %13497  ;;  %v1676_v46 = vsel %vm552_vm0, %v1521_v36, 0.0  ;;  %v11809_v21 = vmul.f32 -1.442695, %v14243_v61  ;;  %v11807_v36 = vmul.f32 -1.442695, %v14248_v45 }
 0x154   : > { %13519 = vrcp.f32 %v1310_v47  ;;  %v1312_v28 = vadd.f32 1.0, %v13498_v6  ;;  %v14255_v47 = vadd.f32 %v14173_v3, %v996_v56  ;;  %v1677_v11 = vadd.f32 %v1676_v46, %v1675_v58 }
 0x155   : > { %13521 = vrcp.f32 %v1308_v48  ;;  %v1593_v48 = vadd.f32 %v1592_v55, %v1591_v57  ;;  %v1311_v56 = vadd.f32 1.0, %v13492_v18  ;;  %v14268_v58 = vadd.f32 %v14173_v3, %v994_v32 }
 0x156   : > { %13523 = vpow2.f32 %v11804_v15  ;;  %v1526_v15 = vmul.f32 %v14179_v60, %v13981_v43  ;;  %v1680_v46 = vsel %vm552_vm0, %v1523_v7, 0.0  ;;  %v13235_v60 = vpop.f32.mrf.mxu0  ;;  %v1496_v8 = vmul.f32 %v13496_v1, %v14072_v51 }
 0x157   : > { %v13500_v22 = vpop.eup %13499  ;;  %13525 = vrcp.f32 %v1309_v23  ;;  %v1679_v32 = vadd.f32 %v14208_v5, %v1677_v11  ;;  %v11808_v1 = vmul.f32 -1.442695, %v14268_v58 }
 0x158   : > { %v13502_v52 = vpop.eup %13501  ;;  %13527 = vrcp.f32 %v1314_v38  ;;  %v1315_v59 = vadd.f32 1.0, %v13500_v22  ;;  %v11810_v38 = vmul.f32 -1.442695, %v14255_v47  ;;  %v1595_v22 = vadd.f32 %v1594_v20, %v1593_v48  ;;  %v894_v11 = vpop.f32.mrf.mxu0 }
 0x159   : > { %v13504_v25 = vpop.eup %13503  ;;  %13529 = vrcp.f32 %v1312_v28  ;;  %v1313_v19 = vadd.f32 1.0, %v13502_v52  ;;  %v997_v28 = vmul.f32 %v14165_v49, %v891_v40  ;;  %v14282_v20 = vsel %vm552_vm0, %v1526_v15, 0.0 }
 0x15a   : > { %v13506_v23 = vpop.eup %13505  ;;  %13531 = vrcp.f32 %v1315_v59  ;;  %v1318_v43 = vadd.f32 1.0, %v13504_v25  ;;  %v1494_v59 = vmul.f32 %v14191_v37, %v13997_v2  ;;  %v1597_v25 = vadd.f32 %v1596_v12, %v1595_v22 }
 0x15b   : > { %v14263_v57 = vpop.eup %13507  ;;  %v1497_v55 = vmul.f32 %v13506_v23, %v14102_v24  ;;  %13533 = vrcp.f32 %v1313_v19  ;;  %v14275_v24 = vadd.f32 %v14173_v3, %v999_v44  ;;  %v1612_v2 = vsel %vm552_vm0, %v1496_v8, 0.0 }
 0x15c   : > { %v14270_v6 = vpop.eup %13509  ;;  %13535 = vpow2.f32 %v11809_v21  ;;  %v1524_v15 = vmul.f32 %v14195_v16, %v14010_v9  ;;  %v1492_v44 = vmul.f32 %v14203_v35, %v14023_v33  ;;  %v14305_v8 = vadd.f32 %v1680_v46, %v1679_v32 }
 0x15d   : > { %v13512_v18 = vpop.eup %13511  ;;  %13537 = vpow2.f32 %v11807_v36  ;;  %v1613_v48 = vsel %vm552_vm0, %v1497_v55, 0.0  ;;  %v11813_v37 = vmul.f32 -1.442695, %v14275_v24  ;;  %v14292_v36 = vadd.f32 %v14173_v3, %v997_v28 }
 0x15e   : > { %v13514_v52 = vpop.eup %13513  ;;  %13539 = vrcp.f32 %v1311_v56  ;;  %v1498_v40 = vmul.f32 %v13512_v18, %v14089_v17  ;;  %v1614_v12 = vadd.f32 %v1613_v48, %v1612_v2  ;;  %v1000_v17 = vmul.f32 %v14165_v49, %v13235_v60 }
 0x15f   : > { %v13516_v7 = vpop.eup %13515  ;;  %v1316_v51 = vadd.f32 1.0, %v13514_v52  ;;  %13541 = vpow2.f32 %v11810_v38  ;;  %v11811_v55 = vmul.f32 -1.442695, %v14292_v36  ;;  %v998_v38 = vmul.f32 %v14165_v49, %v894_v11 }
 0x160   : > { %v13518_v21 = vpop.eup %13517  ;;  %13543 = vrcp.f32 %v1318_v43  ;;  %v1319_v5 = vadd.f32 1.0, %v13516_v7  ;;  %v14303_v9 = vadd.f32 %v14173_v3, %v1000_v17  ;;  %v1615_v60 = vsel %vm552_vm0, %v1498_v40, 0.0  ;;  %v2574_v40 = vld [vmem:[%s18685_s6 + $0xb80] sm:$0xff] }
 0x161   : > { %v14287_v19 = vpop.eup %13519  ;;  %13545 = vrcp.f32 %v1316_v51  ;;  %v1499_v43 = vmul.f32 %v13518_v21, %v14110_v41  ;;  %v14309_v33 = vadd.f32 %v14173_v3, %v998_v38  ;;  %v14312_v49 = vsel %vm552_vm0, %v1494_v59, 0.0 }
 0x162   : > { %v13522_v23 = vpop.eup %13521  ;;  %13547 = vrcp.f32 %v1319_v5  ;;  %v1616_v28 = vadd.f32 %v1615_v60, %v1614_v12  ;;  %v11814_v41 = vmul.f32 -1.442695, %v14303_v9  ;;  %v1598_v7 = vsel %vm552_vm0, %v1492_v44, 0.0  ;;  %v2558_v12 = vld [vmem:[%s18685_s6 + $0xb00] sm:$0xff] }
 0x163   : > { %v13524_v56 = vpop.eup %13523  ;;  %13549 = vpow2.f32 %v11808_v1  ;;  %v11812_v32 = vmul.f32 -1.442695, %v14309_v33  ;;  %v1599_v51 = vadd.f32 %v1598_v7, %v1597_v25  ;;  %v1682_v3 = vsel %vm552_vm0, %v1524_v15, 0.0 }
 0x164   : > { %v13526_v22 = vpop.eup %13525  ;;  %v1317_v18 = vadd.f32 1.0, %v13524_v56  ;;  %13551 = vpow2.f32 %v11813_v37  ;;  %v1493_v1 = vmul.f32 %v14263_v57, %v14075_v0  ;;  %v1617_v59 = vsel %vm552_vm0, %v1499_v43, 0.0 }
 0x165   : > { %v13528_v16 = vpop.eup %13527  ;;  %13553 = vpow2.f32 %v11811_v55  ;;  %v13631_v21 = vmov 0   ;;  %v1500_v25 = vmul.f32 %v13522_v23, %v14119_v63  ;;  %v1618_v2 = vadd.f32 %v1617_v59, %v1616_v28  ;;  %v2566_v63 = vld [vmem:[%s18685_s6 + $0xb40] sm:$0xff] }
 0x166   : > { %v13530_v35 = vpop.eup %13529  ;;  %13555 = vrcp.f32 %v1317_v18  ;;  %1953 = vmatprep.mubr.bf16.mxu1 %v13631_v21  ;;  %v1506_v11 = vmul.f32 %v13528_v16, %v14154_v54  ;;  %v1501_v37 = vmul.f32 %v13526_v22, %v14140_v29  ;;  %v1600_v29 = vsel %vm552_vm0, %v1493_v1, 0.0  ;;  %v2550_v28 = vld [vmem:[%s18685_s6 + $0xac0] sm:$0xff] }
 0x167   : > { %v13532_v52 = vpop.eup %13531  ;;  %v1504_v46 = vmul.f32 %v13530_v35, %v14176_v34  ;;  %v2582_v34 = vld [vmem:[%s18685_s6 + $0xbc0] sm:$0xff]  ;;  %13557 = vpow2.f32 %v11814_v41  ;;  %v1619_v43 = vsel %vm552_vm0, %v1500_v25, 0.0  ;;  %v12211_v60 = vcombine.high %v2558_v12, %v2566_v63 }
 0x168   : > { %v13534_v48 = vpop.eup %13533  ;;  %v1507_v15 = vmul.f32 %v13532_v52, %v14182_v27  ;;  %13559 = vpow2.f32 %v11812_v32  ;;  %v12226_v56 = vcombine.low %v2574_v40, %v2582_v34  ;;  %v1525_v27 = vmul.f32 %v14270_v6, %v14078_v42  ;;  %v2542_v35 = vld [vmem:[%s18685_s6 + $0xa80] sm:$0xff] }
 0x169   : > { %v13536_v5 = vpop.eup %13535  ;;  %v1505_v0 = vmul.f32 %v13534_v48, %v14185_v10  ;;  %v1633_v54 = vsel %vm552_vm0, %v1504_v46, 0.0  ;;  %v12227_v38 = vcombine.high %v2574_v40, %v2582_v34  ;;  %v1636_v18 = vsel %vm552_vm0, %v1506_v11, 0.0 }
 0x16a   : > { %v13538_v57 = vpop.eup %13537  ;;  %v1322_v16 = vadd.f32 1.0, %v13536_v5  ;;  %v1620_v52 = vadd.f32 %v1619_v43, %v1618_v2  ;;  %v1621_v42 = vsel %vm552_vm0, %v1501_v37, 0.0  ;;  %v1638_v32 = vsel %vm552_vm0, %v1507_v15, 0.0 }
 0x16b   : > { %v13540_v23 = vpop.eup %13539  ;;  %v1634_v10 = vsel %vm552_vm0, %v1505_v0, 0.0  ;;  %v1320_v17 = vadd.f32 1.0, %v13538_v57  ;;  %10011 = vmatprep.subr.bf16.mxu0 %v12227_v38  ;;  %v12210_v1 = vcombine.low %v2558_v12, %v2566_v63  ;;  %v1683_v40 = vadd.f32 %v1682_v3, %v14305_v8  ;;  %v2534_v8 = vld [vmem:[%s18685_s6 + $0xa40] sm:$0xff] }
 0x16c   : > { %v13542_v44 = vpop.eup %13541  ;;  %v1635_v55 = vadd.f32 %v1634_v10, %v1633_v54  ;;  %10012 = vmatpush1.bf16.msra.mxu0 %v12226_v56  ;;  %v1601_v34 = vadd.f32 %v1600_v29, %v1599_v51  ;;  %v12195_v25 = vcombine.high %v2542_v35, %v2550_v28  ;;  %v1495_v0 = vmul.f32 %v14225_v62, %v14048_v14  ;;  %v2510_v29 = vld [vmem:[%s18685_s6 + $0x980] sm:$0xff] }
 0x16d   : > { %v13544_v22 = vpop.eup %13543  ;;  %v1323_v7 = vadd.f32 1.0, %v13542_v44  ;;  %13561 = vrcp.f32 %v1320_v17  ;;  %10013 = vmatprep.subr.bf16.mxu0 %v12211_v60  ;;  %v1502_v57 = vmul.f32 %v14287_v19, %v14113_v39  ;;  %v1684_v3 = vsel %vm552_vm0, %v1525_v27, 0.0 }
 0x16e   : > { %v13546_v41 = vpop.eup %13545  ;;  %v1637_v6 = vadd.f32 %v1636_v18, %v1635_v55  ;;  %13563 = vrcp.f32 %v1322_v16  ;;  %v1622_v37 = vadd.f32 %v1621_v42, %v1620_v52  ;;  %v12194_v19 = vcombine.low %v2542_v35, %v2550_v28 }
 0x16f   : > { %v13548_v46 = vpop.eup %13547  ;;  %v1508_v48 = vmul.f32 %v13546_v41, %v14201_v31  ;;  %v2526_v31 = vld [vmem:[%s18685_s6 + $0xa00] sm:$0xff]  ;;  %13565 = vrcp.f32 %v1323_v7  ;;  %v1603_v12 = vadd.f32 %v14312_v49, %v1601_v34  ;;  %v1510_v63 = vmul.f32 %v13544_v22, %v14188_v13 }
 0x170   : > { %v13550_v59 = vpop.eup %13549  ;;  %v1639_v5 = vadd.f32 %v1638_v32, %v1637_v6  ;;  %10014 = vmatpush1.bf16.msra.mxu0 %v12210_v1  ;;  %v12179_v10 = vcombine.high %v2526_v31, %v2534_v8  ;;  %v1623_v17 = vsel %vm552_vm0, %v1502_v57, 0.0  ;;  %v1503_v56 = vmul.f32 %v13540_v23, %v14133_v4  ;;  %v2518_v49 = vld [vmem:[%s18685_s6 + $0x9c0] sm:$0xff] }
 0x171   : > { %v13552_v11 = vpop.eup %13551  ;;  %v1321_v2 = vadd.f32 1.0, %v13550_v59  ;;  %v1640_v15 = vsel %vm552_vm0, %v1508_v48, 0.0  ;;  %10015 = vmatprep.subr.bf16.mxu0 %v12195_v25  ;;  %v1685_v13 = vadd.f32 %v1684_v3, %v1683_v40  ;;  %v1624_v55 = vadd.f32 %v1623_v17, %v1622_v37  ;;  %v2478_v34 = vld [vmem:[%s18685_s6 + $0x880] sm:$0xff] }
 0x172   : > { %v13554_v51 = vpop.eup %13553  ;;  %v1641_v62 = vadd.f32 %v1640_v15, %v1639_v5  ;;  %v1326_v44 = vadd.f32 1.0, %v13552_v11  ;;  %v1527_v4 = vmul.f32 %v14220_v26, %v14040_v53  ;;  %v12178_v18 = vcombine.low %v2526_v31, %v2534_v8  ;;  %v2494_v53 = vld [vmem:[%s18685_s6 + $0x900] sm:$0xff] }
 0x173   : > { %v13556_v14 = vpop.eup %13555  ;;  %13567 = vrcp.f32 %v1321_v2  ;;  %v1324_v39 = vadd.f32 1.0, %v13554_v51  ;;  %v1604_v16 = vsel %vm552_vm0, %v1495_v0, 0.0  ;;  %v1644_v60 = vsel %vm552_vm0, %v1510_v63, 0.0  ;;  %v2502_v26 = vld [vmem:[%s18685_s6 + $0x940] sm:$0xff] }
 0x174   : > { %v1509_v54 = vmul.f32 %v13556_v14, %v14228_v30  ;;  %v13558_v27 = vpop.eup %13557  ;;  %v1511_v30 = vmul.f32 %v13548_v46, %v14212_v50  ;;  %10016 = vmatpush1.bf16.msra.mxu0 %v12194_v19  ;;  %v12163_v28 = vcombine.high %v2510_v29, %v2518_v49  ;;  %v1605_v41 = vadd.f32 %v1604_v16, %v1603_v12  ;;  %v2462_v14 = vld [vmem:[%s18685_s6 + $0x800] sm:$0xff] }
 0x175   : > { %13569 = vrcp.f32 %v1324_v39  ;;  %v13560_v22 = vpop.eup %13559  ;;  %v1327_v43 = vadd.f32 1.0, %v13558_v27  ;;  %10017 = vmatprep.subr.bf16.mxu0 %v12179_v10  ;;  %v1625_v50 = vsel %vm552_vm0, %v1503_v56, 0.0  ;;  %v1687_v42 = vadd.f32 %v14282_v20, %v1685_v13  ;;  %v2486_v20 = vld [vmem:[%s18685_s6 + $0x8c0] sm:$0xff] }
 0x176   : > { %v1642_v38 = vsel %vm552_vm0, %v1509_v54, 0.0  ;;  %v1325_v35 = vadd.f32 1.0, %v13560_v22  ;;  %13571 = vrcp.f32 %v1326_v44  ;;  %v1626_v6 = vadd.f32 %v1625_v50, %v1624_v55  ;;  %v2710_v27 = vld [vmem:[%s18685_s6 + $0xfc0] sm:$0xff] }
 0x177   : > { %v1643_v23 = vadd.f32 %v1642_v38, %v1641_v62  ;;  %v1646_v7 = vsel %vm552_vm0, %v1511_v30, 0.0  ;;  %v1688_v46 = vsel %vm552_vm0, %v1527_v4, 0.0  ;;  %v12162_v48 = vcombine.low %v2510_v29, %v2518_v49  ;;  %v2470_v62 = vld [vmem:[%s18685_s6 + $0x840] sm:$0xff] }
 0x178   : > { %13573 = vrcp.f32 %v1325_v35  ;;  %10018 = vmatpush1.bf16.msra.mxu0 %v12178_v18  ;;  %v12147_v59 = vcombine.high %v2494_v53, %v2502_v26  ;;  %v1606_v40 = vrot.slane %v1605_v41, 4  ;;  %v1689_v25 = vadd.f32 %v1688_v46, %v1687_v42  ;;  %v2702_v49 = vld [vmem:[%s18685_s6 + $0xf80] sm:$0xff] }
 0x179   : > { %v1645_v52 = vadd.f32 %v1644_v60, %v1643_v23  ;;  %13575 = vrcp.f32 %v1327_v43  ;;  %10019 = vmatprep.subr.bf16.mxu0 %v12163_v28  ;;  %v1627_v11 = vrot.slane %v1626_v6, 4  ;;  %v12146_v31 = vcombine.low %v2494_v53, %v2502_v26 }
 0x17a   : > { %v13562_v1 = vpop.eup %13561  ;;  %v12131_v51 = vcombine.high %v2478_v34, %v2486_v20  ;;  %v1607_v3 = vadd.f32 %v1606_v40, %v1605_v41  ;;  %v12130_v12 = vcombine.low %v2478_v34, %v2486_v20  ;;  %v12115_v17 = vcombine.high %v2462_v14, %v2470_v62 }
 0x17b   : > { %v1647_v32 = vadd.f32 %v1646_v7, %v1645_v52  ;;  %v13564_v5 = vpop.eup %13563  ;;  %v1512_v2 = vmul.f32 %v13562_v1, %v14248_v45  ;;  %v1690_v45 = vrot.slane %v1689_v25, 4  ;;  %v1628_v19 = vadd.f32 %v1627_v11, %v1626_v6 }
 0x17c   : > { %v13566_v0 = vpop.eup %13565  ;;  %10020 = vmatpush1.bf16.msra.mxu0 %v12162_v48  ;;  %v1514_v37 = vmul.f32 %v13564_v5, %v14243_v61  ;;  %v1608_v56 = vrot.slane %v1607_v3, 2  ;;  %v12114_v23 = vcombine.low %v2462_v14, %v2470_v62  ;;  %v12355_v16 = vcombine.high %v2702_v49, %v2710_v27 }
 0x17d   : > { %v1648_v57 = vrot.slane %v1647_v32, 4  ;;  %10021 = vmatprep.subr.bf16.mxu0 %v12147_v59  ;;  %v1654_v54 = vsel %vm552_vm0, %v1512_v2, 0.0  ;;  %v1515_v10 = vmul.f32 %v13566_v0, %v14255_v47  ;;  %v1629_v13 = vrot.slane %v1628_v19, 2 }
 0x17e   : > { %v1657_v44 = vsel %vm552_vm0, %v1514_v37, 0.0  ;;  %v1691_v38 = vadd.f32 %v1690_v45, %v1689_v25  ;;  %v1609_v60 = vadd.f32 %v1608_v56, %v1607_v3  ;;  %v12354_v6 = vcombine.low %v2702_v49, %v2710_v27  ;;  %v13297_v27 = vld [vmem:[%s18683_s4 + $0x58] ss:$40 sps:$4 sm:$0xff]  }
 0x17f   : > { %v1649_v63 = vadd.f32 %v1648_v57, %v1647_v32  ;;  %v1659_v4 = vsel %vm552_vm0, %v1515_v10, 0.0  ;;  %v1630_v41 = vadd.f32 %v1629_v13, %v1628_v19 }
 0x180   : > { %v13568_v8 = vpop.eup %13567  ;;  %10022 = vmatpush1.bf16.msra.mxu0 %v12146_v31  ;;  %v1692_v53 = vrot.slane %v1691_v38, 2 }
 0x181   : > { %v1513_v15 = vmul.f32 %v13568_v8, %v14268_v58  ;;  %10023 = vmatprep.subr.bf16.mxu0 %v12131_v51  ;;  %v1650_v22 = vrot.slane %v1649_v63, 2  ;;  %v1631_v32 = vrot.slane %v1630_v41, 1 }
 0x182   : > { %v13570_v39 = vpop.eup %13569 }
 0x183   : > { %v1655_v61 = vsel %vm552_vm0, %v1513_v15, 0.0  ;;  %v1516_v29 = vmul.f32 %v13570_v39, %v14292_v36  ;;  %v13572_v47 = vpop.eup %13571  ;;  %v1651_v26 = vadd.f32 %v1650_v22, %v1649_v63  ;;  %v1632_v20 = vadd.f32 %v1631_v32, %v1630_v41  ;;  %v13303_v22 = vld [vmem:[%s18683_s4 + $0x60] ss:$40 sps:$4 sm:$0xff]  }
 0x184   : > { %v1656_v58 = vadd.f32 %v1655_v61, %v1654_v54  ;;  %10024 = vmatpush1.bf16.msra.mxu0 %v12130_v12  ;;  %v1518_v35 = vmul.f32 %v13572_v47, %v14275_v24  ;;  %v1693_v24 = vadd.f32 %v1692_v53, %v1691_v38  ;;  %v18689_v61 = vld [vmem:[#allocation2_spill] sm:$0xff] }
 0x185   : > { %v13574_v30 = vpop.eup %13573  ;;  %10025 = vmatprep.subr.bf16.mxu0 %v12115_v17  ;;  %v1661_v28 = vsel %vm552_vm0, %v1516_v29, 0.0  ;;  %v1652_v1 = vrot.slane %v1651_v26, 1  ;;  %v1701_v57 = vmul.f32 0.015625, %v1632_v20  ;;  %v13305_v38 = vld [vmem:[%s18683_s4 + $0x64] ss:$40 sps:$4 sm:$0xff]  }
 0x186   : > { %v1658_v55 = vadd.f32 %v1657_v44, %v1656_v58  ;;  %v13576_v43 = vpop.eup %13575  ;;  %v1517_v18 = vmul.f32 %v13574_v30, %v14309_v33  ;;  %v1610_v33 = vrot.slane %v1609_v60, 1  ;;  %v1665_v46 = vsel %vm552_vm0, %v1518_v35, 0.0  ;;  %v13300_v30 = vld [vmem:[%s18683_s4 + $0x8] ss:$40 sps:$4 sm:$0xff]   ;;  %v2318_v41 = vld [vmem:[%s18685_s6 + $0x380] sm:$0xff] }
 0x187   : > { %v1519_v42 = vmul.f32 %v13576_v43, %v14303_v9  ;;  %v1694_v25 = vrot.slane %v1693_v24, 1  ;;  %v1653_v9 = vadd.f32 %v1652_v1, %v1651_v26  ;;  %v1709_v37 = vpack.c.bf16 %v1701_v57, %v1701_v57  ;;  %v13311_v43 = vld [vmem:[%s18683_s4 + $0x6c] ss:$40 sps:$4 sm:$0xff]   ;;  %v13315_v35 = vld [vmem:[%s18683_s4 + $0x70] ss:$40 sps:$4 sm:$0xff]   ;;  %v2302_v26 = vld [vmem:[%s18685_s6 + $0x300] sm:$0xff] }
 0x188   : > { %v1660_v36 = vadd.f32 %v1659_v4, %v1658_v55  ;;  %v1663_v52 = vsel %vm552_vm0, %v1517_v18, 0.0  ;;  %10026 = vmatpush1.bf16.msra.mxu0 %v12114_v23  ;;  %v1611_v34 = vadd.f32 %v1610_v33, %v1609_v60  ;;  %v13302_v55 = vld [vmem:[%s18683_s4 + $0xc] ss:$40 sps:$4 sm:$0xff]   ;;  %v13306_v23 = vld [vmem:[%s18683_s4 + $0x10] ss:$40 sps:$4 sm:$0xff]   ;;  %v2286_v33 = vld [vmem:[%s18685_s6 + $0x280] sm:$0xff] }
 0x189   : > { %10027 = vmatprep.subr.bf16.mxu0 %v12355_v16  ;;  %v1667_v59 = vsel %vm552_vm0, %v1519_v42, 0.0  ;;  %v1695_v31 = vadd.f32 %v1694_v25, %v1693_v24  ;;  %v1702_v8 = vmul.f32 0.015625, %v1653_v9  ;;  %v1799_v19 = vunpack.c.l.b16 %v1709_v37  ;;  %v13308_v4 = vld [vmem:[%s18683_s4 + $0x14] ss:$40 sps:$4 sm:$0xff]   ;;  %v13312_v16 = vld [vmem:[%s18683_s4 + $0x18] ss:$40 sps:$4 sm:$0xff]  }
 0x18a   : > { %v1662_v50 = vadd.f32 %v1661_v28, %v1660_v36  ;;  %v1700_v0 = vmul.f32 0.015625, %v1611_v34  ;;  %v13309_v36 = vld [vmem:[%s18683_s4 + $0x68] ss:$40 sps:$4 sm:$0xff]   ;;  %v13314_v18 = vld [vmem:[%s18683_s4 + $0x1c] ss:$40 sps:$4 sm:$0xff]  }
 0x18b   : > { %v1704_v14 = vmul.f32 0.015625, %v1695_v31  ;;  %v1710_v62 = vpack.c.bf16 %v1702_v8, %v1702_v8  ;;  %v13317_v60 = vld [vmem:[%s18683_s4 + $0x74] ss:$40 sps:$4 sm:$0xff]   ;;  %v13320_v28 = vld [vmem:[%s18683_s4 + $0x24] ss:$40 sps:$4 sm:$0xff]  }
 0x18c   : > { %v1664_v7 = vadd.f32 %v1663_v52, %v1662_v50  ;;  %10028 = vmatpush2.bf16.msra.mxu0 %v12354_v6  ;;  %v1708_v3 = vpack.c.bf16 %v1700_v0, %v1700_v0  ;;  %v2326_v50 = vld [vmem:[%s18685_s6 + $0x3c0] sm:$0xff] }
 0x18d   : > { %v1712_v63 = vpack.c.bf16 %v1704_v14, %v1704_v14  ;;  %v1800_v54 = vunpack.c.l.b16 %v1710_v62  ;;  %v13318_v52 = vld [vmem:[%s18683_s4 + $0x20] ss:$40 sps:$4 sm:$0xff]   ;;  %v11971_v53 = vcombine.high %v2318_v41, %v2326_v50  ;;  %v11970_v6 = vcombine.low %v2318_v41, %v2326_v50 }
 0x18e   : > { %v1666_v48 = vadd.f32 %v1665_v46, %v1664_v7  ;;  %v1798_v45 = vunpack.c.l.b16 %v1708_v3  ;;  %v2310_v42 = vld [vmem:[%s18685_s6 + $0x340] sm:$0xff] }
 0x18f   : > { %v1802_v44 = vunpack.c.l.b16 %v1712_v63  ;;  %v11955_v7 = vcombine.high %v2302_v26, %v2310_v42  ;;  %v11954_v46 = vcombine.low %v2302_v26, %v2310_v42  ;;  %v2278_v24 = vld [vmem:[%s18685_s6 + $0x240] sm:$0xff] }
 0x190   : > { %v1668_v40 = vadd.f32 %v1667_v59, %v1666_v48  ;;  %v1808_v58 = vsel %vm1807_vm3, %v1798_v45, %v18689_v61  ;;  %v2270_v48 = vld [vmem:[%s18685_s6 + $0x200] sm:$0xff] }
 0x191   : > { %v1810_v17 = vsel %vm1809_vm4, %v1799_v19, %v1808_v58  ;;  %v11923_v59 = vcombine.high %v2270_v48, %v2278_v24  ;;  %v2262_v34 = vld [vmem:[%s18685_s6 + $0x1c0] sm:$0xff]  ;;  %v11922_v20 = vcombine.low %v2270_v48, %v2278_v24 }
 0x192   : > { %v1669_v5 = vrot.slane %v1668_v40, 4  ;;  %v1812_v29 = vsel %vm1811_vm5, %v1800_v54, %v1810_v17  ;;  %v2238_v25 = vld [vmem:[%s18685_s6 + $0x100] sm:$0xff] }
 0x193   : > { %v2246_v9 = vld [vmem:[%s18685_s6 + $0x140] sm:$0xff] }
 0x194   : > { %v1670_v11 = vadd.f32 %v1669_v5, %v1668_v40  ;;  %v2254_v40 = vld [vmem:[%s18685_s6 + $0x180] sm:$0xff]  ;;  %v11891_v0 = vcombine.high %v2238_v25, %v2246_v9  ;;  %v11890_v57 = vcombine.low %v2238_v25, %v2246_v9 }
 0x195   : > { %v11907_v5 = vcombine.high %v2254_v40, %v2262_v34  ;;  %v2230_v31 = vld [vmem:[%s18685_s6 + $0xc0] sm:$0xff] }
 0x196   : > { %v1671_v2 = vrot.slane %v1670_v11, 2  ;;  %v2206_v3 = vld [vmem:[%s18685_s6] sm:$0xff] }
 0x197   : > { %v2214_v37 = vld [vmem:[%s18685_s6 + $0x40] sm:$0xff] }
 0x198   : > { %v1672_v51 = vadd.f32 %v1671_v2, %v1670_v11  ;;  %v11906_v11 = vcombine.low %v2254_v40, %v2262_v34  ;;  %v2222_v2 = vld [vmem:[%s18685_s6 + $0x80] sm:$0xff]  ;;  %v11858_v14 = vcombine.low %v2206_v3, %v2214_v37 }
 0x199   : > { %v11875_v8 = vcombine.high %v2222_v2, %v2230_v31  ;;  %v2446_v62 = vld [vmem:[%s18685_s6 + $0x780] sm:$0xff] }
 0x19a   : > { %v1673_v15 = vrot.slane %v1672_v51, 1  ;;  %v2438_v63 = vld [vmem:[%s18685_s6 + $0x740] sm:$0xff] }
 0x19b   : > { %v2414_v61 = vld [vmem:[%s18685_s6 + $0x680] sm:$0xff] }
 0x19c   : > { %v1674_v39 = vadd.f32 %v1673_v15, %v1672_v51  ;;  %v11874_v51 = vcombine.low %v2222_v2, %v2230_v31  ;;  %v11859_v15 = vcombine.high %v2206_v3, %v2214_v37  ;;  %v2422_v58 = vld [vmem:[%s18685_s6 + $0x6c0] sm:$0xff] }
 0x19d   : > { %v12067_v17 = vcombine.high %v2414_v61, %v2422_v58  ;;  %v2366_v41 = vld [vmem:[%s18685_s6 + $0x500] sm:$0xff] }
 0x19e   : > { %v1703_v12 = vmul.f32 0.015625, %v1674_v39  ;;  %v2454_v39 = vld [vmem:[%s18685_s6 + $0x7c0] sm:$0xff] }
 0x19f   : > { %v12099_v45 = vcombine.high %v2446_v62, %v2454_v39  ;;  %v12098_v19 = vcombine.low %v2446_v62, %v2454_v39  ;;  %v2374_v50 = vld [vmem:[%s18685_s6 + $0x540] sm:$0xff] }
 0x1a0   : > { %v1711_v10 = vpack.c.bf16 %v1703_v12, %v1703_v12  ;;  %v2430_v12 = vld [vmem:[%s18685_s6 + $0x700] sm:$0xff]  ;;  %v12018_v26 = vcombine.low %v2366_v41, %v2374_v50 }
 0x1a1   : > { %v12083_v54 = vcombine.high %v2430_v12, %v2438_v63  ;;  %v2638_v42 = vld [vmem:[%s18685_s6 + $0xd80] sm:$0xff] }
 0x1a2   : > { %v1801_v56 = vunpack.c.l.b16 %v1711_v10  ;;  %v12082_v10 = vcombine.low %v2430_v12, %v2438_v63  ;;  %v2622_v24 = vld [vmem:[%s18685_s6 + $0xd00] sm:$0xff]  ;;  %v1737_v12 = vlaneseq }
 0x1a3   : > { %v2342_v34 = vld [vmem:[%s18685_s6 + $0x440] sm:$0xff] }
 0x1a4   : > { %v1814_v49 = vsel %vm1813_vm6, %v1801_v56, %v1812_v29  ;;  %v12066_v56 = vcombine.low %v2414_v61, %v2422_v58  ;;  %v2694_v29 = vld [vmem:[%s18685_s6 + $0xf40] sm:$0xff]  ;;  %v14651_v63 = vshrl.u32 %v1737_v12, 7 }
 0x1a5   : > { %v1816_v47 = vsel %vm1815_vm7, %v1802_v44, %v1814_v49  ;;  %v2686_v44 = vld [vmem:[%s18685_s6 + $0xf00] sm:$0xff] }
 0x1a6   : > { %v1817_v13 = vpack.c.b16 %v1816_v47, %v1816_v47  ;;  %v12339_v49 = vcombine.high %v2686_v44, %v2694_v29  ;;  %v2406_v47 = vld [vmem:[%s18685_s6 + $0x640] sm:$0xff]  ;;  %v14662_v61 = vsub.s32 1, %v14651_v63 }
 0x1a7   : > { %v2606_v9 = vld [vmem:[%s18685_s6 + $0xc80] sm:$0xff] }
 0x1a8   : > { %11843 = vmatmul.mubr.msk.bf16.vlgmr.msra.gmra.mxu1 %vm552_vm0, %v1817_v13  ;;  %10029 = vmatprep.subr.bf16.mxu0 %v12339_v49  ;;  %v14625_v2 = vld [vmem:[%s18685_s6 + $0x13c0] sm:$0xff] }
 0x1a9   : > { %1975 = vmatpush1.bf16.msra.mxu1 %v13297_v27  ;;  %1994 = vmatprep.mubr.bf16.mxu1 %v13631_v21  ;;  %v2398_v27 = vld [vmem:[%s18685_s6 + $0x600] sm:$0xff] }
 0x1aa   : > { %1976 = vmatprep.subr.bf16.mxu1 %v13302_v55  ;;  %v12051_v55 = vcombine.high %v2398_v27, %v2406_v47  ;;  %v2590_v3 = vld [vmem:[%s18685_s6 + $0xc00] sm:$0xff] }
 0x1ab   : > { %v2598_v37 = vld [vmem:[%s18685_s6 + $0xc40] sm:$0xff] }
 0x1ac   : > { %v14640_v62 = vld [vmem:[%s18685_s6 + $0x1b80] sm:$0xff] }
 0x1ad   : > { %1977 = vmatpush1.bf16.msra.mxu1 %v13300_v30  ;;  %v12050_v30 = vcombine.low %v2398_v27, %v2406_v47  ;;  %v14645_v39 = vld [vmem:[%s18685_s6 + $0x1bc0] sm:$0xff] }
 0x1ae   : > { %2015 = vmatprep.subr.bf16.mxu1 %v13305_v38  ;;  %v2670_v38 = vld [vmem:[%s18685_s6 + $0xe80] sm:$0xff] }
 0x1b0   : > { %11844 = vmatmul.mubr.msk.bf16.vlgmr.msra.gmra.mxu1 %vm552_vm0, %v1817_v13 }
 0x1b1   : > { %2016 = vmatpush1.bf16.msra.mxu1 %v13303_v22  ;;  %2035 = vmatprep.mubr.bf16.mxu1 %v13631_v21  ;;  %v2678_v22 = vld [vmem:[%s18685_s6 + $0xec0] sm:$0xff] }
 0x1b2   : > { %2017 = vmatprep.subr.bf16.mxu1 %v13308_v4  ;;  %v12323_v4 = vcombine.high %v2670_v38, %v2678_v22 }
 0x1b5   : > { %2018 = vmatpush1.bf16.msra.mxu1 %v13306_v23  ;;  %v2382_v23 = vld [vmem:[%s18685_s6 + $0x580] sm:$0xff] }
 0x1b6   : > { %2056 = vmatprep.subr.bf16.mxu1 %v13311_v43  ;;  %v2390_v43 = vld [vmem:[%s18685_s6 + $0x5c0] sm:$0xff] }
 0x1b8   : > { %11845 = vmatmul.mubr.msk.bf16.vlgmr.msra.gmra.mxu1 %vm552_vm0, %v1817_v13 }
 0x1b9   : > { %2057 = vmatpush1.bf16.msra.mxu1 %v13309_v36  ;;  %2076 = vmatprep.mubr.bf16.mxu1 %v13631_v21  ;;  %v12322_v36 = vcombine.low %v2670_v38, %v2678_v22 }
 0x1ba   : > { %2058 = vmatprep.subr.bf16.mxu1 %v13314_v18  ;;  %v12035_v18 = vcombine.high %v2382_v23, %v2390_v43 }
 0x1bd   : > { %2059 = vmatpush1.bf16.msra.mxu1 %v13312_v16  ;;  %v12034_v16 = vcombine.low %v2382_v23, %v2390_v43 }
 0x1be   : > { %2097 = vmatprep.subr.bf16.mxu1 %v13317_v60  ;;  %v2654_v60 = vld [vmem:[%s18685_s6 + $0xe00] sm:$0xff] }
 0x1c0   : > { %11846 = vmatmul.mubr.msk.bf16.vlgmr.msra.gmra.mxu1 %vm552_vm0, %v1817_v13 }
 0x1c1   : > { %2098 = vmatpush1.bf16.msra.mxu1 %v13315_v35  ;;  %2117 = vmatprep.mubr.bf16.mxu1 %v13631_v21  ;;  %v2294_v21 = vld [vmem:[%s18685_s6 + $0x2c0] sm:$0xff] }
 0x1c2   : > { %2099 = vmatprep.subr.bf16.mxu1 %v13320_v28  ;;  %v11939_v32 = vcombine.high %v2286_v33, %v2294_v21  ;;  %v11938_v1 = vcombine.low %v2286_v33, %v2294_v21  ;;  %v2662_v35 = vld [vmem:[%s18685_s6 + $0xe40] sm:$0xff] }
 0x1c3   : > { %v12307_v28 = vcombine.high %v2654_v60, %v2662_v35  ;;  %v2350_v33 = vld [vmem:[%s18685_s6 + $0x480] sm:$0xff] }
 0x1c4   : > { %v2358_v21 = vld [vmem:[%s18685_s6 + $0x4c0] sm:$0xff] }
 0x1c5   : > { %2100 = vmatpush1.bf16.msra.mxu1 %v13318_v52  ;;  %v12306_v52 = vcombine.low %v2654_v60, %v2662_v35  ;;  %v12003_v48 = vcombine.high %v2350_v33, %v2358_v21  ;;  %v14684_v60 = vsub.s32 5, %v14651_v63 }
 0x1c6   : > { %9970 = vmatprep.subr.bf16.mxu1 %v11971_v53  ;;  %v12019_v53 = vcombine.high %v2366_v41, %v2374_v50 }
 0x1c8   : > { %11847 = vmatmul.mubr.msk.bf16.vlgmr.msra.gmra.mxu1 %vm552_vm0, %v1817_v13  ;;  %v12338_v13 = vcombine.low %v2686_v44, %v2694_v29  ;;  %v14669_v29 = vsub.s32 2, %v14651_v63 }
 0x1c9   : > { %9971 = vmatpush1.bf16.msra.mxu1 %v11970_v6  ;;  %v2646_v6 = vld [vmem:[%s18685_s6 + $0xdc0] sm:$0xff] }
 0x1ca   : > { %9972 = vmatprep.subr.bf16.mxu1 %v11955_v7  ;;  %10030 = vmatpush2.bf16.msra.mxu0 %v12338_v13  ;;  %v12291_v7 = vcombine.high %v2638_v42, %v2646_v6  ;;  %v14672_v13 = vsub.s32 3, %v14651_v63 }
 0x1cb   : > { %10031 = vmatprep.subr.bf16.mxu0 %v12323_v4 }
 0x1cd   : > { %9973 = vmatpush1.bf16.msra.mxu1 %v11954_v46  ;;  %v12290_v46 = vcombine.low %v2638_v42, %v2646_v6 }
 0x1ce   : > { %9974 = vmatprep.subr.bf16.mxu1 %v11939_v32  ;;  %10032 = vmatpush2.bf16.msra.mxu0 %v12322_v36  ;;  %v12002_v32 = vcombine.low %v2350_v33, %v2358_v21 }
 0x1cf   : > { %10033 = vmatprep.subr.bf16.mxu0 %v12307_v28 }
 0x1d1   : > { %9975 = vmatpush1.bf16.msra.mxu1 %v11938_v1  ;;  %v2630_v1 = vld [vmem:[%s18685_s6 + $0xd40] sm:$0xff] }
 0x1d2   : > { %9976 = vmatprep.subr.bf16.mxu1 %v11923_v59  ;;  %10034 = vmatpush2.bf16.msra.mxu0 %v12306_v52  ;;  %v2334_v59 = vld [vmem:[%s18685_s6 + $0x400] sm:$0xff]  ;;  %v12275_v40 = vcombine.high %v2622_v24, %v2630_v1 }
 0x1d3   : > { %10035 = vmatprep.subr.bf16.mxu0 %v12291_v7  ;;  %v11987_v25 = vcombine.high %v2334_v59, %v2342_v34  ;;  %v14694_v7 = vsub.s32 7, %v14651_v63 }
 0x1d5   : > { %9977 = vmatpush1.bf16.msra.mxu1 %v11922_v20  ;;  %v12274_v20 = vcombine.low %v2622_v24, %v2630_v1 }
 0x1d6   : > { %9978 = vmatprep.subr.bf16.mxu1 %v11907_v5  ;;  %10036 = vmatpush2.bf16.msra.mxu0 %v12290_v46  ;;  %v11986_v5 = vcombine.low %v2334_v59, %v2342_v34 }
 0x1d7   : > { %10037 = vmatprep.subr.bf16.mxu0 %v12275_v40 }
 0x1d9   : > { %9979 = vmatpush1.bf16.msra.mxu1 %v11906_v11  ;;  %v2614_v11 = vld [vmem:[%s18685_s6 + $0xcc0] sm:$0xff] }
 0x1da   : > { %9980 = vmatprep.subr.bf16.mxu1 %v11891_v0  ;;  %10038 = vmatpush2.bf16.msra.mxu0 %v12274_v20  ;;  %v14620_v0 = vld [vmem:[%s18685_s6 + $0x1380] sm:$0xff]  ;;  %v12258_v31 = vcombine.low %v2606_v9, %v2614_v11 }
 0x1dd   : > { %9981 = vmatpush1.bf16.msra.mxu1 %v11890_v57  ;;  %v12259_v57 = vcombine.high %v2606_v9, %v2614_v11 }
 0x1de   : > { %9982 = vmatprep.subr.bf16.mxu1 %v11875_v8  ;;  %v12482_v8 = vcombine.low %v14620_v0, %v14625_v2 }
 0x1df   : > { %10039 = vmatprep.subr.bf16.mxu0 %v12259_v57 }
 0x1e0   : > { %10040 = vmatpush2.bf16.msra.mxu0 %v12258_v31 }
 0x1e1   : > { %9983 = vmatpush1.bf16.msra.mxu1 %v11874_v51  ;;  %v12483_v51 = vcombine.high %v14620_v0, %v14625_v2  ;;  %v3070_v0 = vld [vmem:[%s18685_s6 + $0x1b00] sm:$0xff] }
 0x1e2   : > { %9984 = vmatprep.subr.bf16.mxu1 %v11859_v15  ;;  %v12243_v15 = vcombine.high %v2590_v3, %v2598_v37  ;;  %v3078_v2 = vld [vmem:[%s18685_s6 + $0x1b40] sm:$0xff] }
 0x1e4   : > { %10041 = vmatprep.subr.bf16.mxu0 %v12243_v15 }
 0x1e5   : > { %9985 = vmatpush1.bf16.msra.mxu1 %v11858_v14  ;;  %v12242_v14 = vcombine.low %v2590_v3, %v2598_v37 }
 0x1e6   : > { %9986 = vmatprep.subr.bf16.mxu1 %v12099_v45  ;;  %v12738_v45 = vcombine.low %v14640_v62, %v14645_v39 }
 0x1e7   : > { %10042 = vmatpush2.bf16.msra.mxu0 %v12242_v14 }
 0x1e9   : > { %9987 = vmatpush2.bf16.msra.mxu1 %v12098_v19  ;;  %v12739_v19 = vcombine.high %v14640_v62, %v14645_v39  ;;  %v14778_v62 = vld [vmem:[%s18684_s5 + $0x8] sm:$0x3]  ;;  %v3038_v39 = vld [vmem:[%s18685_s6 + $0x1a00] sm:$0xff] }
 0x1ea   : > { %9988 = vmatprep.subr.bf16.mxu1 %v12083_v54  ;;  %v14654_v54 = vsub.s32 0, %v14651_v63 }
 0x1eb   : > { %10093 = vmatprep.subr.bf16.mxu0 %v12739_v19 }
 0x1ed   : > { %9989 = vmatpush2.bf16.msra.mxu1 %v12082_v10  ;;  %v14659_v10 = vld [vmem:[%s18684_s5] sm:$0xff] }
 0x1ee   : > { %9990 = vmatprep.subr.bf16.mxu1 %v12067_v17  ;;  %v1740_v58 = vrot.slane %v14659_v10, %v14654_v54  ;;  %v1744_v17 = vrot.slane %v14659_v10, %v14662_v61  ;;  %v1748_v38 = vrot.slane %v14659_v10, %v14669_v29  ;;  %v1752_v4 = vrot.slane %v14659_v10, %v14672_v13 }
 0x1ef   : > { %v1760_v50 = vrot.slane %v14659_v10, %v14684_v60  ;;  %v1768_v24 = vrot.slane %v14659_v10, %v14694_v7 }
 0x1f1   : > { %9991 = vmatpush2.bf16.msra.mxu1 %v12066_v56 }
 0x1f2   : > { %9992 = vmatprep.subr.bf16.mxu1 %v12051_v55 }
 0x1f5   : > { %9993 = vmatpush2.bf16.msra.mxu1 %v12050_v30 }
 0x1f6   : > { %9994 = vmatprep.subr.bf16.mxu1 %v12035_v18 }
 0x1f9   : > { %9995 = vmatpush2.bf16.msra.mxu1 %v12034_v16 }
 0x1fa   : > { %9996 = vmatprep.subr.bf16.mxu1 %v12019_v53 }
 0x1fd   : > { %9997 = vmatpush2.bf16.msra.mxu1 %v12018_v26 }
 0x1fe   : > { %9998 = vmatprep.subr.bf16.mxu1 %v12003_v48 }
 0x201   : > { %9999 = vmatpush2.bf16.msra.mxu1 %v12002_v32 }
 0x202   : > { %10000 = vmatprep.subr.bf16.mxu1 %v11987_v25 }
 0x205   : > { %10001 = vmatpush2.bf16.msra.mxu1 %v11986_v5 }
 0x206   : > { %10052 = vmatprep.subr.bf16.mxu1 %v12483_v51 }
 0x268   : > { %v1955_v56 = vpop.f32.mrf.mxu1 }
 0x269   : > { %v1956_v44 = vadd.f32 %v1955_v56, %v1740_v58  ;;  %v2814_v58 = vld [vmem:[%s18685_s6 + $0x1300] sm:$0xff] }
 0x26a   : > { %v1957_v49 = vpop.f32.mrf.mxu1 }
 0x26b   : > { %v11848_v27 = vmul.f32 -1.442695, %v1956_v44  ;;  %v1958_v47 = vadd.f32 %v1957_v49, %v1744_v17  ;;  %v2822_v17 = vld [vmem:[%s18685_s6 + $0x1340] sm:$0xff] }
 0x26c   : > { %v1959_v55 = vpop.f32.mrf.mxu1 }
 0x26d   : > { %13577 = vpow2.f32 %v11848_v27  ;;  %v11849_v30 = vmul.f32 -1.442695, %v1958_v47 }
 0x26e   : > { %v1960_v22 = vpop.f32.mrf.mxu1 }
 0x26f   : > { %13579 = vpow2.f32 %v11849_v30  ;;  %v12467_v30 = vcombine.high %v2814_v58, %v2822_v17  ;;  %v12466_v22 = vcombine.low %v2814_v58, %v2822_v17  ;;  %v2742_v17 = vld [vmem:[%s18685_s6 + $0x10c0] sm:$0xff] }
 0x270   : > { %v1996_v23 = vpop.f32.mrf.mxu1 }
 0x271   : > { %v14678_v43 = vadd.f32 %v1996_v23, %v1748_v38 }
 0x272   : > { %v1998_v36 = vpop.f32.mrf.mxu1 }
 0x273   : > { %v11850_v18 = vmul.f32 -1.442695, %v14678_v43  ;;  %v14681_v16 = vadd.f32 %v1998_v36, %v1752_v4 }
 0x274   : > { %v2000_v35 = vpop.f32.mrf.mxu1 }
 0x275   : > { %13581 = vpow2.f32 %v11850_v18  ;;  %v11851_v28 = vmul.f32 -1.442695, %v14681_v16  ;;  %v2782_v18 = vld [vmem:[%s18685_s6 + $0x1200] sm:$0xff] }
 0x276   : > { %v2001_v41 = vpop.f32.mrf.mxu1 }
 0x277   : > { %13583 = vpow2.f32 %v11851_v28  ;;  %v2790_v41 = vld [vmem:[%s18685_s6 + $0x1240] sm:$0xff] }
 0x278   : > { %v14689_v52 = vpop.f32.mrf.mxu1 }
 0x27a   : > { %v13578_v53 = vpop.eup %13577  ;;  %v2039_v26 = vpop.f32.mrf.mxu1 }
 0x27b   : > { %v2156_v42 = vadd.f32 1.0, %v13578_v53  ;;  %v14691_v6 = vadd.f32 %v2039_v26, %v1760_v50  ;;  %v14746_v50 = vsub.s32 4, %v14651_v63  ;;  %v12435_v26 = vcombine.high %v2782_v18, %v2790_v41 }
 0x27c   : > { %v13580_v33 = vpop.eup %13579  ;;  %v2041_v21 = vpop.f32.mrf.mxu1 }
 0x27d   : > { %13585 = vrcp.f32 %v2156_v42  ;;  %v2157_v46 = vadd.f32 1.0, %v13580_v33  ;;  %v11853_v32 = vmul.f32 -1.442695, %v14691_v6  ;;  %v12723_v42 = vcombine.high %v3070_v0, %v3078_v2  ;;  %v2766_v33 = vld [vmem:[%s18685_s6 + $0x1180] sm:$0xff] }
 0x27e   : > { %v2042_v48 = vpop.f32.mrf.mxu1  ;;  %v2774_v21 = vld [vmem:[%s18685_s6 + $0x11c0] sm:$0xff] }
 0x27f   : > { %13587 = vrcp.f32 %v2157_v46  ;;  %v3054_v46 = vld [vmem:[%s18685_s6 + $0x1a80] sm:$0xff]  ;;  %v12434_v48 = vcombine.low %v2782_v18, %v2790_v41 }
 0x280   : > { %13589 = vpow2.f32 %v11853_v32  ;;  %v14699_v1 = vpop.f32.mrf.mxu1  ;;  %v3062_v32 = vld [vmem:[%s18685_s6 + $0x1ac0] sm:$0xff] }
 0x282   : > { %v13582_v59 = vpop.eup %13581  ;;  %v2080_v40 = vpop.f32.mrf.mxu1 }
 0x283   : > { %v2158_v34 = vadd.f32 1.0, %v13582_v59  ;;  %v14701_v20 = vadd.f32 %v2080_v40, %v1768_v24  ;;  %v12722_v24 = vcombine.low %v3070_v0, %v3078_v2  ;;  %v1756_v59 = vrot.slane %v14659_v10, %v14746_v50 }
 0x284   : > { %v13584_v5 = vpop.eup %13583  ;;  %v2082_v25 = vpop.f32.mrf.mxu1  ;;  %v12419_v40 = vcombine.high %v2766_v33, %v2774_v21 }
 0x285   : > { %13591 = vrcp.f32 %v2158_v34  ;;  %v2159_v9 = vadd.f32 1.0, %v13584_v5  ;;  %v11855_v11 = vmul.f32 -1.442695, %v14701_v20  ;;  %v12707_v34 = vcombine.high %v3054_v46, %v3062_v32  ;;  %v2750_v5 = vld [vmem:[%s18685_s6 + $0x1100] sm:$0xff] }
 0x286   : > { %v2083_v57 = vpop.f32.mrf.mxu1  ;;  %v2758_v25 = vld [vmem:[%s18685_s6 + $0x1140] sm:$0xff] }
 0x287   : > { %13593 = vrcp.f32 %v2159_v9  ;;  %v1776_v57 = vrot.slane %v14778_v62, %v14662_v61 }
 0x288   : > { %13595 = vpow2.f32 %v11855_v11  ;;  %v14704_v31 = vpop.f32.mrf.mxu1 }
 0x28a   : > { %v13586_v51 = vpop.eup %13585  ;;  %v14706_v3 = vpop.f32.mrf.mxu1 }
 0x28b   : > { %v2186_v15 = vmul.f32 %v13586_v51, %v1956_v44  ;;  %v2798_v44 = vld [vmem:[%s18685_s6 + $0x1280] sm:$0xff]  ;;  %v12418_v51 = vcombine.low %v2766_v33, %v2774_v21 }
 0x28c   : > { %v13588_v37 = vpop.eup %13587  ;;  %v2123_v14 = vpop.f32.mrf.mxu1 }
 0x28d   : > { %v13590_v19 = vpop.eup %13589  ;;  %v2187_v12 = vmul.f32 %v13588_v37, %v1958_v47  ;;  %v14716_v55 = vpack.c.bf16 %v2186_v15, %v2186_v15  ;;  %v2806_v47 = vld [vmem:[%s18685_s6 + $0x12c0] sm:$0xff]  ;;  %v12706_v37 = vcombine.low %v3054_v46, %v3062_v32  ;;  %v12403_v15 = vcombine.high %v2750_v5, %v2758_v25 }
 0x28e   : > { %v2161_v56 = vadd.f32 1.0, %v13590_v19  ;;  %v2124_v49 = vpop.f32.mrf.mxu1  ;;  %v12451_v36 = vcombine.high %v2798_v44, %v2806_v47  ;;  %v14790_v14 = vadd.f32 %v14689_v52, %v1756_v59  ;;  %v3022_v52 = vld [vmem:[%s18685_s6 + $0x1980] sm:$0xff] }
 0x28f   : > { %v14714_v27 = vpack.c.bf16 %v2187_v12, %v2187_v12  ;;  %v14795_v12 = vsub.s32 6, %v14651_v63  ;;  %v3030_v63 = vld [vmem:[%s18685_s6 + $0x19c0] sm:$0xff]  ;;  %v12402_v49 = vcombine.low %v2750_v5, %v2758_v25 }
 0x290   : > { %13597 = vrcp.f32 %v2161_v56  ;;  %v14810_v56 = vadd.f32 %v14706_v3, %v1776_v57  ;;  %v2718_v3 = vld [vmem:[%s18685_s6 + $0x1000] sm:$0xff]  ;;  %v12674_v41 = vcombine.low %v3022_v52, %v3030_v63 }
 0x291   : > { %10002 = vmatprep.mubr.bf16.mxu1 %v14714_v27  ;;  %v2950_v59 = vld [vmem:[%s18685_s6 + $0x1740] sm:$0xff] }
 0x292   : > { %v13592_v38 = vpop.eup %13591  ;;  %10003 = vmatmul.mubr.bf16.vlgmr.msra.gmra.mxu1 %v14716_v55  ;;  %v3214_v57 = vld [vmem:[%s18685_s6 + $0x1f80] sm:$0xff] }
 0x293   : > { %10053 = vmatpush1.bf16.msra.mxu1 %v12482_v8  ;;  %v2188_v23 = vmul.f32 %v13592_v38, %v14678_v43 }
 0x294   : > { %v13594_v4 = vpop.eup %13593  ;;  %10054 = vmatprep.subr.bf16.mxu1 %v12467_v30 }
 0x295   : > { %v13596_v35 = vpop.eup %13595  ;;  %v2189_v28 = vmul.f32 %v13594_v4, %v14681_v16  ;;  %v12450_v16 = vcombine.low %v2798_v44, %v2806_v47  ;;  %v14748_v53 = vpack.c.bf16 %v2188_v23, %v2188_v23  ;;  %v11852_v44 = vmul.f32 -1.442695, %v14790_v14  ;;  %v2726_v4 = vld [vmem:[%s18685_s6 + $0x1040] sm:$0xff] }
 0x296   : > { %v2163_v8 = vadd.f32 1.0, %v13596_v35  ;;  %v1764_v47 = vrot.slane %v14659_v10, %v14795_v12  ;;  %v3014_v10 = vld [vmem:[%s18685_s6 + $0x1940] sm:$0xff]  ;;  %v11857_v35 = vmul.f32 -1.442695, %v14810_v56  ;;  %v12371_v0 = vcombine.high %v2718_v3, %v2726_v4 }
 0x297   : > { %v14743_v43 = vpack.c.bf16 %v2189_v28, %v2189_v28  ;;  %10055 = vmatpush1.bf16.msra.mxu1 %v12466_v22  ;;  %v12675_v22 = vcombine.high %v3022_v52, %v3030_v63  ;;  %v12370_v33 = vcombine.low %v2718_v3, %v2726_v4  ;;  %v2918_v63 = vld [vmem:[%s18685_s6 + $0x1640] sm:$0xff] }
 0x298   : > { %13599 = vrcp.f32 %v2163_v8  ;;  %10056 = vmatprep.subr.bf16.mxu1 %v12451_v36  ;;  %v3006_v36 = vld [vmem:[%s18685_s6 + $0x1900] sm:$0xff]  ;;  %v14831_v2 = vadd.f32 %v14699_v1, %v1764_v47 }
 0x299   : > { %10043 = vmatprep.mubr.bf16.mxu0 %v14743_v43  ;;  %13601 = vpow2.f32 %v11852_v44  ;;  %v2998_v1 = vld [vmem:[%s18685_s6 + $0x18c0] sm:$0xff]  ;;  %v12658_v21 = vcombine.low %v3006_v36, %v3014_v10 }
 0x29a   : > { %10044 = vmatmul.mubr.bf16.vlgmr.msra.gmra.mxu0 %v14748_v53  ;;  %13603 = vpow2.f32 %v11857_v35  ;;  %v11854_v46 = vmul.f32 -1.442695, %v14831_v2 }
 0x29b   : > { %10057 = vmatpush1.bf16.msra.mxu1 %v12450_v16  ;;  %10094 = vmatpush1.bf16.msra.mxu0 %v12738_v45  ;;  %v3046_v45 = vld [vmem:[%s18685_s6 + $0x1a40] sm:$0xff]  ;;  %v12659_v16 = vcombine.high %v3006_v36, %v3014_v10 }
 0x29c   : > { %10058 = vmatprep.subr.bf16.mxu1 %v12435_v26  ;;  %10095 = vmatprep.subr.bf16.mxu0 %v12723_v42  ;;  %v12691_v58 = vcombine.high %v3038_v39, %v3046_v45  ;;  %v12690_v30 = vcombine.low %v3038_v39, %v3046_v45  ;;  %v2966_v26 = vld [vmem:[%s18685_s6 + $0x17c0] sm:$0xff]  ;;  %13605 = vpow2.f32 %v11854_v46 }
 0x29d   : > { %v13598_v9 = vpop.eup %13597  ;;  %v2990_v42 = vld [vmem:[%s18685_s6 + $0x1880] sm:$0xff] }
 0x29e   : > { %v2191_v11 = vmul.f32 %v13598_v9, %v14691_v6  ;;  %v2734_v6 = vld [vmem:[%s18685_s6 + $0x1080] sm:$0xff]  ;;  %v12642_v25 = vcombine.low %v2990_v42, %v2998_v1 }
 0x29f   : > { %10059 = vmatpush1.bf16.msra.mxu1 %v12434_v48  ;;  %10096 = vmatpush1.bf16.msra.mxu0 %v12722_v24  ;;  %v12387_v38 = vcombine.high %v2734_v6, %v2742_v17  ;;  %v12386_v28 = vcombine.low %v2734_v6, %v2742_v17  ;;  %v12643_v48 = vcombine.high %v2990_v42, %v2998_v1  ;;  %v2942_v24 = vld [vmem:[%s18685_s6 + $0x1700] sm:$0xff] }
 0x2a0   : > { %v14792_v19 = vpack.c.bf16 %v2191_v11, %v2191_v11  ;;  %10060 = vmatprep.subr.bf16.mxu1 %v12419_v40  ;;  %10097 = vmatprep.subr.bf16.mxu0 %v12707_v34  ;;  %v2974_v40 = vld [vmem:[%s18685_s6 + $0x1800] sm:$0xff]  ;;  %v12595_v9 = vcombine.high %v2942_v24, %v2950_v59 }
 0x2a1   : > { %v2982_v34 = vld [vmem:[%s18685_s6 + $0x1840] sm:$0xff] }
 0x2a2   : > { %10084 = vmatprep.mubr.bf16.mxu1 %v14792_v19  ;;  %v12627_v39 = vcombine.high %v2974_v40, %v2982_v34  ;;  %v2926_v45 = vld [vmem:[%s18685_s6 + $0x1680] sm:$0xff] }
 0x2a3   : > { %10061 = vmatpush1.bf16.msra.mxu1 %v12418_v51  ;;  %10098 = vmatpush1.bf16.msra.mxu0 %v12706_v37  ;;  %v2934_v11 = vld [vmem:[%s18685_s6 + $0x16c0] sm:$0xff]  ;;  %v12594_v37 = vcombine.low %v2942_v24, %v2950_v59 }
 0x2a4   : > { %10062 = vmatprep.subr.bf16.mxu1 %v12403_v15  ;;  %10099 = vmatprep.subr.bf16.mxu0 %v12691_v58  ;;  %v3222_v51 = vld [vmem:[%s18685_s6 + $0x1fc0] sm:$0xff]  ;;  %v12626_v15 = vcombine.low %v2974_v40, %v2982_v34  ;;  %v12579_v58 = vcombine.high %v2926_v45, %v2934_v11  ;;  %v12578_v47 = vcombine.low %v2926_v45, %v2934_v11 }
 0x2a5   : > { %v13600_v23 = vpop.eup %13599  ;;  %v12867_v6 = vcombine.high %v3214_v57, %v3222_v51  ;;  %v2910_v17 = vld [vmem:[%s18685_s6 + $0x1600] sm:$0xff] }
 0x2a6   : > { %v2193_v18 = vmul.f32 %v13600_v23, %v14701_v20  ;;  %v2958_v20 = vld [vmem:[%s18685_s6 + $0x1780] sm:$0xff]  ;;  %v13602_v52 = vpop.eup %13601  ;;  %v12563_v3 = vcombine.high %v2910_v17, %v2918_v63 }
 0x2a7   : > { %10063 = vmatpush1.bf16.msra.mxu1 %v12402_v49  ;;  %10100 = vmatpush1.bf16.msra.mxu0 %v12690_v30  ;;  %v12611_v32 = vcombine.high %v2958_v20, %v2966_v26  ;;  %v12610_v5 = vcombine.low %v2958_v20, %v2966_v26  ;;  %v3198_v49 = vld [vmem:[%s18685_s6 + $0x1f00] sm:$0xff]  ;;  %v13604_v44 = vpop.eup %13603 }
 0x2a8   : > { %v14833_v8 = vpack.c.bf16 %v2193_v18, %v2193_v18  ;;  %10064 = vmatprep.subr.bf16.mxu1 %v12387_v38  ;;  %10101 = vmatprep.subr.bf16.mxu0 %v12675_v22  ;;  %v3206_v30 = vld [vmem:[%s18685_s6 + $0x1f40] sm:$0xff]  ;;  %v12866_v38 = vcombine.low %v3214_v57, %v3222_v51  ;;  %v2160_v22 = vadd.f32 1.0, %v13602_v52  ;;  %v2165_v35 = vadd.f32 1.0, %v13604_v44 }
 0x2a9   : > { %v12851_v4 = vcombine.high %v3198_v49, %v3206_v30  ;;  %v2894_v23 = vld [vmem:[%s18685_s6 + $0x1580] sm:$0xff]  ;;  %v13606_v26 = vpop.eup %13605 }
 0x2aa   : > { %10125 = vmatprep.mubr.bf16.mxu0 %v14833_v8  ;;  %v2902_v36 = vld [vmem:[%s18685_s6 + $0x15c0] sm:$0xff]  ;;  %13607 = vrcp.f32 %v2160_v22 }
 0x2ab   : > { %10065 = vmatpush1.bf16.msra.mxu1 %v12386_v28  ;;  %10102 = vmatpush1.bf16.msra.mxu0 %v12674_v41  ;;  %v3182_v10 = vld [vmem:[%s18685_s6 + $0x1e80] sm:$0xff]  ;;  %v12562_v28 = vcombine.low %v2910_v17, %v2918_v63  ;;  %v12850_v41 = vcombine.low %v3198_v49, %v3206_v30  ;;  %13609 = vrcp.f32 %v2165_v35 }
 0x2ac   : > { %10066 = vmatprep.subr.bf16.mxu1 %v12371_v0  ;;  %10103 = vmatprep.subr.bf16.mxu0 %v12659_v16  ;;  %v3190_v18 = vld [vmem:[%s18685_s6 + $0x1ec0] sm:$0xff]  ;;  %v12547_v0 = vcombine.high %v2894_v23, %v2902_v36 }
 0x2ad   : > { %v12835_v16 = vcombine.high %v3182_v10, %v3190_v18  ;;  %v2878_v20 = vld [vmem:[%s18685_s6 + $0x1500] sm:$0xff]  ;;  %v12834_v46 = vcombine.low %v3182_v10, %v3190_v18 }
 0x2ae   : > { %v2886_v42 = vld [vmem:[%s18685_s6 + $0x1540] sm:$0xff] }
 0x2af   : > { %10067 = vmatpush1.bf16.msra.mxu1 %v12370_v33  ;;  %10104 = vmatpush1.bf16.msra.mxu0 %v12658_v21  ;;  %v3166_v1 = vld [vmem:[%s18685_s6 + $0x1e00] sm:$0xff]  ;;  %v12546_v21 = vcombine.low %v2894_v23, %v2902_v36 }
 0x2b0   : > { %10068 = vmatprep.subr.bf16.mxu1 %v12611_v32  ;;  %10105 = vmatprep.subr.bf16.mxu0 %v12643_v48  ;;  %v3174_v33 = vld [vmem:[%s18685_s6 + $0x1e40] sm:$0xff]  ;;  %v2162_v32 = vadd.f32 1.0, %v13606_v26  ;;  %v12531_v48 = vcombine.high %v2878_v20, %v2886_v42 }
 0x2b1   : > { %v12819_v24 = vcombine.high %v3166_v1, %v3174_v33  ;;  %v2862_v59 = vld [vmem:[%s18685_s6 + $0x1480] sm:$0xff] }
 0x2b2   : > { %v2870_v40 = vld [vmem:[%s18685_s6 + $0x14c0] sm:$0xff]  ;;  %13611 = vrcp.f32 %v2162_v32 }
 0x2b3   : > { %10069 = vmatpush2.bf16.msra.mxu1 %v12610_v5  ;;  %10106 = vmatpush1.bf16.msra.mxu0 %v12642_v25  ;;  %v3150_v34 = vld [vmem:[%s18685_s6 + $0x1d80] sm:$0xff]  ;;  %v12530_v25 = vcombine.low %v2878_v20, %v2886_v42 }
 0x2b4   : > { %10070 = vmatprep.subr.bf16.mxu1 %v12595_v9  ;;  %10107 = vmatprep.subr.bf16.mxu0 %v12627_v39  ;;  %v3158_v5 = vld [vmem:[%s18685_s6 + $0x1dc0] sm:$0xff]  ;;  %v12818_v9 = vcombine.low %v3166_v1, %v3174_v33  ;;  %v12515_v39 = vcombine.high %v2862_v59, %v2870_v40  ;;  %v2319_v1 = vld [vmem:[%s18685_s6 + $0x388] sm:$0xff] }
 0x2b5   : > { %v12803_v45 = vcombine.high %v3150_v34, %v3158_v5  ;;  %v2846_v11 = vld [vmem:[%s18685_s6 + $0x1400] sm:$0xff]  ;;  %v2327_v33 = vld [vmem:[%s18685_s6 + $0x3c8] sm:$0xff] }
 0x2b6   : > { %v2854_v57 = vld [vmem:[%s18685_s6 + $0x1440] sm:$0xff] }
 0x2b7   : > { %10071 = vmatpush2.bf16.msra.mxu1 %v12594_v37  ;;  %10108 = vmatpush1.bf16.msra.mxu0 %v12626_v15  ;;  %v3134_v51 = vld [vmem:[%s18685_s6 + $0x1d00] sm:$0xff]  ;;  %v12514_v15 = vcombine.low %v2862_v59, %v2870_v40  ;;  %v13608_v63 = vpop.eup %13607  ;;  %v11973_v59 = vcombine.high %v2319_v1, %v2327_v33 }
 0x2b8   : > { %10072 = vmatprep.subr.bf16.mxu1 %v12579_v58  ;;  %10109 = vmatprep.subr.bf16.mxu0 %v12867_v6  ;;  %v3142_v37 = vld [vmem:[%s18685_s6 + $0x1d40] sm:$0xff]  ;;  %v12802_v58 = vcombine.low %v3150_v34, %v3158_v5  ;;  %v12499_v6 = vcombine.high %v2846_v11, %v2854_v57  ;;  %v2303_v5 = vld [vmem:[%s18685_s6 + $0x308] sm:$0xff] }
 0x2b9   : > { %v12787_v17 = vcombine.high %v3134_v51, %v3142_v37  ;;  %v3118_v52 = vld [vmem:[%s18685_s6 + $0x1c80] sm:$0xff]  ;;  %v12786_v22 = vcombine.low %v3134_v51, %v3142_v37  ;;  %v2287_v37 = vld [vmem:[%s18685_s6 + $0x288] sm:$0xff] }
 0x2ba   : > { %v3126_v49 = vld [vmem:[%s18685_s6 + $0x1cc0] sm:$0xff] }
 0x2bb   : > { %10073 = vmatpush2.bf16.msra.mxu1 %v12578_v47  ;;  %10110 = vmatpush2.bf16.msra.mxu0 %v12866_v38  ;;  %v3342_v30 = vld [vmem:[%s18685_s6 + $0x2380] sm:$0xff]  ;;  %v13610_v47 = vpop.eup %13609  ;;  %v12498_v38 = vcombine.low %v2846_v11, %v2854_v57 }
 0x2bc   : > { %10074 = vmatprep.subr.bf16.mxu1 %v12563_v3  ;;  %10111 = vmatprep.subr.bf16.mxu0 %v12851_v4  ;;  %v3350_v44 = vld [vmem:[%s18685_s6 + $0x23c0] sm:$0xff]  ;;  %v2190_v3 = vmul.f32 %v13608_v63, %v14790_v14  ;;  %v12771_v4 = vcombine.high %v3118_v52, %v3126_v49  ;;  %v2195_v18 = vmul.f32 %v13610_v47, %v14810_v56 }
 0x2bd   : > { %v12995_v23 = vcombine.high %v3342_v30, %v3350_v44  ;;  %v3102_v36 = vld [vmem:[%s18685_s6 + $0x1c00] sm:$0xff] }
 0x2be   : > { %v3110_v10 = vld [vmem:[%s18685_s6 + $0x1c40] sm:$0xff] }
 0x2bf   : > { %10075 = vmatpush2.bf16.msra.mxu1 %v12562_v28  ;;  %10112 = vmatpush2.bf16.msra.mxu0 %v12850_v41  ;;  %v3326_v35 = vld [vmem:[%s18685_s6 + $0x2300] sm:$0xff]  ;;  %v12770_v28 = vcombine.low %v3118_v52, %v3126_v49  ;;  %v12994_v41 = vcombine.low %v3342_v30, %v3350_v44  ;;  %v13612_v20 = vpop.eup %13611  ;;  %v2271_v44 = vld [vmem:[%s18685_s6 + $0x208] sm:$0xff] }
 0x2c0   : > { %10076 = vmatprep.subr.bf16.mxu1 %v12547_v0  ;;  %10113 = vmatprep.subr.bf16.mxu0 %v12835_v16  ;;  %v3334_v14 = vld [vmem:[%s18685_s6 + $0x2340] sm:$0xff]  ;;  %v14959_v0 = vpack.c.bf16 %v2190_v3, %v2190_v3  ;;  %v12755_v16 = vcombine.high %v3102_v36, %v3110_v10 }
 0x2c1   : > { %v3310_v56 = vld [vmem:[%s18685_s6 + $0x2280] sm:$0xff]  ;;  %v12979_v26 = vcombine.high %v3326_v35, %v3334_v14  ;;  %v12978_v32 = vcombine.low %v3326_v35, %v3334_v14 }
 0x2c2   : > { %v3318_v42 = vld [vmem:[%s18685_s6 + $0x22c0] sm:$0xff] }
 0x2c3   : > { %10077 = vmatpush2.bf16.msra.mxu1 %v12546_v21  ;;  %10114 = vmatpush2.bf16.msra.mxu0 %v12834_v46  ;;  %v14973_v21 = vpack.c.bf16 %v2195_v18, %v2195_v18  ;;  %v12754_v46 = vcombine.low %v3102_v36, %v3110_v10  ;;  %v3294_v40 = vld [vmem:[%s18685_s6 + $0x2200] sm:$0xff]  ;;  %v2255_v10 = vld [vmem:[%s18685_s6 + $0x188] sm:$0xff] }
 0x2c4   : > { %10078 = vmatprep.subr.bf16.mxu1 %v12531_v48  ;;  %10115 = vmatprep.subr.bf16.mxu0 %v12819_v24  ;;  %v2192_v48 = vmul.f32 %v13612_v20, %v14831_v2  ;;  %v12963_v24 = vcombine.high %v3310_v56, %v3318_v42  ;;  %v3302_v34 = vld [vmem:[%s18685_s6 + $0x2240] sm:$0xff]  ;;  %v2311_v2 = vld [vmem:[%s18685_s6 + $0x348] sm:$0xff] }
 0x2c5   : > { %v3278_v11 = vld [vmem:[%s18685_s6 + $0x2180] sm:$0xff]  ;;  %v11957_v57 = vcombine.high %v2303_v5, %v2311_v2  ;;  %v2239_v20 = vld [vmem:[%s18685_s6 + $0x108] sm:$0xff] }
 0x2c6   : > { %v3286_v51 = vld [vmem:[%s18685_s6 + $0x21c0] sm:$0xff] }
 0x2c7   : > { %10079 = vmatpush2.bf16.msra.mxu1 %v12530_v25  ;;  %10116 = vmatpush2.bf16.msra.mxu0 %v12818_v9  ;;  %v12962_v25 = vcombine.low %v3310_v56, %v3318_v42  ;;  %v11972_v9 = vcombine.low %v2319_v1, %v2327_v33  ;;  %v12931_v52 = vcombine.high %v3278_v11, %v3286_v51  ;;  %v3262_v49 = vld [vmem:[%s18685_s6 + $0x2100] sm:$0xff] }
 0x2c8   : > { %10080 = vmatprep.subr.bf16.mxu1 %v12515_v39  ;;  %10117 = vmatprep.subr.bf16.mxu0 %v12803_v45  ;;  %v14990_v39 = vpack.c.bf16 %v2192_v48, %v2192_v48  ;;  %v12947_v45 = vcombine.high %v3294_v40, %v3302_v34  ;;  %v3270_v30 = vld [vmem:[%s18685_s6 + $0x2140] sm:$0xff]  ;;  %v12930_v47 = vcombine.low %v3278_v11, %v3286_v51  ;;  %v2215_v11 = vld [vmem:[%s18685_s6 + $0x48] sm:$0xff] }
 0x2c9   : > { %v12915_v3 = vcombine.high %v3262_v49, %v3270_v30  ;;  %v3254_v36 = vld [vmem:[%s18685_s6 + $0x20c0] sm:$0xff]  ;;  %v12914_v18 = vcombine.low %v3262_v49, %v3270_v30 }
 0x2ca   : > { %v3238_v56 = vld [vmem:[%s18685_s6 + $0x2040] sm:$0xff] }
 0x2cb   : > { %10081 = vmatpush2.bf16.msra.mxu1 %v12514_v15  ;;  %10118 = vmatpush2.bf16.msra.mxu0 %v12802_v58  ;;  %v2295_v15 = vld [vmem:[%s18685_s6 + $0x2c8] sm:$0xff]  ;;  %v12946_v58 = vcombine.low %v3294_v40, %v3302_v34  ;;  %v3478_v48 = vld [vmem:[%s18685_s6 + $0x27c0] sm:$0xff] }
 0x2cc   : > { %10082 = vmatprep.subr.bf16.mxu1 %v12499_v6  ;;  %10119 = vmatprep.subr.bf16.mxu0 %v12787_v17  ;;  %v11956_v6 = vcombine.low %v2303_v5, %v2311_v2  ;;  %v1772_v17 = vrot.slane %v14778_v62, %v14654_v54  ;;  %v11941_v63 = vcombine.high %v2287_v37, %v2295_v15  ;;  %v2279_v62 = vld [vmem:[%s18685_s6 + $0x248] sm:$0xff] }
 0x2cd   : > { %v11924_v35 = vcombine.low %v2271_v44, %v2279_v62 }
 0x2cf   : > { %10083 = vmatpush2.bf16.msra.mxu1 %v12498_v38  ;;  %10120 = vmatpush2.bf16.msra.mxu0 %v12786_v22  ;;  %v11940_v38 = vcombine.low %v2287_v37, %v2295_v15  ;;  %v15021_v22 = vadd.f32 %v14704_v31, %v1772_v17  ;;  %v2263_v31 = vld [vmem:[%s18685_s6 + $0x1c8] sm:$0xff] }
 0x2d0   : > { %10121 = vmatprep.subr.bf16.mxu0 %v12771_v4  ;;  %10134 = vmatprep.subr.bf16.mxu1 %v12995_v23  ;;  %v11925_v4 = vcombine.high %v2271_v44, %v2279_v62  ;;  %v3246_v23 = vld [vmem:[%s18685_s6 + $0x2080] sm:$0xff]  ;;  %v11908_v1 = vcombine.low %v2255_v10, %v2263_v31  ;;  %v2447_v17 = vld [vmem:[%s18685_s6 + $0x788] sm:$0xff] }
 0x2d1   : > { %v11856_v14 = vmul.f32 -1.442695, %v15021_v22  ;;  %v12898_v42 = vcombine.low %v3246_v23, %v3254_v36  ;;  %v3422_v62 = vld [vmem:[%s18685_s6 + $0x2600] sm:$0xff] }
 0x2d2   : > { %10085 = vmatmul.mubr.bf16.vlgmr.msra.gmra.mxu1 %v14959_v0 }
 0x2d3   : > { %10122 = vmatpush2.bf16.msra.mxu0 %v12770_v28  ;;  %10135 = vmatpush1.bf16.msra.mxu1 %v12994_v41  ;;  %v12899_v28 = vcombine.high %v3246_v23, %v3254_v36  ;;  %v11909_v41 = vcombine.high %v2255_v10, %v2263_v31  ;;  %13613 = vpow2.f32 %v11856_v14  ;;  %v3414_v14 = vld [vmem:[%s18685_s6 + $0x25c0] sm:$0xff] }
 0x2d4   : > { %10166 = vmatprep.mubr.bf16.mxu1 %v14973_v21  ;;  %10123 = vmatprep.subr.bf16.mxu0 %v12755_v16  ;;  %v3230_v16 = vld [vmem:[%s18685_s6 + $0x2000] sm:$0xff] }
 0x2d5   : > { %10136 = vmatprep.subr.bf16.mxu1 %v12979_v26  ;;  %v2247_v26 = vld [vmem:[%s18685_s6 + $0x148] sm:$0xff]  ;;  %v12883_v33 = vcombine.high %v3230_v16, %v3238_v56  ;;  %v12882_v40 = vcombine.low %v3230_v16, %v3238_v56 }
 0x2d6   : > { %v11892_v34 = vcombine.low %v2239_v20, %v2247_v26 }
 0x2d7   : > { %10124 = vmatpush2.bf16.msra.mxu0 %v12754_v46  ;;  %10137 = vmatpush1.bf16.msra.mxu1 %v12978_v32  ;;  %v11893_v46 = vcombine.high %v2239_v20, %v2247_v26  ;;  %v3470_v32 = vld [vmem:[%s18685_s6 + $0x2780] sm:$0xff] }
 0x2d8   : > { %10138 = vmatprep.subr.bf16.mxu1 %v12963_v24  ;;  %10175 = vmatprep.subr.bf16.mxu0 %v11973_v59  ;;  %v2223_v24 = vld [vmem:[%s18685_s6 + $0x88] sm:$0xff]  ;;  %v13123_v5 = vcombine.high %v3470_v32, %v3478_v48 }
 0x2d9   : > { %v2231_v59 = vld [vmem:[%s18685_s6 + $0xc8] sm:$0xff] }
 0x2da   : > { %10126 = vmatmul.mubr.bf16.vlgmr.msra.gmra.mxu0 %v14990_v39  ;;  %v11877_v2 = vcombine.high %v2223_v24, %v2231_v59  ;;  %v11876_v51 = vcombine.low %v2223_v24, %v2231_v59 }
 0x2db   : > { %10139 = vmatpush1.bf16.msra.mxu1 %v12962_v25  ;;  %10176 = vmatpush1.bf16.msra.mxu0 %v11972_v9  ;;  %v3454_v25 = vld [vmem:[%s18685_s6 + $0x2700] sm:$0xff] }
 0x2dc   : > { %10207 = vmatprep.mubr.bf16.mxu0 %v14714_v27  ;;  %10140 = vmatprep.subr.bf16.mxu1 %v12947_v45  ;;  %v3462_v9 = vld [vmem:[%s18685_s6 + $0x2740] sm:$0xff]  ;;  %v2207_v45 = vld [vmem:[%s18685_s6 + $0x8] sm:$0xff] }
 0x2dd   : > { %10177 = vmatprep.subr.bf16.mxu0 %v11957_v57  ;;  %v13122_v57 = vcombine.low %v3470_v32, %v3478_v48  ;;  %v13107_v37 = vcombine.high %v3454_v25, %v3462_v9  ;;  %v11861_v15 = vcombine.high %v2207_v45, %v2215_v11  ;;  %v11860_v49 = vcombine.low %v2207_v45, %v2215_v11 }
 0x2df   : > { %10141 = vmatpush1.bf16.msra.mxu1 %v12946_v58  ;;  %10178 = vmatpush1.bf16.msra.mxu0 %v11956_v6  ;;  %v3438_v58 = vld [vmem:[%s18685_s6 + $0x2680] sm:$0xff] }
 0x2e0   : > { %10142 = vmatprep.subr.bf16.mxu1 %v12931_v52  ;;  %10179 = vmatprep.subr.bf16.mxu0 %v11941_v63  ;;  %v3446_v6 = vld [vmem:[%s18685_s6 + $0x26c0] sm:$0xff]  ;;  %v2455_v52 = vld [vmem:[%s18685_s6 + $0x7c8] sm:$0xff]  ;;  %v13106_v63 = vcombine.low %v3454_v25, %v3462_v9 }
 0x2e1   : > { %v13091_v30 = vcombine.high %v3438_v58, %v3446_v6  ;;  %v12101_v44 = vcombine.high %v2447_v17, %v2455_v52  ;;  %v13090_v23 = vcombine.low %v3438_v58, %v3446_v6  ;;  %v12100_v36 = vcombine.low %v2447_v17, %v2455_v52 }
 0x2e3   : > { %10143 = vmatpush1.bf16.msra.mxu1 %v12930_v47  ;;  %10180 = vmatpush1.bf16.msra.mxu0 %v11940_v38  ;;  %v13614_v47 = vpop.eup %13613  ;;  %v3430_v38 = vld [vmem:[%s18685_s6 + $0x2640] sm:$0xff] }
 0x2e4   : > { %10144 = vmatprep.subr.bf16.mxu1 %v12915_v3  ;;  %10181 = vmatprep.subr.bf16.mxu0 %v11925_v4  ;;  %v2431_v3 = vld [vmem:[%s18685_s6 + $0x708] sm:$0xff]  ;;  %v2164_v10 = vadd.f32 1.0, %v13614_v47  ;;  %v13075_v31 = vcombine.high %v3422_v62, %v3430_v38  ;;  %v13074_v16 = vcombine.low %v3422_v62, %v3430_v38 }
 0x2e5   : > { %v2439_v4 = vld [vmem:[%s18685_s6 + $0x748] sm:$0xff] }
 0x2e6   : > { %v12084_v56 = vcombine.low %v2431_v3, %v2439_v4  ;;  %13615 = vrcp.f32 %v2164_v10  ;;  %v2583_v62 = vld [vmem:[%s18685_s6 + $0xbc8] sm:$0xff] }
 0x2e7   : > { %10145 = vmatpush1.bf16.msra.mxu1 %v12914_v18  ;;  %10182 = vmatpush1.bf16.msra.mxu0 %v11924_v35  ;;  %v12085_v18 = vcombine.high %v2431_v3, %v2439_v4  ;;  %v3406_v35 = vld [vmem:[%s18685_s6 + $0x2580] sm:$0xff]  ;;  %v2343_v10 = vld [vmem:[%s18685_s6 + $0x448] sm:$0xff] }
 0x2e8   : > { %10146 = vmatprep.subr.bf16.mxu1 %v12899_v28  ;;  %10183 = vmatprep.subr.bf16.mxu0 %v11909_v41  ;;  %v2415_v28 = vld [vmem:[%s18685_s6 + $0x688] sm:$0xff]  ;;  %v13059_v20 = vcombine.high %v3406_v35, %v3414_v14  ;;  %v13058_v32 = vcombine.low %v3406_v35, %v3414_v14 }
 0x2e9   : > { %v2423_v41 = vld [vmem:[%s18685_s6 + $0x6c8] sm:$0xff] }
 0x2ea   : > { %v12069_v26 = vcombine.high %v2415_v28, %v2423_v41  ;;  %v12068_v48 = vcombine.low %v2415_v28, %v2423_v41  ;;  %v2543_v41 = vld [vmem:[%s18685_s6 + $0xa88] sm:$0xff] }
 0x2eb   : > { %10147 = vmatpush1.bf16.msra.mxu1 %v12898_v42  ;;  %10184 = vmatpush1.bf16.msra.mxu0 %v11908_v1  ;;  %v3390_v42 = vld [vmem:[%s18685_s6 + $0x2500] sm:$0xff] }
 0x2ec   : > { %10148 = vmatprep.subr.bf16.mxu1 %v12883_v33  ;;  %10185 = vmatprep.subr.bf16.mxu0 %v11893_v46  ;;  %v3398_v1 = vld [vmem:[%s18685_s6 + $0x2540] sm:$0xff]  ;;  %v2399_v33 = vld [vmem:[%s18685_s6 + $0x608] sm:$0xff] }
 0x2ed   : > { %v2407_v46 = vld [vmem:[%s18685_s6 + $0x648] sm:$0xff]  ;;  %v13043_v24 = vcombine.high %v3390_v42, %v3398_v1  ;;  %v13042_v25 = vcombine.low %v3390_v42, %v3398_v1 }
 0x2ee   : > { %v12053_v59 = vcombine.high %v2399_v33, %v2407_v46  ;;  %v12052_v9 = vcombine.low %v2399_v33, %v2407_v46 }
 0x2ef   : > { %10149 = vmatpush1.bf16.msra.mxu1 %v12882_v40  ;;  %10186 = vmatpush1.bf16.msra.mxu0 %v11892_v34  ;;  %v3374_v40 = vld [vmem:[%s18685_s6 + $0x2480] sm:$0xff] }
 0x2f0   : > { %10150 = vmatprep.subr.bf16.mxu1 %v13123_v5  ;;  %10187 = vmatprep.subr.bf16.mxu0 %v11877_v2  ;;  %v3382_v34 = vld [vmem:[%s18685_s6 + $0x24c0] sm:$0xff]  ;;  %v2383_v5 = vld [vmem:[%s18685_s6 + $0x588] sm:$0xff] }
 0x2f1   : > { %v2391_v2 = vld [vmem:[%s18685_s6 + $0x5c8] sm:$0xff]  ;;  %v13027_v45 = vcombine.high %v3374_v40, %v3382_v34  ;;  %v13026_v58 = vcombine.low %v3374_v40, %v3382_v34 }
 0x2f2   : > { %v12037_v11 = vcombine.high %v2383_v5, %v2391_v2  ;;  %v12036_v6 = vcombine.low %v2383_v5, %v2391_v2  ;;  %v2511_v2 = vld [vmem:[%s18685_s6 + $0x988] sm:$0xff] }
 0x2f3   : > { %10151 = vmatpush2.bf16.msra.mxu1 %v13122_v57  ;;  %10188 = vmatpush1.bf16.msra.mxu0 %v11876_v51  ;;  %v3358_v57 = vld [vmem:[%s18685_s6 + $0x2400] sm:$0xff] }
 0x2f4   : > { %10152 = vmatprep.subr.bf16.mxu1 %v13107_v37  ;;  %10189 = vmatprep.subr.bf16.mxu0 %v11861_v15  ;;  %v3366_v51 = vld [vmem:[%s18685_s6 + $0x2440] sm:$0xff]  ;;  %v2367_v37 = vld [vmem:[%s18685_s6 + $0x508] sm:$0xff] }
 0x2f5   : > { %v2375_v15 = vld [vmem:[%s18685_s6 + $0x548] sm:$0xff]  ;;  %v13011_v17 = vcombine.high %v3358_v57, %v3366_v51  ;;  %v13010_v47 = vcombine.low %v3358_v57, %v3366_v51 }
 0x2f6   : > { %v12021_v52 = vcombine.high %v2367_v37, %v2375_v15  ;;  %v12020_v38 = vcombine.low %v2367_v37, %v2375_v15 }
 0x2f7   : > { %10153 = vmatpush2.bf16.msra.mxu1 %v13106_v63  ;;  %10190 = vmatpush1.bf16.msra.mxu0 %v11860_v49  ;;  %v2351_v63 = vld [vmem:[%s18685_s6 + $0x488] sm:$0xff]  ;;  %v13616_v49 = vpop.eup %13615 }
 0x2f8   : > { %10154 = vmatprep.subr.bf16.mxu1 %v13091_v30  ;;  %10191 = vmatprep.subr.bf16.mxu0 %v12101_v44  ;;  %v2359_v30 = vld [vmem:[%s18685_s6 + $0x4c8] sm:$0xff]  ;;  %v2194_v3 = vmul.f32 %v13616_v49, %v15021_v22 }
 0x2f9   : > { %v2575_v44 = vld [vmem:[%s18685_s6 + $0xb88] sm:$0xff]  ;;  %v12005_v4 = vcombine.high %v2351_v63, %v2359_v30 }
 0x2fa   : > { %v2567_v22 = vld [vmem:[%s18685_s6 + $0xb48] sm:$0xff]  ;;  %v12228_v35 = vcombine.low %v2575_v44, %v2583_v62  ;;  %v15169_v14 = vpack.c.bf16 %v2194_v3, %v2194_v3 }
 0x2fb   : > { %10155 = vmatpush2.bf16.msra.mxu1 %v13090_v23  ;;  %10192 = vmatpush2.bf16.msra.mxu0 %v12100_v36  ;;  %v12229_v23 = vcombine.high %v2575_v44, %v2583_v62  ;;  %v2335_v36 = vld [vmem:[%s18685_s6 + $0x408] sm:$0xff] }
 0x2fc   : > { %10156 = vmatprep.subr.bf16.mxu1 %v13075_v31  ;;  %10193 = vmatprep.subr.bf16.mxu0 %v12085_v18  ;;  %v2559_v31 = vld [vmem:[%s18685_s6 + $0xb08] sm:$0xff]  ;;  %v12004_v18 = vcombine.low %v2351_v63, %v2359_v30  ;;  %v11989_v28 = vcombine.high %v2335_v36, %v2343_v10  ;;  %v11988_v42 = vcombine.low %v2335_v36, %v2343_v10 }
 0x2fd   : > { %v12212_v1 = vcombine.low %v2559_v31, %v2567_v22  ;;  %v2479_v62 = vld [vmem:[%s18685_s6 + $0x888] sm:$0xff] }
 0x2fe   : > { %v2775_v3 = vld [vmem:[%s18685_s6 + $0x11c8] sm:$0xff] }
 0x2ff   : > { %10157 = vmatpush2.bf16.msra.mxu1 %v13074_v16  ;;  %10194 = vmatpush2.bf16.msra.mxu0 %v12084_v56  ;;  %v12213_v16 = vcombine.high %v2559_v31, %v2567_v22  ;;  %v2551_v56 = vld [vmem:[%s18685_s6 + $0xac8] sm:$0xff] }
 0x300   : > { %10158 = vmatprep.subr.bf16.mxu1 %v13059_v20  ;;  %10195 = vmatprep.subr.bf16.mxu0 %v12069_v26  ;;  %v2831_v20 = vld [vmem:[%s18685_s6 + $0x1388] sm:$0xff]  ;;  %v12197_v33 = vcombine.high %v2543_v41, %v2551_v56  ;;  %v12196_v40 = vcombine.low %v2543_v41, %v2551_v56 }
 0x301   : > { %v2839_v26 = vld [vmem:[%s18685_s6 + $0x13c8] sm:$0xff] }
 0x302   : > { %v12485_v46 = vcombine.high %v2831_v20, %v2839_v26  ;;  %v12484_v34 = vcombine.low %v2831_v20, %v2839_v26  ;;  %v2463_v31 = vld [vmem:[%s18685_s6 + $0x808] sm:$0xff] }
 0x303   : > { %10159 = vmatpush2.bf16.msra.mxu1 %v13058_v32  ;;  %10196 = vmatpush2.bf16.msra.mxu0 %v12068_v48  ;;  %v2527_v32 = vld [vmem:[%s18685_s6 + $0xa08] sm:$0xff] }
 0x304   : > { %10160 = vmatprep.subr.bf16.mxu1 %v13043_v24  ;;  %10197 = vmatprep.subr.bf16.mxu0 %v12053_v59  ;;  %v2535_v48 = vld [vmem:[%s18685_s6 + $0xa48] sm:$0xff] }
 0x305   : > { %v2815_v24 = vld [vmem:[%s18685_s6 + $0x1308] sm:$0xff]  ;;  %v12181_v5 = vcombine.high %v2527_v32, %v2535_v48  ;;  %v12180_v57 = vcombine.low %v2527_v32, %v2535_v48 }
 0x306   : > { %v2823_v59 = vld [vmem:[%s18685_s6 + $0x1348] sm:$0xff] }
 0x307   : > { %10161 = vmatpush2.bf16.msra.mxu1 %v13042_v25  ;;  %10198 = vmatpush2.bf16.msra.mxu0 %v12052_v9  ;;  %v12469_v25 = vcombine.high %v2815_v24, %v2823_v59  ;;  %v2519_v9 = vld [vmem:[%s18685_s6 + $0x9c8] sm:$0xff]  ;;  %v12468_v51 = vcombine.low %v2815_v24, %v2823_v59 }
 0x308   : > { %10162 = vmatprep.subr.bf16.mxu1 %v13027_v45  ;;  %10199 = vmatprep.subr.bf16.mxu0 %v12037_v11  ;;  %v2799_v45 = vld [vmem:[%s18685_s6 + $0x1288] sm:$0xff]  ;;  %v12165_v37 = vcombine.high %v2511_v2, %v2519_v9  ;;  %v12164_v63 = vcombine.low %v2511_v2, %v2519_v9 }
 0x309   : > { %v2807_v11 = vld [vmem:[%s18685_s6 + $0x12c8] sm:$0xff] }
 0x30a   : > { %v12453_v15 = vcombine.high %v2799_v45, %v2807_v11  ;;  %v12452_v49 = vcombine.low %v2799_v45, %v2807_v11  ;;  %v2471_v22 = vld [vmem:[%s18685_s6 + $0x848] sm:$0xff] }
 0x30b   : > { %10163 = vmatpush2.bf16.msra.mxu1 %v13026_v58  ;;  %10200 = vmatpush2.bf16.msra.mxu0 %v12036_v6  ;;  %v2495_v58 = vld [vmem:[%s18685_s6 + $0x908] sm:$0xff] }
 0x30c   : > { %10164 = vmatprep.subr.bf16.mxu1 %v13011_v17  ;;  %10201 = vmatprep.subr.bf16.mxu0 %v12021_v52  ;;  %v2503_v6 = vld [vmem:[%s18685_s6 + $0x948] sm:$0xff] }
 0x30d   : > { %v2783_v17 = vld [vmem:[%s18685_s6 + $0x1208] sm:$0xff]  ;;  %v12149_v30 = vcombine.high %v2495_v58, %v2503_v6 }
 0x30e   : > { %v2791_v52 = vld [vmem:[%s18685_s6 + $0x1248] sm:$0xff] }
 0x30f   : > { %10165 = vmatpush2.bf16.msra.mxu1 %v13010_v47  ;;  %10202 = vmatpush2.bf16.msra.mxu0 %v12020_v38  ;;  %v12437_v44 = vcombine.high %v2783_v17, %v2791_v52  ;;  %v2487_v47 = vld [vmem:[%s18685_s6 + $0x8c8] sm:$0xff] }
 0x310   : > { %10203 = vmatprep.subr.bf16.mxu0 %v12005_v4  ;;  %10216 = vmatprep.subr.bf16.mxu1 %v12229_v23  ;;  %v2767_v38 = vld [vmem:[%s18685_s6 + $0x1188] sm:$0xff]  ;;  %v12148_v4 = vcombine.low %v2495_v58, %v2503_v6  ;;  %v12436_v23 = vcombine.low %v2783_v17, %v2791_v52  ;;  %v12133_v36 = vcombine.high %v2479_v62, %v2487_v47 }
 0x311   : > { %v12421_v10 = vcombine.high %v2767_v38, %v2775_v3  ;;  %v12420_v41 = vcombine.low %v2767_v38, %v2775_v3  ;;  %v2703_v20 = vld [vmem:[%s18685_s6 + $0xf88] sm:$0xff] }
 0x312   : > { %10167 = vmatmul.mubr.bf16.vlgmr.msra.gmra.mxu1 %v15169_v14  ;;  %v2711_v26 = vld [vmem:[%s18685_s6 + $0xfc8] sm:$0xff] }
 0x313   : > { %10204 = vmatpush2.bf16.msra.mxu0 %v12004_v18  ;;  %10217 = vmatpush1.bf16.msra.mxu1 %v12228_v35  ;;  %v2751_v18 = vld [vmem:[%s18685_s6 + $0x1108] sm:$0xff]  ;;  %v12357_v32 = vcombine.high %v2703_v20, %v2711_v26 }
 0x314   : > { %10248 = vmatprep.mubr.bf16.mxu1 %v14743_v43  ;;  %10205 = vmatprep.subr.bf16.mxu0 %v11989_v28  ;;  %v2759_v35 = vld [vmem:[%s18685_s6 + $0x1148] sm:$0xff]  ;;  %v12132_v28 = vcombine.low %v2479_v62, %v2487_v47 }
 0x315   : > { %10218 = vmatprep.subr.bf16.mxu1 %v12213_v16  ;;  %v12117_v16 = vcombine.high %v2463_v31, %v2471_v22  ;;  %v12405_v56 = vcombine.high %v2751_v18, %v2759_v35  ;;  %v2687_v24 = vld [vmem:[%s18685_s6 + $0xf08] sm:$0xff] }
 0x316   : > { %v2695_v59 = vld [vmem:[%s18685_s6 + $0xf48] sm:$0xff] }
 0x317   : > { %10206 = vmatpush2.bf16.msra.mxu0 %v11988_v42  ;;  %10219 = vmatpush1.bf16.msra.mxu1 %v12212_v1  ;;  %v2735_v42 = vld [vmem:[%s18685_s6 + $0x1088] sm:$0xff] }
 0x318   : > { %10220 = vmatprep.subr.bf16.mxu1 %v12197_v33  ;;  %10257 = vmatprep.subr.bf16.mxu0 %v12485_v46  ;;  %v2743_v1 = vld [vmem:[%s18685_s6 + $0x10c8] sm:$0xff]  ;;  %v12116_v33 = vcombine.low %v2463_v31, %v2471_v22  ;;  %v12404_v46 = vcombine.low %v2751_v18, %v2759_v35 }
 0x319   : > { %v12389_v48 = vcombine.high %v2735_v42, %v2743_v1  ;;  %v12388_v2 = vcombine.low %v2735_v42, %v2743_v1  ;;  %v2671_v45 = vld [vmem:[%s18685_s6 + $0xe88] sm:$0xff] }
 0x31a   : > { %10208 = vmatmul.mubr.bf16.vlgmr.msra.gmra.mxu0 %v14716_v55  ;;  %v2679_v11 = vld [vmem:[%s18685_s6 + $0xec8] sm:$0xff] }
 0x31b   : > { %10221 = vmatpush1.bf16.msra.mxu1 %v12196_v40  ;;  %10258 = vmatpush1.bf16.msra.mxu0 %v12484_v34  ;;  %v2719_v40 = vld [vmem:[%s18685_s6 + $0x1008] sm:$0xff]  ;;  %v12325_v58 = vcombine.high %v2671_v45, %v2679_v11 }
 0x31c   : > { %10289 = vmatprep.mubr.bf16.mxu0 %v14792_v19  ;;  %10222 = vmatprep.subr.bf16.mxu1 %v12181_v5  ;;  %v2727_v34 = vld [vmem:[%s18685_s6 + $0x1048] sm:$0xff]  ;;  %v12356_v5 = vcombine.low %v2703_v20, %v2711_v26 }
 0x31d   : > { %10259 = vmatprep.subr.bf16.mxu0 %v12469_v25  ;;  %v12341_v25 = vcombine.high %v2687_v24, %v2695_v59  ;;  %v12373_v9 = vcombine.high %v2719_v40, %v2727_v34  ;;  %v2655_v17 = vld [vmem:[%s18685_s6 + $0xe08] sm:$0xff] }
 0x31e   : > { %v2663_v52 = vld [vmem:[%s18685_s6 + $0xe48] sm:$0xff] }
 0x31f   : > { %10223 = vmatpush1.bf16.msra.mxu1 %v12180_v57  ;;  %10260 = vmatpush1.bf16.msra.mxu0 %v12468_v51  ;;  %v2959_v57 = vld [vmem:[%s18685_s6 + $0x1788] sm:$0xff]  ;;  %v12309_v62 = vcombine.high %v2655_v17, %v2663_v52 }
 0x320   : > { %10224 = vmatprep.subr.bf16.mxu1 %v12165_v37  ;;  %10261 = vmatprep.subr.bf16.mxu0 %v12453_v15  ;;  %v2967_v51 = vld [vmem:[%s18685_s6 + $0x17c8] sm:$0xff]  ;;  %v12340_v37 = vcombine.low %v2687_v24, %v2695_v59  ;;  %v12372_v15 = vcombine.low %v2719_v40, %v2727_v34 }
 0x321   : > { %v12613_v6 = vcombine.high %v2959_v57, %v2967_v51  ;;  %v2639_v38 = vld [vmem:[%s18685_s6 + $0xd88] sm:$0xff] }
 0x322   : > { %v2647_v3 = vld [vmem:[%s18685_s6 + $0xdc8] sm:$0xff] }
 0x323   : > { %10225 = vmatpush1.bf16.msra.mxu1 %v12164_v63  ;;  %10262 = vmatpush1.bf16.msra.mxu0 %v12452_v49  ;;  %v2943_v63 = vld [vmem:[%s18685_s6 + $0x1708] sm:$0xff]  ;;  %v12293_v31 = vcombine.high %v2639_v38, %v2647_v3 }
 0x324   : > { %10226 = vmatprep.subr.bf16.mxu1 %v12149_v30  ;;  %10263 = vmatprep.subr.bf16.mxu0 %v12437_v44  ;;  %v2951_v49 = vld [vmem:[%s18685_s6 + $0x1748] sm:$0xff]  ;;  %v12324_v30 = vcombine.low %v2671_v45, %v2679_v11  ;;  %v12612_v44 = vcombine.low %v2959_v57, %v2967_v51 }
 0x325   : > { %v12597_v47 = vcombine.high %v2943_v63, %v2951_v49  ;;  %v2623_v18 = vld [vmem:[%s18685_s6 + $0xd08] sm:$0xff] }
 0x326   : > { %v2631_v35 = vld [vmem:[%s18685_s6 + $0xd48] sm:$0xff] }
 0x327   : > { %10227 = vmatpush1.bf16.msra.mxu1 %v12148_v4  ;;  %10264 = vmatpush1.bf16.msra.mxu0 %v12436_v23  ;;  %v2927_v4 = vld [vmem:[%s18685_s6 + $0x1688] sm:$0xff]  ;;  %v12277_v20 = vcombine.high %v2623_v18, %v2631_v35 }
 0x328   : > { %10228 = vmatprep.subr.bf16.mxu1 %v12133_v36  ;;  %10265 = vmatprep.subr.bf16.mxu0 %v12421_v10  ;;  %v2935_v23 = vld [vmem:[%s18685_s6 + $0x16c8] sm:$0xff]  ;;  %v12308_v36 = vcombine.low %v2655_v17, %v2663_v52  ;;  %v12596_v10 = vcombine.low %v2943_v63, %v2951_v49 }
 0x329   : > { %v12581_v22 = vcombine.high %v2927_v4, %v2935_v23  ;;  %v2607_v42 = vld [vmem:[%s18685_s6 + $0xc88] sm:$0xff] }
 0x32a   : > { %v2615_v1 = vld [vmem:[%s18685_s6 + $0xcc8] sm:$0xff] }
 0x32b   : > { %10229 = vmatpush1.bf16.msra.mxu1 %v12132_v28  ;;  %10266 = vmatpush1.bf16.msra.mxu0 %v12420_v41  ;;  %v2911_v28 = vld [vmem:[%s18685_s6 + $0x1608] sm:$0xff]  ;;  %v12261_v24 = vcombine.high %v2607_v42, %v2615_v1 }
 0x32c   : > { %10230 = vmatprep.subr.bf16.mxu1 %v12117_v16  ;;  %10267 = vmatprep.subr.bf16.mxu0 %v12405_v56  ;;  %v2919_v41 = vld [vmem:[%s18685_s6 + $0x1648] sm:$0xff]  ;;  %v12292_v16 = vcombine.low %v2639_v38, %v2647_v3  ;;  %v12580_v56 = vcombine.low %v2927_v4, %v2935_v23 }
 0x32d   : > { %v12565_v26 = vcombine.high %v2911_v28, %v2919_v41  ;;  %v2591_v40 = vld [vmem:[%s18685_s6 + $0xc08] sm:$0xff] }
 0x32e   : > { %v2599_v34 = vld [vmem:[%s18685_s6 + $0xc48] sm:$0xff] }
 0x32f   : > { %10231 = vmatpush1.bf16.msra.mxu1 %v12116_v33  ;;  %10268 = vmatpush1.bf16.msra.mxu0 %v12404_v46  ;;  %v2895_v33 = vld [vmem:[%s18685_s6 + $0x1588] sm:$0xff]  ;;  %v12245_v45 = vcombine.high %v2591_v40, %v2599_v34 }
 0x330   : > { %10232 = vmatprep.subr.bf16.mxu1 %v12357_v32  ;;  %10269 = vmatprep.subr.bf16.mxu0 %v12389_v48  ;;  %v2903_v46 = vld [vmem:[%s18685_s6 + $0x15c8] sm:$0xff]  ;;  %v12276_v32 = vcombine.low %v2623_v18, %v2631_v35  ;;  %v12564_v48 = vcombine.low %v2911_v28, %v2919_v41 }
 0x331   : > { %v12549_v59 = vcombine.high %v2895_v33, %v2903_v46  ;;  %v2863_v57 = vld [vmem:[%s18685_s6 + $0x1488] sm:$0xff] }
 0x332   : > { %v2871_v51 = vld [vmem:[%s18685_s6 + $0x14c8] sm:$0xff] }
 0x333   : > { %10233 = vmatpush2.bf16.msra.mxu1 %v12356_v5  ;;  %10270 = vmatpush1.bf16.msra.mxu0 %v12388_v2  ;;  %v2879_v5 = vld [vmem:[%s18685_s6 + $0x1508] sm:$0xff]  ;;  %v12517_v17 = vcombine.high %v2863_v57, %v2871_v51 }
 0x334   : > { %10234 = vmatprep.subr.bf16.mxu1 %v12341_v25  ;;  %10271 = vmatprep.subr.bf16.mxu0 %v12373_v9  ;;  %v2887_v2 = vld [vmem:[%s18685_s6 + $0x1548] sm:$0xff]  ;;  %v12260_v25 = vcombine.low %v2607_v42, %v2615_v1  ;;  %v12548_v9 = vcombine.low %v2895_v33, %v2903_v46 }
 0x335   : > { %v12533_v11 = vcombine.high %v2879_v5, %v2887_v2  ;;  %v2847_v63 = vld [vmem:[%s18685_s6 + $0x1408] sm:$0xff] }
 0x336   : > { %v2855_v49 = vld [vmem:[%s18685_s6 + $0x1448] sm:$0xff] }
 0x337   : > { %10235 = vmatpush2.bf16.msra.mxu1 %v12340_v37  ;;  %10272 = vmatpush1.bf16.msra.mxu0 %v12372_v15  ;;  %v3087_v37 = vld [vmem:[%s18685_s6 + $0x1b88] sm:$0xff]  ;;  %v12501_v38 = vcombine.high %v2847_v63, %v2855_v49  ;;  %v12500_v18 = vcombine.low %v2847_v63, %v2855_v49 }
 0x338   : > { %10236 = vmatprep.subr.bf16.mxu1 %v12325_v58  ;;  %10273 = vmatprep.subr.bf16.mxu0 %v12613_v6  ;;  %v3095_v15 = vld [vmem:[%s18685_s6 + $0x1bc8] sm:$0xff]  ;;  %v12244_v58 = vcombine.low %v2591_v40, %v2599_v34  ;;  %v12532_v6 = vcombine.low %v2879_v5, %v2887_v2 }
 0x339   : > { %v12741_v52 = vcombine.high %v3087_v37, %v3095_v15  ;;  %v3055_v3 = vld [vmem:[%s18685_s6 + $0x1a88] sm:$0xff] }
 0x33a   : > { %v3063_v23 = vld [vmem:[%s18685_s6 + $0x1ac8] sm:$0xff] }
 0x33b   : > { %10237 = vmatpush2.bf16.msra.mxu1 %v12324_v30  ;;  %10274 = vmatpush2.bf16.msra.mxu0 %v12612_v44  ;;  %v3071_v30 = vld [vmem:[%s18685_s6 + $0x1b08] sm:$0xff]  ;;  %v12709_v41 = vcombine.high %v3055_v3, %v3063_v23 }
 0x33c   : > { %10238 = vmatprep.subr.bf16.mxu1 %v12309_v62  ;;  %10275 = vmatprep.subr.bf16.mxu0 %v12597_v47  ;;  %v3079_v44 = vld [vmem:[%s18685_s6 + $0x1b48] sm:$0xff]  ;;  %v12516_v62 = vcombine.low %v2863_v57, %v2871_v51  ;;  %v12740_v47 = vcombine.low %v3087_v37, %v3095_v15 }
 0x33d   : > { %v12725_v4 = vcombine.high %v3071_v30, %v3079_v44  ;;  %v12724_v35 = vcombine.low %v3071_v30, %v3079_v44  ;;  %v3327_v1 = vld [vmem:[%s18685_s6 + $0x2308] sm:$0xff] }
 0x33e   : > { %v3335_v33 = vld [vmem:[%s18685_s6 + $0x2348] sm:$0xff] }
 0x33f   : > { %10239 = vmatpush2.bf16.msra.mxu1 %v12308_v36  ;;  %10276 = vmatpush2.bf16.msra.mxu0 %v12596_v10  ;;  %v3343_v36 = vld [vmem:[%s18685_s6 + $0x2388] sm:$0xff]  ;;  %v12981_v5 = vcombine.high %v3327_v1, %v3335_v33  ;;  %v12980_v37 = vcombine.low %v3327_v1, %v3335_v33 }
 0x340   : > { %10240 = vmatprep.subr.bf16.mxu1 %v12293_v31  ;;  %10277 = vmatprep.subr.bf16.mxu0 %v12581_v22  ;;  %v3351_v10 = vld [vmem:[%s18685_s6 + $0x23c8] sm:$0xff]  ;;  %v3486_v31 = vld [vmem:[%s18686_s7] sm:$0xff] }
 0x341   : > { %v3497_v46 = vrot.slane %v3486_v31, %v14662_v61  ;;  %v3023_v40 = vld [vmem:[%s18685_s6 + $0x1988] sm:$0xff] }
 0x342   : > { %v3031_v2 = vld [vmem:[%s18685_s6 + $0x19c8] sm:$0xff] }
 0x343   : > { %10241 = vmatpush2.bf16.msra.mxu1 %v12292_v16  ;;  %10278 = vmatpush2.bf16.msra.mxu0 %v12580_v56  ;;  %v12997_v16 = vcombine.high %v3343_v36, %v3351_v10  ;;  %v3493_v56 = vrot.slane %v3486_v31, %v14654_v54  ;;  %v3015_v63 = vld [vmem:[%s18685_s6 + $0x1948] sm:$0xff] }
 0x344   : > { %10242 = vmatprep.subr.bf16.mxu1 %v12277_v20  ;;  %10279 = vmatprep.subr.bf16.mxu0 %v12565_v26  ;;  %v3039_v20 = vld [vmem:[%s18685_s6 + $0x1a08] sm:$0xff] }
 0x345   : > { %v3047_v26 = vld [vmem:[%s18685_s6 + $0x1a48] sm:$0xff] }
 0x346   : > { %v3295_v49 = vld [vmem:[%s18685_s6 + $0x2208] sm:$0xff] }
 0x347   : > { %10243 = vmatpush2.bf16.msra.mxu1 %v12276_v32  ;;  %10280 = vmatpush2.bf16.msra.mxu0 %v12564_v48  ;;  %v12708_v32 = vcombine.low %v3055_v3, %v3063_v23  ;;  %v12996_v48 = vcombine.low %v3343_v36, %v3351_v10  ;;  %v3303_v30 = vld [vmem:[%s18685_s6 + $0x2248] sm:$0xff] }
 0x348   : > { %10244 = vmatprep.subr.bf16.mxu1 %v12261_v24  ;;  %10281 = vmatprep.subr.bf16.mxu0 %v12549_v59  ;;  %v12693_v59 = vcombine.high %v3039_v20, %v3047_v26  ;;  %v2991_v23 = vld [vmem:[%s18685_s6 + $0x1888] sm:$0xff] }
 0x349   : > { %v2999_v36 = vld [vmem:[%s18685_s6 + $0x18c8] sm:$0xff] }
 0x34a   : > { %v3279_v10 = vld [vmem:[%s18685_s6 + $0x2188] sm:$0xff] }
 0x34b   : > { %10245 = vmatpush2.bf16.msra.mxu1 %v12260_v25  ;;  %10282 = vmatpush2.bf16.msra.mxu0 %v12548_v9  ;;  %v3311_v25 = vld [vmem:[%s18685_s6 + $0x2288] sm:$0xff] }
 0x34c   : > { %10246 = vmatprep.subr.bf16.mxu1 %v12245_v45  ;;  %10283 = vmatprep.subr.bf16.mxu0 %v12533_v11  ;;  %v3319_v9 = vld [vmem:[%s18685_s6 + $0x22c8] sm:$0xff]  ;;  %v12692_v11 = vcombine.low %v3039_v20, %v3047_v26  ;;  %v12644_v26 = vcombine.low %v2991_v23, %v2999_v36 }
 0x34d   : > { %v3287_v31 = vld [vmem:[%s18685_s6 + $0x21c8] sm:$0xff] }
 0x34e   : > { %v3271_v20 = vld [vmem:[%s18685_s6 + $0x2148] sm:$0xff] }
 0x34f   : > { %10247 = vmatpush2.bf16.msra.mxu1 %v12244_v58  ;;  %10284 = vmatpush2.bf16.msra.mxu0 %v12532_v6  ;;  %v12677_v58 = vcombine.high %v3023_v40, %v3031_v2  ;;  %v12965_v6 = vcombine.high %v3311_v25, %v3319_v9 }
 0x350   : > { %10285 = vmatprep.subr.bf16.mxu0 %v12517_v17  ;;  %10298 = vmatprep.subr.bf16.mxu1 %v12741_v52  ;;  %v3007_v17 = vld [vmem:[%s18685_s6 + $0x1908] sm:$0xff] }
 0x351   : > { %v12661_v3 = vcombine.high %v3007_v17, %v3015_v63 }
 0x352   : > { %10249 = vmatmul.mubr.bf16.vlgmr.msra.gmra.mxu1 %v14748_v53  ;;  %v10004_v22 = vpop.f32.mrf.mxu1 }
 0x353   : > { %10286 = vmatpush2.bf16.msra.mxu0 %v12516_v62  ;;  %10299 = vmatpush1.bf16.msra.mxu1 %v12740_v47  ;;  %v10005_v34 = vadd.f32 %v10004_v22, %v3493_v56  ;;  %v12676_v62 = vcombine.low %v3023_v40, %v3031_v2  ;;  %v12964_v47 = vcombine.low %v3311_v25, %v3319_v9  ;;  %v3263_v56 = vld [vmem:[%s18685_s6 + $0x2108] sm:$0xff] }
 0x354   : > { %10330 = vmatprep.mubr.bf16.mxu1 %v14833_v8  ;;  %v10006_v28 = vpop.f32.mrf.mxu1  ;;  %10287 = vmatprep.subr.bf16.mxu0 %v12501_v38  ;;  %v12660_v22 = vcombine.low %v3007_v17, %v3015_v63  ;;  %v12917_v33 = vcombine.high %v3263_v56, %v3271_v20  ;;  %v12916_v40 = vcombine.low %v3263_v56, %v3271_v20  ;;  %v3199_v2 = vld [vmem:[%s18685_s6 + $0x1f08] sm:$0xff] }
 0x355   : > { %10300 = vmatprep.subr.bf16.mxu1 %v12725_v4  ;;  %v10007_v57 = vadd.f32 %v10006_v28, %v3497_v46  ;;  %v12949_v4 = vcombine.high %v3295_v49, %v3303_v30  ;;  %v12933_v28 = vcombine.high %v3279_v10, %v3287_v31  ;;  %v3215_v46 = vld [vmem:[%s18685_s6 + $0x1f88] sm:$0xff] }
 0x356   : > { %v10008_v42 = vpop.f32.mrf.mxu1  ;;  %v3207_v25 = vld [vmem:[%s18685_s6 + $0x1f48] sm:$0xff] }
 0x357   : > { %10288 = vmatpush2.bf16.msra.mxu0 %v12500_v18  ;;  %10301 = vmatpush1.bf16.msra.mxu1 %v12724_v35  ;;  %v12948_v18 = vcombine.low %v3295_v49, %v3303_v30  ;;  %v12645_v35 = vcombine.high %v2991_v23, %v2999_v36  ;;  %v12932_v42 = vcombine.low %v3279_v10, %v3287_v31  ;;  %v3231_v9 = vld [vmem:[%s18685_s6 + $0x2008] sm:$0xff] }
 0x358   : > { %v10009_v24 = vpop.f32.mrf.mxu1  ;;  %10302 = vmatprep.subr.bf16.mxu1 %v12709_v41  ;;  %10339 = vmatprep.subr.bf16.mxu0 %v12997_v16  ;;  %v2975_v41 = vld [vmem:[%s18685_s6 + $0x1808] sm:$0xff]  ;;  %v12852_v49 = vcombine.low %v3199_v2, %v3207_v25 }
 0x359   : > { %v2983_v16 = vld [vmem:[%s18685_s6 + $0x1848] sm:$0xff] }
 0x35a   : > { %10290 = vmatmul.mubr.bf16.vlgmr.msra.gmra.mxu0 %v14959_v0  ;;  %v10045_v45 = vpop.f32.mrf.mxu0  ;;  %v12629_v1 = vcombine.high %v2975_v41, %v2983_v16  ;;  %v3255_v24 = vld [vmem:[%s18685_s6 + $0x20c8] sm:$0xff] }
 0x35b   : > { %v15411_v51 = vadd.f32 %v10045_v45, %v10005_v34  ;;  %10303 = vmatpush1.bf16.msra.mxu1 %v12708_v32  ;;  %10340 = vmatpush1.bf16.msra.mxu0 %v12996_v48  ;;  %v3223_v32 = vld [vmem:[%s18685_s6 + $0x1fc8] sm:$0xff] }
 0x35c   : > { %10371 = vmatprep.mubr.bf16.mxu0 %v14973_v21  ;;  %v10047_v15 = vpop.f32.mrf.mxu0  ;;  %10304 = vmatprep.subr.bf16.mxu1 %v12693_v59  ;;  %v3247_v48 = vld [vmem:[%s18685_s6 + $0x2088] sm:$0xff]  ;;  %v12628_v59 = vcombine.low %v2975_v41, %v2983_v16  ;;  %v12869_v34 = vcombine.high %v3215_v46, %v3223_v32 }
 0x35d   : > { %v15417_v52 = vadd.f32 %v10047_v15, %v10007_v57  ;;  %10341 = vmatprep.subr.bf16.mxu0 %v12981_v5  ;;  %v12901_v5 = vcombine.high %v3247_v48, %v3255_v24  ;;  %v3239_v45 = vld [vmem:[%s18685_s6 + $0x2048] sm:$0xff]  ;;  %v12900_v57 = vcombine.low %v3247_v48, %v3255_v24 }
 0x35e   : > { %v10049_v44 = vpop.f32.mrf.mxu0  ;;  %v12885_v15 = vcombine.high %v3231_v9, %v3239_v45  ;;  %v3471_v17 = vld [vmem:[%s18685_s6 + $0x2788] sm:$0xff]  ;;  %v12884_v30 = vcombine.low %v3231_v9, %v3239_v45 }
 0x35f   : > { %10305 = vmatpush1.bf16.msra.mxu1 %v12692_v11  ;;  %10342 = vmatpush1.bf16.msra.mxu0 %v12980_v37  ;;  %v12868_v11 = vcombine.low %v3215_v46, %v3223_v32  ;;  %v12853_v37 = vcombine.high %v3199_v2, %v3207_v25  ;;  %v3479_v63 = vld [vmem:[%s18685_s6 + $0x27c8] sm:$0xff] }
 0x360   : > { %v10050_v38 = vpop.f32.mrf.mxu0  ;;  %10306 = vmatprep.subr.bf16.mxu1 %v12677_v58  ;;  %10343 = vmatprep.subr.bf16.mxu0 %v12965_v6  ;;  %v3183_v58 = vld [vmem:[%s18685_s6 + $0x1e88] sm:$0xff]  ;;  %v13124_v36 = vcombine.low %v3471_v17, %v3479_v63 }
 0x361   : > { %v3191_v6 = vld [vmem:[%s18685_s6 + $0x1ec8] sm:$0xff] }
 0x362   : > { %v12837_v44 = vcombine.high %v3183_v58, %v3191_v6  ;;  %v3175_v38 = vld [vmem:[%s18685_s6 + $0x1e48] sm:$0xff]  ;;  %v12836_v23 = vcombine.low %v3183_v58, %v3191_v6 }
 0x363   : > { %10307 = vmatpush1.bf16.msra.mxu1 %v12676_v62  ;;  %10344 = vmatpush1.bf16.msra.mxu0 %v12964_v47  ;;  %v13125_v62 = vcombine.high %v3471_v17, %v3479_v63  ;;  %v3167_v47 = vld [vmem:[%s18685_s6 + $0x1e08] sm:$0xff] }
 0x364   : > { %10308 = vmatprep.subr.bf16.mxu1 %v12661_v3  ;;  %10345 = vmatprep.subr.bf16.mxu0 %v12949_v4  ;;  %v3455_v3 = vld [vmem:[%s18685_s6 + $0x2708] sm:$0xff]  ;;  %v12821_v10 = vcombine.high %v3167_v47, %v3175_v38  ;;  %v12820_v41 = vcombine.low %v3167_v47, %v3175_v38 }
 0x365   : > { %v3463_v4 = vld [vmem:[%s18685_s6 + $0x2748] sm:$0xff] }
 0x366   : > { %v13109_v31 = vcombine.high %v3455_v3, %v3463_v4  ;;  %v13108_v16 = vcombine.low %v3455_v3, %v3463_v4 }
 0x367   : > { %10309 = vmatpush1.bf16.msra.mxu1 %v12660_v22  ;;  %10346 = vmatpush1.bf16.msra.mxu0 %v12948_v18  ;;  %v3151_v22 = vld [vmem:[%s18685_s6 + $0x1d88] sm:$0xff] }
 0x368   : > { %10310 = vmatprep.subr.bf16.mxu1 %v12645_v35  ;;  %10347 = vmatprep.subr.bf16.mxu0 %v12933_v28  ;;  %v3159_v18 = vld [vmem:[%s18685_s6 + $0x1dc8] sm:$0xff] }
 0x369   : > { %v3439_v35 = vld [vmem:[%s18685_s6 + $0x2688] sm:$0xff]  ;;  %v12805_v56 = vcombine.high %v3151_v22, %v3159_v18  ;;  %v12804_v46 = vcombine.low %v3151_v22, %v3159_v18 }
 0x36a   : > { %v3447_v28 = vld [vmem:[%s18685_s6 + $0x26c8] sm:$0xff] }
 0x36b   : > { %10311 = vmatpush1.bf16.msra.mxu1 %v12644_v26  ;;  %10348 = vmatpush1.bf16.msra.mxu0 %v12932_v42  ;;  %v13093_v20 = vcombine.high %v3439_v35, %v3447_v28  ;;  %v3135_v26 = vld [vmem:[%s18685_s6 + $0x1d08] sm:$0xff]  ;;  %v13092_v32 = vcombine.low %v3439_v35, %v3447_v28  ;;  %v2288_v28 = vld [vmem:[%s18685_s6 + $0x290] sm:$0xff] }
 0x36c   : > { %10312 = vmatprep.subr.bf16.mxu1 %v12629_v1  ;;  %10349 = vmatprep.subr.bf16.mxu0 %v12917_v33  ;;  %v3143_v42 = vld [vmem:[%s18685_s6 + $0x1d48] sm:$0xff] }
 0x36d   : > { %v3423_v1 = vld [vmem:[%s18685_s6 + $0x2608] sm:$0xff]  ;;  %v12789_v48 = vcombine.high %v3135_v26, %v3143_v42  ;;  %v12788_v2 = vcombine.low %v3135_v26, %v3143_v42 }
 0x36e   : > { %v3431_v33 = vld [vmem:[%s18685_s6 + $0x2648] sm:$0xff] }
 0x36f   : > { %10313 = vmatpush1.bf16.msra.mxu1 %v12628_v59  ;;  %10350 = vmatpush1.bf16.msra.mxu0 %v12916_v40  ;;  %v13077_v24 = vcombine.high %v3423_v1, %v3431_v33  ;;  %v3119_v59 = vld [vmem:[%s18685_s6 + $0x1c88] sm:$0xff]  ;;  %v13076_v25 = vcombine.low %v3423_v1, %v3431_v33 }
 0x370   : > { %10314 = vmatprep.subr.bf16.mxu1 %v12869_v34  ;;  %10351 = vmatprep.subr.bf16.mxu0 %v12901_v5  ;;  %v3127_v40 = vld [vmem:[%s18685_s6 + $0x1cc8] sm:$0xff] }
 0x371   : > { %v3407_v34 = vld [vmem:[%s18685_s6 + $0x2588] sm:$0xff]  ;;  %v12773_v9 = vcombine.high %v3119_v59, %v3127_v40  ;;  %v12772_v58 = vcombine.low %v3119_v59, %v3127_v40  ;;  %v2560_v40 = vld [vmem:[%s18685_s6 + $0xb10] sm:$0xff] }
 0x372   : > { %v3415_v5 = vld [vmem:[%s18685_s6 + $0x25c8] sm:$0xff] }
 0x373   : > { %10315 = vmatpush2.bf16.msra.mxu1 %v12868_v11  ;;  %10352 = vmatpush1.bf16.msra.mxu0 %v12900_v57  ;;  %v13061_v45 = vcombine.high %v3407_v34, %v3415_v5  ;;  %v3103_v11 = vld [vmem:[%s18685_s6 + $0x1c08] sm:$0xff]  ;;  %v13060_v6 = vcombine.low %v3407_v34, %v3415_v5  ;;  %v2568_v34 = vld [vmem:[%s18685_s6 + $0xb50] sm:$0xff] }
 0x374   : > { %10316 = vmatprep.subr.bf16.mxu1 %v12853_v37  ;;  %10353 = vmatprep.subr.bf16.mxu0 %v12885_v15  ;;  %v3111_v57 = vld [vmem:[%s18685_s6 + $0x1c48] sm:$0xff] }
 0x375   : > { %v3391_v37 = vld [vmem:[%s18685_s6 + $0x2508] sm:$0xff]  ;;  %v12757_v17 = vcombine.high %v3103_v11, %v3111_v57  ;;  %v12756_v47 = vcombine.low %v3103_v11, %v3111_v57  ;;  %v12215_v11 = vcombine.high %v2560_v40, %v2568_v34  ;;  %v2264_v57 = vld [vmem:[%s18685_s6 + $0x1d0] sm:$0xff] }
 0x376   : > { %v3399_v15 = vld [vmem:[%s18685_s6 + $0x2548] sm:$0xff] }
 0x377   : > { %10317 = vmatpush2.bf16.msra.mxu1 %v12852_v49  ;;  %10354 = vmatpush1.bf16.msra.mxu0 %v12884_v30  ;;  %v13045_v63 = vcombine.high %v3391_v37, %v3399_v15  ;;  %v3375_v49 = vld [vmem:[%s18685_s6 + $0x2488] sm:$0xff]  ;;  %v13044_v38 = vcombine.low %v3391_v37, %v3399_v15  ;;  %v2544_v37 = vld [vmem:[%s18685_s6 + $0xa90] sm:$0xff] }
 0x378   : > { %10318 = vmatprep.subr.bf16.mxu1 %v12837_v44  ;;  %10355 = vmatprep.subr.bf16.mxu0 %v13125_v62  ;;  %v3383_v30 = vld [vmem:[%s18685_s6 + $0x24c8] sm:$0xff]  ;;  %v2320_v44 = vld [vmem:[%s18685_s6 + $0x390] sm:$0xff] }
 0x379   : > { %v2328_v62 = vld [vmem:[%s18685_s6 + $0x3d0] sm:$0xff]  ;;  %v13029_v3 = vcombine.high %v3375_v49, %v3383_v30  ;;  %v13028_v22 = vcombine.low %v3375_v49, %v3383_v30 }
 0x37a   : > { %v11975_v4 = vcombine.high %v2320_v44, %v2328_v62  ;;  %v11974_v18 = vcombine.low %v2320_v44, %v2328_v62  ;;  %v2552_v15 = vld [vmem:[%s18685_s6 + $0xad0] sm:$0xff] }
 0x37b   : > { %10319 = vmatpush2.bf16.msra.mxu1 %v12836_v23  ;;  %10356 = vmatpush2.bf16.msra.mxu0 %v13124_v36  ;;  %v3359_v23 = vld [vmem:[%s18685_s6 + $0x2408] sm:$0xff]  ;;  %v12199_v30 = vcombine.high %v2544_v37, %v2552_v15  ;;  %v2240_v44 = vld [vmem:[%s18685_s6 + $0x110] sm:$0xff] }
 0x37c   : > { %10320 = vmatprep.subr.bf16.mxu1 %v12821_v10  ;;  %10357 = vmatprep.subr.bf16.mxu0 %v13109_v31  ;;  %v3367_v36 = vld [vmem:[%s18685_s6 + $0x2448] sm:$0xff]  ;;  %v2304_v10 = vld [vmem:[%s18685_s6 + $0x310] sm:$0xff] }
 0x37d   : > { %v2312_v31 = vld [vmem:[%s18685_s6 + $0x350] sm:$0xff]  ;;  %v13013_v35 = vcombine.high %v3359_v23, %v3367_v36  ;;  %v13012_v42 = vcombine.low %v3359_v23, %v3367_v36  ;;  %v12198_v23 = vcombine.low %v2544_v37, %v2552_v15 }
 0x37e   : > { %v11958_v1 = vcombine.low %v2304_v10, %v2312_v31  ;;  %v2248_v62 = vld [vmem:[%s18685_s6 + $0x150] sm:$0xff] }
 0x37f   : > { %10321 = vmatpush2.bf16.msra.mxu1 %v12820_v41  ;;  %10358 = vmatpush2.bf16.msra.mxu0 %v13108_v16  ;;  %v11959_v41 = vcombine.high %v2304_v10, %v2312_v31  ;;  %v2296_v16 = vld [vmem:[%s18685_s6 + $0x2d0] sm:$0xff]  ;;  %v11895_v10 = vcombine.high %v2240_v44, %v2248_v62 }
 0x380   : > { %10322 = vmatprep.subr.bf16.mxu1 %v12805_v56  ;;  %10359 = vmatprep.subr.bf16.mxu0 %v13093_v20  ;;  %v2576_v56 = vld [vmem:[%s18685_s6 + $0xb90] sm:$0xff]  ;;  %v11942_v5 = vcombine.low %v2288_v28, %v2296_v16 }
 0x381   : > { %v2584_v20 = vld [vmem:[%s18685_s6 + $0xbd0] sm:$0xff] }
 0x382   : > { %v2432_v37 = vld [vmem:[%s18685_s6 + $0x710] sm:$0xff] }
 0x383   : > { %10323 = vmatpush2.bf16.msra.mxu1 %v12804_v46  ;;  %10360 = vmatpush2.bf16.msra.mxu0 %v13092_v32  ;;  %v11943_v46 = vcombine.high %v2288_v28, %v2296_v16  ;;  %v12231_v32 = vcombine.high %v2576_v56, %v2584_v20  ;;  %v2520_v28 = vld [vmem:[%s18685_s6 + $0x9d0] sm:$0xff] }
 0x384   : > { %10324 = vmatprep.subr.bf16.mxu1 %v12789_v48  ;;  %10361 = vmatprep.subr.bf16.mxu0 %v13077_v24  ;;  %v2272_v48 = vld [vmem:[%s18685_s6 + $0x210] sm:$0xff] }
 0x385   : > { %v2280_v24 = vld [vmem:[%s18685_s6 + $0x250] sm:$0xff] }
 0x386   : > { %v2440_v15 = vld [vmem:[%s18685_s6 + $0x750] sm:$0xff] }
 0x387   : > { %10325 = vmatpush2.bf16.msra.mxu1 %v12788_v2  ;;  %10362 = vmatpush2.bf16.msra.mxu0 %v13076_v25  ;;  %v12230_v2 = vcombine.low %v2576_v56, %v2584_v20 }
 0x388   : > { %10326 = vmatprep.subr.bf16.mxu1 %v12773_v9  ;;  %10363 = vmatprep.subr.bf16.mxu0 %v13061_v45  ;;  %v11927_v9 = vcombine.high %v2272_v48, %v2280_v24  ;;  %v2256_v45 = vld [vmem:[%s18685_s6 + $0x190] sm:$0xff] }
 0x389   : > { %v11911_v49 = vcombine.high %v2256_v45, %v2264_v57 }
 0x38b   : > { %10327 = vmatpush2.bf16.msra.mxu1 %v12772_v58  ;;  %10364 = vmatpush2.bf16.msra.mxu0 %v13060_v6  ;;  %v11926_v6 = vcombine.low %v2272_v48, %v2280_v24 }
 0x38c   : > { %10328 = vmatprep.subr.bf16.mxu1 %v12757_v17  ;;  %10365 = vmatprep.subr.bf16.mxu0 %v13045_v63  ;;  %v12214_v17 = vcombine.low %v2560_v40, %v2568_v34  ;;  %v2448_v34 = vld [vmem:[%s18685_s6 + $0x790] sm:$0xff] }
 0x38f   : > { %10329 = vmatpush2.bf16.msra.mxu1 %v12756_v47  ;;  %10366 = vmatpush2.bf16.msra.mxu0 %v13044_v38  ;;  %v2528_v47 = vld [vmem:[%s18685_s6 + $0xa10] sm:$0xff] }
 0x390   : > { %10367 = vmatprep.subr.bf16.mxu0 %v13029_v3  ;;  %10380 = vmatprep.subr.bf16.mxu1 %v11975_v4  ;;  %v2536_v38 = vld [vmem:[%s18685_s6 + $0xa50] sm:$0xff]  ;;  %v11910_v4 = vcombine.low %v2256_v45, %v2264_v57 }
 0x391   : > { %v12183_v31 = vcombine.high %v2528_v47, %v2536_v38  ;;  %v12182_v16 = vcombine.low %v2528_v47, %v2536_v38  ;;  %v2416_v47 = vld [vmem:[%s18685_s6 + $0x690] sm:$0xff] }
 0x392   : > { %v15584_v26 = vpop.f32.mrf.mxu1  ;;  %10331 = vmatmul.mubr.bf16.vlgmr.msra.gmra.mxu1 %v14990_v39  ;;  %v2424_v38 = vld [vmem:[%s18685_s6 + $0x6d0] sm:$0xff] }
 0x393   : > { %10368 = vmatpush2.bf16.msra.mxu0 %v13028_v22  ;;  %10381 = vmatpush1.bf16.msra.mxu1 %v11974_v18  ;;  %v2224_v22 = vld [vmem:[%s18685_s6 + $0x90] sm:$0xff] }
 0x394   : > { %10412 = vmatprep.mubr.bf16.mxu1 %v14714_v27  ;;  %v15588_v33 = vpop.f32.mrf.mxu1  ;;  %10369 = vmatprep.subr.bf16.mxu0 %v13013_v35  ;;  %v2232_v18 = vld [vmem:[%s18685_s6 + $0xd0] sm:$0xff] }
 0x395   : > { %10382 = vmatprep.subr.bf16.mxu1 %v11959_v41  ;;  %v2512_v35 = vld [vmem:[%s18685_s6 + $0x990] sm:$0xff]  ;;  %v11894_v41 = vcombine.low %v2240_v44, %v2248_v62  ;;  %v11879_v56 = vcombine.high %v2224_v22, %v2232_v18  ;;  %v11878_v48 = vcombine.low %v2224_v22, %v2232_v18  ;;  %v12087_v44 = vcombine.high %v2432_v37, %v2440_v15 }
 0x396   : > { %v10090_v59 = vpop.f32.mrf.mxu1  ;;  %v12167_v20 = vcombine.high %v2512_v35, %v2520_v28  ;;  %v12166_v24 = vcombine.low %v2512_v35, %v2520_v28  ;;  %v2400_v22 = vld [vmem:[%s18685_s6 + $0x610] sm:$0xff] }
 0x397   : > { %10370 = vmatpush2.bf16.msra.mxu0 %v13012_v42  ;;  %10383 = vmatpush1.bf16.msra.mxu1 %v11958_v1  ;;  %v2208_v42 = vld [vmem:[%s18685_s6 + $0x10] sm:$0xff] }
 0x398   : > { %v10091_v25 = vpop.f32.mrf.mxu1  ;;  %10384 = vmatprep.subr.bf16.mxu1 %v11943_v46  ;;  %10421 = vmatprep.subr.bf16.mxu0 %v12231_v32  ;;  %v2216_v1 = vld [vmem:[%s18685_s6 + $0x50] sm:$0xff] }
 0x399   : > { %v2496_v46 = vld [vmem:[%s18685_s6 + $0x910] sm:$0xff]  ;;  %v11863_v59 = vcombine.high %v2208_v42, %v2216_v1 }
 0x39a   : > { %v15614_v58 = vpop.f32.mrf.mxu0  ;;  %10372 = vmatmul.mubr.bf16.vlgmr.msra.gmra.mxu0 %v15169_v14  ;;  %v2504_v32 = vld [vmem:[%s18685_s6 + $0x950] sm:$0xff] }
 0x39b   : > { %10385 = vmatpush1.bf16.msra.mxu1 %v11942_v5  ;;  %10422 = vmatpush1.bf16.msra.mxu0 %v12230_v2  ;;  %v12151_v40 = vcombine.high %v2496_v46, %v2504_v32  ;;  %v2456_v5 = vld [vmem:[%s18685_s6 + $0x7d0] sm:$0xff]  ;;  %v12150_v45 = vcombine.low %v2496_v46, %v2504_v32 }
 0x39c   : > { %10453 = vmatprep.mubr.bf16.mxu0 %v14743_v43  ;;  %v15618_v63 = vpop.f32.mrf.mxu0  ;;  %10386 = vmatprep.subr.bf16.mxu1 %v11927_v9  ;;  %v2480_v2 = vld [vmem:[%s18685_s6 + $0x890] sm:$0xff]  ;;  %v11862_v9 = vcombine.low %v2208_v42, %v2216_v1 }
 0x39d   : > { %10423 = vmatprep.subr.bf16.mxu0 %v12215_v11  ;;  %v2488_v25 = vld [vmem:[%s18685_s6 + $0x8d0] sm:$0xff]  ;;  %v12103_v11 = vcombine.high %v2448_v34, %v2456_v5 }
 0x39e   : > { %v10131_v3 = vpop.f32.mrf.mxu0  ;;  %v12135_v57 = vcombine.high %v2480_v2, %v2488_v25  ;;  %v2408_v18 = vld [vmem:[%s18685_s6 + $0x650] sm:$0xff] }
 0x39f   : > { %10387 = vmatpush1.bf16.msra.mxu1 %v11926_v6  ;;  %10424 = vmatpush1.bf16.msra.mxu0 %v12214_v17  ;;  %v2464_v6 = vld [vmem:[%s18685_s6 + $0x810] sm:$0xff] }
 0x3a0   : > { %v10132_v36 = vpop.f32.mrf.mxu0  ;;  %10388 = vmatprep.subr.bf16.mxu1 %v11911_v49  ;;  %10425 = vmatprep.subr.bf16.mxu0 %v12199_v30  ;;  %v2472_v17 = vld [vmem:[%s18685_s6 + $0x850] sm:$0xff]  ;;  %v12102_v49 = vcombine.low %v2448_v34, %v2456_v5  ;;  %v12134_v30 = vcombine.low %v2480_v2, %v2488_v25 }
 0x3a1   : > { %v12119_v62 = vcombine.high %v2464_v6, %v2472_v17  ;;  %v2704_v3 = vld [vmem:[%s18685_s6 + $0xf90] sm:$0xff]  ;;  %v12118_v36 = vcombine.low %v2464_v6, %v2472_v17 }
 0x3a2   : > { %v2688_v35 = vld [vmem:[%s18685_s6 + $0xf10] sm:$0xff] }
 0x3a3   : > { %10389 = vmatpush1.bf16.msra.mxu1 %v11910_v4  ;;  %10426 = vmatpush1.bf16.msra.mxu0 %v12198_v23  ;;  %v2712_v4 = vld [vmem:[%s18685_s6 + $0xfd0] sm:$0xff]  ;;  %v12086_v23 = vcombine.low %v2432_v37, %v2440_v15 }
 0x3a4   : > { %10390 = vmatprep.subr.bf16.mxu1 %v11895_v10  ;;  %10427 = vmatprep.subr.bf16.mxu0 %v12183_v31  ;;  %v12071_v10 = vcombine.high %v2416_v47, %v2424_v38  ;;  %v12359_v31 = vcombine.high %v2704_v3, %v2712_v4  ;;  %v2696_v28 = vld [vmem:[%s18685_s6 + $0xf50] sm:$0xff] }
 0x3a5   : > { %v2384_v42 = vld [vmem:[%s18685_s6 + $0x590] sm:$0xff] }
 0x3a6   : > { %v2392_v1 = vld [vmem:[%s18685_s6 + $0x5d0] sm:$0xff] }
 0x3a7   : > { %10391 = vmatpush1.bf16.msra.mxu1 %v11894_v41  ;;  %10428 = vmatpush1.bf16.msra.mxu0 %v12182_v16  ;;  %v12070_v41 = vcombine.low %v2416_v47, %v2424_v38  ;;  %v12358_v16 = vcombine.low %v2704_v3, %v2712_v4  ;;  %v2672_v46 = vld [vmem:[%s18685_s6 + $0xe90] sm:$0xff] }
 0x3a8   : > { %10392 = vmatprep.subr.bf16.mxu1 %v11879_v56  ;;  %10429 = vmatprep.subr.bf16.mxu0 %v12167_v20  ;;  %v12055_v56 = vcombine.high %v2400_v22, %v2408_v18  ;;  %v12343_v20 = vcombine.high %v2688_v35, %v2696_v28  ;;  %v2680_v32 = vld [vmem:[%s18685_s6 + $0xed0] sm:$0xff] }
 0x3a9   : > { %v2368_v34 = vld [vmem:[%s18685_s6 + $0x510] sm:$0xff] }
 0x3aa   : > { %v2376_v5 = vld [vmem:[%s18685_s6 + $0x550] sm:$0xff] }
 0x3ab   : > { %10393 = vmatpush1.bf16.msra.mxu1 %v11878_v48  ;;  %10430 = vmatpush1.bf16.msra.mxu0 %v12166_v24  ;;  %v12054_v48 = vcombine.low %v2400_v22, %v2408_v18  ;;  %v12342_v24 = vcombine.low %v2688_v35, %v2696_v28  ;;  %v2656_v2 = vld [vmem:[%s18685_s6 + $0xe10] sm:$0xff] }
 0x3ac   : > { %10394 = vmatprep.subr.bf16.mxu1 %v11863_v59  ;;  %10431 = vmatprep.subr.bf16.mxu0 %v12151_v40  ;;  %v12039_v59 = vcombine.high %v2384_v42, %v2392_v1  ;;  %v12327_v40 = vcombine.high %v2672_v46, %v2680_v32  ;;  %v2664_v25 = vld [vmem:[%s18685_s6 + $0xe50] sm:$0xff] }
 0x3ad   : > { %v2352_v37 = vld [vmem:[%s18685_s6 + $0x490] sm:$0xff] }
 0x3ae   : > { %v2360_v15 = vld [vmem:[%s18685_s6 + $0x4d0] sm:$0xff] }
 0x3af   : > { %10395 = vmatpush1.bf16.msra.mxu1 %v11862_v9  ;;  %10432 = vmatpush1.bf16.msra.mxu0 %v12150_v45  ;;  %v12038_v9 = vcombine.low %v2384_v42, %v2392_v1  ;;  %v12326_v45 = vcombine.low %v2672_v46, %v2680_v32  ;;  %v2640_v6 = vld [vmem:[%s18685_s6 + $0xd90] sm:$0xff] }
 0x3b0   : > { %10396 = vmatprep.subr.bf16.mxu1 %v12103_v11  ;;  %10433 = vmatprep.subr.bf16.mxu0 %v12135_v57  ;;  %v12023_v11 = vcombine.high %v2368_v34, %v2376_v5  ;;  %v12311_v57 = vcombine.high %v2656_v2, %v2664_v25  ;;  %v2648_v17 = vld [vmem:[%s18685_s6 + $0xdd0] sm:$0xff] }
 0x3b1   : > { %v2336_v47 = vld [vmem:[%s18685_s6 + $0x410] sm:$0xff] }
 0x3b2   : > { %v2344_v38 = vld [vmem:[%s18685_s6 + $0x450] sm:$0xff] }
 0x3b3   : > { %10397 = vmatpush2.bf16.msra.mxu1 %v12102_v49  ;;  %10434 = vmatpush1.bf16.msra.mxu0 %v12134_v30  ;;  %v12022_v49 = vcombine.low %v2368_v34, %v2376_v5  ;;  %v12310_v30 = vcombine.low %v2656_v2, %v2664_v25  ;;  %v2624_v3 = vld [vmem:[%s18685_s6 + $0xd10] sm:$0xff]  ;;  %v10089_v5 = vadd.f32 %v15588_v33, %v15417_v52 }
 0x3b4   : > { %10398 = vmatprep.subr.bf16.mxu1 %v12087_v44  ;;  %10435 = vmatprep.subr.bf16.mxu0 %v12119_v62  ;;  %v12007_v44 = vcombine.high %v2352_v37, %v2360_v15  ;;  %v12295_v62 = vcombine.high %v2640_v6, %v2648_v17  ;;  %v2632_v4 = vld [vmem:[%s18685_s6 + $0xd50] sm:$0xff] }
 0x3b5   : > { %v2608_v22 = vld [vmem:[%s18685_s6 + $0xc90] sm:$0xff] }
 0x3b6   : > { %v2616_v18 = vld [vmem:[%s18685_s6 + $0xcd0] sm:$0xff] }
 0x3b7   : > { %10399 = vmatpush2.bf16.msra.mxu1 %v12086_v23  ;;  %10436 = vmatpush1.bf16.msra.mxu0 %v12118_v36  ;;  %v12006_v23 = vcombine.low %v2352_v37, %v2360_v15  ;;  %v12294_v36 = vcombine.low %v2640_v6, %v2648_v17  ;;  %v2832_v35 = vld [vmem:[%s18685_s6 + $0x1390] sm:$0xff] }
 0x3b8   : > { %10400 = vmatprep.subr.bf16.mxu1 %v12071_v10  ;;  %10437 = vmatprep.subr.bf16.mxu0 %v12359_v31  ;;  %v11991_v10 = vcombine.high %v2336_v47, %v2344_v38  ;;  %v12279_v31 = vcombine.high %v2624_v3, %v2632_v4  ;;  %v2840_v28 = vld [vmem:[%s18685_s6 + $0x13d0] sm:$0xff] }
 0x3b9   : > { %v2592_v42 = vld [vmem:[%s18685_s6 + $0xc10] sm:$0xff] }
 0x3ba   : > { %v2600_v1 = vld [vmem:[%s18685_s6 + $0xc50] sm:$0xff] }
 0x3bb   : > { %10401 = vmatpush2.bf16.msra.mxu1 %v12070_v41  ;;  %10438 = vmatpush2.bf16.msra.mxu0 %v12358_v16  ;;  %v11990_v41 = vcombine.low %v2336_v47, %v2344_v38  ;;  %v12278_v16 = vcombine.low %v2624_v3, %v2632_v4  ;;  %v2816_v46 = vld [vmem:[%s18685_s6 + $0x1310] sm:$0xff]  ;;  %v12246_v33 = vcombine.low %v2592_v42, %v2600_v1 }
 0x3bc   : > { %10402 = vmatprep.subr.bf16.mxu1 %v12055_v56  ;;  %10439 = vmatprep.subr.bf16.mxu0 %v12343_v20  ;;  %v12263_v56 = vcombine.high %v2608_v22, %v2616_v18  ;;  %v12487_v20 = vcombine.high %v2832_v35, %v2840_v28  ;;  %v2824_v32 = vld [vmem:[%s18685_s6 + $0x1350] sm:$0xff] }
 0x3bd   : > { %v2800_v34 = vld [vmem:[%s18685_s6 + $0x1290] sm:$0xff]  ;;  %v12471_v25 = vcombine.high %v2816_v46, %v2824_v32 }
 0x3be   : > { %v2784_v17 = vld [vmem:[%s18685_s6 + $0x1210] sm:$0xff] }
 0x3bf   : > { %10403 = vmatpush2.bf16.msra.mxu1 %v12054_v48  ;;  %10440 = vmatpush2.bf16.msra.mxu0 %v12342_v24  ;;  %v10087_v48 = vadd.f32 %v15584_v26, %v15411_v51  ;;  %v12262_v24 = vcombine.low %v2608_v22, %v2616_v18  ;;  %v2808_v51 = vld [vmem:[%s18685_s6 + $0x12d0] sm:$0xff] }
 0x3c0   : > { %10404 = vmatprep.subr.bf16.mxu1 %v12039_v59  ;;  %10441 = vmatprep.subr.bf16.mxu0 %v12327_v40  ;;  %v12486_v59 = vcombine.low %v2832_v35, %v2840_v28  ;;  %v12247_v40 = vcombine.high %v2592_v42, %v2600_v1  ;;  %v3088_v26 = vld [vmem:[%s18685_s6 + $0x1b90] sm:$0xff]  ;;  %v12455_v37 = vcombine.high %v2800_v34, %v2808_v51 }
 0x3c1   : > { %v10128_v2 = vadd.f32 %v15614_v58, %v10087_v48  ;;  %v10130_v58 = vadd.f32 %v15618_v63, %v10089_v5  ;;  %v2792_v63 = vld [vmem:[%s18685_s6 + $0x1250] sm:$0xff] }
 0x3c2   : > { %v12439_v3 = vcombine.high %v2784_v17, %v2792_v63  ;;  %v2768_v4 = vld [vmem:[%s18685_s6 + $0x1190] sm:$0xff]  ;;  %v12438_v18 = vcombine.low %v2784_v17, %v2792_v63 }
 0x3c3   : > { %10405 = vmatpush2.bf16.msra.mxu1 %v12038_v9  ;;  %10442 = vmatpush2.bf16.msra.mxu0 %v12326_v45  ;;  %v3096_v9 = vld [vmem:[%s18685_s6 + $0x1bd0] sm:$0xff] }
 0x3c4   : > { %10406 = vmatprep.subr.bf16.mxu1 %v12023_v11  ;;  %10443 = vmatprep.subr.bf16.mxu0 %v12311_v57  ;;  %v12470_v11 = vcombine.low %v2816_v46, %v2824_v32  ;;  %v12743_v15 = vcombine.high %v3088_v26, %v3096_v9  ;;  %v12742_v47 = vcombine.low %v3088_v26, %v3096_v9  ;;  %v3040_v42 = vld [vmem:[%s18685_s6 + $0x1a10] sm:$0xff] }
 0x3c5   : > { %v3048_v1 = vld [vmem:[%s18685_s6 + $0x1a50] sm:$0xff] }
 0x3c6   : > { %v2744_v5 = vld [vmem:[%s18685_s6 + $0x10d0] sm:$0xff]  ;;  %v12694_v26 = vcombine.low %v3040_v42, %v3048_v1 }
 0x3c7   : > { %10407 = vmatpush2.bf16.msra.mxu1 %v12022_v49  ;;  %10444 = vmatpush2.bf16.msra.mxu0 %v12310_v30  ;;  %v3072_v30 = vld [vmem:[%s18685_s6 + $0x1b10] sm:$0xff] }
 0x3c8   : > { %10408 = vmatprep.subr.bf16.mxu1 %v12007_v44  ;;  %10445 = vmatprep.subr.bf16.mxu0 %v12295_v62  ;;  %v3080_v44 = vld [vmem:[%s18685_s6 + $0x1b50] sm:$0xff]  ;;  %v12454_v62 = vcombine.low %v2800_v34, %v2808_v51 }
 0x3c9   : > { %v12726_v35 = vcombine.low %v3072_v30, %v3080_v44  ;;  %v2736_v34 = vld [vmem:[%s18685_s6 + $0x1090] sm:$0xff] }
 0x3ca   : > { %v12391_v9 = vcombine.high %v2736_v34, %v2744_v5  ;;  %v2960_v17 = vld [vmem:[%s18685_s6 + $0x1790] sm:$0xff] }
 0x3cb   : > { %10409 = vmatpush2.bf16.msra.mxu1 %v12006_v23  ;;  %10446 = vmatpush2.bf16.msra.mxu0 %v12294_v36  ;;  %v12727_v23 = vcombine.high %v3072_v30, %v3080_v44  ;;  %v2776_v36 = vld [vmem:[%s18685_s6 + $0x11d0] sm:$0xff] }
 0x3cc   : > { %10410 = vmatprep.subr.bf16.mxu1 %v11991_v10  ;;  %10447 = vmatprep.subr.bf16.mxu0 %v12279_v31  ;;  %v3056_v10 = vld [vmem:[%s18685_s6 + $0x1a90] sm:$0xff]  ;;  %v12422_v32 = vcombine.low %v2768_v4, %v2776_v36 }
 0x3cd   : > { %v3064_v31 = vld [vmem:[%s18685_s6 + $0x1ad0] sm:$0xff] }
 0x3ce   : > { %v12710_v48 = vcombine.low %v3056_v10, %v3064_v31  ;;  %v2968_v63 = vld [vmem:[%s18685_s6 + $0x17d0] sm:$0xff] }
 0x3cf   : > { %10411 = vmatpush2.bf16.msra.mxu1 %v11990_v41  ;;  %10448 = vmatpush2.bf16.msra.mxu0 %v12278_v16  ;;  %v12423_v41 = vcombine.high %v2768_v4, %v2776_v36  ;;  %v12711_v16 = vcombine.high %v3056_v10, %v3064_v31  ;;  %v3000_v30 = vld [vmem:[%s18685_s6 + $0x18d0] sm:$0xff]  ;;  %v12614_v10 = vcombine.low %v2960_v17, %v2968_v63 }
 0x3d0   : > { %10449 = vmatprep.subr.bf16.mxu0 %v12263_v56  ;;  %10462 = vmatprep.subr.bf16.mxu1 %v12487_v20  ;;  %v2752_v56 = vld [vmem:[%s18685_s6 + $0x1110] sm:$0xff] }
 0x3d1   : > { %v2760_v20 = vld [vmem:[%s18685_s6 + $0x1150] sm:$0xff] }
 0x3d2   : > { %v10168_v52 = vpop.f32.mrf.mxu1  ;;  %10413 = vmatmul.mubr.bf16.vlgmr.msra.gmra.mxu1 %v14716_v55  ;;  %v12406_v51 = vcombine.low %v2752_v56, %v2760_v20  ;;  %v2952_v4 = vld [vmem:[%s18685_s6 + $0x1750] sm:$0xff] }
 0x3d3   : > { %v10169_v45 = vadd.f32 %v10168_v52, %v10128_v2  ;;  %10450 = vmatpush2.bf16.msra.mxu0 %v12262_v24  ;;  %10463 = vmatpush1.bf16.msra.mxu1 %v12486_v59  ;;  %v12407_v59 = vcombine.high %v2752_v56, %v2760_v20  ;;  %v3024_v2 = vld [vmem:[%s18685_s6 + $0x1990] sm:$0xff] }
 0x3d4   : > { %10494 = vmatprep.mubr.bf16.mxu1 %v14792_v19  ;;  %v10170_v57 = vpop.f32.mrf.mxu1  ;;  %10451 = vmatprep.subr.bf16.mxu0 %v12247_v40  ;;  %v12695_v40 = vcombine.high %v3040_v42, %v3048_v1  ;;  %v2984_v36 = vld [vmem:[%s18685_s6 + $0x1850] sm:$0xff] }
 0x3d5   : > { %11610 = vst [vmem:[%s15798_s16] sm:$0xff] %v10169_v45  ;;  %v10171_v6 = vadd.f32 %v10170_v57, %v10130_v58  ;;  %10464 = vmatprep.subr.bf16.mxu1 %v12471_v25  ;;  %v3032_v25 = vld [vmem:[%s18685_s6 + $0x19d0] sm:$0xff]  ;;  %v12390_v57 = vcombine.low %v2736_v34, %v2744_v5 }
 0x3d6   : > { %v10172_v49 = vpop.f32.mrf.mxu1  ;;  %v12679_v52 = vcombine.high %v3024_v2, %v3032_v25  ;;  %v2728_v58 = vld [vmem:[%s18685_s6 + $0x1050] sm:$0xff] }
 0x3d7   : > { %11611 = vst [vmem:[%s15798_s16 + $0x8] sm:$0xff] %v10171_v6  ;;  %10452 = vmatpush2.bf16.msra.mxu0 %v12246_v33  ;;  %10465 = vmatpush1.bf16.msra.mxu1 %v12470_v11  ;;  %v2720_v33 = vld [vmem:[%s18685_s6 + $0x1010] sm:$0xff] }
 0x3d8   : > { %v10173_v38 = vpop.f32.mrf.mxu1  ;;  %10466 = vmatprep.subr.bf16.mxu1 %v12455_v37  ;;  %10503 = vmatprep.subr.bf16.mxu0 %v12743_v15  ;;  %v3008_v45 = vld [vmem:[%s18685_s6 + $0x1910] sm:$0xff]  ;;  %v12678_v37 = vcombine.low %v3024_v2, %v3032_v25  ;;  %v12375_v15 = vcombine.high %v2720_v33, %v2728_v58  ;;  %v12374_v44 = vcombine.low %v2720_v33, %v2728_v58 }
 0x3d9   : > { %v3016_v11 = vld [vmem:[%s18685_s6 + $0x1950] sm:$0xff] }
 0x3da   : > { %v15829_v22 = vpop.f32.mrf.mxu0  ;;  %10454 = vmatmul.mubr.bf16.vlgmr.msra.gmra.mxu0 %v14748_v53  ;;  %v12663_v6 = vcombine.high %v3008_v45, %v3016_v11  ;;  %v2992_v49 = vld [vmem:[%s18685_s6 + $0x1890] sm:$0xff] }
 0x3db   : > { %10467 = vmatpush1.bf16.msra.mxu1 %v12454_v62  ;;  %10504 = vmatpush1.bf16.msra.mxu0 %v12742_v47  ;;  %v12662_v62 = vcombine.low %v3008_v45, %v3016_v11  ;;  %v12615_v47 = vcombine.high %v2960_v17, %v2968_v63  ;;  %v12647_v38 = vcombine.high %v2992_v49, %v3000_v30  ;;  %v3216_v56 = vld [vmem:[%s18685_s6 + $0x1f90] sm:$0xff] }
 0x3dc   : > { %10535 = vmatprep.mubr.bf16.mxu0 %v14833_v8  ;;  %v15833_v28 = vpop.f32.mrf.mxu0  ;;  %10468 = vmatprep.subr.bf16.mxu1 %v12439_v3  ;;  %v2944_v3 = vld [vmem:[%s18685_s6 + $0x1710] sm:$0xff]  ;;  %v12646_v31 = vcombine.low %v2992_v49, %v3000_v30 }
 0x3dd   : > { %10505 = vmatprep.subr.bf16.mxu0 %v12727_v23  ;;  %v2976_v23 = vld [vmem:[%s18685_s6 + $0x1810] sm:$0xff]  ;;  %v12598_v42 = vcombine.low %v2944_v3, %v2952_v4 }
 0x3de   : > { %v10213_v46 = vpop.f32.mrf.mxu0  ;;  %v3224_v20 = vld [vmem:[%s18685_s6 + $0x1fd0] sm:$0xff]  ;;  %v12630_v1 = vcombine.low %v2976_v23, %v2984_v36 }
 0x3df   : > { %10469 = vmatpush1.bf16.msra.mxu1 %v12438_v18  ;;  %10506 = vmatpush1.bf16.msra.mxu0 %v12726_v35  ;;  %v12599_v18 = vcombine.high %v2944_v3, %v2952_v4  ;;  %v12631_v35 = vcombine.high %v2976_v23, %v2984_v36  ;;  %v12870_v5 = vcombine.low %v3216_v56, %v3224_v20 }
 0x3e0   : > { %v10214_v24 = vpop.f32.mrf.mxu0  ;;  %10470 = vmatprep.subr.bf16.mxu1 %v12423_v41  ;;  %10507 = vmatprep.subr.bf16.mxu0 %v12711_v16  ;;  %v2928_v41 = vld [vmem:[%s18685_s6 + $0x1690] sm:$0xff] }
 0x3e1   : > { %v2936_v16 = vld [vmem:[%s18685_s6 + $0x16d0] sm:$0xff] }
 0x3e2   : > { %v12583_v46 = vcombine.high %v2928_v41, %v2936_v16  ;;  %v2920_v24 = vld [vmem:[%s18685_s6 + $0x1650] sm:$0xff]  ;;  %v12582_v34 = vcombine.low %v2928_v41, %v2936_v16 }
 0x3e3   : > { %10471 = vmatpush1.bf16.msra.mxu1 %v12422_v32  ;;  %10508 = vmatpush1.bf16.msra.mxu0 %v12710_v48  ;;  %v12871_v32 = vcombine.high %v3216_v56, %v3224_v20  ;;  %v2912_v48 = vld [vmem:[%s18685_s6 + $0x1610] sm:$0xff] }
 0x3e4   : > { %10472 = vmatprep.subr.bf16.mxu1 %v12407_v59  ;;  %10509 = vmatprep.subr.bf16.mxu0 %v12695_v40  ;;  %v3200_v59 = vld [vmem:[%s18685_s6 + $0x1f10] sm:$0xff]  ;;  %v12567_v2 = vcombine.high %v2912_v48, %v2920_v24  ;;  %v12566_v33 = vcombine.low %v2912_v48, %v2920_v24 }
 0x3e5   : > { %v3208_v40 = vld [vmem:[%s18685_s6 + $0x1f50] sm:$0xff] }
 0x3e6   : > { %v12855_v25 = vcombine.high %v3200_v59, %v3208_v40  ;;  %v12854_v58 = vcombine.low %v3200_v59, %v3208_v40 }
 0x3e7   : > { %10473 = vmatpush1.bf16.msra.mxu1 %v12406_v51  ;;  %10510 = vmatpush1.bf16.msra.mxu0 %v12694_v26  ;;  %v2896_v51 = vld [vmem:[%s18685_s6 + $0x1590] sm:$0xff] }
 0x3e8   : > { %10474 = vmatprep.subr.bf16.mxu1 %v12391_v9  ;;  %10511 = vmatprep.subr.bf16.mxu0 %v12679_v52  ;;  %v2904_v26 = vld [vmem:[%s18685_s6 + $0x15d0] sm:$0xff] }
 0x3e9   : > { %v3184_v9 = vld [vmem:[%s18685_s6 + $0x1e90] sm:$0xff]  ;;  %v12551_v45 = vcombine.high %v2896_v51, %v2904_v26  ;;  %v12550_v17 = vcombine.low %v2896_v51, %v2904_v26 }
 0x3ea   : > { %v3192_v52 = vld [vmem:[%s18685_s6 + $0x1ed0] sm:$0xff] }
 0x3eb   : > { %10475 = vmatpush1.bf16.msra.mxu1 %v12390_v57  ;;  %10512 = vmatpush1.bf16.msra.mxu0 %v12678_v37  ;;  %v12839_v11 = vcombine.high %v3184_v9, %v3192_v52  ;;  %v2880_v57 = vld [vmem:[%s18685_s6 + $0x1510] sm:$0xff]  ;;  %v12838_v63 = vcombine.low %v3184_v9, %v3192_v52 }
 0x3ec   : > { %10476 = vmatprep.subr.bf16.mxu1 %v12375_v15  ;;  %10513 = vmatprep.subr.bf16.mxu0 %v12663_v6  ;;  %v2888_v37 = vld [vmem:[%s18685_s6 + $0x1550] sm:$0xff] }
 0x3ed   : > { %v3168_v15 = vld [vmem:[%s18685_s6 + $0x1e10] sm:$0xff]  ;;  %v12535_v49 = vcombine.high %v2880_v57, %v2888_v37  ;;  %v12534_v3 = vcombine.low %v2880_v57, %v2888_v37 }
 0x3ee   : > { %v3176_v6 = vld [vmem:[%s18685_s6 + $0x1e50] sm:$0xff] }
 0x3ef   : > { %10477 = vmatpush1.bf16.msra.mxu1 %v12374_v44  ;;  %10514 = vmatpush1.bf16.msra.mxu0 %v12662_v62  ;;  %v12823_v30 = vcombine.high %v3168_v15, %v3176_v6  ;;  %v2864_v44 = vld [vmem:[%s18685_s6 + $0x1490] sm:$0xff]  ;;  %v12822_v4 = vcombine.low %v3168_v15, %v3176_v6  ;;  %v2321_v15 = vld [vmem:[%s18685_s6 + $0x398] sm:$0xff] }
 0x3f0   : > { %10478 = vmatprep.subr.bf16.mxu1 %v12615_v47  ;;  %10515 = vmatprep.subr.bf16.mxu0 %v12647_v38  ;;  %v2872_v62 = vld [vmem:[%s18685_s6 + $0x14d0] sm:$0xff]  ;;  %v2329_v6 = vld [vmem:[%s18685_s6 + $0x3d8] sm:$0xff] }
 0x3f1   : > { %v3152_v47 = vld [vmem:[%s18685_s6 + $0x1d90] sm:$0xff]  ;;  %v12519_v23 = vcombine.high %v2864_v44, %v2872_v62  ;;  %v12518_v41 = vcombine.low %v2864_v44, %v2872_v62 }
 0x3f2   : > { %v3160_v38 = vld [vmem:[%s18685_s6 + $0x1dd0] sm:$0xff] }
 0x3f3   : > { %10479 = vmatpush2.bf16.msra.mxu1 %v12614_v10  ;;  %10516 = vmatpush1.bf16.msra.mxu0 %v12646_v31  ;;  %v12807_v36 = vcombine.high %v3152_v47, %v3160_v38  ;;  %v2848_v10 = vld [vmem:[%s18685_s6 + $0x1410] sm:$0xff]  ;;  %v12806_v16 = vcombine.low %v3152_v47, %v3160_v38  ;;  %v11977_v47 = vcombine.high %v2321_v15, %v2329_v6 }
 0x3f4   : > { %10480 = vmatprep.subr.bf16.mxu1 %v12599_v18  ;;  %10517 = vmatprep.subr.bf16.mxu0 %v12631_v35  ;;  %v2856_v31 = vld [vmem:[%s18685_s6 + $0x1450] sm:$0xff] }
 0x3f5   : > { %v3136_v18 = vld [vmem:[%s18685_s6 + $0x1d10] sm:$0xff]  ;;  %v12503_v56 = vcombine.high %v2848_v10, %v2856_v31  ;;  %v12502_v48 = vcombine.low %v2848_v10, %v2856_v31  ;;  %v11976_v31 = vcombine.low %v2321_v15, %v2329_v6 }
 0x3f6   : > { %v3144_v35 = vld [vmem:[%s18685_s6 + $0x1d50] sm:$0xff] }
 0x3f7   : > { %10481 = vmatpush2.bf16.msra.mxu1 %v12598_v42  ;;  %10518 = vmatpush1.bf16.msra.mxu0 %v12630_v1  ;;  %v12791_v20 = vcombine.high %v3136_v18, %v3144_v35  ;;  %v3120_v42 = vld [vmem:[%s18685_s6 + $0x1c90] sm:$0xff]  ;;  %v12790_v24 = vcombine.low %v3136_v18, %v3144_v35 }
 0x3f8   : > { %10482 = vmatprep.subr.bf16.mxu1 %v12583_v46  ;;  %10519 = vmatprep.subr.bf16.mxu0 %v12871_v32  ;;  %v3128_v1 = vld [vmem:[%s18685_s6 + $0x1cd0] sm:$0xff] }
 0x3f9   : > { %v3344_v46 = vld [vmem:[%s18685_s6 + $0x2390] sm:$0xff]  ;;  %v12775_v59 = vcombine.high %v3120_v42, %v3128_v1  ;;  %v12774_v52 = vcombine.low %v3120_v42, %v3128_v1  ;;  %v2297_v42 = vld [vmem:[%s18685_s6 + $0x2d8] sm:$0xff] }
 0x3fa   : > { %v3352_v32 = vld [vmem:[%s18685_s6 + $0x23d0] sm:$0xff] }
 0x3fb   : > { %10483 = vmatpush2.bf16.msra.mxu1 %v12582_v34  ;;  %10520 = vmatpush2.bf16.msra.mxu0 %v12870_v5  ;;  %v12999_v40 = vcombine.high %v3344_v46, %v3352_v32  ;;  %v15982_v34 = vld [vmem:[%s18686_s7] sm:$0xff]  ;;  %v3328_v51 = vld [vmem:[%s18685_s6 + $0x2310] sm:$0xff] }
 0x3fc   : > { %10484 = vmatprep.subr.bf16.mxu1 %v12567_v2  ;;  %10521 = vmatprep.subr.bf16.mxu0 %v12855_v25  ;;  %v3501_v5 = vrot.slane %v15982_v34, %v14669_v29  ;;  %v3104_v2 = vld [vmem:[%s18685_s6 + $0x1c10] sm:$0xff]  ;;  %v3505_v9 = vrot.slane %v15982_v34, %v14672_v13 }
 0x3fd   : > { %v3112_v25 = vld [vmem:[%s18685_s6 + $0x1c50] sm:$0xff] }
 0x3fe   : > { %v3336_v26 = vld [vmem:[%s18685_s6 + $0x2350] sm:$0xff] }
 0x3ff   : > { %10485 = vmatpush2.bf16.msra.mxu1 %v12566_v33  ;;  %10522 = vmatpush2.bf16.msra.mxu0 %v12854_v58  ;;  %v12998_v33 = vcombine.low %v3344_v46, %v3352_v32  ;;  %v12759_v58 = vcombine.high %v3104_v2, %v3112_v25  ;;  %v12983_v57 = vcombine.high %v3328_v51, %v3336_v26  ;;  %v3320_v37 = vld [vmem:[%s18685_s6 + $0x22d0] sm:$0xff] }
 0x400   : > { %10486 = vmatprep.subr.bf16.mxu1 %v12551_v45  ;;  %10523 = vmatprep.subr.bf16.mxu0 %v12839_v11  ;;  %v3312_v45 = vld [vmem:[%s18685_s6 + $0x2290] sm:$0xff]  ;;  %v10210_v11 = vadd.f32 %v15829_v22, %v3501_v5 }
 0x401   : > { %v12967_v62 = vcombine.high %v3312_v45, %v3320_v37  ;;  %v12966_v10 = vcombine.low %v3312_v45, %v3320_v37  ;;  %v3272_v5 = vld [vmem:[%s18685_s6 + $0x2150] sm:$0xff]  ;;  %v2265_v37 = vld [vmem:[%s18685_s6 + $0x1d8] sm:$0xff] }
 0x402   : > { %v3248_v45 = vld [vmem:[%s18685_s6 + $0x2090] sm:$0xff] }
 0x403   : > { %10487 = vmatpush2.bf16.msra.mxu1 %v12550_v17  ;;  %10524 = vmatpush2.bf16.msra.mxu0 %v12838_v63  ;;  %v12758_v63 = vcombine.low %v3104_v2, %v3112_v25  ;;  %v2273_v2 = vld [vmem:[%s18685_s6 + $0x218] sm:$0xff] }
 0x404   : > { %10488 = vmatprep.subr.bf16.mxu1 %v12535_v49  ;;  %10525 = vmatprep.subr.bf16.mxu0 %v12823_v30  ;;  %v10212_v49 = vadd.f32 %v15833_v28, %v3505_v9  ;;  %v12982_v30 = vcombine.low %v3328_v51, %v3336_v26  ;;  %v3304_v28 = vld [vmem:[%s18685_s6 + $0x2250] sm:$0xff]  ;;  %v2281_v25 = vld [vmem:[%s18685_s6 + $0x258] sm:$0xff] }
 0x405   : > { %v11928_v6 = vcombine.low %v2273_v2, %v2281_v25 }
 0x407   : > { %10489 = vmatpush2.bf16.msra.mxu1 %v12534_v3  ;;  %10526 = vmatpush2.bf16.msra.mxu0 %v12822_v4  ;;  %v3296_v3 = vld [vmem:[%s18685_s6 + $0x2210] sm:$0xff] }
 0x408   : > { %10490 = vmatprep.subr.bf16.mxu1 %v12519_v23  ;;  %10527 = vmatprep.subr.bf16.mxu0 %v12807_v36  ;;  %v2305_v23 = vld [vmem:[%s18685_s6 + $0x318] sm:$0xff]  ;;  %v12951_v35 = vcombine.high %v3296_v3, %v3304_v28  ;;  %v12950_v46 = vcombine.low %v3296_v3, %v3304_v28 }
 0x409   : > { %v2313_v36 = vld [vmem:[%s18685_s6 + $0x358] sm:$0xff] }
 0x40a   : > { %v11960_v32 = vcombine.low %v2305_v23, %v2313_v36 }
 0x40b   : > { %10491 = vmatpush2.bf16.msra.mxu1 %v12518_v41  ;;  %10528 = vmatpush2.bf16.msra.mxu0 %v12806_v16  ;;  %v3280_v41 = vld [vmem:[%s18685_s6 + $0x2190] sm:$0xff]  ;;  %v11961_v16 = vcombine.high %v2305_v23, %v2313_v36 }
 0x40c   : > { %10492 = vmatprep.subr.bf16.mxu1 %v12503_v56  ;;  %10529 = vmatprep.subr.bf16.mxu0 %v12791_v20  ;;  %v3288_v56 = vld [vmem:[%s18685_s6 + $0x21d0] sm:$0xff]  ;;  %v2289_v20 = vld [vmem:[%s18685_s6 + $0x298] sm:$0xff] }
 0x40d   : > { %v12934_v26 = vcombine.low %v3280_v41, %v3288_v56  ;;  %v11944_v9 = vcombine.low %v2289_v20, %v2297_v42  ;;  %v3472_v23 = vld [vmem:[%s18685_s6 + $0x2790] sm:$0xff] }
 0x40e   : > { %v3480_v36 = vld [vmem:[%s18685_s6 + $0x27d0] sm:$0xff] }
 0x40f   : > { %10493 = vmatpush2.bf16.msra.mxu1 %v12502_v48  ;;  %10530 = vmatpush2.bf16.msra.mxu0 %v12790_v24  ;;  %v12935_v24 = vcombine.high %v3280_v41, %v3288_v56  ;;  %v13127_v41 = vcombine.high %v3472_v23, %v3480_v36  ;;  %v3456_v56 = vld [vmem:[%s18685_s6 + $0x2710] sm:$0xff] }
 0x410   : > { %10531 = vmatprep.subr.bf16.mxu0 %v12775_v59  ;;  %10544 = vmatprep.subr.bf16.mxu1 %v12999_v40  ;;  %v11945_v59 = vcombine.high %v2289_v20, %v2297_v42  ;;  %v3264_v40 = vld [vmem:[%s18685_s6 + $0x2110] sm:$0xff]  ;;  %v2209_v42 = vld [vmem:[%s18685_s6 + $0x18] sm:$0xff] }
 0x411   : > { %v12918_v15 = vcombine.low %v3264_v40, %v3272_v5  ;;  %v3464_v20 = vld [vmem:[%s18685_s6 + $0x2750] sm:$0xff] }
 0x412   : > { %v10250_v17 = vpop.f32.mrf.mxu1  ;;  %10495 = vmatmul.mubr.bf16.vlgmr.msra.gmra.mxu1 %v14959_v0 }
 0x413   : > { %v16015_v22 = vadd.f32 %v10250_v17, %v10210_v11  ;;  %10532 = vmatpush2.bf16.msra.mxu0 %v12774_v52  ;;  %10545 = vmatpush1.bf16.msra.mxu1 %v12998_v33  ;;  %v12919_v33 = vcombine.high %v3264_v40, %v3272_v5  ;;  %v3256_v11 = vld [vmem:[%s18685_s6 + $0x20d0] sm:$0xff] }
 0x414   : > { %10576 = vmatprep.mubr.bf16.mxu1 %v14973_v21  ;;  %v10252_v44 = vpop.f32.mrf.mxu1  ;;  %10533 = vmatprep.subr.bf16.mxu0 %v12759_v58  ;;  %v11929_v58 = vcombine.high %v2273_v2, %v2281_v25  ;;  %v12903_v17 = vcombine.high %v3248_v45, %v3256_v11  ;;  %v3440_v5 = vld [vmem:[%s18685_s6 + $0x2690] sm:$0xff]  ;;  %v2449_v25 = vld [vmem:[%s18685_s6 + $0x798] sm:$0xff] }
 0x415   : > { %v16018_v38 = vadd.f32 %v10252_v44, %v10212_v49  ;;  %10546 = vmatprep.subr.bf16.mxu1 %v12983_v57  ;;  %v2257_v57 = vld [vmem:[%s18685_s6 + $0x198] sm:$0xff]  ;;  %v3232_v49 = vld [vmem:[%s18685_s6 + $0x2010] sm:$0xff] }
 0x416   : > { %v10254_v4 = vpop.f32.mrf.mxu1  ;;  %v2241_v44 = vld [vmem:[%s18685_s6 + $0x118] sm:$0xff]  ;;  %v11912_v3 = vcombine.low %v2257_v57, %v2265_v37  ;;  %v3448_v2 = vld [vmem:[%s18685_s6 + $0x26d0] sm:$0xff] }
 0x417   : > { %10534 = vmatpush2.bf16.msra.mxu0 %v12758_v63  ;;  %10547 = vmatpush1.bf16.msra.mxu1 %v12982_v30  ;;  %v11913_v63 = vcombine.high %v2257_v57, %v2265_v37  ;;  %v3240_v30 = vld [vmem:[%s18685_s6 + $0x2050] sm:$0xff]  ;;  %v2441_v57 = vld [vmem:[%s18685_s6 + $0x758] sm:$0xff]  ;;  %v13094_v37 = vcombine.low %v3440_v5, %v3448_v2 }
 0x418   : > { %v10255_v18 = vpop.f32.mrf.mxu1  ;;  %10548 = vmatprep.subr.bf16.mxu1 %v12967_v62  ;;  %10585 = vmatprep.subr.bf16.mxu0 %v11977_v47  ;;  %v2249_v62 = vld [vmem:[%s18685_s6 + $0x158] sm:$0xff]  ;;  %v12902_v47 = vcombine.low %v3248_v45, %v3256_v11  ;;  %v12887_v28 = vcombine.high %v3232_v49, %v3240_v30  ;;  %v3432_v45 = vld [vmem:[%s18685_s6 + $0x2650] sm:$0xff] }
 0x419   : > { %v11897_v4 = vcombine.high %v2241_v44, %v2249_v62  ;;  %v12886_v18 = vcombine.low %v3232_v49, %v3240_v30  ;;  %v2433_v11 = vld [vmem:[%s18685_s6 + $0x718] sm:$0xff]  ;;  %v3416_v49 = vld [vmem:[%s18685_s6 + $0x25d0] sm:$0xff] }
 0x41a   : > { %v16044_v1 = vpop.f32.mrf.mxu0  ;;  %10536 = vmatmul.mubr.bf16.vlgmr.msra.gmra.mxu0 %v14990_v39  ;;  %v2417_v30 = vld [vmem:[%s18685_s6 + $0x698] sm:$0xff] }
 0x41b   : > { %10549 = vmatpush1.bf16.msra.mxu1 %v12966_v10  ;;  %10586 = vmatpush1.bf16.msra.mxu0 %v11976_v31  ;;  %v2225_v10 = vld [vmem:[%s18685_s6 + $0x98] sm:$0xff] }
 0x41c   : > { %10617 = vmatprep.mubr.bf16.mxu0 %v14714_v27  ;;  %v16048_v48 = vpop.f32.mrf.mxu0  ;;  %10550 = vmatprep.subr.bf16.mxu1 %v12951_v35  ;;  %v2233_v31 = vld [vmem:[%s18685_s6 + $0xd8] sm:$0xff]  ;;  %v11896_v35 = vcombine.low %v2241_v44, %v2249_v62 }
 0x41d   : > { %10587 = vmatprep.subr.bf16.mxu0 %v11961_v16  ;;  %v11881_v16 = vcombine.high %v2225_v10, %v2233_v31  ;;  %v2425_v44 = vld [vmem:[%s18685_s6 + $0x6d8] sm:$0xff] }
 0x41e   : > { %v10295_v51 = vpop.f32.mrf.mxu0 }
 0x41f   : > { %10551 = vmatpush1.bf16.msra.mxu1 %v12950_v46  ;;  %10588 = vmatpush1.bf16.msra.mxu0 %v11960_v32  ;;  %v2217_v46 = vld [vmem:[%s18685_s6 + $0x58] sm:$0xff]  ;;  %v13126_v32 = vcombine.low %v3472_v23, %v3480_v36  ;;  %v3400_v23 = vld [vmem:[%s18685_s6 + $0x2550] sm:$0xff] }
 0x420   : > { %v10296_v52 = vpop.f32.mrf.mxu0  ;;  %10552 = vmatprep.subr.bf16.mxu1 %v12935_v24  ;;  %10589 = vmatprep.subr.bf16.mxu0 %v11945_v59  ;;  %v11880_v24 = vcombine.low %v2225_v10, %v2233_v31  ;;  %v13111_v59 = vcombine.high %v3456_v56, %v3464_v20  ;;  %v11865_v40 = vcombine.high %v2209_v42, %v2217_v46  ;;  %v2457_v51 = vld [vmem:[%s18685_s6 + $0x7d8] sm:$0xff] }
 0x421   : > { %v13095_v52 = vcombine.high %v3440_v5, %v3448_v2  ;;  %v2401_v36 = vld [vmem:[%s18685_s6 + $0x618] sm:$0xff]  ;;  %v3368_v5 = vld [vmem:[%s18685_s6 + $0x2450] sm:$0xff] }
 0x422   : > { %v2409_v10 = vld [vmem:[%s18685_s6 + $0x658] sm:$0xff] }
 0x423   : > { %10553 = vmatpush1.bf16.msra.mxu1 %v12934_v26  ;;  %10590 = vmatpush1.bf16.msra.mxu0 %v11944_v9  ;;  %v13110_v26 = vcombine.low %v3456_v56, %v3464_v20  ;;  %v11864_v9 = vcombine.low %v2209_v42, %v2217_v46  ;;  %v3384_v56 = vld [vmem:[%s18685_s6 + $0x24d0] sm:$0xff]  ;;  %v2385_v20 = vld [vmem:[%s18685_s6 + $0x598] sm:$0xff] }
 0x424   : > { %10554 = vmatprep.subr.bf16.mxu1 %v12919_v33  ;;  %10591 = vmatprep.subr.bf16.mxu0 %v11929_v58  ;;  %v12105_v33 = vcombine.high %v2449_v25, %v2457_v51  ;;  %v3424_v58 = vld [vmem:[%s18685_s6 + $0x2610] sm:$0xff]  ;;  %v2393_v42 = vld [vmem:[%s18685_s6 + $0x5d8] sm:$0xff] }
 0x425   : > { %v13078_v62 = vcombine.low %v3424_v58, %v3432_v45  ;;  %v2369_v2 = vld [vmem:[%s18685_s6 + $0x518] sm:$0xff] }
 0x427   : > { %10555 = vmatpush1.bf16.msra.mxu1 %v12918_v15  ;;  %10592 = vmatpush1.bf16.msra.mxu0 %v11928_v6  ;;  %v12104_v15 = vcombine.low %v2449_v25, %v2457_v51  ;;  %v13079_v6 = vcombine.high %v3424_v58, %v3432_v45  ;;  %v2377_v25 = vld [vmem:[%s18685_s6 + $0x558] sm:$0xff] }
 0x428   : > { %10556 = vmatprep.subr.bf16.mxu1 %v12903_v17  ;;  %10593 = vmatprep.subr.bf16.mxu0 %v11913_v63  ;;  %v12089_v17 = vcombine.high %v2433_v11, %v2441_v57  ;;  %v3408_v63 = vld [vmem:[%s18685_s6 + $0x2590] sm:$0xff]  ;;  %v2361_v58 = vld [vmem:[%s18685_s6 + $0x4d8] sm:$0xff] }
 0x429   : > { %v13062_v31 = vcombine.low %v3408_v63, %v3416_v49  ;;  %v2577_v45 = vld [vmem:[%s18685_s6 + $0xb98] sm:$0xff] }
 0x42b   : > { %10557 = vmatpush1.bf16.msra.mxu1 %v12902_v47  ;;  %10594 = vmatpush1.bf16.msra.mxu0 %v11912_v3  ;;  %v12088_v47 = vcombine.low %v2433_v11, %v2441_v57  ;;  %v13063_v3 = vcombine.high %v3408_v63, %v3416_v49  ;;  %v2585_v11 = vld [vmem:[%s18685_s6 + $0xbd8] sm:$0xff] }
 0x42c   : > { %10558 = vmatprep.subr.bf16.mxu1 %v12887_v28  ;;  %10595 = vmatprep.subr.bf16.mxu0 %v11897_v4  ;;  %v12073_v28 = vcombine.high %v2417_v30, %v2425_v44  ;;  %v3392_v4 = vld [vmem:[%s18685_s6 + $0x2510] sm:$0xff]  ;;  %v2345_v63 = vld [vmem:[%s18685_s6 + $0x458] sm:$0xff] }
 0x42d   : > { %v13046_v46 = vcombine.low %v3392_v4, %v3400_v23  ;;  %v2561_v49 = vld [vmem:[%s18685_s6 + $0xb18] sm:$0xff] }
 0x42f   : > { %10559 = vmatpush1.bf16.msra.mxu1 %v12886_v18  ;;  %10596 = vmatpush1.bf16.msra.mxu0 %v11896_v35  ;;  %v12072_v18 = vcombine.low %v2417_v30, %v2425_v44  ;;  %v13047_v35 = vcombine.high %v3392_v4, %v3400_v23  ;;  %v2569_v30 = vld [vmem:[%s18685_s6 + $0xb58] sm:$0xff] }
 0x430   : > { %10560 = vmatprep.subr.bf16.mxu1 %v13127_v41  ;;  %10597 = vmatprep.subr.bf16.mxu0 %v11881_v16  ;;  %v12057_v41 = vcombine.high %v2401_v36, %v2409_v10  ;;  %v3376_v16 = vld [vmem:[%s18685_s6 + $0x2490] sm:$0xff]  ;;  %v2553_v4 = vld [vmem:[%s18685_s6 + $0xad8] sm:$0xff] }
 0x431   : > { %v13030_v51 = vcombine.low %v3376_v16, %v3384_v56  ;;  %v2833_v23 = vld [vmem:[%s18685_s6 + $0x1398] sm:$0xff] }
 0x433   : > { %10561 = vmatpush2.bf16.msra.mxu1 %v13126_v32  ;;  %10598 = vmatpush1.bf16.msra.mxu0 %v11880_v24  ;;  %v12056_v32 = vcombine.low %v2401_v36, %v2409_v10  ;;  %v13031_v24 = vcombine.high %v3376_v16, %v3384_v56  ;;  %v2841_v36 = vld [vmem:[%s18685_s6 + $0x13d8] sm:$0xff] }
 0x434   : > { %10562 = vmatprep.subr.bf16.mxu1 %v13111_v59  ;;  %10599 = vmatprep.subr.bf16.mxu0 %v11865_v40  ;;  %v12041_v59 = vcombine.high %v2385_v20, %v2393_v42  ;;  %v3360_v40 = vld [vmem:[%s18685_s6 + $0x2410] sm:$0xff]  ;;  %v12489_v16 = vcombine.high %v2833_v23, %v2841_v36  ;;  %v2529_v56 = vld [vmem:[%s18685_s6 + $0xa18] sm:$0xff] }
 0x435   : > { %v13014_v57 = vcombine.low %v3360_v40, %v3368_v5 }
 0x437   : > { %10563 = vmatpush2.bf16.msra.mxu1 %v13110_v26  ;;  %10600 = vmatpush1.bf16.msra.mxu0 %v11864_v9  ;;  %v12040_v26 = vcombine.low %v2385_v20, %v2393_v42  ;;  %v13015_v9 = vcombine.high %v3360_v40, %v3368_v5  ;;  %v2537_v20 = vld [vmem:[%s18685_s6 + $0xa58] sm:$0xff]  ;;  %v12488_v40 = vcombine.low %v2833_v23, %v2841_v36 }
 0x438   : > { %10564 = vmatprep.subr.bf16.mxu1 %v13095_v52  ;;  %10601 = vmatprep.subr.bf16.mxu0 %v12105_v33  ;;  %v12025_v52 = vcombine.high %v2369_v2, %v2377_v25  ;;  %v2353_v33 = vld [vmem:[%s18685_s6 + $0x498] sm:$0xff] }
 0x439   : > { %v12008_v44 = vcombine.low %v2353_v33, %v2361_v58  ;;  %v2489_v23 = vld [vmem:[%s18685_s6 + $0x8d8] sm:$0xff] }
 0x43a   : > { %v2769_v36 = vld [vmem:[%s18685_s6 + $0x1198] sm:$0xff] }
 0x43b   : > { %10565 = vmatpush2.bf16.msra.mxu1 %v13094_v37  ;;  %10602 = vmatpush2.bf16.msra.mxu0 %v12104_v15  ;;  %v12024_v37 = vcombine.low %v2369_v2, %v2377_v25  ;;  %v12009_v15 = vcombine.high %v2353_v33, %v2361_v58  ;;  %v12185_v2 = vcombine.high %v2529_v56, %v2537_v20  ;;  %v2513_v25 = vld [vmem:[%s18685_s6 + $0x998] sm:$0xff] }
 0x43c   : > { %10566 = vmatprep.subr.bf16.mxu1 %v13079_v6  ;;  %10603 = vmatprep.subr.bf16.mxu0 %v12089_v17  ;;  %v12233_v6 = vcombine.high %v2577_v45, %v2585_v11  ;;  %v2337_v17 = vld [vmem:[%s18685_s6 + $0x418] sm:$0xff]  ;;  %v12184_v58 = vcombine.low %v2529_v56, %v2537_v20 }
 0x43d   : > { %v2473_v56 = vld [vmem:[%s18685_s6 + $0x858] sm:$0xff] }
 0x43e   : > { %v2753_v20 = vld [vmem:[%s18685_s6 + $0x1118] sm:$0xff] }
 0x43f   : > { %10567 = vmatpush2.bf16.msra.mxu1 %v13078_v62  ;;  %10604 = vmatpush2.bf16.msra.mxu0 %v12088_v47  ;;  %v12232_v62 = vcombine.low %v2577_v45, %v2585_v11  ;;  %v11993_v47 = vcombine.high %v2337_v17, %v2345_v63 }
 0x440   : > { %10568 = vmatprep.subr.bf16.mxu1 %v13063_v3  ;;  %10605 = vmatprep.subr.bf16.mxu0 %v12073_v28  ;;  %v2545_v3 = vld [vmem:[%s18685_s6 + $0xa98] sm:$0xff]  ;;  %v12217_v28 = vcombine.high %v2561_v49, %v2569_v30 }
 0x443   : > { %10569 = vmatpush2.bf16.msra.mxu1 %v13062_v31  ;;  %10606 = vmatpush2.bf16.msra.mxu0 %v12072_v18  ;;  %v11992_v31 = vcombine.low %v2337_v17, %v2345_v63  ;;  %v12216_v18 = vcombine.low %v2561_v49, %v2569_v30  ;;  %v2505_v17 = vld [vmem:[%s18685_s6 + $0x958] sm:$0xff] }
 0x444   : > { %10570 = vmatprep.subr.bf16.mxu1 %v13047_v35  ;;  %10607 = vmatprep.subr.bf16.mxu0 %v12057_v41  ;;  %v12201_v41 = vcombine.high %v2545_v3, %v2553_v4  ;;  %v2785_v63 = vld [vmem:[%s18685_s6 + $0x1218] sm:$0xff] }
 0x445   : > { %v2793_v49 = vld [vmem:[%s18685_s6 + $0x1258] sm:$0xff] }
 0x447   : > { %10571 = vmatpush2.bf16.msra.mxu1 %v13046_v46  ;;  %10608 = vmatpush2.bf16.msra.mxu0 %v12056_v32  ;;  %v2817_v46 = vld [vmem:[%s18685_s6 + $0x1318] sm:$0xff] }
 0x448   : > { %10572 = vmatprep.subr.bf16.mxu1 %v13031_v24  ;;  %10609 = vmatprep.subr.bf16.mxu0 %v12041_v59  ;;  %v2825_v32 = vld [vmem:[%s18685_s6 + $0x1358] sm:$0xff]  ;;  %v10292_v24 = vadd.f32 %v16044_v1, %v16015_v22  ;;  %v12200_v59 = vcombine.low %v2545_v3, %v2553_v4 }
 0x449   : > { %v2521_v22 = vld [vmem:[%s18685_s6 + $0x9d8] sm:$0xff]  ;;  %v12472_v45 = vcombine.low %v2817_v46, %v2825_v32 }
 0x44a   : > { %v2801_v1 = vld [vmem:[%s18685_s6 + $0x1298] sm:$0xff] }
 0x44b   : > { %10573 = vmatpush2.bf16.msra.mxu1 %v13030_v51  ;;  %10610 = vmatpush2.bf16.msra.mxu0 %v12040_v26  ;;  %v10294_v51 = vadd.f32 %v16048_v48, %v16018_v38  ;;  %v2481_v4 = vld [vmem:[%s18685_s6 + $0x898] sm:$0xff] }
 0x44c   : > { %10574 = vmatprep.subr.bf16.mxu1 %v13015_v9  ;;  %10611 = vmatprep.subr.bf16.mxu0 %v12025_v52  ;;  %v12473_v9 = vcombine.high %v2817_v46, %v2825_v32  ;;  %v2809_v52 = vld [vmem:[%s18685_s6 + $0x12d8] sm:$0xff]  ;;  %v12136_v46 = vcombine.low %v2481_v4, %v2489_v23 }
 0x44f   : > { %10575 = vmatpush2.bf16.msra.mxu1 %v13014_v57  ;;  %10612 = vmatpush2.bf16.msra.mxu0 %v12024_v37  ;;  %v12169_v57 = vcombine.high %v2513_v25, %v2521_v22  ;;  %v12457_v37 = vcombine.high %v2801_v1, %v2809_v52 }
 0x450   : > { %10613 = vmatprep.subr.bf16.mxu0 %v12009_v15  ;;  %10626 = vmatprep.subr.bf16.mxu1 %v12233_v6  ;;  %v2497_v15 = vld [vmem:[%s18685_s6 + $0x918] sm:$0xff] }
 0x451   : > { %v12153_v3 = vcombine.high %v2497_v15, %v2505_v17 }
 0x452   : > { %v10332_v10 = vpop.f32.mrf.mxu1  ;;  %10577 = vmatmul.mubr.bf16.vlgmr.msra.gmra.mxu1 %v15169_v14 }
 0x453   : > { %10614 = vmatpush2.bf16.msra.mxu0 %v12008_v44  ;;  %10627 = vmatpush1.bf16.msra.mxu1 %v12232_v62  ;;  %v10333_v26 = vadd.f32 %v10332_v10, %v10292_v24  ;;  %v12168_v44 = vcombine.low %v2513_v25, %v2521_v22  ;;  %v12456_v62 = vcombine.low %v2801_v1, %v2809_v52  ;;  %v2777_v10 = vld [vmem:[%s18685_s6 + $0x11d8] sm:$0xff] }
 0x454   : > { %10658 = vmatprep.mubr.bf16.mxu1 %v14743_v43  ;;  %v10334_v35 = vpop.f32.mrf.mxu1  ;;  %10615 = vmatprep.subr.bf16.mxu0 %v11993_v47  ;;  %v12424_v32 = vcombine.low %v2769_v36, %v2777_v10  ;;  %v2745_v25 = vld [vmem:[%s18685_s6 + $0x10d8] sm:$0xff] }
 0x455   : > { %10628 = vmatprep.subr.bf16.mxu1 %v12217_v28  ;;  %v10335_v38 = vadd.f32 %v10334_v35, %v10294_v51  ;;  %v12441_v28 = vcombine.high %v2785_v63, %v2793_v49  ;;  %v12137_v35 = vcombine.high %v2481_v4, %v2489_v23  ;;  %v2689_v1 = vld [vmem:[%s18685_s6 + $0xf18] sm:$0xff] }
 0x456   : > { %v10336_v42 = vpop.f32.mrf.mxu1  ;;  %v2697_v52 = vld [vmem:[%s18685_s6 + $0xf58] sm:$0xff] }
 0x457   : > { %10616 = vmatpush2.bf16.msra.mxu0 %v11992_v31  ;;  %10629 = vmatpush1.bf16.msra.mxu1 %v12216_v18  ;;  %v12152_v31 = vcombine.low %v2497_v15, %v2505_v17  ;;  %v12440_v18 = vcombine.low %v2785_v63, %v2793_v49  ;;  %v2761_v42 = vld [vmem:[%s18685_s6 + $0x1158] sm:$0xff]  ;;  %v12344_v17 = vcombine.low %v2689_v1, %v2697_v52 }
 0x458   : > { %v10337_v5 = vpop.f32.mrf.mxu1  ;;  %10630 = vmatprep.subr.bf16.mxu1 %v12201_v41  ;;  %10667 = vmatprep.subr.bf16.mxu0 %v12489_v16  ;;  %v12425_v41 = vcombine.high %v2769_v36, %v2777_v10  ;;  %v2465_v16 = vld [vmem:[%s18685_s6 + $0x818] sm:$0xff] }
 0x459   : > { %v12121_v24 = vcombine.high %v2465_v16, %v2473_v56  ;;  %v2713_v5 = vld [vmem:[%s18685_s6 + $0xfd8] sm:$0xff]  ;;  %v12120_v51 = vcombine.low %v2465_v16, %v2473_v56 }
 0x45a   : > { %v10373_v33 = vpop.f32.mrf.mxu0  ;;  %10618 = vmatmul.mubr.bf16.vlgmr.msra.gmra.mxu0 %v14716_v55  ;;  %v2961_v15 = vld [vmem:[%s18685_s6 + $0x1798] sm:$0xff] }
 0x45b   : > { %v10374_v48 = vadd.f32 %v10373_v33, %v10333_v26  ;;  %10631 = vmatpush1.bf16.msra.mxu1 %v12200_v59  ;;  %10668 = vmatpush1.bf16.msra.mxu0 %v12488_v40  ;;  %v12409_v59 = vcombine.high %v2753_v20, %v2761_v42  ;;  %v2705_v40 = vld [vmem:[%s18685_s6 + $0xf98] sm:$0xff]  ;;  %v12408_v26 = vcombine.low %v2753_v20, %v2761_v42 }
 0x45c   : > { %10699 = vmatprep.mubr.bf16.mxu0 %v14792_v19  ;;  %v10375_v11 = vpop.f32.mrf.mxu0  ;;  %10632 = vmatprep.subr.bf16.mxu1 %v12185_v2  ;;  %v2737_v2 = vld [vmem:[%s18685_s6 + $0x1098] sm:$0xff] }
 0x45d   : > { %11612 = vst [vmem:[%s15798_s16 + $0x10] sm:$0xff] %v10374_v48  ;;  %v10376_v6 = vadd.f32 %v10375_v11, %v10335_v38  ;;  %10669 = vmatprep.subr.bf16.mxu0 %v12473_v9  ;;  %v12361_v9 = vcombine.high %v2705_v40, %v2713_v5  ;;  %v12393_v22 = vcombine.high %v2737_v2, %v2745_v25  ;;  %v2721_v33 = vld [vmem:[%s18685_s6 + $0x1018] sm:$0xff] }
 0x45e   : > { %v10377_v30 = vpop.f32.mrf.mxu0  ;;  %v12360_v38 = vcombine.low %v2705_v40, %v2713_v5  ;;  %v12392_v48 = vcombine.low %v2737_v2, %v2745_v25  ;;  %v2641_v10 = vld [vmem:[%s18685_s6 + $0xd98] sm:$0xff] }
 0x45f   : > { %11613 = vst [vmem:[%s15798_s16 + $0x18] sm:$0xff] %v10376_v6  ;;  %10633 = vmatpush1.bf16.msra.mxu1 %v12184_v58  ;;  %10670 = vmatpush1.bf16.msra.mxu0 %v12472_v45  ;;  %v2729_v58 = vld [vmem:[%s18685_s6 + $0x1058] sm:$0xff]  ;;  %v12345_v45 = vcombine.high %v2689_v1, %v2697_v52 }
 0x460   : > { %v10378_v47 = vpop.f32.mrf.mxu0  ;;  %10634 = vmatprep.subr.bf16.mxu1 %v12169_v57  ;;  %10671 = vmatprep.subr.bf16.mxu0 %v12457_v37  ;;  %v12377_v11 = vcombine.high %v2721_v33, %v2729_v58  ;;  %v2673_v57 = vld [vmem:[%s18685_s6 + $0xe98] sm:$0xff]  ;;  %v12376_v63 = vcombine.low %v2721_v33, %v2729_v58 }
 0x461   : > { %v2681_v37 = vld [vmem:[%s18685_s6 + $0xed8] sm:$0xff] }
 0x462   : > { %v2969_v6 = vld [vmem:[%s18685_s6 + $0x17d8] sm:$0xff]  ;;  %v12329_v49 = vcombine.high %v2673_v57, %v2681_v37 }
 0x463   : > { %10635 = vmatpush1.bf16.msra.mxu1 %v12168_v44  ;;  %10672 = vmatpush1.bf16.msra.mxu0 %v12456_v62  ;;  %v12617_v30 = vcombine.high %v2961_v15, %v2969_v6  ;;  %v2657_v44 = vld [vmem:[%s18685_s6 + $0xe18] sm:$0xff]  ;;  %v12616_v4 = vcombine.low %v2961_v15, %v2969_v6 }
 0x464   : > { %10636 = vmatprep.subr.bf16.mxu1 %v12153_v3  ;;  %10673 = vmatprep.subr.bf16.mxu0 %v12441_v28  ;;  %v2665_v62 = vld [vmem:[%s18685_s6 + $0xe58] sm:$0xff]  ;;  %v12328_v28 = vcombine.low %v2673_v57, %v2681_v37 }
 0x465   : > { %v2945_v47 = vld [vmem:[%s18685_s6 + $0x1718] sm:$0xff]  ;;  %v12313_v23 = vcombine.high %v2657_v44, %v2665_v62 }
 0x466   : > { %v2953_v3 = vld [vmem:[%s18685_s6 + $0x1758] sm:$0xff] }
 0x467   : > { %10637 = vmatpush1.bf16.msra.mxu1 %v12152_v31  ;;  %10674 = vmatpush1.bf16.msra.mxu0 %v12440_v18  ;;  %v12601_v36 = vcombine.high %v2945_v47, %v2953_v3  ;;  %v2649_v31 = vld [vmem:[%s18685_s6 + $0xdd8] sm:$0xff]  ;;  %v12600_v16 = vcombine.low %v2945_v47, %v2953_v3 }
 0x468   : > { %10638 = vmatprep.subr.bf16.mxu1 %v12137_v35  ;;  %10675 = vmatprep.subr.bf16.mxu0 %v12425_v41  ;;  %v2929_v18 = vld [vmem:[%s18685_s6 + $0x1698] sm:$0xff]  ;;  %v12312_v41 = vcombine.low %v2657_v44, %v2665_v62  ;;  %v12297_v56 = vcombine.high %v2641_v10, %v2649_v31 }
 0x469   : > { %v2937_v35 = vld [vmem:[%s18685_s6 + $0x16d8] sm:$0xff] }
 0x46a   : > { %v12585_v20 = vcombine.high %v2929_v18, %v2937_v35  ;;  %v2625_v42 = vld [vmem:[%s18685_s6 + $0xd18] sm:$0xff]  ;;  %v12584_v40 = vcombine.low %v2929_v18, %v2937_v35 }
 0x46b   : > { %10639 = vmatpush1.bf16.msra.mxu1 %v12136_v46  ;;  %10676 = vmatpush1.bf16.msra.mxu0 %v12424_v32  ;;  %v2633_v46 = vld [vmem:[%s18685_s6 + $0xd58] sm:$0xff] }
 0x46c   : > { %10640 = vmatprep.subr.bf16.mxu1 %v12121_v24  ;;  %10677 = vmatprep.subr.bf16.mxu0 %v12409_v59  ;;  %v2913_v32 = vld [vmem:[%s18685_s6 + $0x1618] sm:$0xff]  ;;  %v12296_v59 = vcombine.low %v2641_v10, %v2649_v31  ;;  %v12281_v5 = vcombine.high %v2625_v42, %v2633_v46 }
 0x46d   : > { %v2921_v24 = vld [vmem:[%s18685_s6 + $0x1658] sm:$0xff] }
 0x46e   : > { %v12569_v2 = vcombine.high %v2913_v32, %v2921_v24  ;;  %v2609_v25 = vld [vmem:[%s18685_s6 + $0xc98] sm:$0xff]  ;;  %v12568_v1 = vcombine.low %v2913_v32, %v2921_v24 }
 0x46f   : > { %10641 = vmatpush1.bf16.msra.mxu1 %v12120_v51  ;;  %10678 = vmatpush1.bf16.msra.mxu0 %v12408_v26  ;;  %v2617_v51 = vld [vmem:[%s18685_s6 + $0xcd8] sm:$0xff] }
 0x470   : > { %10642 = vmatprep.subr.bf16.mxu1 %v12361_v9  ;;  %10679 = vmatprep.subr.bf16.mxu0 %v12393_v22  ;;  %v2897_v26 = vld [vmem:[%s18685_s6 + $0x1598] sm:$0xff]  ;;  %v12280_v22 = vcombine.low %v2625_v42, %v2633_v46  ;;  %v12265_v52 = vcombine.high %v2609_v25, %v2617_v51 }
 0x471   : > { %v2905_v9 = vld [vmem:[%s18685_s6 + $0x15d8] sm:$0xff] }
 0x472   : > { %v12553_v33 = vcombine.high %v2897_v26, %v2905_v9  ;;  %v2593_v58 = vld [vmem:[%s18685_s6 + $0xc18] sm:$0xff]  ;;  %v12552_v57 = vcombine.low %v2897_v26, %v2905_v9  ;;  %v3513_v9 = vrot.slane %v15982_v34, %v14684_v60 }
 0x473   : > { %10643 = vmatpush2.bf16.msra.mxu1 %v12360_v38  ;;  %10680 = vmatpush1.bf16.msra.mxu0 %v12392_v48  ;;  %v2601_v38 = vld [vmem:[%s18685_s6 + $0xc58] sm:$0xff] }
 0x474   : > { %10644 = vmatprep.subr.bf16.mxu1 %v12345_v45  ;;  %10681 = vmatprep.subr.bf16.mxu0 %v12377_v11  ;;  %v2881_v48 = vld [vmem:[%s18685_s6 + $0x1518] sm:$0xff]  ;;  %v12264_v11 = vcombine.low %v2609_v25, %v2617_v51  ;;  %v12249_v37 = vcombine.high %v2593_v58, %v2601_v38 }
 0x475   : > { %v2889_v45 = vld [vmem:[%s18685_s6 + $0x1558] sm:$0xff] }
 0x476   : > { %v12537_v15 = vcombine.high %v2881_v48, %v2889_v45  ;;  %v2865_v6 = vld [vmem:[%s18685_s6 + $0x1498] sm:$0xff]  ;;  %v12536_v44 = vcombine.low %v2881_v48, %v2889_v45 }
 0x477   : > { %10645 = vmatpush2.bf16.msra.mxu1 %v12344_v17  ;;  %10682 = vmatpush1.bf16.msra.mxu0 %v12376_v63  ;;  %v2873_v17 = vld [vmem:[%s18685_s6 + $0x14d8] sm:$0xff] }
 0x478   : > { %10646 = vmatprep.subr.bf16.mxu1 %v12329_v49  ;;  %10683 = vmatprep.subr.bf16.mxu0 %v12617_v30  ;;  %v3089_v63 = vld [vmem:[%s18685_s6 + $0x1b98] sm:$0xff]  ;;  %v12248_v30 = vcombine.low %v2593_v58, %v2601_v38  ;;  %v12521_v62 = vcombine.high %v2865_v6, %v2873_v17 }
 0x479   : > { %v3097_v49 = vld [vmem:[%s18685_s6 + $0x1bd8] sm:$0xff] }
 0x47a   : > { %v12745_v47 = vcombine.high %v3089_v63, %v3097_v49  ;;  %v2849_v3 = vld [vmem:[%s18685_s6 + $0x1418] sm:$0xff]  ;;  %v12744_v10 = vcombine.low %v3089_v63, %v3097_v49 }
 0x47b   : > { %10647 = vmatpush2.bf16.msra.mxu1 %v12328_v28  ;;  %10684 = vmatpush2.bf16.msra.mxu0 %v12616_v4  ;;  %v2857_v28 = vld [vmem:[%s18685_s6 + $0x1458] sm:$0xff] }
 0x47c   : > { %10648 = vmatprep.subr.bf16.mxu1 %v12313_v23  ;;  %10685 = vmatprep.subr.bf16.mxu0 %v12601_v36  ;;  %v3073_v4 = vld [vmem:[%s18685_s6 + $0x1b18] sm:$0xff]  ;;  %v12520_v36 = vcombine.low %v2865_v6, %v2873_v17  ;;  %v12505_v31 = vcombine.high %v2849_v3, %v2857_v28  ;;  %v12504_v42 = vcombine.low %v2849_v3, %v2857_v28 }
 0x47d   : > { %v3081_v23 = vld [vmem:[%s18685_s6 + $0x1b58] sm:$0xff] }
 0x47e   : > { %v3057_v18 = vld [vmem:[%s18685_s6 + $0x1a98] sm:$0xff]  ;;  %v12729_v35 = vcombine.high %v3073_v4, %v3081_v23  ;;  %v12728_v46 = vcombine.low %v3073_v4, %v3081_v23 }
 0x47f   : > { %10649 = vmatpush2.bf16.msra.mxu1 %v12312_v41  ;;  %10686 = vmatpush2.bf16.msra.mxu0 %v12600_v16  ;;  %v3065_v41 = vld [vmem:[%s18685_s6 + $0x1ad8] sm:$0xff] }
 0x480   : > { %10650 = vmatprep.subr.bf16.mxu1 %v12297_v56  ;;  %10687 = vmatprep.subr.bf16.mxu0 %v12585_v20  ;;  %v3345_v16 = vld [vmem:[%s18685_s6 + $0x2398] sm:$0xff]  ;;  %v12713_v24 = vcombine.high %v3057_v18, %v3065_v41 }
 0x481   : > { %v3353_v56 = vld [vmem:[%s18685_s6 + $0x23d8] sm:$0xff] }
 0x482   : > { %v3329_v51 = vld [vmem:[%s18685_s6 + $0x2318] sm:$0xff] }
 0x483   : > { %10651 = vmatpush2.bf16.msra.mxu1 %v12296_v59  ;;  %10688 = vmatpush2.bf16.msra.mxu0 %v12584_v40  ;;  %v13001_v59 = vcombine.high %v3345_v16, %v3353_v56  ;;  %v3509_v40 = vrot.slane %v15982_v34, %v14746_v50  ;;  %v3337_v26 = vld [vmem:[%s18685_s6 + $0x2358] sm:$0xff] }
 0x484   : > { %10652 = vmatprep.subr.bf16.mxu1 %v12281_v5  ;;  %10689 = vmatprep.subr.bf16.mxu0 %v12569_v2  ;;  %v3041_v5 = vld [vmem:[%s18685_s6 + $0x1a18] sm:$0xff]  ;;  %v12985_v48 = vcombine.high %v3329_v51, %v3337_v26  ;;  %v12984_v17 = vcombine.low %v3329_v51, %v3337_v26 }
 0x485   : > { %v3049_v2 = vld [vmem:[%s18685_s6 + $0x1a58] sm:$0xff] }
 0x486   : > { %v3025_v58 = vld [vmem:[%s18685_s6 + $0x1998] sm:$0xff] }
 0x487   : > { %10653 = vmatpush2.bf16.msra.mxu1 %v12280_v22  ;;  %10690 = vmatpush2.bf16.msra.mxu0 %v12568_v1  ;;  %v12712_v22 = vcombine.low %v3057_v18, %v3065_v41  ;;  %v13000_v1 = vcombine.low %v3345_v16, %v3353_v56  ;;  %v3033_v45 = vld [vmem:[%s18685_s6 + $0x19d8] sm:$0xff] }
 0x488   : > { %10654 = vmatprep.subr.bf16.mxu1 %v12265_v52  ;;  %10691 = vmatprep.subr.bf16.mxu0 %v12553_v33  ;;  %v12697_v33 = vcombine.high %v3041_v5, %v3049_v2  ;;  %v3313_v34 = vld [vmem:[%s18685_s6 + $0x2298] sm:$0xff]  ;;  %v12681_v49 = vcombine.high %v3025_v58, %v3033_v45  ;;  %v12680_v23 = vcombine.low %v3025_v58, %v3033_v45 }
 0x489   : > { %v3297_v3 = vld [vmem:[%s18685_s6 + $0x2218] sm:$0xff] }
 0x48a   : > { %v3305_v28 = vld [vmem:[%s18685_s6 + $0x2258] sm:$0xff] }
 0x48b   : > { %10655 = vmatpush2.bf16.msra.mxu1 %v12264_v11  ;;  %10692 = vmatpush2.bf16.msra.mxu0 %v12552_v57  ;;  %v3321_v11 = vld [vmem:[%s18685_s6 + $0x22d8] sm:$0xff]  ;;  %v12953_v18 = vcombine.high %v3297_v3, %v3305_v28 }
 0x48c   : > { %10656 = vmatprep.subr.bf16.mxu1 %v12249_v37  ;;  %10693 = vmatprep.subr.bf16.mxu0 %v12537_v15  ;;  %v12696_v37 = vcombine.low %v3041_v5, %v3049_v2  ;;  %v3001_v41 = vld [vmem:[%s18685_s6 + $0x18d8] sm:$0xff] }
 0x48d   : > { %v3281_v16 = vld [vmem:[%s18685_s6 + $0x2198] sm:$0xff] }
 0x48e   : > { %v3289_v56 = vld [vmem:[%s18685_s6 + $0x21d8] sm:$0xff] }
 0x48f   : > { %10657 = vmatpush2.bf16.msra.mxu1 %v12248_v30  ;;  %10694 = vmatpush2.bf16.msra.mxu0 %v12536_v44  ;;  %v12969_v30 = vcombine.high %v3313_v34, %v3321_v11  ;;  %v3009_v44 = vld [vmem:[%s18685_s6 + $0x1918] sm:$0xff] }
 0x490   : > { %10695 = vmatprep.subr.bf16.mxu0 %v12521_v62  ;;  %10708 = vmatprep.subr.bf16.mxu1 %v12745_v47  ;;  %v3017_v47 = vld [vmem:[%s18685_s6 + $0x1958] sm:$0xff] }
 0x491   : > { %v3273_v5 = vld [vmem:[%s18685_s6 + $0x2158] sm:$0xff] }
 0x492   : > { %v10414_v20 = vpop.f32.mrf.mxu1  ;;  %10659 = vmatmul.mubr.bf16.vlgmr.msra.gmra.mxu1 %v14748_v53  ;;  %v3201_v45 = vld [vmem:[%s18685_s6 + $0x1f18] sm:$0xff] }
 0x493   : > { %10696 = vmatpush2.bf16.msra.mxu0 %v12520_v36  ;;  %10709 = vmatpush1.bf16.msra.mxu1 %v12744_v10  ;;  %v10415_v38 = vadd.f32 %v10414_v20, %v3509_v40  ;;  %v12968_v36 = vcombine.low %v3313_v34, %v3321_v11  ;;  %v12664_v20 = vcombine.low %v3009_v44, %v3017_v47  ;;  %v3265_v40 = vld [vmem:[%s18685_s6 + $0x2118] sm:$0xff] }
 0x494   : > { %10740 = vmatprep.mubr.bf16.mxu1 %v14833_v8  ;;  %v10416_v32 = vpop.f32.mrf.mxu1  ;;  %10697 = vmatprep.subr.bf16.mxu0 %v12505_v31  ;;  %v12665_v31 = vcombine.high %v3009_v44, %v3017_v47  ;;  %v12921_v26 = vcombine.high %v3265_v40, %v3273_v5  ;;  %v12920_v58 = vcombine.low %v3265_v40, %v3273_v5  ;;  %v3209_v34 = vld [vmem:[%s18685_s6 + $0x1f58] sm:$0xff] }
 0x495   : > { %10710 = vmatprep.subr.bf16.mxu1 %v12729_v35  ;;  %v10417_v15 = vadd.f32 %v10416_v32, %v3513_v9  ;;  %v2993_v35 = vld [vmem:[%s18685_s6 + $0x1898] sm:$0xff]  ;;  %v12937_v32 = vcombine.high %v3281_v16, %v3289_v56 }
 0x496   : > { %v10418_v25 = vpop.f32.mrf.mxu1  ;;  %v12648_v2 = vcombine.low %v2993_v35, %v3001_v41  ;;  %v3217_v9 = vld [vmem:[%s18685_s6 + $0x1f98] sm:$0xff] }
 0x497   : > { %10698 = vmatpush2.bf16.msra.mxu0 %v12504_v42  ;;  %10711 = vmatpush1.bf16.msra.mxu1 %v12728_v46  ;;  %v12952_v42 = vcombine.low %v3297_v3, %v3305_v28  ;;  %v12649_v46 = vcombine.high %v2993_v35, %v3001_v41  ;;  %v12936_v25 = vcombine.low %v3281_v16, %v3289_v56  ;;  %v3233_v11 = vld [vmem:[%s18685_s6 + $0x2018] sm:$0xff] }
 0x498   : > { %v10419_v52 = vpop.f32.mrf.mxu1  ;;  %10712 = vmatprep.subr.bf16.mxu1 %v12713_v24  ;;  %10749 = vmatprep.subr.bf16.mxu0 %v13001_v59  ;;  %v2977_v24 = vld [vmem:[%s18685_s6 + $0x1818] sm:$0xff]  ;;  %v12856_v3 = vcombine.low %v3201_v45, %v3209_v34 }
 0x499   : > { %v2985_v59 = vld [vmem:[%s18685_s6 + $0x1858] sm:$0xff] }
 0x49a   : > { %v10455_v57 = vpop.f32.mrf.mxu0  ;;  %10700 = vmatmul.mubr.bf16.vlgmr.msra.gmra.mxu0 %v14959_v0  ;;  %v12633_v51 = vcombine.high %v2977_v24, %v2985_v59  ;;  %v3257_v52 = vld [vmem:[%s18685_s6 + $0x20d8] sm:$0xff] }
 0x49b   : > { %v16451_v6 = vadd.f32 %v10455_v57, %v10415_v38  ;;  %10713 = vmatpush1.bf16.msra.mxu1 %v12712_v22  ;;  %10750 = vmatpush1.bf16.msra.mxu0 %v13000_v1  ;;  %v3225_v22 = vld [vmem:[%s18685_s6 + $0x1fd8] sm:$0xff] }
 0x49c   : > { %10781 = vmatprep.mubr.bf16.mxu0 %v14973_v21  ;;  %v10457_v63 = vpop.f32.mrf.mxu0  ;;  %10714 = vmatprep.subr.bf16.mxu1 %v12697_v33  ;;  %v3249_v1 = vld [vmem:[%s18685_s6 + $0x2098] sm:$0xff]  ;;  %v12632_v33 = vcombine.low %v2977_v24, %v2985_v59  ;;  %v12873_v38 = vcombine.high %v3217_v9, %v3225_v22 }
 0x49d   : > { %v16457_v62 = vadd.f32 %v10457_v63, %v10417_v15  ;;  %10751 = vmatprep.subr.bf16.mxu0 %v12985_v48  ;;  %v12905_v48 = vcombine.high %v3249_v1, %v3257_v52  ;;  %v3241_v57 = vld [vmem:[%s18685_s6 + $0x2058] sm:$0xff]  ;;  %v12904_v15 = vcombine.low %v3249_v1, %v3257_v52 }
 0x49e   : > { %v10459_v4 = vpop.f32.mrf.mxu0  ;;  %v12889_v63 = vcombine.high %v3233_v11, %v3241_v57  ;;  %v3473_v44 = vld [vmem:[%s18685_s6 + $0x2798] sm:$0xff]  ;;  %v12888_v28 = vcombine.low %v3233_v11, %v3241_v57 }
 0x49f   : > { %10715 = vmatpush1.bf16.msra.mxu1 %v12696_v37  ;;  %10752 = vmatpush1.bf16.msra.mxu0 %v12984_v17  ;;  %v12872_v37 = vcombine.low %v3217_v9, %v3225_v22  ;;  %v12857_v17 = vcombine.high %v3201_v45, %v3209_v34  ;;  %v3481_v47 = vld [vmem:[%s18685_s6 + $0x27d8] sm:$0xff] }
 0x4a0   : > { %v10460_v10 = vpop.f32.mrf.mxu0  ;;  %10716 = vmatprep.subr.bf16.mxu1 %v12681_v49  ;;  %10753 = vmatprep.subr.bf16.mxu0 %v12969_v30  ;;  %v3185_v49 = vld [vmem:[%s18685_s6 + $0x1e98] sm:$0xff]  ;;  %v13128_v41 = vcombine.low %v3473_v44, %v3481_v47 }
 0x4a1   : > { %v3193_v30 = vld [vmem:[%s18685_s6 + $0x1ed8] sm:$0xff] }
 0x4a2   : > { %v12841_v4 = vcombine.high %v3185_v49, %v3193_v30  ;;  %v3177_v10 = vld [vmem:[%s18685_s6 + $0x1e58] sm:$0xff]  ;;  %v12840_v35 = vcombine.low %v3185_v49, %v3193_v30 }
 0x4a3   : > { %10717 = vmatpush1.bf16.msra.mxu1 %v12680_v23  ;;  %10754 = vmatpush1.bf16.msra.mxu0 %v12968_v36  ;;  %v13129_v23 = vcombine.high %v3473_v44, %v3481_v47  ;;  %v3169_v36 = vld [vmem:[%s18685_s6 + $0x1e18] sm:$0xff] }
 0x4a4   : > { %10718 = vmatprep.subr.bf16.mxu1 %v12665_v31  ;;  %10755 = vmatprep.subr.bf16.mxu0 %v12953_v18  ;;  %v3457_v31 = vld [vmem:[%s18685_s6 + $0x2718] sm:$0xff]  ;;  %v12825_v16 = vcombine.high %v3169_v36, %v3177_v10  ;;  %v12824_v24 = vcombine.low %v3169_v36, %v3177_v10 }
 0x4a5   : > { %v3465_v18 = vld [vmem:[%s18685_s6 + $0x2758] sm:$0xff] }
 0x4a6   : > { %v13113_v56 = vcombine.high %v3457_v31, %v3465_v18  ;;  %v13112_v59 = vcombine.low %v3457_v31, %v3465_v18 }
 0x4a7   : > { %10719 = vmatpush1.bf16.msra.mxu1 %v12664_v20  ;;  %10756 = vmatpush1.bf16.msra.mxu0 %v12952_v42  ;;  %v3153_v20 = vld [vmem:[%s18685_s6 + $0x1d98] sm:$0xff] }
 0x4a8   : > { %10720 = vmatprep.subr.bf16.mxu1 %v12649_v46  ;;  %10757 = vmatprep.subr.bf16.mxu0 %v12937_v32  ;;  %v3161_v42 = vld [vmem:[%s18685_s6 + $0x1dd8] sm:$0xff] }
 0x4a9   : > { %v3441_v46 = vld [vmem:[%s18685_s6 + $0x2698] sm:$0xff]  ;;  %v12809_v40 = vcombine.high %v3153_v20, %v3161_v42  ;;  %v12808_v9 = vcombine.low %v3153_v20, %v3161_v42 }
 0x4aa   : > { %v3449_v32 = vld [vmem:[%s18685_s6 + $0x26d8] sm:$0xff] }
 0x4ab   : > { %10721 = vmatpush1.bf16.msra.mxu1 %v12648_v2  ;;  %10758 = vmatpush1.bf16.msra.mxu0 %v12936_v25  ;;  %v13097_v5 = vcombine.high %v3441_v46, %v3449_v32  ;;  %v3137_v2 = vld [vmem:[%s18685_s6 + $0x1d18] sm:$0xff]  ;;  %v13096_v22 = vcombine.low %v3441_v46, %v3449_v32  ;;  %v2290_v32 = vld [vmem:[%s18685_s6 + $0x2a0] sm:$0xff] }
 0x4ac   : > { %10722 = vmatprep.subr.bf16.mxu1 %v12633_v51  ;;  %10759 = vmatprep.subr.bf16.mxu0 %v12921_v26  ;;  %v3145_v25 = vld [vmem:[%s18685_s6 + $0x1d58] sm:$0xff] }
 0x4ad   : > { %v3425_v51 = vld [vmem:[%s18685_s6 + $0x2618] sm:$0xff]  ;;  %v12793_v1 = vcombine.high %v3137_v2, %v3145_v25  ;;  %v12792_v45 = vcombine.low %v3137_v2, %v3145_v25 }
 0x4ae   : > { %v3433_v26 = vld [vmem:[%s18685_s6 + $0x2658] sm:$0xff] }
 0x4af   : > { %10723 = vmatpush1.bf16.msra.mxu1 %v12632_v33  ;;  %10760 = vmatpush1.bf16.msra.mxu0 %v12920_v58  ;;  %v13081_v52 = vcombine.high %v3425_v51, %v3433_v26  ;;  %v3121_v33 = vld [vmem:[%s18685_s6 + $0x1c98] sm:$0xff]  ;;  %v13080_v34 = vcombine.low %v3425_v51, %v3433_v26 }
 0x4b0   : > { %10724 = vmatprep.subr.bf16.mxu1 %v12873_v38  ;;  %10761 = vmatprep.subr.bf16.mxu0 %v12905_v48  ;;  %v3129_v58 = vld [vmem:[%s18685_s6 + $0x1cd8] sm:$0xff] }
 0x4b1   : > { %v3409_v38 = vld [vmem:[%s18685_s6 + $0x2598] sm:$0xff]  ;;  %v12777_v11 = vcombine.high %v3121_v33, %v3129_v58  ;;  %v12776_v49 = vcombine.low %v3121_v33, %v3129_v58  ;;  %v2562_v58 = vld [vmem:[%s18685_s6 + $0xb20] sm:$0xff] }
 0x4b2   : > { %v3417_v48 = vld [vmem:[%s18685_s6 + $0x25d8] sm:$0xff] }
 0x4b3   : > { %10725 = vmatpush2.bf16.msra.mxu1 %v12872_v37  ;;  %10762 = vmatpush1.bf16.msra.mxu0 %v12904_v15  ;;  %v13065_v57 = vcombine.high %v3409_v38, %v3417_v48  ;;  %v3105_v37 = vld [vmem:[%s18685_s6 + $0x1c18] sm:$0xff]  ;;  %v13064_v30 = vcombine.low %v3409_v38, %v3417_v48  ;;  %v2570_v38 = vld [vmem:[%s18685_s6 + $0xb60] sm:$0xff] }
 0x4b4   : > { %10726 = vmatprep.subr.bf16.mxu1 %v12857_v17  ;;  %10763 = vmatprep.subr.bf16.mxu0 %v12889_v63  ;;  %v3113_v15 = vld [vmem:[%s18685_s6 + $0x1c58] sm:$0xff] }
 0x4b5   : > { %v3393_v17 = vld [vmem:[%s18685_s6 + $0x2518] sm:$0xff]  ;;  %v12761_v44 = vcombine.high %v3105_v37, %v3113_v15  ;;  %v12760_v36 = vcombine.low %v3105_v37, %v3113_v15  ;;  %v12219_v37 = vcombine.high %v2562_v58, %v2570_v38  ;;  %v2266_v15 = vld [vmem:[%s18685_s6 + $0x1e0] sm:$0xff] }
 0x4b6   : > { %v3401_v63 = vld [vmem:[%s18685_s6 + $0x2558] sm:$0xff] }
 0x4b7   : > { %10727 = vmatpush2.bf16.msra.mxu1 %v12856_v3  ;;  %10764 = vmatpush1.bf16.msra.mxu0 %v12888_v28  ;;  %v13049_v47 = vcombine.high %v3393_v17, %v3401_v63  ;;  %v3377_v3 = vld [vmem:[%s18685_s6 + $0x2498] sm:$0xff]  ;;  %v13048_v10 = vcombine.low %v3393_v17, %v3401_v63  ;;  %v2546_v17 = vld [vmem:[%s18685_s6 + $0xaa0] sm:$0xff] }
 0x4b8   : > { %10728 = vmatprep.subr.bf16.mxu1 %v12841_v4  ;;  %10765 = vmatprep.subr.bf16.mxu0 %v13129_v23  ;;  %v3385_v28 = vld [vmem:[%s18685_s6 + $0x24d8] sm:$0xff]  ;;  %v2322_v4 = vld [vmem:[%s18685_s6 + $0x3a0] sm:$0xff] }
 0x4b9   : > { %v2330_v23 = vld [vmem:[%s18685_s6 + $0x3e0] sm:$0xff]  ;;  %v13033_v31 = vcombine.high %v3377_v3, %v3385_v28  ;;  %v13032_v20 = vcombine.low %v3377_v3, %v3385_v28 }
 0x4ba   : > { %v11979_v18 = vcombine.high %v2322_v4, %v2330_v23  ;;  %v11978_v42 = vcombine.low %v2322_v4, %v2330_v23  ;;  %v2554_v63 = vld [vmem:[%s18685_s6 + $0xae0] sm:$0xff] }
 0x4bb   : > { %10729 = vmatpush2.bf16.msra.mxu1 %v12840_v35  ;;  %10766 = vmatpush2.bf16.msra.mxu0 %v13128_v41  ;;  %v3361_v35 = vld [vmem:[%s18685_s6 + $0x2418] sm:$0xff]  ;;  %v12203_v28 = vcombine.high %v2546_v17, %v2554_v63  ;;  %v2242_v4 = vld [vmem:[%s18685_s6 + $0x120] sm:$0xff] }
 0x4bc   : > { %10730 = vmatprep.subr.bf16.mxu1 %v12825_v16  ;;  %10767 = vmatprep.subr.bf16.mxu0 %v13113_v56  ;;  %v3369_v41 = vld [vmem:[%s18685_s6 + $0x2458] sm:$0xff]  ;;  %v2306_v16 = vld [vmem:[%s18685_s6 + $0x320] sm:$0xff] }
 0x4bd   : > { %v2314_v56 = vld [vmem:[%s18685_s6 + $0x360] sm:$0xff]  ;;  %v13017_v46 = vcombine.high %v3361_v35, %v3369_v41  ;;  %v13016_v25 = vcombine.low %v3361_v35, %v3369_v41  ;;  %v12202_v35 = vcombine.low %v2546_v17, %v2554_v63 }
 0x4be   : > { %v11962_v51 = vcombine.low %v2306_v16, %v2314_v56  ;;  %v2250_v23 = vld [vmem:[%s18685_s6 + $0x160] sm:$0xff] }
 0x4bf   : > { %10731 = vmatpush2.bf16.msra.mxu1 %v12824_v24  ;;  %10768 = vmatpush2.bf16.msra.mxu0 %v13112_v59  ;;  %v11963_v24 = vcombine.high %v2306_v16, %v2314_v56  ;;  %v2298_v59 = vld [vmem:[%s18685_s6 + $0x2e0] sm:$0xff]  ;;  %v11899_v16 = vcombine.high %v2242_v4, %v2250_v23 }
 0x4c0   : > { %10732 = vmatprep.subr.bf16.mxu1 %v12809_v40  ;;  %10769 = vmatprep.subr.bf16.mxu0 %v13097_v5  ;;  %v2578_v40 = vld [vmem:[%s18685_s6 + $0xba0] sm:$0xff]  ;;  %v11946_v48 = vcombine.low %v2290_v32, %v2298_v59 }
 0x4c1   : > { %v2586_v5 = vld [vmem:[%s18685_s6 + $0xbe0] sm:$0xff] }
 0x4c2   : > { %v2434_v17 = vld [vmem:[%s18685_s6 + $0x720] sm:$0xff] }
 0x4c3   : > { %10733 = vmatpush2.bf16.msra.mxu1 %v12808_v9  ;;  %10770 = vmatpush2.bf16.msra.mxu0 %v13096_v22  ;;  %v11947_v9 = vcombine.high %v2290_v32, %v2298_v59  ;;  %v12235_v22 = vcombine.high %v2578_v40, %v2586_v5  ;;  %v2522_v32 = vld [vmem:[%s18685_s6 + $0x9e0] sm:$0xff] }
 0x4c4   : > { %10734 = vmatprep.subr.bf16.mxu1 %v12793_v1  ;;  %10771 = vmatprep.subr.bf16.mxu0 %v13081_v52  ;;  %v2274_v1 = vld [vmem:[%s18685_s6 + $0x220] sm:$0xff] }
 0x4c5   : > { %v2282_v52 = vld [vmem:[%s18685_s6 + $0x260] sm:$0xff] }
 0x4c6   : > { %v2442_v63 = vld [vmem:[%s18685_s6 + $0x760] sm:$0xff] }
 0x4c7   : > { %10735 = vmatpush2.bf16.msra.mxu1 %v12792_v45  ;;  %10772 = vmatpush2.bf16.msra.mxu0 %v13080_v34  ;;  %v12234_v45 = vcombine.low %v2578_v40, %v2586_v5 }
 0x4c8   : > { %10736 = vmatprep.subr.bf16.mxu1 %v12777_v11  ;;  %10773 = vmatprep.subr.bf16.mxu0 %v13065_v57  ;;  %v11931_v11 = vcombine.high %v2274_v1, %v2282_v52  ;;  %v2258_v57 = vld [vmem:[%s18685_s6 + $0x1a0] sm:$0xff] }
 0x4c9   : > { %v11915_v3 = vcombine.high %v2258_v57, %v2266_v15 }
 0x4cb   : > { %10737 = vmatpush2.bf16.msra.mxu1 %v12776_v49  ;;  %10774 = vmatpush2.bf16.msra.mxu0 %v13064_v30  ;;  %v11930_v30 = vcombine.low %v2274_v1, %v2282_v52 }
 0x4cc   : > { %10738 = vmatprep.subr.bf16.mxu1 %v12761_v44  ;;  %10775 = vmatprep.subr.bf16.mxu0 %v13049_v47  ;;  %v12218_v44 = vcombine.low %v2562_v58, %v2570_v38  ;;  %v2450_v38 = vld [vmem:[%s18685_s6 + $0x7a0] sm:$0xff] }
 0x4cf   : > { %10739 = vmatpush2.bf16.msra.mxu1 %v12760_v36  ;;  %10776 = vmatpush2.bf16.msra.mxu0 %v13048_v10  ;;  %v2530_v36 = vld [vmem:[%s18685_s6 + $0xa20] sm:$0xff] }
 0x4d0   : > { %10777 = vmatprep.subr.bf16.mxu0 %v13033_v31  ;;  %10790 = vmatprep.subr.bf16.mxu1 %v11979_v18  ;;  %v2538_v10 = vld [vmem:[%s18685_s6 + $0xa60] sm:$0xff]  ;;  %v11914_v18 = vcombine.low %v2258_v57, %v2266_v15 }
 0x4d1   : > { %v12187_v56 = vcombine.high %v2530_v36, %v2538_v10  ;;  %v12186_v59 = vcombine.low %v2530_v36, %v2538_v10  ;;  %v2418_v36 = vld [vmem:[%s18685_s6 + $0x6a0] sm:$0xff] }
 0x4d2   : > { %v16624_v2 = vpop.f32.mrf.mxu1  ;;  %10741 = vmatmul.mubr.bf16.vlgmr.msra.gmra.mxu1 %v14990_v39  ;;  %v2426_v10 = vld [vmem:[%s18685_s6 + $0x6e0] sm:$0xff] }
 0x4d3   : > { %10778 = vmatpush2.bf16.msra.mxu0 %v13032_v20  ;;  %10791 = vmatpush1.bf16.msra.mxu1 %v11978_v42  ;;  %v2226_v20 = vld [vmem:[%s18685_s6 + $0xa0] sm:$0xff] }
 0x4d4   : > { %10822 = vmatprep.mubr.bf16.mxu1 %v14714_v27  ;;  %v16628_v26 = vpop.f32.mrf.mxu1  ;;  %10779 = vmatprep.subr.bf16.mxu0 %v13017_v46  ;;  %v2234_v42 = vld [vmem:[%s18685_s6 + $0xe0] sm:$0xff] }
 0x4d5   : > { %10792 = vmatprep.subr.bf16.mxu1 %v11963_v24  ;;  %v2514_v46 = vld [vmem:[%s18685_s6 + $0x9a0] sm:$0xff]  ;;  %v11898_v24 = vcombine.low %v2242_v4, %v2250_v23  ;;  %v11883_v40 = vcombine.high %v2226_v20, %v2234_v42  ;;  %v11882_v1 = vcombine.low %v2226_v20, %v2234_v42  ;;  %v12091_v4 = vcombine.high %v2434_v17, %v2442_v63 }
 0x4d6   : > { %v10500_v33 = vpop.f32.mrf.mxu1  ;;  %v12171_v5 = vcombine.high %v2514_v46, %v2522_v32  ;;  %v12170_v52 = vcombine.low %v2514_v46, %v2522_v32  ;;  %v2402_v20 = vld [vmem:[%s18685_s6 + $0x620] sm:$0xff] }
 0x4d7   : > { %10780 = vmatpush2.bf16.msra.mxu0 %v13016_v25  ;;  %10793 = vmatpush1.bf16.msra.mxu1 %v11962_v51  ;;  %v2210_v25 = vld [vmem:[%s18685_s6 + $0x20] sm:$0xff] }
 0x4d8   : > { %v10501_v34 = vpop.f32.mrf.mxu1  ;;  %10794 = vmatprep.subr.bf16.mxu1 %v11947_v9  ;;  %10831 = vmatprep.subr.bf16.mxu0 %v12235_v22  ;;  %v2218_v51 = vld [vmem:[%s18685_s6 + $0x60] sm:$0xff] }
 0x4d9   : > { %v2498_v9 = vld [vmem:[%s18685_s6 + $0x920] sm:$0xff]  ;;  %v11867_v33 = vcombine.high %v2210_v25, %v2218_v51 }
 0x4da   : > { %v16654_v49 = vpop.f32.mrf.mxu0  ;;  %10782 = vmatmul.mubr.bf16.vlgmr.msra.gmra.mxu0 %v15169_v14  ;;  %v2506_v22 = vld [vmem:[%s18685_s6 + $0x960] sm:$0xff] }
 0x4db   : > { %10795 = vmatpush1.bf16.msra.mxu1 %v11946_v48  ;;  %10832 = vmatpush1.bf16.msra.mxu0 %v12234_v45  ;;  %v12155_v58 = vcombine.high %v2498_v9, %v2506_v22  ;;  %v2458_v48 = vld [vmem:[%s18685_s6 + $0x7e0] sm:$0xff]  ;;  %v12154_v57 = vcombine.low %v2498_v9, %v2506_v22 }
 0x4dc   : > { %10863 = vmatprep.mubr.bf16.mxu0 %v14743_v43  ;;  %v16658_v47 = vpop.f32.mrf.mxu0  ;;  %10796 = vmatprep.subr.bf16.mxu1 %v11931_v11  ;;  %v2482_v45 = vld [vmem:[%s18685_s6 + $0x8a0] sm:$0xff]  ;;  %v11866_v11 = vcombine.low %v2210_v25, %v2218_v51 }
 0x4dd   : > { %10833 = vmatprep.subr.bf16.mxu0 %v12219_v37  ;;  %v2490_v34 = vld [vmem:[%s18685_s6 + $0x8e0] sm:$0xff]  ;;  %v12107_v37 = vcombine.high %v2450_v38, %v2458_v48 }
 0x4de   : > { %v10541_v31 = vpop.f32.mrf.mxu0  ;;  %v12139_v15 = vcombine.high %v2482_v45, %v2490_v34  ;;  %v2410_v42 = vld [vmem:[%s18685_s6 + $0x660] sm:$0xff] }
 0x4df   : > { %10797 = vmatpush1.bf16.msra.mxu1 %v11930_v30  ;;  %10834 = vmatpush1.bf16.msra.mxu0 %v12218_v44  ;;  %v2466_v30 = vld [vmem:[%s18685_s6 + $0x820] sm:$0xff] }
 0x4e0   : > { %v10542_v41 = vpop.f32.mrf.mxu0  ;;  %10798 = vmatprep.subr.bf16.mxu1 %v11915_v3  ;;  %10835 = vmatprep.subr.bf16.mxu0 %v12203_v28  ;;  %v2474_v44 = vld [vmem:[%s18685_s6 + $0x860] sm:$0xff]  ;;  %v12106_v3 = vcombine.low %v2450_v38, %v2458_v48  ;;  %v12138_v28 = vcombine.low %v2482_v45, %v2490_v34 }
 0x4e1   : > { %v12123_v23 = vcombine.high %v2466_v30, %v2474_v44  ;;  %v2706_v31 = vld [vmem:[%s18685_s6 + $0xfa0] sm:$0xff]  ;;  %v12122_v41 = vcombine.low %v2466_v30, %v2474_v44 }
 0x4e2   : > { %v2690_v46 = vld [vmem:[%s18685_s6 + $0xf20] sm:$0xff] }
 0x4e3   : > { %10799 = vmatpush1.bf16.msra.mxu1 %v11914_v18  ;;  %10836 = vmatpush1.bf16.msra.mxu0 %v12202_v35  ;;  %v2714_v18 = vld [vmem:[%s18685_s6 + $0xfe0] sm:$0xff]  ;;  %v12090_v35 = vcombine.low %v2434_v17, %v2442_v63 }
 0x4e4   : > { %10800 = vmatprep.subr.bf16.mxu1 %v11899_v16  ;;  %10837 = vmatprep.subr.bf16.mxu0 %v12187_v56  ;;  %v12075_v16 = vcombine.high %v2418_v36, %v2426_v10  ;;  %v12363_v56 = vcombine.high %v2706_v31, %v2714_v18  ;;  %v2698_v32 = vld [vmem:[%s18685_s6 + $0xf60] sm:$0xff] }
 0x4e5   : > { %v2386_v25 = vld [vmem:[%s18685_s6 + $0x5a0] sm:$0xff] }
 0x4e6   : > { %v2394_v51 = vld [vmem:[%s18685_s6 + $0x5e0] sm:$0xff] }
 0x4e7   : > { %10801 = vmatpush1.bf16.msra.mxu1 %v11898_v24  ;;  %10838 = vmatpush1.bf16.msra.mxu0 %v12186_v59  ;;  %v12074_v24 = vcombine.low %v2418_v36, %v2426_v10  ;;  %v12362_v59 = vcombine.low %v2706_v31, %v2714_v18  ;;  %v2674_v9 = vld [vmem:[%s18685_s6 + $0xea0] sm:$0xff] }
 0x4e8   : > { %10802 = vmatprep.subr.bf16.mxu1 %v11883_v40  ;;  %10839 = vmatprep.subr.bf16.mxu0 %v12171_v5  ;;  %v12059_v40 = vcombine.high %v2402_v20, %v2410_v42  ;;  %v12347_v5 = vcombine.high %v2690_v46, %v2698_v32  ;;  %v2682_v22 = vld [vmem:[%s18685_s6 + $0xee0] sm:$0xff] }
 0x4e9   : > { %v2370_v38 = vld [vmem:[%s18685_s6 + $0x520] sm:$0xff] }
 0x4ea   : > { %v2378_v48 = vld [vmem:[%s18685_s6 + $0x560] sm:$0xff] }
 0x4eb   : > { %10803 = vmatpush1.bf16.msra.mxu1 %v11882_v1  ;;  %10840 = vmatpush1.bf16.msra.mxu0 %v12170_v52  ;;  %v12058_v1 = vcombine.low %v2402_v20, %v2410_v42  ;;  %v12346_v52 = vcombine.low %v2690_v46, %v2698_v32  ;;  %v2658_v45 = vld [vmem:[%s18685_s6 + $0xe20] sm:$0xff] }
 0x4ec   : > { %10804 = vmatprep.subr.bf16.mxu1 %v11867_v33  ;;  %10841 = vmatprep.subr.bf16.mxu0 %v12155_v58  ;;  %v12043_v33 = vcombine.high %v2386_v25, %v2394_v51  ;;  %v12331_v58 = vcombine.high %v2674_v9, %v2682_v22  ;;  %v2666_v34 = vld [vmem:[%s18685_s6 + $0xe60] sm:$0xff] }
 0x4ed   : > { %v2354_v17 = vld [vmem:[%s18685_s6 + $0x4a0] sm:$0xff] }
 0x4ee   : > { %v2362_v63 = vld [vmem:[%s18685_s6 + $0x4e0] sm:$0xff] }
 0x4ef   : > { %10805 = vmatpush1.bf16.msra.mxu1 %v11866_v11  ;;  %10842 = vmatpush1.bf16.msra.mxu0 %v12154_v57  ;;  %v12042_v11 = vcombine.low %v2386_v25, %v2394_v51  ;;  %v12330_v57 = vcombine.low %v2674_v9, %v2682_v22  ;;  %v2642_v30 = vld [vmem:[%s18685_s6 + $0xda0] sm:$0xff] }
 0x4f0   : > { %10806 = vmatprep.subr.bf16.mxu1 %v12107_v37  ;;  %10843 = vmatprep.subr.bf16.mxu0 %v12139_v15  ;;  %v12027_v37 = vcombine.high %v2370_v38, %v2378_v48  ;;  %v12315_v15 = vcombine.high %v2658_v45, %v2666_v34  ;;  %v2650_v44 = vld [vmem:[%s18685_s6 + $0xde0] sm:$0xff] }
 0x4f1   : > { %v2338_v36 = vld [vmem:[%s18685_s6 + $0x420] sm:$0xff] }
 0x4f2   : > { %v2346_v10 = vld [vmem:[%s18685_s6 + $0x460] sm:$0xff] }
 0x4f3   : > { %10807 = vmatpush2.bf16.msra.mxu1 %v12106_v3  ;;  %10844 = vmatpush1.bf16.msra.mxu0 %v12138_v28  ;;  %v12026_v3 = vcombine.low %v2370_v38, %v2378_v48  ;;  %v12314_v28 = vcombine.low %v2658_v45, %v2666_v34  ;;  %v2626_v31 = vld [vmem:[%s18685_s6 + $0xd20] sm:$0xff]  ;;  %v10499_v48 = vadd.f32 %v16628_v26, %v16457_v62 }
 0x4f4   : > { %10808 = vmatprep.subr.bf16.mxu1 %v12091_v4  ;;  %10845 = vmatprep.subr.bf16.mxu0 %v12123_v23  ;;  %v12011_v4 = vcombine.high %v2354_v17, %v2362_v63  ;;  %v12299_v23 = vcombine.high %v2642_v30, %v2650_v44  ;;  %v2634_v18 = vld [vmem:[%s18685_s6 + $0xd60] sm:$0xff] }
 0x4f5   : > { %v2610_v20 = vld [vmem:[%s18685_s6 + $0xca0] sm:$0xff]  ;;  %v10540_v26 = vadd.f32 %v16658_v47, %v10499_v48 }
 0x4f6   : > { %v2618_v42 = vld [vmem:[%s18685_s6 + $0xce0] sm:$0xff] }
 0x4f7   : > { %10809 = vmatpush2.bf16.msra.mxu1 %v12090_v35  ;;  %10846 = vmatpush1.bf16.msra.mxu0 %v12122_v41  ;;  %v12010_v35 = vcombine.low %v2354_v17, %v2362_v63  ;;  %v12298_v41 = vcombine.low %v2642_v30, %v2650_v44  ;;  %v2834_v46 = vld [vmem:[%s18685_s6 + $0x13a0] sm:$0xff] }
 0x4f8   : > { %10810 = vmatprep.subr.bf16.mxu1 %v12075_v16  ;;  %10847 = vmatprep.subr.bf16.mxu0 %v12363_v56  ;;  %v11995_v16 = vcombine.high %v2338_v36, %v2346_v10  ;;  %v12283_v56 = vcombine.high %v2626_v31, %v2634_v18  ;;  %v2842_v32 = vld [vmem:[%s18685_s6 + $0x13e0] sm:$0xff] }
 0x4f9   : > { %v2594_v25 = vld [vmem:[%s18685_s6 + $0xc20] sm:$0xff] }
 0x4fa   : > { %v2602_v51 = vld [vmem:[%s18685_s6 + $0xc60] sm:$0xff] }
 0x4fb   : > { %10811 = vmatpush2.bf16.msra.mxu1 %v12074_v24  ;;  %10848 = vmatpush2.bf16.msra.mxu0 %v12362_v59  ;;  %v11994_v24 = vcombine.low %v2338_v36, %v2346_v10  ;;  %v12282_v59 = vcombine.low %v2626_v31, %v2634_v18  ;;  %v2818_v9 = vld [vmem:[%s18685_s6 + $0x1320] sm:$0xff]  ;;  %v12250_v62 = vcombine.low %v2594_v25, %v2602_v51 }
 0x4fc   : > { %10812 = vmatprep.subr.bf16.mxu1 %v12059_v40  ;;  %10849 = vmatprep.subr.bf16.mxu0 %v12347_v5  ;;  %v12267_v40 = vcombine.high %v2610_v20, %v2618_v42  ;;  %v12491_v5 = vcombine.high %v2834_v46, %v2842_v32  ;;  %v2826_v22 = vld [vmem:[%s18685_s6 + $0x1360] sm:$0xff] }
 0x4fd   : > { %v2802_v38 = vld [vmem:[%s18685_s6 + $0x12a0] sm:$0xff]  ;;  %v12475_v34 = vcombine.high %v2818_v9, %v2826_v22 }
 0x4fe   : > { %v2786_v44 = vld [vmem:[%s18685_s6 + $0x1220] sm:$0xff] }
 0x4ff   : > { %10813 = vmatpush2.bf16.msra.mxu1 %v12058_v1  ;;  %10850 = vmatpush2.bf16.msra.mxu0 %v12346_v52  ;;  %v10497_v1 = vadd.f32 %v16624_v2, %v16451_v6  ;;  %v12266_v52 = vcombine.low %v2610_v20, %v2618_v42  ;;  %v2810_v6 = vld [vmem:[%s18685_s6 + $0x12e0] sm:$0xff] }
 0x500   : > { %10814 = vmatprep.subr.bf16.mxu1 %v12043_v33  ;;  %10851 = vmatprep.subr.bf16.mxu0 %v12331_v58  ;;  %v12490_v33 = vcombine.low %v2834_v46, %v2842_v32  ;;  %v12251_v58 = vcombine.high %v2594_v25, %v2602_v51  ;;  %v3090_v2 = vld [vmem:[%s18685_s6 + $0x1ba0] sm:$0xff]  ;;  %v12459_v17 = vcombine.high %v2802_v38, %v2810_v6 }
 0x501   : > { %v10538_v45 = vadd.f32 %v16654_v49, %v10497_v1  ;;  %v2794_v47 = vld [vmem:[%s18685_s6 + $0x1260] sm:$0xff] }
 0x502   : > { %v12443_v31 = vcombine.high %v2786_v44, %v2794_v47  ;;  %v2770_v18 = vld [vmem:[%s18685_s6 + $0x11a0] sm:$0xff]  ;;  %v12442_v42 = vcombine.low %v2786_v44, %v2794_v47 }
 0x503   : > { %10815 = vmatpush2.bf16.msra.mxu1 %v12042_v11  ;;  %10852 = vmatpush2.bf16.msra.mxu0 %v12330_v57  ;;  %v3098_v11 = vld [vmem:[%s18685_s6 + $0x1be0] sm:$0xff] }
 0x504   : > { %10816 = vmatprep.subr.bf16.mxu1 %v12027_v37  ;;  %10853 = vmatprep.subr.bf16.mxu0 %v12315_v15  ;;  %v12474_v37 = vcombine.low %v2818_v9, %v2826_v22  ;;  %v12747_v63 = vcombine.high %v3090_v2, %v3098_v11  ;;  %v12746_v36 = vcombine.low %v3090_v2, %v3098_v11  ;;  %v3042_v25 = vld [vmem:[%s18685_s6 + $0x1a20] sm:$0xff] }
 0x505   : > { %v3050_v51 = vld [vmem:[%s18685_s6 + $0x1a60] sm:$0xff] }
 0x506   : > { %v2746_v48 = vld [vmem:[%s18685_s6 + $0x10e0] sm:$0xff]  ;;  %v12698_v2 = vcombine.low %v3042_v25, %v3050_v51 }
 0x507   : > { %10817 = vmatpush2.bf16.msra.mxu1 %v12026_v3  ;;  %10854 = vmatpush2.bf16.msra.mxu0 %v12314_v28  ;;  %v3074_v28 = vld [vmem:[%s18685_s6 + $0x1b20] sm:$0xff] }
 0x508   : > { %10818 = vmatprep.subr.bf16.mxu1 %v12011_v4  ;;  %10855 = vmatprep.subr.bf16.mxu0 %v12299_v23  ;;  %v3082_v4 = vld [vmem:[%s18685_s6 + $0x1b60] sm:$0xff]  ;;  %v12458_v23 = vcombine.low %v2802_v38, %v2810_v6 }
 0x509   : > { %v12730_v46 = vcombine.low %v3074_v28, %v3082_v4  ;;  %v2738_v38 = vld [vmem:[%s18685_s6 + $0x10a0] sm:$0xff] }
 0x50a   : > { %v12395_v11 = vcombine.high %v2738_v38, %v2746_v48  ;;  %v2962_v44 = vld [vmem:[%s18685_s6 + $0x17a0] sm:$0xff] }
 0x50b   : > { %10819 = vmatpush2.bf16.msra.mxu1 %v12010_v35  ;;  %10856 = vmatpush2.bf16.msra.mxu0 %v12298_v41  ;;  %v12731_v35 = vcombine.high %v3074_v28, %v3082_v4  ;;  %v2778_v41 = vld [vmem:[%s18685_s6 + $0x11e0] sm:$0xff] }
 0x50c   : > { %10820 = vmatprep.subr.bf16.mxu1 %v11995_v16  ;;  %10857 = vmatprep.subr.bf16.mxu0 %v12283_v56  ;;  %v3058_v16 = vld [vmem:[%s18685_s6 + $0x1aa0] sm:$0xff]  ;;  %v12426_v22 = vcombine.low %v2770_v18, %v2778_v41 }
 0x50d   : > { %v3066_v56 = vld [vmem:[%s18685_s6 + $0x1ae0] sm:$0xff] }
 0x50e   : > { %v12714_v1 = vcombine.low %v3058_v16, %v3066_v56  ;;  %v2970_v47 = vld [vmem:[%s18685_s6 + $0x17e0] sm:$0xff] }
 0x50f   : > { %10821 = vmatpush2.bf16.msra.mxu1 %v11994_v24  ;;  %10858 = vmatpush2.bf16.msra.mxu0 %v12282_v59  ;;  %v12427_v24 = vcombine.high %v2770_v18, %v2778_v41  ;;  %v12715_v59 = vcombine.high %v3058_v16, %v3066_v56  ;;  %v3002_v28 = vld [vmem:[%s18685_s6 + $0x18e0] sm:$0xff]  ;;  %v12618_v16 = vcombine.low %v2962_v44, %v2970_v47 }
 0x510   : > { %10859 = vmatprep.subr.bf16.mxu0 %v12267_v40  ;;  %10872 = vmatprep.subr.bf16.mxu1 %v12491_v5  ;;  %v2754_v40 = vld [vmem:[%s18685_s6 + $0x1120] sm:$0xff] }
 0x511   : > { %v2762_v5 = vld [vmem:[%s18685_s6 + $0x1160] sm:$0xff] }
 0x512   : > { %v10578_v57 = vpop.f32.mrf.mxu1  ;;  %10823 = vmatmul.mubr.bf16.vlgmr.msra.gmra.mxu1 %v14716_v55  ;;  %v12410_v6 = vcombine.low %v2754_v40, %v2762_v5  ;;  %v2954_v18 = vld [vmem:[%s18685_s6 + $0x1760] sm:$0xff] }
 0x513   : > { %v10579_v49 = vadd.f32 %v10578_v57, %v10538_v45  ;;  %10860 = vmatpush2.bf16.msra.mxu0 %v12266_v52  ;;  %10873 = vmatpush1.bf16.msra.mxu1 %v12490_v33  ;;  %v12411_v33 = vcombine.high %v2754_v40, %v2762_v5  ;;  %v3026_v45 = vld [vmem:[%s18685_s6 + $0x19a0] sm:$0xff] }
 0x514   : > { %10904 = vmatprep.mubr.bf16.mxu1 %v14792_v19  ;;  %v10580_v15 = vpop.f32.mrf.mxu1  ;;  %10861 = vmatprep.subr.bf16.mxu0 %v12251_v58  ;;  %v12699_v58 = vcombine.high %v3042_v25, %v3050_v51  ;;  %v2986_v41 = vld [vmem:[%s18685_s6 + $0x1860] sm:$0xff] }
 0x515   : > { %11614 = vst [vmem:[%s15798_s16 + $0x20] sm:$0xff] %v10579_v49  ;;  %v10581_v30 = vadd.f32 %v10580_v15, %v10540_v26  ;;  %10874 = vmatprep.subr.bf16.mxu1 %v12475_v34  ;;  %v3034_v34 = vld [vmem:[%s18685_s6 + $0x19e0] sm:$0xff]  ;;  %v12394_v15 = vcombine.low %v2738_v38, %v2746_v48 }
 0x516   : > { %v10582_v3 = vpop.f32.mrf.mxu1  ;;  %v12683_v57 = vcombine.high %v3026_v45, %v3034_v34  ;;  %v2730_v26 = vld [vmem:[%s18685_s6 + $0x1060] sm:$0xff] }
 0x517   : > { %11615 = vst [vmem:[%s15798_s16 + $0x28] sm:$0xff] %v10581_v30  ;;  %10862 = vmatpush2.bf16.msra.mxu0 %v12250_v62  ;;  %10875 = vmatpush1.bf16.msra.mxu1 %v12474_v37  ;;  %v2722_v62 = vld [vmem:[%s18685_s6 + $0x1020] sm:$0xff] }
 0x518   : > { %v10583_v10 = vpop.f32.mrf.mxu1  ;;  %10876 = vmatprep.subr.bf16.mxu1 %v12459_v17  ;;  %10913 = vmatprep.subr.bf16.mxu0 %v12747_v63  ;;  %v3010_v49 = vld [vmem:[%s18685_s6 + $0x1920] sm:$0xff]  ;;  %v12682_v17 = vcombine.low %v3026_v45, %v3034_v34  ;;  %v12379_v63 = vcombine.high %v2722_v62, %v2730_v26  ;;  %v12378_v4 = vcombine.low %v2722_v62, %v2730_v26 }
 0x519   : > { %v3018_v37 = vld [vmem:[%s18685_s6 + $0x1960] sm:$0xff] }
 0x51a   : > { %v16862_v20 = vpop.f32.mrf.mxu0  ;;  %10864 = vmatmul.mubr.bf16.vlgmr.msra.gmra.mxu0 %v14748_v53  ;;  %v12667_v30 = vcombine.high %v3010_v49, %v3018_v37  ;;  %v2994_v3 = vld [vmem:[%s18685_s6 + $0x18a0] sm:$0xff] }
 0x51b   : > { %10877 = vmatpush1.bf16.msra.mxu1 %v12458_v23  ;;  %10914 = vmatpush1.bf16.msra.mxu0 %v12746_v36  ;;  %v12666_v23 = vcombine.low %v3010_v49, %v3018_v37  ;;  %v12619_v36 = vcombine.high %v2962_v44, %v2970_v47  ;;  %v12651_v10 = vcombine.high %v2994_v3, %v3002_v28  ;;  %v3218_v40 = vld [vmem:[%s18685_s6 + $0x1fa0] sm:$0xff] }
 0x51c   : > { %10945 = vmatprep.mubr.bf16.mxu0 %v14833_v8  ;;  %v16866_v32 = vpop.f32.mrf.mxu0  ;;  %10878 = vmatprep.subr.bf16.mxu1 %v12443_v31  ;;  %v2946_v31 = vld [vmem:[%s18685_s6 + $0x1720] sm:$0xff]  ;;  %v12650_v56 = vcombine.low %v2994_v3, %v3002_v28 }
 0x51d   : > { %10915 = vmatprep.subr.bf16.mxu0 %v12731_v35  ;;  %v2978_v35 = vld [vmem:[%s18685_s6 + $0x1820] sm:$0xff]  ;;  %v12602_v25 = vcombine.low %v2946_v31, %v2954_v18 }
 0x51e   : > { %v10623_v9 = vpop.f32.mrf.mxu0  ;;  %v3226_v5 = vld [vmem:[%s18685_s6 + $0x1fe0] sm:$0xff]  ;;  %v12634_v51 = vcombine.low %v2978_v35, %v2986_v41 }
 0x51f   : > { %10879 = vmatpush1.bf16.msra.mxu1 %v12442_v42  ;;  %10916 = vmatpush1.bf16.msra.mxu0 %v12730_v46  ;;  %v12603_v42 = vcombine.high %v2946_v31, %v2954_v18  ;;  %v12635_v46 = vcombine.high %v2978_v35, %v2986_v41  ;;  %v12874_v48 = vcombine.low %v3218_v40, %v3226_v5 }
 0x520   : > { %v10624_v52 = vpop.f32.mrf.mxu0  ;;  %10880 = vmatprep.subr.bf16.mxu1 %v12427_v24  ;;  %10917 = vmatprep.subr.bf16.mxu0 %v12715_v59  ;;  %v2930_v24 = vld [vmem:[%s18685_s6 + $0x16a0] sm:$0xff] }
 0x521   : > { %v2938_v59 = vld [vmem:[%s18685_s6 + $0x16e0] sm:$0xff] }
 0x522   : > { %v12587_v9 = vcombine.high %v2930_v24, %v2938_v59  ;;  %v2922_v52 = vld [vmem:[%s18685_s6 + $0x1660] sm:$0xff]  ;;  %v12586_v38 = vcombine.low %v2930_v24, %v2938_v59 }
 0x523   : > { %10881 = vmatpush1.bf16.msra.mxu1 %v12426_v22  ;;  %10918 = vmatpush1.bf16.msra.mxu0 %v12714_v1  ;;  %v12875_v22 = vcombine.high %v3218_v40, %v3226_v5  ;;  %v2914_v1 = vld [vmem:[%s18685_s6 + $0x1620] sm:$0xff] }
 0x524   : > { %10882 = vmatprep.subr.bf16.mxu1 %v12411_v33  ;;  %10919 = vmatprep.subr.bf16.mxu0 %v12699_v58  ;;  %v3202_v33 = vld [vmem:[%s18685_s6 + $0x1f20] sm:$0xff]  ;;  %v12571_v45 = vcombine.high %v2914_v1, %v2922_v52  ;;  %v12570_v62 = vcombine.low %v2914_v1, %v2922_v52 }
 0x525   : > { %v3210_v58 = vld [vmem:[%s18685_s6 + $0x1f60] sm:$0xff] }
 0x526   : > { %v12859_v34 = vcombine.high %v3202_v33, %v3210_v58  ;;  %v12858_v26 = vcombine.low %v3202_v33, %v3210_v58 }
 0x527   : > { %10883 = vmatpush1.bf16.msra.mxu1 %v12410_v6  ;;  %10920 = vmatpush1.bf16.msra.mxu0 %v12698_v2  ;;  %v2898_v6 = vld [vmem:[%s18685_s6 + $0x15a0] sm:$0xff] }
 0x528   : > { %10884 = vmatprep.subr.bf16.mxu1 %v12395_v11  ;;  %10921 = vmatprep.subr.bf16.mxu0 %v12683_v57  ;;  %v2906_v2 = vld [vmem:[%s18685_s6 + $0x15e0] sm:$0xff] }
 0x529   : > { %v3186_v11 = vld [vmem:[%s18685_s6 + $0x1ea0] sm:$0xff]  ;;  %v12555_v49 = vcombine.high %v2898_v6, %v2906_v2  ;;  %v12554_v44 = vcombine.low %v2898_v6, %v2906_v2 }
 0x52a   : > { %v3194_v57 = vld [vmem:[%s18685_s6 + $0x1ee0] sm:$0xff] }
 0x52b   : > { %10885 = vmatpush1.bf16.msra.mxu1 %v12394_v15  ;;  %10922 = vmatpush1.bf16.msra.mxu0 %v12682_v17  ;;  %v12843_v37 = vcombine.high %v3186_v11, %v3194_v57  ;;  %v2882_v15 = vld [vmem:[%s18685_s6 + $0x1520] sm:$0xff]  ;;  %v12842_v47 = vcombine.low %v3186_v11, %v3194_v57 }
 0x52c   : > { %10886 = vmatprep.subr.bf16.mxu1 %v12379_v63  ;;  %10923 = vmatprep.subr.bf16.mxu0 %v12667_v30  ;;  %v2890_v17 = vld [vmem:[%s18685_s6 + $0x1560] sm:$0xff] }
 0x52d   : > { %v3170_v63 = vld [vmem:[%s18685_s6 + $0x1e20] sm:$0xff]  ;;  %v12539_v3 = vcombine.high %v2882_v15, %v2890_v17  ;;  %v12538_v31 = vcombine.low %v2882_v15, %v2890_v17 }
 0x52e   : > { %v3178_v30 = vld [vmem:[%s18685_s6 + $0x1e60] sm:$0xff] }
 0x52f   : > { %10887 = vmatpush1.bf16.msra.mxu1 %v12378_v4  ;;  %10924 = vmatpush1.bf16.msra.mxu0 %v12666_v23  ;;  %v12827_v28 = vcombine.high %v3170_v63, %v3178_v30  ;;  %v2866_v4 = vld [vmem:[%s18685_s6 + $0x14a0] sm:$0xff]  ;;  %v12826_v18 = vcombine.low %v3170_v63, %v3178_v30  ;;  %v2323_v63 = vld [vmem:[%s18685_s6 + $0x3a8] sm:$0xff] }
 0x530   : > { %10888 = vmatprep.subr.bf16.mxu1 %v12619_v36  ;;  %10925 = vmatprep.subr.bf16.mxu0 %v12651_v10  ;;  %v2874_v23 = vld [vmem:[%s18685_s6 + $0x14e0] sm:$0xff]  ;;  %v2331_v30 = vld [vmem:[%s18685_s6 + $0x3e8] sm:$0xff] }
 0x531   : > { %v3154_v36 = vld [vmem:[%s18685_s6 + $0x1da0] sm:$0xff]  ;;  %v12523_v35 = vcombine.high %v2866_v4, %v2874_v23  ;;  %v12522_v24 = vcombine.low %v2866_v4, %v2874_v23 }
 0x532   : > { %v3162_v10 = vld [vmem:[%s18685_s6 + $0x1de0] sm:$0xff] }
 0x533   : > { %10889 = vmatpush2.bf16.msra.mxu1 %v12618_v16  ;;  %10926 = vmatpush1.bf16.msra.mxu0 %v12650_v56  ;;  %v12811_v41 = vcombine.high %v3154_v36, %v3162_v10  ;;  %v2850_v16 = vld [vmem:[%s18685_s6 + $0x1420] sm:$0xff]  ;;  %v12810_v59 = vcombine.low %v3154_v36, %v3162_v10  ;;  %v11981_v36 = vcombine.high %v2323_v63, %v2331_v30 }
 0x534   : > { %10890 = vmatprep.subr.bf16.mxu1 %v12603_v42  ;;  %10927 = vmatprep.subr.bf16.mxu0 %v12635_v46  ;;  %v2858_v56 = vld [vmem:[%s18685_s6 + $0x1460] sm:$0xff] }
 0x535   : > { %v3138_v42 = vld [vmem:[%s18685_s6 + $0x1d20] sm:$0xff]  ;;  %v12507_v40 = vcombine.high %v2850_v16, %v2858_v56  ;;  %v12506_v1 = vcombine.low %v2850_v16, %v2858_v56  ;;  %v11980_v56 = vcombine.low %v2323_v63, %v2331_v30 }
 0x536   : > { %v3146_v46 = vld [vmem:[%s18685_s6 + $0x1d60] sm:$0xff] }
 0x537   : > { %10891 = vmatpush2.bf16.msra.mxu1 %v12602_v25  ;;  %10928 = vmatpush1.bf16.msra.mxu0 %v12634_v51  ;;  %v12795_v5 = vcombine.high %v3138_v42, %v3146_v46  ;;  %v3122_v25 = vld [vmem:[%s18685_s6 + $0x1ca0] sm:$0xff]  ;;  %v12794_v52 = vcombine.low %v3138_v42, %v3146_v46 }
 0x538   : > { %10892 = vmatprep.subr.bf16.mxu1 %v12587_v9  ;;  %10929 = vmatprep.subr.bf16.mxu0 %v12875_v22  ;;  %v3130_v51 = vld [vmem:[%s18685_s6 + $0x1ce0] sm:$0xff] }
 0x539   : > { %v3346_v9 = vld [vmem:[%s18685_s6 + $0x23a0] sm:$0xff]  ;;  %v12779_v33 = vcombine.high %v3122_v25, %v3130_v51  ;;  %v12778_v57 = vcombine.low %v3122_v25, %v3130_v51  ;;  %v2299_v25 = vld [vmem:[%s18685_s6 + $0x2e8] sm:$0xff] }
 0x53a   : > { %v3354_v22 = vld [vmem:[%s18685_s6 + $0x23e0] sm:$0xff] }
 0x53b   : > { %10893 = vmatpush2.bf16.msra.mxu1 %v12586_v38  ;;  %10930 = vmatpush2.bf16.msra.mxu0 %v12874_v48  ;;  %v13003_v58 = vcombine.high %v3346_v9, %v3354_v22  ;;  %v13620_v38 = vld [vmem:[%s18686_s7] sm:$0xff] }
 0x53c   : > { %10894 = vmatprep.subr.bf16.mxu1 %v12571_v45  ;;  %10931 = vmatprep.subr.bf16.mxu0 %v12859_v34  ;;  %v3517_v48 = vrot.slane %v13620_v38, %v14795_v12  ;;  %v3106_v45 = vld [vmem:[%s18685_s6 + $0x1c20] sm:$0xff]  ;;  %v3521_v11 = vrot.slane %v13620_v38, %v14694_v7 }
 0x53d   : > { %v3114_v34 = vld [vmem:[%s18685_s6 + $0x1c60] sm:$0xff] }
 0x53e   : > { %v3330_v6 = vld [vmem:[%s18685_s6 + $0x2320] sm:$0xff] }
 0x53f   : > { %10895 = vmatpush2.bf16.msra.mxu1 %v12570_v62  ;;  %10932 = vmatpush2.bf16.msra.mxu0 %v12858_v26  ;;  %v3338_v2 = vld [vmem:[%s18685_s6 + $0x2360] sm:$0xff]  ;;  %v13002_v62 = vcombine.low %v3346_v9, %v3354_v22  ;;  %v12763_v26 = vcombine.high %v3106_v45, %v3114_v34 }
 0x540   : > { %10896 = vmatprep.subr.bf16.mxu1 %v12555_v49  ;;  %10933 = vmatprep.subr.bf16.mxu0 %v12843_v37  ;;  %v3314_v49 = vld [vmem:[%s18685_s6 + $0x22a0] sm:$0xff]  ;;  %v10620_v37 = vadd.f32 %v16862_v20, %v3517_v48  ;;  %v12987_v15 = vcombine.high %v3330_v6, %v3338_v2  ;;  %v2275_v48 = vld [vmem:[%s18685_s6 + $0x228] sm:$0xff] }
 0x541   : > { %v3322_v17 = vld [vmem:[%s18685_s6 + $0x22e0] sm:$0xff] }
 0x542   : > { %v12971_v23 = vcombine.high %v3314_v49, %v3322_v17  ;;  %v12970_v16 = vcombine.low %v3314_v49, %v3322_v17  ;;  %v3274_v38 = vld [vmem:[%s18685_s6 + $0x2160] sm:$0xff] }
 0x543   : > { %10897 = vmatpush2.bf16.msra.mxu1 %v12554_v44  ;;  %10934 = vmatpush2.bf16.msra.mxu0 %v12842_v47  ;;  %v12762_v47 = vcombine.low %v3106_v45, %v3114_v34  ;;  %v2283_v45 = vld [vmem:[%s18685_s6 + $0x268] sm:$0xff]  ;;  %v3258_v49 = vld [vmem:[%s18685_s6 + $0x20e0] sm:$0xff] }
 0x544   : > { %10898 = vmatprep.subr.bf16.mxu1 %v12539_v3  ;;  %10935 = vmatprep.subr.bf16.mxu0 %v12827_v28  ;;  %v10622_v3 = vadd.f32 %v16866_v32, %v3521_v11  ;;  %v12986_v28 = vcombine.low %v3330_v6, %v3338_v2  ;;  %v3306_v32 = vld [vmem:[%s18685_s6 + $0x2260] sm:$0xff]  ;;  %v11932_v63 = vcombine.low %v2275_v48, %v2283_v45 }
 0x547   : > { %10899 = vmatpush2.bf16.msra.mxu1 %v12538_v31  ;;  %10936 = vmatpush2.bf16.msra.mxu0 %v12826_v18  ;;  %v3298_v31 = vld [vmem:[%s18685_s6 + $0x2220] sm:$0xff] }
 0x548   : > { %10900 = vmatprep.subr.bf16.mxu1 %v12523_v35  ;;  %10937 = vmatprep.subr.bf16.mxu0 %v12811_v41  ;;  %v2307_v35 = vld [vmem:[%s18685_s6 + $0x328] sm:$0xff]  ;;  %v12955_v46 = vcombine.high %v3298_v31, %v3306_v32  ;;  %v12954_v9 = vcombine.low %v3298_v31, %v3306_v32 }
 0x549   : > { %v2315_v41 = vld [vmem:[%s18685_s6 + $0x368] sm:$0xff] }
 0x54a   : > { %v11964_v22 = vcombine.low %v2307_v35, %v2315_v41 }
 0x54b   : > { %10901 = vmatpush2.bf16.msra.mxu1 %v12522_v24  ;;  %10938 = vmatpush2.bf16.msra.mxu0 %v12810_v59  ;;  %v3282_v24 = vld [vmem:[%s18685_s6 + $0x21a0] sm:$0xff]  ;;  %v11965_v59 = vcombine.high %v2307_v35, %v2315_v41  ;;  %v2227_v41 = vld [vmem:[%s18685_s6 + $0xa8] sm:$0xff] }
 0x54c   : > { %10902 = vmatprep.subr.bf16.mxu1 %v12507_v40  ;;  %10939 = vmatprep.subr.bf16.mxu0 %v12795_v5  ;;  %v3290_v40 = vld [vmem:[%s18685_s6 + $0x21e0] sm:$0xff]  ;;  %v2291_v5 = vld [vmem:[%s18685_s6 + $0x2a8] sm:$0xff] }
 0x54d   : > { %v12938_v6 = vcombine.low %v3282_v24, %v3290_v40  ;;  %v11948_v2 = vcombine.low %v2291_v5, %v2299_v25  ;;  %v3482_v35 = vld [vmem:[%s18685_s6 + $0x27e0] sm:$0xff] }
 0x54f   : > { %10903 = vmatpush2.bf16.msra.mxu1 %v12506_v1  ;;  %10940 = vmatpush2.bf16.msra.mxu0 %v12794_v52  ;;  %v12939_v52 = vcombine.high %v3282_v24, %v3290_v40  ;;  %v3466_v40 = vld [vmem:[%s18685_s6 + $0x2760] sm:$0xff] }
 0x550   : > { %10941 = vmatprep.subr.bf16.mxu0 %v12779_v33  ;;  %10954 = vmatprep.subr.bf16.mxu1 %v13003_v58  ;;  %v11949_v33 = vcombine.high %v2291_v5, %v2299_v25  ;;  %v3266_v58 = vld [vmem:[%s18685_s6 + $0x2120] sm:$0xff]  ;;  %v2211_v5 = vld [vmem:[%s18685_s6 + $0x28] sm:$0xff] }
 0x551   : > { %v12922_v17 = vcombine.low %v3266_v58, %v3274_v38  ;;  %v2219_v25 = vld [vmem:[%s18685_s6 + $0x68] sm:$0xff] }
 0x552   : > { %v10660_v44 = vpop.f32.mrf.mxu1  ;;  %10905 = vmatmul.mubr.bf16.vlgmr.msra.gmra.mxu1 %v14959_v0 }
 0x553   : > { %v17044_v20 = vadd.f32 %v10660_v44, %v10620_v37  ;;  %10942 = vmatpush2.bf16.msra.mxu0 %v12778_v57  ;;  %10955 = vmatpush1.bf16.msra.mxu1 %v13002_v62  ;;  %v12923_v57 = vcombine.high %v3266_v58, %v3274_v38  ;;  %v11933_v62 = vcombine.high %v2275_v48, %v2283_v45  ;;  %v2259_v37 = vld [vmem:[%s18685_s6 + $0x1a8] sm:$0xff]  ;;  %v3442_v58 = vld [vmem:[%s18685_s6 + $0x26a0] sm:$0xff] }
 0x554   : > { %10986 = vmatprep.mubr.bf16.mxu1 %v14973_v21  ;;  %v10662_v4 = vpop.f32.mrf.mxu1  ;;  %10943 = vmatprep.subr.bf16.mxu0 %v12763_v26  ;;  %v3250_v26 = vld [vmem:[%s18685_s6 + $0x20a0] sm:$0xff]  ;;  %v2451_v48 = vld [vmem:[%s18685_s6 + $0x7a8] sm:$0xff] }
 0x555   : > { %v17047_v10 = vadd.f32 %v10662_v4, %v10622_v3  ;;  %10956 = vmatprep.subr.bf16.mxu1 %v12987_v15  ;;  %v2267_v15 = vld [vmem:[%s18685_s6 + $0x1e8] sm:$0xff]  ;;  %v12907_v30 = vcombine.high %v3250_v26, %v3258_v49  ;;  %v3242_v3 = vld [vmem:[%s18685_s6 + $0x2060] sm:$0xff] }
 0x556   : > { %v10664_v18 = vpop.f32.mrf.mxu1  ;;  %v11917_v44 = vcombine.high %v2259_v37, %v2267_v15  ;;  %v2251_v4 = vld [vmem:[%s18685_s6 + $0x168] sm:$0xff]  ;;  %v3450_v38 = vld [vmem:[%s18685_s6 + $0x26e0] sm:$0xff] }
 0x557   : > { %10944 = vmatpush2.bf16.msra.mxu0 %v12762_v47  ;;  %10957 = vmatpush1.bf16.msra.mxu1 %v12986_v28  ;;  %v3234_v47 = vld [vmem:[%s18685_s6 + $0x2020] sm:$0xff]  ;;  %v2243_v28 = vld [vmem:[%s18685_s6 + $0x128] sm:$0xff] }
 0x558   : > { %v10665_v42 = vpop.f32.mrf.mxu1  ;;  %10958 = vmatprep.subr.bf16.mxu1 %v12971_v23  ;;  %10995 = vmatprep.subr.bf16.mxu0 %v11981_v36  ;;  %v12906_v23 = vcombine.low %v3250_v26, %v3258_v49  ;;  %v11916_v36 = vcombine.low %v2259_v37, %v2267_v15  ;;  %v12891_v31 = vcombine.high %v3234_v47, %v3242_v3  ;;  %v3474_v18 = vld [vmem:[%s18685_s6 + $0x27a0] sm:$0xff]  ;;  %v2459_v45 = vld [vmem:[%s18685_s6 + $0x7e8] sm:$0xff] }
 0x559   : > { %v11901_v32 = vcombine.high %v2243_v28, %v2251_v4  ;;  %v11900_v42 = vcombine.low %v2243_v28, %v2251_v4  ;;  %v2435_v26 = vld [vmem:[%s18685_s6 + $0x728] sm:$0xff]  ;;  %v13098_v37 = vcombine.low %v3442_v58, %v3450_v38  ;;  %v12108_v15 = vcombine.low %v2451_v48, %v2459_v45 }
 0x55a   : > { %v17073_v51 = vpop.f32.mrf.mxu0  ;;  %10946 = vmatmul.mubr.bf16.vlgmr.msra.gmra.mxu0 %v14990_v39  ;;  %v2443_v49 = vld [vmem:[%s18685_s6 + $0x768] sm:$0xff] }
 0x55b   : > { %10959 = vmatpush1.bf16.msra.mxu1 %v12970_v16  ;;  %10996 = vmatpush1.bf16.msra.mxu0 %v11980_v56  ;;  %v2235_v16 = vld [vmem:[%s18685_s6 + $0xe8] sm:$0xff]  ;;  %v12890_v56 = vcombine.low %v3234_v47, %v3242_v3  ;;  %v12092_v4 = vcombine.low %v2435_v26, %v2443_v49 }
 0x55c   : > { %11027 = vmatprep.mubr.bf16.mxu0 %v14714_v27  ;;  %v17077_v1 = vpop.f32.mrf.mxu0  ;;  %10960 = vmatprep.subr.bf16.mxu1 %v12955_v46  ;;  %v13131_v46 = vcombine.high %v3474_v18, %v3482_v35  ;;  %v11885_v24 = vcombine.high %v2227_v41, %v2235_v16  ;;  %v2419_v47 = vld [vmem:[%s18685_s6 + $0x6a8] sm:$0xff] }
 0x55d   : > { %10997 = vmatprep.subr.bf16.mxu0 %v11965_v59  ;;  %v3458_v59 = vld [vmem:[%s18685_s6 + $0x2720] sm:$0xff]  ;;  %v2427_v3 = vld [vmem:[%s18685_s6 + $0x6e8] sm:$0xff] }
 0x55e   : > { %v10705_v34 = vpop.f32.mrf.mxu0 }
 0x55f   : > { %10961 = vmatpush1.bf16.msra.mxu1 %v12954_v9  ;;  %10998 = vmatpush1.bf16.msra.mxu0 %v11964_v22  ;;  %v13130_v9 = vcombine.low %v3474_v18, %v3482_v35  ;;  %v11884_v22 = vcombine.low %v2227_v41, %v2235_v16  ;;  %v13114_v34 = vcombine.low %v3458_v59, %v3466_v40  ;;  %v2403_v18 = vld [vmem:[%s18685_s6 + $0x628] sm:$0xff] }
 0x560   : > { %v10706_v11 = vpop.f32.mrf.mxu0  ;;  %10962 = vmatprep.subr.bf16.mxu1 %v12939_v52  ;;  %10999 = vmatprep.subr.bf16.mxu0 %v11949_v33  ;;  %v13115_v52 = vcombine.high %v3458_v59, %v3466_v40  ;;  %v11869_v33 = vcombine.high %v2211_v5, %v2219_v25  ;;  %v2411_v35 = vld [vmem:[%s18685_s6 + $0x668] sm:$0xff]  ;;  %v12076_v16 = vcombine.low %v2419_v47, %v2427_v3 }
 0x561   : > { %v12109_v11 = vcombine.high %v2451_v48, %v2459_v45  ;;  %v2387_v59 = vld [vmem:[%s18685_s6 + $0x5a8] sm:$0xff] }
 0x562   : > { %v2395_v40 = vld [vmem:[%s18685_s6 + $0x5e8] sm:$0xff] }
 0x563   : > { %10963 = vmatpush1.bf16.msra.mxu1 %v12938_v6  ;;  %11000 = vmatpush1.bf16.msra.mxu0 %v11948_v2  ;;  %v11868_v6 = vcombine.low %v2211_v5, %v2219_v25  ;;  %v13099_v2 = vcombine.high %v3442_v58, %v3450_v38  ;;  %v12060_v25 = vcombine.low %v2403_v18, %v2411_v35  ;;  %v2371_v58 = vld [vmem:[%s18685_s6 + $0x528] sm:$0xff] }
 0x564   : > { %10964 = vmatprep.subr.bf16.mxu1 %v12923_v57  ;;  %11001 = vmatprep.subr.bf16.mxu0 %v11933_v62  ;;  %v3426_v57 = vld [vmem:[%s18685_s6 + $0x2620] sm:$0xff]  ;;  %v2379_v38 = vld [vmem:[%s18685_s6 + $0x568] sm:$0xff]  ;;  %v12044_v45 = vcombine.low %v2387_v59, %v2395_v40 }
 0x565   : > { %v3434_v62 = vld [vmem:[%s18685_s6 + $0x2660] sm:$0xff] }
 0x566   : > { %v13082_v28 = vcombine.low %v3426_v57, %v3434_v62 }
 0x567   : > { %10965 = vmatpush1.bf16.msra.mxu1 %v12922_v17  ;;  %11002 = vmatpush1.bf16.msra.mxu0 %v11932_v63  ;;  %v13083_v17 = vcombine.high %v3426_v57, %v3434_v62  ;;  %v12093_v63 = vcombine.high %v2435_v26, %v2443_v49  ;;  %v2579_v57 = vld [vmem:[%s18685_s6 + $0xba8] sm:$0xff]  ;;  %v12028_v49 = vcombine.low %v2371_v58, %v2379_v38 }
 0x568   : > { %10966 = vmatprep.subr.bf16.mxu1 %v12907_v30  ;;  %11003 = vmatprep.subr.bf16.mxu0 %v11917_v44  ;;  %v3410_v30 = vld [vmem:[%s18685_s6 + $0x25a0] sm:$0xff]  ;;  %v2587_v62 = vld [vmem:[%s18685_s6 + $0xbe8] sm:$0xff] }
 0x569   : > { %v3418_v44 = vld [vmem:[%s18685_s6 + $0x25e0] sm:$0xff] }
 0x56a   : > { %v13066_v41 = vcombine.low %v3410_v30, %v3418_v44 }
 0x56b   : > { %10967 = vmatpush1.bf16.msra.mxu1 %v12906_v23  ;;  %11004 = vmatpush1.bf16.msra.mxu0 %v11916_v36  ;;  %v13067_v23 = vcombine.high %v3410_v30, %v3418_v44  ;;  %v12077_v36 = vcombine.high %v2419_v47, %v2427_v3  ;;  %v2563_v30 = vld [vmem:[%s18685_s6 + $0xb28] sm:$0xff]  ;;  %v12236_v3 = vcombine.low %v2579_v57, %v2587_v62 }
 0x56c   : > { %10968 = vmatprep.subr.bf16.mxu1 %v12891_v31  ;;  %11005 = vmatprep.subr.bf16.mxu0 %v11901_v32  ;;  %v3394_v31 = vld [vmem:[%s18685_s6 + $0x2520] sm:$0xff]  ;;  %v2571_v44 = vld [vmem:[%s18685_s6 + $0xb68] sm:$0xff] }
 0x56d   : > { %v3402_v32 = vld [vmem:[%s18685_s6 + $0x2560] sm:$0xff] }
 0x56e   : > { %v13050_v5 = vcombine.low %v3394_v31, %v3402_v32 }
 0x56f   : > { %10969 = vmatpush1.bf16.msra.mxu1 %v12890_v56  ;;  %11006 = vmatpush1.bf16.msra.mxu0 %v11900_v42  ;;  %v13051_v56 = vcombine.high %v3394_v31, %v3402_v32  ;;  %v12061_v42 = vcombine.high %v2403_v18, %v2411_v35  ;;  %v2835_v31 = vld [vmem:[%s18685_s6 + $0x13a8] sm:$0xff] }
 0x570   : > { %10970 = vmatprep.subr.bf16.mxu1 %v13131_v46  ;;  %11007 = vmatprep.subr.bf16.mxu0 %v11885_v24  ;;  %v3378_v46 = vld [vmem:[%s18685_s6 + $0x24a0] sm:$0xff]  ;;  %v2843_v32 = vld [vmem:[%s18685_s6 + $0x13e8] sm:$0xff] }
 0x571   : > { %v3386_v24 = vld [vmem:[%s18685_s6 + $0x24e0] sm:$0xff] }
 0x572   : > { %v13034_v48 = vcombine.low %v3378_v46, %v3386_v24 }
 0x573   : > { %10971 = vmatpush2.bf16.msra.mxu1 %v13130_v9  ;;  %11008 = vmatpush1.bf16.msra.mxu0 %v11884_v22  ;;  %v13035_v9 = vcombine.high %v3378_v46, %v3386_v24  ;;  %v12045_v22 = vcombine.high %v2387_v59, %v2395_v40  ;;  %v2531_v46 = vld [vmem:[%s18685_s6 + $0xa28] sm:$0xff] }
 0x574   : > { %10972 = vmatprep.subr.bf16.mxu1 %v13115_v52  ;;  %11009 = vmatprep.subr.bf16.mxu0 %v11869_v33  ;;  %v3362_v52 = vld [vmem:[%s18685_s6 + $0x2420] sm:$0xff]  ;;  %v2539_v24 = vld [vmem:[%s18685_s6 + $0xa68] sm:$0xff] }
 0x575   : > { %v3370_v33 = vld [vmem:[%s18685_s6 + $0x2460] sm:$0xff]  ;;  %v2819_v40 = vld [vmem:[%s18685_s6 + $0x1328] sm:$0xff] }
 0x576   : > { %v13018_v26 = vcombine.low %v3362_v52, %v3370_v33 }
 0x577   : > { %10973 = vmatpush2.bf16.msra.mxu1 %v13114_v34  ;;  %11010 = vmatpush1.bf16.msra.mxu0 %v11868_v6  ;;  %v13019_v34 = vcombine.high %v3362_v52, %v3370_v33  ;;  %v12029_v6 = vcombine.high %v2371_v58, %v2379_v38  ;;  %v12189_v33 = vcombine.high %v2531_v46, %v2539_v24  ;;  %v2515_v58 = vld [vmem:[%s18685_s6 + $0x9a8] sm:$0xff] }
 0x578   : > { %10974 = vmatprep.subr.bf16.mxu1 %v13099_v2  ;;  %11011 = vmatprep.subr.bf16.mxu0 %v12109_v11  ;;  %v2355_v2 = vld [vmem:[%s18685_s6 + $0x4a8] sm:$0xff]  ;;  %v10704_v38 = vadd.f32 %v17077_v1, %v17047_v10 }
 0x579   : > { %v2363_v11 = vld [vmem:[%s18685_s6 + $0x4e8] sm:$0xff] }
 0x57a   : > { %v12012_v47 = vcombine.low %v2355_v2, %v2363_v11 }
 0x57b   : > { %10975 = vmatpush2.bf16.msra.mxu1 %v13098_v37  ;;  %11012 = vmatpush2.bf16.msra.mxu0 %v12108_v15  ;;  %v12013_v37 = vcombine.high %v2355_v2, %v2363_v11  ;;  %v12237_v15 = vcombine.high %v2579_v57, %v2587_v62  ;;  %v12188_v2 = vcombine.low %v2531_v46, %v2539_v24  ;;  %v2755_v46 = vld [vmem:[%s18685_s6 + $0x1128] sm:$0xff] }
 0x57c   : > { %10976 = vmatprep.subr.bf16.mxu1 %v13083_v17  ;;  %11013 = vmatprep.subr.bf16.mxu0 %v12093_v63  ;;  %v2339_v17 = vld [vmem:[%s18685_s6 + $0x428] sm:$0xff] }
 0x57d   : > { %v2347_v63 = vld [vmem:[%s18685_s6 + $0x468] sm:$0xff] }
 0x57e   : > { %v11996_v35 = vcombine.low %v2339_v17, %v2347_v63  ;;  %v2763_v24 = vld [vmem:[%s18685_s6 + $0x1168] sm:$0xff] }
 0x57f   : > { %10977 = vmatpush2.bf16.msra.mxu1 %v13082_v28  ;;  %11014 = vmatpush2.bf16.msra.mxu0 %v12092_v4  ;;  %v11997_v28 = vcombine.high %v2339_v17, %v2347_v63  ;;  %v2547_v4 = vld [vmem:[%s18685_s6 + $0xaa8] sm:$0xff] }
 0x580   : > { %10978 = vmatprep.subr.bf16.mxu1 %v13067_v23  ;;  %11015 = vmatprep.subr.bf16.mxu0 %v12077_v36  ;;  %v12221_v23 = vcombine.high %v2563_v30, %v2571_v44  ;;  %v2555_v36 = vld [vmem:[%s18685_s6 + $0xae8] sm:$0xff] }
 0x581   : > { %v2787_v17 = vld [vmem:[%s18685_s6 + $0x1228] sm:$0xff] }
 0x582   : > { %v2795_v63 = vld [vmem:[%s18685_s6 + $0x1268] sm:$0xff] }
 0x583   : > { %10979 = vmatpush2.bf16.msra.mxu1 %v13066_v41  ;;  %11016 = vmatpush2.bf16.msra.mxu0 %v12076_v16  ;;  %v12220_v41 = vcombine.low %v2563_v30, %v2571_v44 }
 0x584   : > { %10980 = vmatprep.subr.bf16.mxu1 %v13051_v56  ;;  %11017 = vmatprep.subr.bf16.mxu0 %v12061_v42  ;;  %v12205_v56 = vcombine.high %v2547_v4, %v2555_v36  ;;  %v12493_v42 = vcombine.high %v2835_v31, %v2843_v32 }
 0x587   : > { %10981 = vmatpush2.bf16.msra.mxu1 %v13050_v5  ;;  %11018 = vmatpush2.bf16.msra.mxu0 %v12060_v25  ;;  %v2827_v5 = vld [vmem:[%s18685_s6 + $0x1368] sm:$0xff]  ;;  %v10702_v25 = vadd.f32 %v17073_v51, %v17044_v20 }
 0x588   : > { %10982 = vmatprep.subr.bf16.mxu1 %v13035_v9  ;;  %11019 = vmatprep.subr.bf16.mxu0 %v12045_v22  ;;  %v12204_v9 = vcombine.low %v2547_v4, %v2555_v36  ;;  %v12492_v22 = vcombine.low %v2835_v31, %v2843_v32  ;;  %v2523_v20 = vld [vmem:[%s18685_s6 + $0x9e8] sm:$0xff]  ;;  %v12476_v11 = vcombine.low %v2819_v40, %v2827_v5 }
 0x589   : > { %v2803_v51 = vld [vmem:[%s18685_s6 + $0x12a8] sm:$0xff]  ;;  %v12173_v62 = vcombine.high %v2515_v58, %v2523_v20  ;;  %v12172_v44 = vcombine.low %v2515_v58, %v2523_v20  ;;  %v12445_v4 = vcombine.high %v2787_v17, %v2795_v63 }
 0x58a   : > { %v2491_v36 = vld [vmem:[%s18685_s6 + $0x8e8] sm:$0xff] }
 0x58b   : > { %10983 = vmatpush2.bf16.msra.mxu1 %v13034_v48  ;;  %11020 = vmatpush2.bf16.msra.mxu0 %v12044_v45  ;;  %v12477_v45 = vcombine.high %v2819_v40, %v2827_v5  ;;  %v2771_v31 = vld [vmem:[%s18685_s6 + $0x11a8] sm:$0xff] }
 0x58c   : > { %10984 = vmatprep.subr.bf16.mxu1 %v13019_v34  ;;  %11021 = vmatprep.subr.bf16.mxu0 %v12029_v6  ;;  %v2811_v34 = vld [vmem:[%s18685_s6 + $0x12e8] sm:$0xff] }
 0x58d   : > { %v2779_v32 = vld [vmem:[%s18685_s6 + $0x11e8] sm:$0xff] }
 0x58e   : > { %v12428_v40 = vcombine.low %v2771_v31, %v2779_v32  ;;  %v2691_v20 = vld [vmem:[%s18685_s6 + $0xf28] sm:$0xff] }
 0x58f   : > { %10985 = vmatpush2.bf16.msra.mxu1 %v13018_v26  ;;  %11022 = vmatpush2.bf16.msra.mxu0 %v12028_v49  ;;  %v12461_v26 = vcombine.high %v2803_v51, %v2811_v34  ;;  %v2499_v49 = vld [vmem:[%s18685_s6 + $0x928] sm:$0xff] }
 0x590   : > { %11023 = vmatprep.subr.bf16.mxu0 %v12013_v37  ;;  %11036 = vmatprep.subr.bf16.mxu1 %v12237_v15  ;;  %v2507_v15 = vld [vmem:[%s18685_s6 + $0x968] sm:$0xff] }
 0x592   : > { %v10742_v18 = vpop.f32.mrf.mxu1  ;;  %10987 = vmatmul.mubr.bf16.vlgmr.msra.gmra.mxu1 %v15169_v14 }
 0x593   : > { %11024 = vmatpush2.bf16.msra.mxu0 %v12012_v47  ;;  %11037 = vmatpush1.bf16.msra.mxu1 %v12236_v3  ;;  %v10743_v48 = vadd.f32 %v10742_v18, %v10702_v25  ;;  %v12460_v47 = vcombine.low %v2803_v51, %v2811_v34  ;;  %v12156_v18 = vcombine.low %v2499_v49, %v2507_v15  ;;  %v2699_v51 = vld [vmem:[%s18685_s6 + $0xf68] sm:$0xff] }
 0x594   : > { %11068 = vmatprep.mubr.bf16.mxu1 %v14743_v43  ;;  %v10744_v16 = vpop.f32.mrf.mxu1  ;;  %11025 = vmatprep.subr.bf16.mxu0 %v11997_v28  ;;  %v12157_v28 = vcombine.high %v2499_v49, %v2507_v15  ;;  %v12413_v25 = vcombine.high %v2755_v46, %v2763_v24  ;;  %v2723_v34 = vld [vmem:[%s18685_s6 + $0x1028] sm:$0xff] }
 0x595   : > { %11038 = vmatprep.subr.bf16.mxu1 %v12221_v23  ;;  %v10745_v10 = vadd.f32 %v10744_v16, %v10704_v38  ;;  %v2483_v23 = vld [vmem:[%s18685_s6 + $0x8a8] sm:$0xff]  ;;  %v12429_v16 = vcombine.high %v2771_v31, %v2779_v32  ;;  %v12412_v38 = vcombine.low %v2755_v46, %v2763_v24 }
 0x596   : > { %v10746_v59 = vpop.f32.mrf.mxu1  ;;  %v2971_v49 = vld [vmem:[%s18685_s6 + $0x17e8] sm:$0xff] }
 0x597   : > { %11026 = vmatpush2.bf16.msra.mxu0 %v11996_v35  ;;  %11039 = vmatpush1.bf16.msra.mxu1 %v12220_v41  ;;  %v12444_v35 = vcombine.low %v2787_v17, %v2795_v63  ;;  %v12141_v41 = vcombine.high %v2483_v23, %v2491_v36  ;;  %v12140_v59 = vcombine.low %v2483_v23, %v2491_v36  ;;  %v2643_v31 = vld [vmem:[%s18685_s6 + $0xda8] sm:$0xff] }
 0x598   : > { %v10747_v52 = vpop.f32.mrf.mxu1  ;;  %11040 = vmatprep.subr.bf16.mxu1 %v12205_v56  ;;  %11077 = vmatprep.subr.bf16.mxu0 %v12493_v42  ;;  %v2467_v56 = vld [vmem:[%s18685_s6 + $0x828] sm:$0xff] }
 0x599   : > { %v2475_v42 = vld [vmem:[%s18685_s6 + $0x868] sm:$0xff] }
 0x59a   : > { %v10783_v6 = vpop.f32.mrf.mxu0  ;;  %11028 = vmatmul.mubr.bf16.vlgmr.msra.gmra.mxu0 %v14716_v55  ;;  %v12125_v5 = vcombine.high %v2467_v56, %v2475_v42  ;;  %v2739_v52 = vld [vmem:[%s18685_s6 + $0x10a8] sm:$0xff]  ;;  %v12124_v58 = vcombine.low %v2467_v56, %v2475_v42 }
 0x59b   : > { %v10784_v1 = vadd.f32 %v10783_v6, %v10743_v48  ;;  %11041 = vmatpush1.bf16.msra.mxu1 %v12204_v9  ;;  %11078 = vmatpush1.bf16.msra.mxu0 %v12492_v22  ;;  %v2707_v9 = vld [vmem:[%s18685_s6 + $0xfa8] sm:$0xff] }
 0x59c   : > { %11109 = vmatprep.mubr.bf16.mxu0 %v14792_v19  ;;  %v10785_v57 = vpop.f32.mrf.mxu0  ;;  %11042 = vmatprep.subr.bf16.mxu1 %v12189_v33  ;;  %v2715_v22 = vld [vmem:[%s18685_s6 + $0xfe8] sm:$0xff] }
 0x59d   : > { %11616 = vst [vmem:[%s15798_s16 + $0x30] sm:$0xff] %v10784_v1  ;;  %v10786_v37 = vadd.f32 %v10785_v57, %v10745_v10  ;;  %11079 = vmatprep.subr.bf16.mxu0 %v12477_v45  ;;  %v2747_v33 = vld [vmem:[%s18685_s6 + $0x10e8] sm:$0xff]  ;;  %v12365_v48 = vcombine.high %v2707_v9, %v2715_v22  ;;  %v12349_v1 = vcombine.high %v2691_v20, %v2699_v51 }
 0x59e   : > { %v10787_v30 = vpop.f32.mrf.mxu0  ;;  %v12397_v45 = vcombine.high %v2739_v52, %v2747_v33  ;;  %v2731_v6 = vld [vmem:[%s18685_s6 + $0x1068] sm:$0xff]  ;;  %v12396_v10 = vcombine.low %v2739_v52, %v2747_v33 }
 0x59f   : > { %11617 = vst [vmem:[%s15798_s16 + $0x38] sm:$0xff] %v10786_v37  ;;  %11043 = vmatpush1.bf16.msra.mxu1 %v12188_v2  ;;  %11080 = vmatpush1.bf16.msra.mxu0 %v12476_v11  ;;  %v12364_v2 = vcombine.low %v2707_v9, %v2715_v22  ;;  %v12381_v11 = vcombine.high %v2723_v34, %v2731_v6  ;;  %v2675_v57 = vld [vmem:[%s18685_s6 + $0xea8] sm:$0xff] }
 0x5a0   : > { %v10788_v3 = vpop.f32.mrf.mxu0  ;;  %11044 = vmatprep.subr.bf16.mxu1 %v12173_v62  ;;  %11081 = vmatprep.subr.bf16.mxu0 %v12461_v26  ;;  %v2683_v62 = vld [vmem:[%s18685_s6 + $0xee8] sm:$0xff]  ;;  %v12348_v37 = vcombine.low %v2691_v20, %v2699_v51  ;;  %v12380_v15 = vcombine.low %v2723_v34, %v2731_v6 }
 0x5a1   : > { %v2963_v26 = vld [vmem:[%s18685_s6 + $0x17a8] sm:$0xff]  ;;  %v12333_v17 = vcombine.high %v2675_v57, %v2683_v62 }
 0x5a2   : > { %v12621_v63 = vcombine.high %v2963_v26, %v2971_v49  ;;  %v2659_v30 = vld [vmem:[%s18685_s6 + $0xe28] sm:$0xff] }
 0x5a3   : > { %11045 = vmatpush1.bf16.msra.mxu1 %v12172_v44  ;;  %11082 = vmatpush1.bf16.msra.mxu0 %v12460_v47  ;;  %v2667_v44 = vld [vmem:[%s18685_s6 + $0xe68] sm:$0xff] }
 0x5a4   : > { %11046 = vmatprep.subr.bf16.mxu1 %v12157_v28  ;;  %11083 = vmatprep.subr.bf16.mxu0 %v12445_v4  ;;  %v2947_v47 = vld [vmem:[%s18685_s6 + $0x1728] sm:$0xff]  ;;  %v12332_v28 = vcombine.low %v2675_v57, %v2683_v62  ;;  %v12620_v4 = vcombine.low %v2963_v26, %v2971_v49  ;;  %v12317_v23 = vcombine.high %v2659_v30, %v2667_v44 }
 0x5a5   : > { %v2955_v3 = vld [vmem:[%s18685_s6 + $0x1768] sm:$0xff] }
 0x5a6   : > { %v12605_v36 = vcombine.high %v2947_v47, %v2955_v3  ;;  %v2651_v32 = vld [vmem:[%s18685_s6 + $0xde8] sm:$0xff] }
 0x5a7   : > { %11047 = vmatpush1.bf16.msra.mxu1 %v12156_v18  ;;  %11084 = vmatpush1.bf16.msra.mxu0 %v12444_v35  ;;  %v2931_v18 = vld [vmem:[%s18685_s6 + $0x16a8] sm:$0xff]  ;;  %v12301_v56 = vcombine.high %v2643_v31, %v2651_v32 }
 0x5a8   : > { %11048 = vmatprep.subr.bf16.mxu1 %v12141_v41  ;;  %11085 = vmatprep.subr.bf16.mxu0 %v12429_v16  ;;  %v2939_v35 = vld [vmem:[%s18685_s6 + $0x16e8] sm:$0xff]  ;;  %v12316_v41 = vcombine.low %v2659_v30, %v2667_v44  ;;  %v12604_v16 = vcombine.low %v2947_v47, %v2955_v3 }
 0x5a9   : > { %v12589_v42 = vcombine.high %v2931_v18, %v2939_v35  ;;  %v2627_v46 = vld [vmem:[%s18685_s6 + $0xd28] sm:$0xff] }
 0x5aa   : > { %v2635_v24 = vld [vmem:[%s18685_s6 + $0xd68] sm:$0xff] }
 0x5ab   : > { %11049 = vmatpush1.bf16.msra.mxu1 %v12140_v59  ;;  %11086 = vmatpush1.bf16.msra.mxu0 %v12428_v40  ;;  %v2915_v59 = vld [vmem:[%s18685_s6 + $0x1628] sm:$0xff]  ;;  %v12285_v9 = vcombine.high %v2627_v46, %v2635_v24 }
 0x5ac   : > { %11050 = vmatprep.subr.bf16.mxu1 %v12125_v5  ;;  %11087 = vmatprep.subr.bf16.mxu0 %v12413_v25  ;;  %v2923_v40 = vld [vmem:[%s18685_s6 + $0x1668] sm:$0xff]  ;;  %v12300_v5 = vcombine.low %v2643_v31, %v2651_v32  ;;  %v12588_v25 = vcombine.low %v2931_v18, %v2939_v35 }
 0x5ad   : > { %v12573_v22 = vcombine.high %v2915_v59, %v2923_v40  ;;  %v2611_v52 = vld [vmem:[%s18685_s6 + $0xca8] sm:$0xff] }
 0x5ae   : > { %v2619_v33 = vld [vmem:[%s18685_s6 + $0xce8] sm:$0xff] }
 0x5af   : > { %11051 = vmatpush1.bf16.msra.mxu1 %v12124_v58  ;;  %11088 = vmatpush1.bf16.msra.mxu0 %v12412_v38  ;;  %v2899_v58 = vld [vmem:[%s18685_s6 + $0x15a8] sm:$0xff]  ;;  %v12269_v20 = vcombine.high %v2611_v52, %v2619_v33 }
 0x5b0   : > { %11052 = vmatprep.subr.bf16.mxu1 %v12365_v48  ;;  %11089 = vmatprep.subr.bf16.mxu0 %v12397_v45  ;;  %v2907_v38 = vld [vmem:[%s18685_s6 + $0x15e8] sm:$0xff]  ;;  %v12284_v48 = vcombine.low %v2627_v46, %v2635_v24  ;;  %v12572_v45 = vcombine.low %v2915_v59, %v2923_v40 }
 0x5b1   : > { %v12557_v51 = vcombine.high %v2899_v58, %v2907_v38  ;;  %v2595_v34 = vld [vmem:[%s18685_s6 + $0xc28] sm:$0xff] }
 0x5b2   : > { %v2603_v6 = vld [vmem:[%s18685_s6 + $0xc68] sm:$0xff] }
 0x5b3   : > { %11053 = vmatpush2.bf16.msra.mxu1 %v12364_v2  ;;  %11090 = vmatpush1.bf16.msra.mxu0 %v12396_v10  ;;  %v2883_v2 = vld [vmem:[%s18685_s6 + $0x1528] sm:$0xff]  ;;  %v12253_v57 = vcombine.high %v2595_v34, %v2603_v6 }
 0x5b4   : > { %11054 = vmatprep.subr.bf16.mxu1 %v12349_v1  ;;  %11091 = vmatprep.subr.bf16.mxu0 %v12381_v11  ;;  %v2891_v10 = vld [vmem:[%s18685_s6 + $0x1568] sm:$0xff]  ;;  %v12268_v1 = vcombine.low %v2611_v52, %v2619_v33  ;;  %v12556_v11 = vcombine.low %v2899_v58, %v2907_v38 }
 0x5b5   : > { %v12541_v62 = vcombine.high %v2883_v2, %v2891_v10  ;;  %v2867_v26 = vld [vmem:[%s18685_s6 + $0x14a8] sm:$0xff] }
 0x5b6   : > { %v2875_v49 = vld [vmem:[%s18685_s6 + $0x14e8] sm:$0xff] }
 0x5b7   : > { %11055 = vmatpush2.bf16.msra.mxu1 %v12348_v37  ;;  %11092 = vmatpush1.bf16.msra.mxu0 %v12380_v15  ;;  %v3091_v37 = vld [vmem:[%s18685_s6 + $0x1ba8] sm:$0xff]  ;;  %v12525_v30 = vcombine.high %v2867_v26, %v2875_v49 }
 0x5b8   : > { %11056 = vmatprep.subr.bf16.mxu1 %v12333_v17  ;;  %11093 = vmatprep.subr.bf16.mxu0 %v12621_v63  ;;  %v3099_v15 = vld [vmem:[%s18685_s6 + $0x1be8] sm:$0xff]  ;;  %v12252_v17 = vcombine.low %v2595_v34, %v2603_v6  ;;  %v12540_v63 = vcombine.low %v2883_v2, %v2891_v10 }
 0x5b9   : > { %v12749_v44 = vcombine.high %v3091_v37, %v3099_v15  ;;  %v2851_v47 = vld [vmem:[%s18685_s6 + $0x1428] sm:$0xff] }
 0x5ba   : > { %v2859_v3 = vld [vmem:[%s18685_s6 + $0x1468] sm:$0xff] }
 0x5bb   : > { %11057 = vmatpush2.bf16.msra.mxu1 %v12332_v28  ;;  %11094 = vmatpush2.bf16.msra.mxu0 %v12620_v4  ;;  %v3075_v28 = vld [vmem:[%s18685_s6 + $0x1b28] sm:$0xff]  ;;  %v12509_v31 = vcombine.high %v2851_v47, %v2859_v3  ;;  %v12508_v46 = vcombine.low %v2851_v47, %v2859_v3 }
 0x5bc   : > { %11058 = vmatprep.subr.bf16.mxu1 %v12317_v23  ;;  %11095 = vmatprep.subr.bf16.mxu0 %v12605_v36  ;;  %v3083_v4 = vld [vmem:[%s18685_s6 + $0x1b68] sm:$0xff]  ;;  %v12524_v23 = vcombine.low %v2867_v26, %v2875_v49  ;;  %v12748_v36 = vcombine.low %v3091_v37, %v3099_v15 }
 0x5bd   : > { %v3059_v32 = vld [vmem:[%s18685_s6 + $0x1aa8] sm:$0xff]  ;;  %v12733_v18 = vcombine.high %v3075_v28, %v3083_v4  ;;  %v12732_v24 = vcombine.low %v3075_v28, %v3083_v4 }
 0x5be   : > { %v3067_v35 = vld [vmem:[%s18685_s6 + $0x1ae8] sm:$0xff] }
 0x5bf   : > { %11059 = vmatpush2.bf16.msra.mxu1 %v12316_v41  ;;  %11096 = vmatpush2.bf16.msra.mxu0 %v12604_v16  ;;  %v3347_v41 = vld [vmem:[%s18685_s6 + $0x23a8] sm:$0xff]  ;;  %v12717_v40 = vcombine.high %v3059_v32, %v3067_v35  ;;  %v12716_v38 = vcombine.low %v3059_v32, %v3067_v35 }
 0x5c0   : > { %11060 = vmatprep.subr.bf16.mxu1 %v12301_v56  ;;  %11097 = vmatprep.subr.bf16.mxu0 %v12589_v42  ;;  %v3355_v16 = vld [vmem:[%s18685_s6 + $0x23e8] sm:$0xff] }
 0x5c1   : > { %v3487_v56 = vld [vmem:[%s18686_s7 + $0x8] sm:$0xff] }
 0x5c2   : > { %v3331_v33 = vld [vmem:[%s18685_s6 + $0x2328] sm:$0xff] }
 0x5c3   : > { %11061 = vmatpush2.bf16.msra.mxu1 %v12300_v5  ;;  %11098 = vmatpush2.bf16.msra.mxu0 %v12588_v25  ;;  %v13005_v5 = vcombine.high %v3347_v41, %v3355_v16  ;;  %v3525_v25 = vrot.slane %v3487_v56, %v14654_v54  ;;  %v3339_v58 = vld [vmem:[%s18685_s6 + $0x2368] sm:$0xff]  ;;  %v3529_v54 = vrot.slane %v3487_v56, %v14662_v61 }
 0x5c4   : > { %11062 = vmatprep.subr.bf16.mxu1 %v12285_v9  ;;  %11099 = vmatprep.subr.bf16.mxu0 %v12573_v22  ;;  %v3043_v9 = vld [vmem:[%s18685_s6 + $0x1a28] sm:$0xff]  ;;  %v12989_v6 = vcombine.high %v3331_v33, %v3339_v58  ;;  %v12988_v26 = vcombine.low %v3331_v33, %v3339_v58 }
 0x5c5   : > { %v3051_v22 = vld [vmem:[%s18685_s6 + $0x1a68] sm:$0xff] }
 0x5c6   : > { %v3035_v2 = vld [vmem:[%s18685_s6 + $0x19e8] sm:$0xff] }
 0x5c7   : > { %11063 = vmatpush2.bf16.msra.mxu1 %v12284_v48  ;;  %11100 = vmatpush2.bf16.msra.mxu0 %v12572_v45  ;;  %v13004_v48 = vcombine.low %v3347_v41, %v3355_v16  ;;  %v3315_v61 = vld [vmem:[%s18685_s6 + $0x22a8] sm:$0xff] }
 0x5c8   : > { %11064 = vmatprep.subr.bf16.mxu1 %v12269_v20  ;;  %11101 = vmatprep.subr.bf16.mxu0 %v12557_v51  ;;  %v12701_v20 = vcombine.high %v3043_v9, %v3051_v22  ;;  %v3027_v51 = vld [vmem:[%s18685_s6 + $0x19a8] sm:$0xff] }
 0x5c9   : > { %v3323_v10 = vld [vmem:[%s18685_s6 + $0x22e8] sm:$0xff]  ;;  %v12685_v37 = vcombine.high %v3027_v51, %v3035_v2  ;;  %v12684_v28 = vcombine.low %v3027_v51, %v3035_v2 }
 0x5ca   : > { %v12973_v15 = vcombine.high %v3315_v61, %v3323_v10  ;;  %v3307_v47 = vld [vmem:[%s18685_s6 + $0x2268] sm:$0xff]  ;;  %v12972_v4 = vcombine.low %v3315_v61, %v3323_v10 }
 0x5cb   : > { %11065 = vmatpush2.bf16.msra.mxu1 %v12268_v1  ;;  %11102 = vmatpush2.bf16.msra.mxu0 %v12556_v11  ;;  %v12700_v11 = vcombine.low %v3043_v9, %v3051_v22  ;;  %v2995_v32 = vld [vmem:[%s18685_s6 + $0x18a8] sm:$0xff] }
 0x5cc   : > { %11066 = vmatprep.subr.bf16.mxu1 %v12253_v57  ;;  %11103 = vmatprep.subr.bf16.mxu0 %v12541_v62  ;;  %v3283_v35 = vld [vmem:[%s18685_s6 + $0x21a8] sm:$0xff] }
 0x5cd   : > { %v3291_v41 = vld [vmem:[%s18685_s6 + $0x21e8] sm:$0xff] }
 0x5ce   : > { %v12940_v9 = vcombine.low %v3283_v35, %v3291_v41  ;;  %v3219_v33 = vld [vmem:[%s18685_s6 + $0x1fa8] sm:$0xff] }
 0x5cf   : > { %11067 = vmatpush2.bf16.msra.mxu1 %v12252_v17  ;;  %11104 = vmatpush2.bf16.msra.mxu0 %v12540_v63  ;;  %v3011_v17 = vld [vmem:[%s18685_s6 + $0x1928] sm:$0xff] }
 0x5d0   : > { %11105 = vmatprep.subr.bf16.mxu0 %v12525_v30  ;;  %11118 = vmatprep.subr.bf16.mxu1 %v12749_v44  ;;  %v3019_v30 = vld [vmem:[%s18685_s6 + $0x1968] sm:$0xff] }
 0x5d1   : > { %v3299_v44 = vld [vmem:[%s18685_s6 + $0x2228] sm:$0xff]  ;;  %v12668_v16 = vcombine.low %v3011_v17, %v3019_v30 }
 0x5d2   : > { %v10824_v42 = vpop.f32.mrf.mxu1  ;;  %11069 = vmatmul.mubr.bf16.vlgmr.msra.gmra.mxu1 %v14748_v53  ;;  %v12956_v56 = vcombine.low %v3299_v44, %v3307_v47  ;;  %v3227_v58 = vld [vmem:[%s18685_s6 + $0x1fe8] sm:$0xff] }
 0x5d3   : > { %11106 = vmatpush2.bf16.msra.mxu0 %v12524_v23  ;;  %11119 = vmatpush1.bf16.msra.mxu1 %v12748_v36  ;;  %v10825_v34 = vadd.f32 %v10824_v42, %v3525_v25  ;;  %v12669_v36 = vcombine.high %v3011_v17, %v3019_v30  ;;  %v3235_v2 = vld [vmem:[%s18685_s6 + $0x2028] sm:$0xff]  ;;  %v12876_v10 = vcombine.low %v3219_v33, %v3227_v58 }
 0x5d4   : > { %11150 = vmatprep.mubr.bf16.mxu1 %v14833_v8  ;;  %v10826_v59 = vpop.f32.mrf.mxu1  ;;  %11107 = vmatprep.subr.bf16.mxu0 %v12509_v31  ;;  %v12957_v31 = vcombine.high %v3299_v44, %v3307_v47  ;;  %v3243_v61 = vld [vmem:[%s18685_s6 + $0x2068] sm:$0xff] }
 0x5d5   : > { %11120 = vmatprep.subr.bf16.mxu1 %v12733_v18  ;;  %v10827_v57 = vadd.f32 %v10826_v59, %v3529_v54  ;;  %v3003_v18 = vld [vmem:[%s18685_s6 + $0x18e8] sm:$0xff]  ;;  %v12892_v30 = vcombine.low %v3235_v2, %v3243_v61 }
 0x5d6   : > { %v10828_v52 = vpop.f32.mrf.mxu1  ;;  %v12653_v42 = vcombine.high %v2995_v32, %v3003_v18  ;;  %v2987_v59 = vld [vmem:[%s18685_s6 + $0x1868] sm:$0xff]  ;;  %v12652_v25 = vcombine.low %v2995_v32, %v3003_v18 }
 0x5d7   : > { %11108 = vmatpush2.bf16.msra.mxu0 %v12508_v46  ;;  %11121 = vmatpush1.bf16.msra.mxu1 %v12732_v24  ;;  %v12941_v46 = vcombine.high %v3283_v35, %v3291_v41  ;;  %v2979_v24 = vld [vmem:[%s18685_s6 + $0x1828] sm:$0xff] }
 0x5d8   : > { %v10829_v45 = vpop.f32.mrf.mxu1  ;;  %11122 = vmatprep.subr.bf16.mxu1 %v12717_v40  ;;  %11159 = vmatprep.subr.bf16.mxu0 %v13005_v5  ;;  %v3267_v40 = vld [vmem:[%s18685_s6 + $0x2128] sm:$0xff]  ;;  %v12637_v22 = vcombine.high %v2979_v24, %v2987_v59 }
 0x5d9   : > { %v3275_v5 = vld [vmem:[%s18685_s6 + $0x2168] sm:$0xff] }
 0x5da   : > { %v10865_v1 = vpop.f32.mrf.mxu0  ;;  %11110 = vmatmul.mubr.bf16.vlgmr.msra.gmra.mxu0 %v14959_v0  ;;  %v12925_v52 = vcombine.high %v3267_v40, %v3275_v5  ;;  %v3251_v54 = vld [vmem:[%s18685_s6 + $0x20a8] sm:$0xff]  ;;  %v12924_v45 = vcombine.low %v3267_v40, %v3275_v5 }
 0x5db   : > { %v17481_v62 = vadd.f32 %v10865_v1, %v10825_v34  ;;  %11123 = vmatpush1.bf16.msra.mxu1 %v12716_v38  ;;  %11160 = vmatpush1.bf16.msra.mxu0 %v13004_v48  ;;  %v3259_v38 = vld [vmem:[%s18685_s6 + $0x20e8] sm:$0xff]  ;;  %v12636_v48 = vcombine.low %v2979_v24, %v2987_v59 }
 0x5dc   : > { %11191 = vmatprep.mubr.bf16.mxu0 %v14973_v21  ;;  %v10867_v49 = vpop.f32.mrf.mxu0  ;;  %11124 = vmatprep.subr.bf16.mxu1 %v12701_v20  ;;  %v12877_v20 = vcombine.high %v3219_v33, %v3227_v58  ;;  %v12909_v51 = vcombine.high %v3251_v54, %v3259_v38  ;;  %v3203_v34 = vld [vmem:[%s18685_s6 + $0x1f28] sm:$0xff]  ;;  %v12908_v1 = vcombine.low %v3251_v54, %v3259_v38 }
 0x5dd   : > { %v17487_v63 = vadd.f32 %v10867_v49, %v10827_v57  ;;  %11161 = vmatprep.subr.bf16.mxu0 %v12989_v6  ;;  %v3211_v6 = vld [vmem:[%s18685_s6 + $0x1f68] sm:$0xff]  ;;  %v12893_v57 = vcombine.high %v3235_v2, %v3243_v61 }
 0x5de   : > { %v10869_v3 = vpop.f32.mrf.mxu0  ;;  %v3195_v49 = vld [vmem:[%s18685_s6 + $0x1ee8] sm:$0xff]  ;;  %v12860_v17 = vcombine.low %v3203_v34, %v3211_v6 }
 0x5df   : > { %11125 = vmatpush1.bf16.msra.mxu1 %v12700_v11  ;;  %11162 = vmatpush1.bf16.msra.mxu0 %v12988_v26  ;;  %v12861_v11 = vcombine.high %v3203_v34, %v3211_v6  ;;  %v3187_v26 = vld [vmem:[%s18685_s6 + $0x1ea8] sm:$0xff] }
 0x5e0   : > { %v10870_v23 = vpop.f32.mrf.mxu0  ;;  %11126 = vmatprep.subr.bf16.mxu1 %v12685_v37  ;;  %11163 = vmatprep.subr.bf16.mxu0 %v12973_v15  ;;  %v3475_v37 = vld [vmem:[%s18685_s6 + $0x27a8] sm:$0xff]  ;;  %v12845_v44 = vcombine.high %v3187_v26, %v3195_v49 }
 0x5e1   : > { %v3483_v15 = vld [vmem:[%s18685_s6 + $0x27e8] sm:$0xff] }
 0x5e2   : > { %v13133_v47 = vcombine.high %v3475_v37, %v3483_v15  ;;  %v3171_v3 = vld [vmem:[%s18685_s6 + $0x1e28] sm:$0xff] }
 0x5e3   : > { %11127 = vmatpush1.bf16.msra.mxu1 %v12684_v28  ;;  %11164 = vmatpush1.bf16.msra.mxu0 %v12972_v4  ;;  %v3179_v28 = vld [vmem:[%s18685_s6 + $0x1e68] sm:$0xff] }
 0x5e4   : > { %11128 = vmatprep.subr.bf16.mxu1 %v12669_v36  ;;  %11165 = vmatprep.subr.bf16.mxu0 %v12957_v31  ;;  %v3459_v4 = vld [vmem:[%s18685_s6 + $0x2728] sm:$0xff]  ;;  %v12844_v36 = vcombine.low %v3187_v26, %v3195_v49  ;;  %v13132_v31 = vcombine.low %v3475_v37, %v3483_v15  ;;  %v12829_v32 = vcombine.high %v3171_v3, %v3179_v28 }
 0x5e5   : > { %v3467_v23 = vld [vmem:[%s18685_s6 + $0x2768] sm:$0xff] }
 0x5e6   : > { %v13117_v18 = vcombine.high %v3459_v4, %v3467_v23  ;;  %v3155_v35 = vld [vmem:[%s18685_s6 + $0x1da8] sm:$0xff] }
 0x5e7   : > { %11129 = vmatpush1.bf16.msra.mxu1 %v12668_v16  ;;  %11166 = vmatpush1.bf16.msra.mxu0 %v12956_v56  ;;  %v3163_v41 = vld [vmem:[%s18685_s6 + $0x1de8] sm:$0xff] }
 0x5e8   : > { %11130 = vmatprep.subr.bf16.mxu1 %v12653_v42  ;;  %11167 = vmatprep.subr.bf16.mxu0 %v12941_v46  ;;  %v3443_v16 = vld [vmem:[%s18685_s6 + $0x26a8] sm:$0xff]  ;;  %v12828_v42 = vcombine.low %v3171_v3, %v3179_v28  ;;  %v13116_v46 = vcombine.low %v3459_v4, %v3467_v23  ;;  %v12813_v24 = vcombine.high %v3155_v35, %v3163_v41 }
 0x5e9   : > { %v3451_v56 = vld [vmem:[%s18685_s6 + $0x26e8] sm:$0xff] }
 0x5ea   : > { %v13101_v59 = vcombine.high %v3443_v16, %v3451_v56  ;;  %v3139_v40 = vld [vmem:[%s18685_s6 + $0x1d28] sm:$0xff] }
 0x5eb   : > { %11131 = vmatpush1.bf16.msra.mxu1 %v12652_v25  ;;  %11168 = vmatpush1.bf16.msra.mxu0 %v12940_v9  ;;  %v3147_v5 = vld [vmem:[%s18685_s6 + $0x1d68] sm:$0xff] }
 0x5ec   : > { %11132 = vmatprep.subr.bf16.mxu1 %v12637_v22  ;;  %11169 = vmatprep.subr.bf16.mxu0 %v12925_v52  ;;  %v3427_v25 = vld [vmem:[%s18685_s6 + $0x2628] sm:$0xff]  ;;  %v12812_v22 = vcombine.low %v3155_v35, %v3163_v41  ;;  %v13100_v52 = vcombine.low %v3443_v16, %v3451_v56  ;;  %v12797_v33 = vcombine.high %v3139_v40, %v3147_v5  ;;  %v2292_v41 = vld [vmem:[%s18685_s6 + $0x2b0] sm:$0xff] }
 0x5ed   : > { %v3435_v9 = vld [vmem:[%s18685_s6 + $0x2668] sm:$0xff]  ;;  %v2300_v56 = vld [vmem:[%s18685_s6 + $0x2f0] sm:$0xff] }
 0x5ee   : > { %v13085_v58 = vcombine.high %v3427_v25, %v3435_v9  ;;  %v3123_v54 = vld [vmem:[%s18685_s6 + $0x1ca8] sm:$0xff] }
 0x5ef   : > { %11133 = vmatpush1.bf16.msra.mxu1 %v12636_v48  ;;  %11170 = vmatpush1.bf16.msra.mxu0 %v12924_v45  ;;  %v3131_v38 = vld [vmem:[%s18685_s6 + $0x1ce8] sm:$0xff] }
 0x5f0   : > { %11134 = vmatprep.subr.bf16.mxu1 %v12877_v20  ;;  %11171 = vmatprep.subr.bf16.mxu0 %v12909_v51  ;;  %v3411_v48 = vld [vmem:[%s18685_s6 + $0x25a8] sm:$0xff]  ;;  %v12796_v20 = vcombine.low %v3139_v40, %v3147_v5  ;;  %v13084_v51 = vcombine.low %v3427_v25, %v3435_v9  ;;  %v12781_v34 = vcombine.high %v3123_v54, %v3131_v38 }
 0x5f1   : > { %v3419_v45 = vld [vmem:[%s18685_s6 + $0x25e8] sm:$0xff]  ;;  %v11951_v25 = vcombine.high %v2292_v41, %v2300_v56 }
 0x5f2   : > { %v13069_v6 = vcombine.high %v3411_v48, %v3419_v45  ;;  %v3107_v2 = vld [vmem:[%s18685_s6 + $0x1c28] sm:$0xff] }
 0x5f3   : > { %11135 = vmatpush2.bf16.msra.mxu1 %v12876_v10  ;;  %11172 = vmatpush1.bf16.msra.mxu0 %v12908_v1  ;;  %v3115_v61 = vld [vmem:[%s18685_s6 + $0x1c68] sm:$0xff] }
 0x5f4   : > { %11136 = vmatprep.subr.bf16.mxu1 %v12861_v11  ;;  %11173 = vmatprep.subr.bf16.mxu0 %v12893_v57  ;;  %v3395_v10 = vld [vmem:[%s18685_s6 + $0x2528] sm:$0xff]  ;;  %v12780_v11 = vcombine.low %v3123_v54, %v3131_v38  ;;  %v13068_v57 = vcombine.low %v3411_v48, %v3419_v45  ;;  %v12765_v26 = vcombine.high %v3107_v2, %v3115_v61  ;;  %v2572_v54 = vld [vmem:[%s18685_s6 + $0xb70] sm:$0xff] }
 0x5f5   : > { %v3403_v1 = vld [vmem:[%s18685_s6 + $0x2568] sm:$0xff]  ;;  %v11950_v38 = vcombine.low %v2292_v41, %v2300_v56 }
 0x5f6   : > { %v13053_v49 = vcombine.high %v3395_v10, %v3403_v1  ;;  %v3379_v37 = vld [vmem:[%s18685_s6 + $0x24a8] sm:$0xff] }
 0x5f7   : > { %11137 = vmatpush2.bf16.msra.mxu1 %v12860_v17  ;;  %11174 = vmatpush1.bf16.msra.mxu0 %v12892_v30  ;;  %v3387_v15 = vld [vmem:[%s18685_s6 + $0x24e8] sm:$0xff]  ;;  %v2324_v17 = vld [vmem:[%s18685_s6 + $0x3b0] sm:$0xff] }
 0x5f8   : > { %11138 = vmatprep.subr.bf16.mxu1 %v12845_v44  ;;  %11175 = vmatprep.subr.bf16.mxu0 %v13133_v47  ;;  %v2332_v30 = vld [vmem:[%s18685_s6 + $0x3f0] sm:$0xff]  ;;  %v12764_v44 = vcombine.low %v3107_v2, %v3115_v61  ;;  %v13052_v47 = vcombine.low %v3395_v10, %v3403_v1  ;;  %v13037_v3 = vcombine.high %v3379_v37, %v3387_v15  ;;  %v3363_v4 = vld [vmem:[%s18685_s6 + $0x2428] sm:$0xff] }
 0x5f9   : > { %v11983_v28 = vcombine.high %v2324_v17, %v2332_v30  ;;  %v3371_v23 = vld [vmem:[%s18685_s6 + $0x2468] sm:$0xff]  ;;  %v2548_v2 = vld [vmem:[%s18685_s6 + $0xab0] sm:$0xff] }
 0x5fa   : > { %v13021_v35 = vcombine.high %v3363_v4, %v3371_v23  ;;  %v2556_v61 = vld [vmem:[%s18685_s6 + $0xaf0] sm:$0xff] }
 0x5fb   : > { %11139 = vmatpush2.bf16.msra.mxu1 %v12844_v36  ;;  %11176 = vmatpush2.bf16.msra.mxu0 %v13132_v31  ;;  %v2308_v36 = vld [vmem:[%s18685_s6 + $0x330] sm:$0xff] }
 0x5fc   : > { %11140 = vmatprep.subr.bf16.mxu1 %v12829_v32  ;;  %11177 = vmatprep.subr.bf16.mxu0 %v13117_v18  ;;  %v2316_v31 = vld [vmem:[%s18685_s6 + $0x370] sm:$0xff]  ;;  %v13036_v32 = vcombine.low %v3379_v37, %v3387_v15  ;;  %v11982_v18 = vcombine.low %v2324_v17, %v2332_v30 }
 0x5fd   : > { %v11967_v16 = vcombine.high %v2308_v36, %v2316_v31  ;;  %v11966_v40 = vcombine.low %v2308_v36, %v2316_v31  ;;  %v2244_v37 = vld [vmem:[%s18685_s6 + $0x130] sm:$0xff] }
 0x5fe   : > { %v2252_v15 = vld [vmem:[%s18685_s6 + $0x170] sm:$0xff] }
 0x5ff   : > { %11141 = vmatpush2.bf16.msra.mxu1 %v12828_v42  ;;  %11178 = vmatpush2.bf16.msra.mxu0 %v13116_v46  ;;  %v2580_v42 = vld [vmem:[%s18685_s6 + $0xbb0] sm:$0xff] }
 0x600   : > { %11142 = vmatprep.subr.bf16.mxu1 %v12813_v24  ;;  %11179 = vmatprep.subr.bf16.mxu0 %v13101_v59  ;;  %v2588_v46 = vld [vmem:[%s18685_s6 + $0xbf0] sm:$0xff]  ;;  %v13020_v59 = vcombine.low %v3363_v4, %v3371_v23  ;;  %v11903_v4 = vcombine.high %v2244_v37, %v2252_v15 }
 0x601   : > { %v12239_v9 = vcombine.high %v2580_v42, %v2588_v46  ;;  %v12238_v48 = vcombine.low %v2580_v42, %v2588_v46  ;;  %v2532_v17 = vld [vmem:[%s18685_s6 + $0xa30] sm:$0xff] }
 0x602   : > { %v2540_v30 = vld [vmem:[%s18685_s6 + $0xa70] sm:$0xff] }
 0x603   : > { %11143 = vmatpush2.bf16.msra.mxu1 %v12812_v22  ;;  %11180 = vmatpush2.bf16.msra.mxu0 %v13100_v52  ;;  %v2276_v22 = vld [vmem:[%s18685_s6 + $0x230] sm:$0xff]  ;;  %v12191_v23 = vcombine.high %v2532_v17, %v2540_v30  ;;  %v12190_v41 = vcombine.low %v2532_v17, %v2540_v30 }
 0x604   : > { %11144 = vmatprep.subr.bf16.mxu1 %v12797_v33  ;;  %11181 = vmatprep.subr.bf16.mxu0 %v13085_v58  ;;  %v2284_v52 = vld [vmem:[%s18685_s6 + $0x270] sm:$0xff] }
 0x605   : > { %v2564_v58 = vld [vmem:[%s18685_s6 + $0xb30] sm:$0xff]  ;;  %v11934_v1 = vcombine.low %v2276_v22, %v2284_v52 }
 0x606   : > { %v2228_v36 = vld [vmem:[%s18685_s6 + $0xb0] sm:$0xff] }
 0x607   : > { %11145 = vmatpush2.bf16.msra.mxu1 %v12796_v20  ;;  %11182 = vmatpush2.bf16.msra.mxu0 %v13084_v51  ;;  %v11935_v20 = vcombine.high %v2276_v22, %v2284_v52  ;;  %v2260_v51 = vld [vmem:[%s18685_s6 + $0x1b0] sm:$0xff] }
 0x608   : > { %11146 = vmatprep.subr.bf16.mxu1 %v12781_v34  ;;  %11183 = vmatprep.subr.bf16.mxu0 %v13069_v6  ;;  %v12223_v34 = vcombine.high %v2564_v58, %v2572_v54  ;;  %v2268_v6 = vld [vmem:[%s18685_s6 + $0x1f0] sm:$0xff] }
 0x609   : > { %v2236_v31 = vld [vmem:[%s18685_s6 + $0xf0] sm:$0xff] }
 0x60a   : > { %v2212_v42 = vld [vmem:[%s18685_s6 + $0x30] sm:$0xff] }
 0x60b   : > { %11147 = vmatpush2.bf16.msra.mxu1 %v12780_v11  ;;  %11184 = vmatpush2.bf16.msra.mxu0 %v13068_v57  ;;  %v12222_v11 = vcombine.low %v2564_v58, %v2572_v54  ;;  %v2220_v46 = vld [vmem:[%s18685_s6 + $0x70] sm:$0xff] }
 0x60c   : > { %11148 = vmatprep.subr.bf16.mxu1 %v12765_v26  ;;  %11185 = vmatprep.subr.bf16.mxu0 %v13053_v49  ;;  %v11919_v26 = vcombine.high %v2260_v51, %v2268_v6  ;;  %v12207_v49 = vcombine.high %v2548_v2, %v2556_v61  ;;  %v11871_v22 = vcombine.high %v2212_v42, %v2220_v46  ;;  %v2460_v58 = vld [vmem:[%s18685_s6 + $0x7f0] sm:$0xff] }
 0x60d   : > { %v2484_v54 = vld [vmem:[%s18685_s6 + $0x8b0] sm:$0xff] }
 0x60e   : > { %v2708_v17 = vld [vmem:[%s18685_s6 + $0xfb0] sm:$0xff] }
 0x60f   : > { %11149 = vmatpush2.bf16.msra.mxu1 %v12764_v44  ;;  %11186 = vmatpush2.bf16.msra.mxu0 %v13052_v47  ;;  %v11918_v47 = vcombine.low %v2260_v51, %v2268_v6  ;;  %v2444_v6 = vld [vmem:[%s18685_s6 + $0x770] sm:$0xff] }
 0x610   : > { %11187 = vmatprep.subr.bf16.mxu0 %v13037_v3  ;;  %11200 = vmatprep.subr.bf16.mxu1 %v11983_v28  ;;  %v12206_v3 = vcombine.low %v2548_v2, %v2556_v61  ;;  %v2468_v2 = vld [vmem:[%s18685_s6 + $0x830] sm:$0xff] }
 0x611   : > { %v2476_v61 = vld [vmem:[%s18685_s6 + $0x870] sm:$0xff] }
 0x612   : > { %v17654_v24 = vpop.f32.mrf.mxu1  ;;  %11151 = vmatmul.mubr.bf16.vlgmr.msra.gmra.mxu1 %v14990_v39  ;;  %v2716_v30 = vld [vmem:[%s18685_s6 + $0xff0] sm:$0xff] }
 0x613   : > { %11188 = vmatpush2.bf16.msra.mxu0 %v13036_v32  ;;  %11201 = vmatpush1.bf16.msra.mxu1 %v11982_v18  ;;  %v2516_v32 = vld [vmem:[%s18685_s6 + $0x9b0] sm:$0xff] }
 0x614   : > { %11232 = vmatprep.mubr.bf16.mxu1 %v14714_v27  ;;  %v17658_v5 = vpop.f32.mrf.mxu1  ;;  %11189 = vmatprep.subr.bf16.mxu0 %v13021_v35  ;;  %v2524_v18 = vld [vmem:[%s18685_s6 + $0x9f0] sm:$0xff]  ;;  %v11902_v35 = vcombine.low %v2244_v37, %v2252_v15 }
 0x615   : > { %11202 = vmatprep.subr.bf16.mxu1 %v11967_v16  ;;  %v11887_v16 = vcombine.high %v2228_v36, %v2236_v31  ;;  %v12175_v56 = vcombine.high %v2516_v32, %v2524_v18  ;;  %v2420_v37 = vld [vmem:[%s18685_s6 + $0x6b0] sm:$0xff] }
 0x616   : > { %v10910_v33 = vpop.f32.mrf.mxu1  ;;  %v2428_v15 = vld [vmem:[%s18685_s6 + $0x6f0] sm:$0xff] }
 0x617   : > { %11190 = vmatpush2.bf16.msra.mxu0 %v13020_v59  ;;  %11203 = vmatpush1.bf16.msra.mxu1 %v11966_v40  ;;  %v2500_v59 = vld [vmem:[%s18685_s6 + $0x930] sm:$0xff] }
 0x618   : > { %v10911_v45 = vpop.f32.mrf.mxu1  ;;  %11204 = vmatprep.subr.bf16.mxu1 %v11951_v25  ;;  %11241 = vmatprep.subr.bf16.mxu0 %v12239_v9  ;;  %v2508_v40 = vld [vmem:[%s18685_s6 + $0x970] sm:$0xff]  ;;  %v11886_v25 = vcombine.low %v2228_v36, %v2236_v31  ;;  %v12174_v9 = vcombine.low %v2516_v32, %v2524_v18  ;;  %v12078_v32 = vcombine.low %v2420_v37, %v2428_v15 }
 0x619   : > { %v12159_v52 = vcombine.high %v2500_v59, %v2508_v40  ;;  %v2452_v33 = vld [vmem:[%s18685_s6 + $0x7b0] sm:$0xff]  ;;  %v12158_v45 = vcombine.low %v2500_v59, %v2508_v40  ;;  %v12366_v18 = vcombine.low %v2708_v17, %v2716_v30 }
 0x61a   : > { %v17684_v10 = vpop.f32.mrf.mxu0  ;;  %11192 = vmatmul.mubr.bf16.vlgmr.msra.gmra.mxu0 %v15169_v14  ;;  %v2692_v36 = vld [vmem:[%s18685_s6 + $0xf30] sm:$0xff] }
 0x61b   : > { %11205 = vmatpush1.bf16.msra.mxu1 %v11950_v38  ;;  %11242 = vmatpush1.bf16.msra.mxu0 %v12238_v48  ;;  %v2492_v38 = vld [vmem:[%s18685_s6 + $0x8f0] sm:$0xff]  ;;  %v11870_v48 = vcombine.low %v2212_v42, %v2220_v46 }
 0x61c   : > { %11273 = vmatprep.mubr.bf16.mxu0 %v14743_v43  ;;  %v17688_v57 = vpop.f32.mrf.mxu0  ;;  %11206 = vmatprep.subr.bf16.mxu1 %v11935_v20  ;;  %v12111_v20 = vcombine.high %v2452_v33, %v2460_v58  ;;  %v12143_v51 = vcombine.high %v2484_v54, %v2492_v38  ;;  %v2700_v31 = vld [vmem:[%s18685_s6 + $0xf70] sm:$0xff] }
 0x61d   : > { %11243 = vmatprep.subr.bf16.mxu0 %v12223_v34  ;;  %v2436_v34 = vld [vmem:[%s18685_s6 + $0x730] sm:$0xff]  ;;  %v12350_v40 = vcombine.low %v2692_v36, %v2700_v31 }
 0x61e   : > { %v10951_v44 = vpop.f32.mrf.mxu0  ;;  %v2676_v42 = vld [vmem:[%s18685_s6 + $0xeb0] sm:$0xff] }
 0x61f   : > { %11207 = vmatpush1.bf16.msra.mxu1 %v11934_v1  ;;  %11244 = vmatpush1.bf16.msra.mxu0 %v12222_v11  ;;  %v12110_v1 = vcombine.low %v2452_v33, %v2460_v58  ;;  %v12142_v11 = vcombine.low %v2484_v54, %v2492_v38  ;;  %v12094_v44 = vcombine.low %v2436_v34, %v2444_v6  ;;  %v2684_v46 = vld [vmem:[%s18685_s6 + $0xef0] sm:$0xff] }
 0x620   : > { %v10952_v28 = vpop.f32.mrf.mxu0  ;;  %11208 = vmatprep.subr.bf16.mxu1 %v11919_v26  ;;  %11245 = vmatprep.subr.bf16.mxu0 %v12207_v49  ;;  %v12095_v26 = vcombine.high %v2436_v34, %v2444_v6  ;;  %v12127_v49 = vcombine.high %v2468_v2, %v2476_v61  ;;  %v2660_v33 = vld [vmem:[%s18685_s6 + $0xe30] sm:$0xff]  ;;  %v12334_v38 = vcombine.low %v2676_v42, %v2684_v46 }
 0x621   : > { %v12367_v28 = vcombine.high %v2708_v17, %v2716_v30  ;;  %v2668_v58 = vld [vmem:[%s18685_s6 + $0xe70] sm:$0xff] }
 0x622   : > { %v2644_v34 = vld [vmem:[%s18685_s6 + $0xdb0] sm:$0xff] }
 0x623   : > { %11209 = vmatpush1.bf16.msra.mxu1 %v11918_v47  ;;  %11246 = vmatpush1.bf16.msra.mxu0 %v12206_v3  ;;  %v12126_v47 = vcombine.low %v2468_v2, %v2476_v61  ;;  %v12079_v3 = vcombine.high %v2420_v37, %v2428_v15  ;;  %v2652_v6 = vld [vmem:[%s18685_s6 + $0xdf0] sm:$0xff]  ;;  %v12318_v61 = vcombine.low %v2660_v33, %v2668_v58 }
 0x624   : > { %11210 = vmatprep.subr.bf16.mxu1 %v11903_v4  ;;  %11247 = vmatprep.subr.bf16.mxu0 %v12191_v23  ;;  %v2404_v4 = vld [vmem:[%s18685_s6 + $0x630] sm:$0xff]  ;;  %v12302_v30 = vcombine.low %v2644_v34, %v2652_v6 }
 0x625   : > { %v2412_v23 = vld [vmem:[%s18685_s6 + $0x670] sm:$0xff] }
 0x626   : > { %v12062_v59 = vcombine.low %v2404_v4, %v2412_v23  ;;  %v2628_v37 = vld [vmem:[%s18685_s6 + $0xd30] sm:$0xff] }
 0x627   : > { %11211 = vmatpush1.bf16.msra.mxu1 %v11902_v35  ;;  %11248 = vmatpush1.bf16.msra.mxu0 %v12190_v41  ;;  %v12063_v35 = vcombine.high %v2404_v4, %v2412_v23  ;;  %v12351_v41 = vcombine.high %v2692_v36, %v2700_v31  ;;  %v2636_v15 = vld [vmem:[%s18685_s6 + $0xd70] sm:$0xff] }
 0x628   : > { %11212 = vmatprep.subr.bf16.mxu1 %v11887_v16  ;;  %11249 = vmatprep.subr.bf16.mxu0 %v12175_v56  ;;  %v2388_v16 = vld [vmem:[%s18685_s6 + $0x5b0] sm:$0xff]  ;;  %v12286_v31 = vcombine.low %v2628_v37, %v2636_v15 }
 0x629   : > { %v2396_v56 = vld [vmem:[%s18685_s6 + $0x5f0] sm:$0xff] }
 0x62a   : > { %v12046_v54 = vcombine.low %v2388_v16, %v2396_v56  ;;  %v2836_v4 = vld [vmem:[%s18685_s6 + $0x13b0] sm:$0xff] }
 0x62b   : > { %11213 = vmatpush1.bf16.msra.mxu1 %v11886_v25  ;;  %11250 = vmatpush1.bf16.msra.mxu0 %v12174_v9  ;;  %v12047_v25 = vcombine.high %v2388_v16, %v2396_v56  ;;  %v12335_v9 = vcombine.high %v2676_v42, %v2684_v46  ;;  %v2844_v23 = vld [vmem:[%s18685_s6 + $0x13f0] sm:$0xff]  ;;  %v10907_v42 = vadd.f32 %v17654_v24, %v17481_v62 }
 0x62c   : > { %11214 = vmatprep.subr.bf16.mxu1 %v11871_v22  ;;  %11251 = vmatprep.subr.bf16.mxu0 %v12159_v52  ;;  %v2372_v22 = vld [vmem:[%s18685_s6 + $0x530] sm:$0xff] }
 0x62d   : > { %v2380_v52 = vld [vmem:[%s18685_s6 + $0x570] sm:$0xff] }
 0x62e   : > { %v12030_v2 = vcombine.low %v2372_v22, %v2380_v52  ;;  %v2820_v16 = vld [vmem:[%s18685_s6 + $0x1330] sm:$0xff] }
 0x62f   : > { %11215 = vmatpush1.bf16.msra.mxu1 %v11870_v48  ;;  %11252 = vmatpush1.bf16.msra.mxu0 %v12158_v45  ;;  %v12031_v48 = vcombine.high %v2372_v22, %v2380_v52  ;;  %v12319_v45 = vcombine.high %v2660_v33, %v2668_v58  ;;  %v2828_v56 = vld [vmem:[%s18685_s6 + $0x1370] sm:$0xff]  ;;  %v10948_v22 = vadd.f32 %v17684_v10, %v10907_v42 }
 0x630   : > { %11216 = vmatprep.subr.bf16.mxu1 %v12111_v20  ;;  %11253 = vmatprep.subr.bf16.mxu0 %v12143_v51  ;;  %v2356_v20 = vld [vmem:[%s18685_s6 + $0x4b0] sm:$0xff]  ;;  %v12479_v52 = vcombine.high %v2820_v16, %v2828_v56 }
 0x631   : > { %v2364_v51 = vld [vmem:[%s18685_s6 + $0x4f0] sm:$0xff] }
 0x632   : > { %v12014_v17 = vcombine.low %v2356_v20, %v2364_v51  ;;  %v2812_v62 = vld [vmem:[%s18685_s6 + $0x12f0] sm:$0xff] }
 0x633   : > { %11217 = vmatpush2.bf16.msra.mxu1 %v12110_v1  ;;  %11254 = vmatpush1.bf16.msra.mxu0 %v12142_v11  ;;  %v12015_v1 = vcombine.high %v2356_v20, %v2364_v51  ;;  %v12303_v11 = vcombine.high %v2644_v34, %v2652_v6  ;;  %v3092_v24 = vld [vmem:[%s18685_s6 + $0x1bb0] sm:$0xff] }
 0x634   : > { %11218 = vmatprep.subr.bf16.mxu1 %v12095_v26  ;;  %11255 = vmatprep.subr.bf16.mxu0 %v12127_v49  ;;  %v2340_v26 = vld [vmem:[%s18685_s6 + $0x430] sm:$0xff] }
 0x635   : > { %v2348_v49 = vld [vmem:[%s18685_s6 + $0x470] sm:$0xff] }
 0x636   : > { %v11998_v36 = vcombine.low %v2340_v26, %v2348_v49  ;;  %v3100_v33 = vld [vmem:[%s18685_s6 + $0x1bf0] sm:$0xff] }
 0x637   : > { %11219 = vmatpush2.bf16.msra.mxu1 %v12094_v44  ;;  %11256 = vmatpush1.bf16.msra.mxu0 %v12126_v47  ;;  %v11999_v44 = vcombine.high %v2340_v26, %v2348_v49  ;;  %v12287_v47 = vcombine.high %v2628_v37, %v2636_v15  ;;  %v2788_v51 = vld [vmem:[%s18685_s6 + $0x1230] sm:$0xff] }
 0x638   : > { %11220 = vmatprep.subr.bf16.mxu1 %v12079_v3  ;;  %11257 = vmatprep.subr.bf16.mxu0 %v12367_v28  ;;  %v2612_v3 = vld [vmem:[%s18685_s6 + $0xcb0] sm:$0xff] }
 0x639   : > { %v2620_v28 = vld [vmem:[%s18685_s6 + $0xcf0] sm:$0xff] }
 0x63a   : > { %v12270_v46 = vcombine.low %v2612_v3, %v2620_v28  ;;  %v3076_v6 = vld [vmem:[%s18685_s6 + $0x1b30] sm:$0xff] }
 0x63b   : > { %11221 = vmatpush2.bf16.msra.mxu1 %v12078_v32  ;;  %11258 = vmatpush2.bf16.msra.mxu0 %v12366_v18  ;;  %v12271_v32 = vcombine.high %v2612_v3, %v2620_v28  ;;  %v12495_v18 = vcombine.high %v2836_v4, %v2844_v23  ;;  %v2772_v49 = vld [vmem:[%s18685_s6 + $0x11b0] sm:$0xff] }
 0x63c   : > { %11222 = vmatprep.subr.bf16.mxu1 %v12063_v35  ;;  %11259 = vmatprep.subr.bf16.mxu0 %v12351_v41  ;;  %v2596_v35 = vld [vmem:[%s18685_s6 + $0xc30] sm:$0xff] }
 0x63d   : > { %v2604_v41 = vld [vmem:[%s18685_s6 + $0xc70] sm:$0xff] }
 0x63e   : > { %v2780_v15 = vld [vmem:[%s18685_s6 + $0x11f0] sm:$0xff] }
 0x63f   : > { %11223 = vmatpush2.bf16.msra.mxu1 %v12062_v59  ;;  %11260 = vmatpush2.bf16.msra.mxu0 %v12350_v40  ;;  %v12494_v59 = vcombine.low %v2836_v4, %v2844_v23  ;;  %v12255_v40 = vcombine.high %v2596_v35, %v2604_v41  ;;  %v12431_v4 = vcombine.high %v2772_v49, %v2780_v15 }
 0x640   : > { %11224 = vmatprep.subr.bf16.mxu1 %v12047_v25  ;;  %11261 = vmatprep.subr.bf16.mxu0 %v12335_v9  ;;  %v2804_v25 = vld [vmem:[%s18685_s6 + $0x12b0] sm:$0xff]  ;;  %v10909_v9 = vadd.f32 %v17658_v5, %v17487_v63  ;;  %v12254_v63 = vcombine.low %v2596_v35, %v2604_v41  ;;  %v12430_v41 = vcombine.low %v2772_v49, %v2780_v15 }
 0x641   : > { %v2988_v49 = vld [vmem:[%s18685_s6 + $0x1870] sm:$0xff] }
 0x642   : > { %v10950_v5 = vadd.f32 %v17688_v57, %v10909_v9  ;;  %v2796_v57 = vld [vmem:[%s18685_s6 + $0x1270] sm:$0xff] }
 0x643   : > { %11225 = vmatpush2.bf16.msra.mxu1 %v12046_v54  ;;  %11262 = vmatpush2.bf16.msra.mxu0 %v12334_v38  ;;  %v12478_v54 = vcombine.low %v2820_v16, %v2828_v56  ;;  %v12447_v26 = vcombine.high %v2788_v51, %v2796_v57  ;;  %v3036_v9 = vld [vmem:[%s18685_s6 + $0x19f0] sm:$0xff] }
 0x644   : > { %11226 = vmatprep.subr.bf16.mxu1 %v12031_v48  ;;  %11263 = vmatprep.subr.bf16.mxu0 %v12319_v45  ;;  %v12463_v48 = vcombine.high %v2804_v25, %v2812_v62  ;;  %v12751_v45 = vcombine.high %v3092_v24, %v3100_v33 }
 0x647   : > { %11227 = vmatpush2.bf16.msra.mxu1 %v12030_v2  ;;  %11264 = vmatpush2.bf16.msra.mxu0 %v12318_v61  ;;  %v3084_v2 = vld [vmem:[%s18685_s6 + $0x1b70] sm:$0xff]  ;;  %v12462_v61 = vcombine.low %v2804_v25, %v2812_v62 }
 0x648   : > { %11228 = vmatprep.subr.bf16.mxu1 %v12015_v1  ;;  %11265 = vmatprep.subr.bf16.mxu0 %v12303_v11  ;;  %v12750_v1 = vcombine.low %v3092_v24, %v3100_v33  ;;  %v12735_v37 = vcombine.high %v3076_v6, %v3084_v2  ;;  %v12734_v3 = vcombine.low %v3076_v6, %v3084_v2  ;;  %v3028_v25 = vld [vmem:[%s18685_s6 + $0x19b0] sm:$0xff] }
 0x649   : > { %v12687_v24 = vcombine.high %v3028_v25, %v3036_v9  ;;  %v2724_v33 = vld [vmem:[%s18685_s6 + $0x1030] sm:$0xff] }
 0x64b   : > { %11229 = vmatpush2.bf16.msra.mxu1 %v12014_v17  ;;  %11266 = vmatpush2.bf16.msra.mxu0 %v12302_v30  ;;  %v3060_v17 = vld [vmem:[%s18685_s6 + $0x1ab0] sm:$0xff] }
 0x64c   : > { %11230 = vmatprep.subr.bf16.mxu1 %v11999_v44  ;;  %11267 = vmatprep.subr.bf16.mxu0 %v12287_v47  ;;  %v3068_v30 = vld [vmem:[%s18685_s6 + $0x1af0] sm:$0xff]  ;;  %v12446_v47 = vcombine.low %v2788_v51, %v2796_v57 }
 0x64d   : > { %v12719_v23 = vcombine.high %v3060_v17, %v3068_v30  ;;  %v12718_v16 = vcombine.low %v3060_v17, %v3068_v30  ;;  %v2996_v51 = vld [vmem:[%s18685_s6 + $0x18b0] sm:$0xff] }
 0x64e   : > { %v3004_v57 = vld [vmem:[%s18685_s6 + $0x18f0] sm:$0xff] }
 0x64f   : > { %11231 = vmatpush2.bf16.msra.mxu1 %v11998_v36  ;;  %11268 = vmatpush2.bf16.msra.mxu0 %v12286_v31  ;;  %v2756_v36 = vld [vmem:[%s18685_s6 + $0x1130] sm:$0xff]  ;;  %v12654_v15 = vcombine.low %v2996_v51, %v3004_v57 }
 0x650   : > { %11269 = vmatprep.subr.bf16.mxu0 %v12271_v32  ;;  %11282 = vmatprep.subr.bf16.mxu1 %v12495_v18  ;;  %v2764_v31 = vld [vmem:[%s18685_s6 + $0x1170] sm:$0xff] }
 0x651   : > { %v3044_v32 = vld [vmem:[%s18685_s6 + $0x1a30] sm:$0xff]  ;;  %v12415_v42 = vcombine.high %v2756_v36, %v2764_v31 }
 0x652   : > { %v10988_v58 = vpop.f32.mrf.mxu1  ;;  %11233 = vmatmul.mubr.bf16.vlgmr.msra.gmra.mxu1 %v14716_v55  ;;  %v3052_v18 = vld [vmem:[%s18685_s6 + $0x1a70] sm:$0xff] }
 0x653   : > { %v10989_v10 = vadd.f32 %v10988_v58, %v10948_v22  ;;  %11270 = vmatpush2.bf16.msra.mxu0 %v12270_v46  ;;  %11283 = vmatpush1.bf16.msra.mxu1 %v12494_v59  ;;  %v12703_v46 = vcombine.high %v3044_v32, %v3052_v18  ;;  %v2740_v59 = vld [vmem:[%s18685_s6 + $0x10b0] sm:$0xff]  ;;  %v12414_v22 = vcombine.low %v2756_v36, %v2764_v31 }
 0x654   : > { %11314 = vmatprep.mubr.bf16.mxu1 %v14792_v19  ;;  %v10990_v38 = vpop.f32.mrf.mxu1  ;;  %11271 = vmatprep.subr.bf16.mxu0 %v12255_v40  ;;  %v2748_v40 = vld [vmem:[%s18685_s6 + $0x10f0] sm:$0xff] }
 0x655   : > { %11618 = vst [vmem:[%s15798_s16 + $0x40] sm:$0xff] %v10989_v10  ;;  %v10991_v20 = vadd.f32 %v10990_v38, %v10950_v5  ;;  %11284 = vmatprep.subr.bf16.mxu1 %v12479_v52  ;;  %v12702_v52 = vcombine.low %v3044_v32, %v3052_v18  ;;  %v12399_v62 = vcombine.high %v2740_v59, %v2748_v40  ;;  %v2732_v58 = vld [vmem:[%s18685_s6 + $0x1070] sm:$0xff] }
 0x656   : > { %v10992_v34 = vpop.f32.mrf.mxu1  ;;  %v3020_v5 = vld [vmem:[%s18685_s6 + $0x1970] sm:$0xff]  ;;  %v12398_v10 = vcombine.low %v2740_v59, %v2748_v40  ;;  %v12383_v38 = vcombine.high %v2724_v33, %v2732_v58 }
 0x657   : > { %11619 = vst [vmem:[%s15798_s16 + $0x48] sm:$0xff] %v10991_v20  ;;  %11272 = vmatpush2.bf16.msra.mxu0 %v12254_v63  ;;  %11285 = vmatpush1.bf16.msra.mxu1 %v12478_v54  ;;  %v3012_v63 = vld [vmem:[%s18685_s6 + $0x1930] sm:$0xff]  ;;  %v12686_v54 = vcombine.low %v3028_v25, %v3036_v9  ;;  %v12382_v34 = vcombine.low %v2724_v33, %v2732_v58 }
 0x658   : > { %v10993_v11 = vpop.f32.mrf.mxu1  ;;  %11286 = vmatprep.subr.bf16.mxu1 %v12463_v48  ;;  %11323 = vmatprep.subr.bf16.mxu0 %v12751_v45  ;;  %v12671_v48 = vcombine.high %v3012_v63, %v3020_v5  ;;  %v2964_v45 = vld [vmem:[%s18685_s6 + $0x17b0] sm:$0xff]  ;;  %v12670_v6 = vcombine.low %v3012_v63, %v3020_v5 }
 0x659   : > { %v2972_v20 = vld [vmem:[%s18685_s6 + $0x17f0] sm:$0xff] }
 0x65a   : > { %v17892_v44 = vpop.f32.mrf.mxu0  ;;  %11274 = vmatmul.mubr.bf16.vlgmr.msra.gmra.mxu0 %v14748_v53  ;;  %v12623_v2 = vcombine.high %v2964_v45, %v2972_v20  ;;  %v2956_v11 = vld [vmem:[%s18685_s6 + $0x1770] sm:$0xff] }
 0x65b   : > { %11287 = vmatpush1.bf16.msra.mxu1 %v12462_v61  ;;  %11324 = vmatpush1.bf16.msra.mxu0 %v12750_v1  ;;  %v12655_v61 = vcombine.high %v2996_v51, %v3004_v57  ;;  %v2948_v1 = vld [vmem:[%s18685_s6 + $0x1730] sm:$0xff] }
 0x65c   : > { %11355 = vmatprep.mubr.bf16.mxu0 %v14833_v8  ;;  %v17896_v28 = vpop.f32.mrf.mxu0  ;;  %11288 = vmatprep.subr.bf16.mxu1 %v12447_v26  ;;  %v2980_v26 = vld [vmem:[%s18685_s6 + $0x1830] sm:$0xff]  ;;  %v12607_v17 = vcombine.high %v2948_v1, %v2956_v11  ;;  %v12606_v36 = vcombine.low %v2948_v1, %v2956_v11 }
 0x65d   : > { %11325 = vmatprep.subr.bf16.mxu0 %v12735_v37  ;;  %v12622_v37 = vcombine.low %v2964_v45, %v2972_v20  ;;  %v12639_v30 = vcombine.high %v2980_v26, %v2988_v49  ;;  %v12638_v31 = vcombine.low %v2980_v26, %v2988_v49  ;;  %v2900_v25 = vld [vmem:[%s18685_s6 + $0x15b0] sm:$0xff] }
 0x65e   : > { %v11033_v35 = vpop.f32.mrf.mxu0  ;;  %v2908_v9 = vld [vmem:[%s18685_s6 + $0x15f0] sm:$0xff] }
 0x65f   : > { %11289 = vmatpush1.bf16.msra.mxu1 %v12446_v47  ;;  %11326 = vmatpush1.bf16.msra.mxu0 %v12734_v3  ;;  %v2932_v47 = vld [vmem:[%s18685_s6 + $0x16b0] sm:$0xff]  ;;  %v12559_v33 = vcombine.high %v2900_v25, %v2908_v9 }
 0x660   : > { %v11034_v56 = vpop.f32.mrf.mxu0  ;;  %11290 = vmatprep.subr.bf16.mxu1 %v12431_v4  ;;  %11327 = vmatprep.subr.bf16.mxu0 %v12719_v23  ;;  %v2940_v3 = vld [vmem:[%s18685_s6 + $0x16f0] sm:$0xff] }
 0x661   : > { %v3220_v4 = vld [vmem:[%s18685_s6 + $0x1fb0] sm:$0xff]  ;;  %v12591_v32 = vcombine.high %v2932_v47, %v2940_v3 }
 0x662   : > { %v3228_v23 = vld [vmem:[%s18685_s6 + $0x1ff0] sm:$0xff] }
 0x663   : > { %11291 = vmatpush1.bf16.msra.mxu1 %v12430_v41  ;;  %11328 = vmatpush1.bf16.msra.mxu0 %v12718_v16  ;;  %v12879_v18 = vcombine.high %v3220_v4, %v3228_v23  ;;  %v2916_v35 = vld [vmem:[%s18685_s6 + $0x1630] sm:$0xff] }
 0x664   : > { %11292 = vmatprep.subr.bf16.mxu1 %v12415_v42  ;;  %11329 = vmatprep.subr.bf16.mxu0 %v12703_v46  ;;  %v2924_v41 = vld [vmem:[%s18685_s6 + $0x1670] sm:$0xff]  ;;  %v12590_v42 = vcombine.low %v2932_v47, %v2940_v3  ;;  %v12878_v46 = vcombine.low %v3220_v4, %v3228_v23 }
 0x665   : > { %v3204_v16 = vld [vmem:[%s18685_s6 + $0x1f30] sm:$0xff]  ;;  %v12575_v59 = vcombine.high %v2916_v35, %v2924_v41 }
 0x666   : > { %v3212_v56 = vld [vmem:[%s18685_s6 + $0x1f70] sm:$0xff] }
 0x667   : > { %11293 = vmatpush1.bf16.msra.mxu1 %v12414_v22  ;;  %11330 = vmatpush1.bf16.msra.mxu0 %v12702_v52  ;;  %v12863_v40 = vcombine.high %v3204_v16, %v3212_v56  ;;  %v3188_v22 = vld [vmem:[%s18685_s6 + $0x1eb0] sm:$0xff] }
 0x668   : > { %11294 = vmatprep.subr.bf16.mxu1 %v12399_v62  ;;  %11331 = vmatprep.subr.bf16.mxu0 %v12687_v24  ;;  %v3196_v52 = vld [vmem:[%s18685_s6 + $0x1ef0] sm:$0xff]  ;;  %v12574_v62 = vcombine.low %v2916_v35, %v2924_v41  ;;  %v12862_v24 = vcombine.low %v3204_v16, %v3212_v56  ;;  %v18045_v16 = vld [vmem:[%s18686_s7 + $0x8] sm:$0xff] }
 0x669   : > { %v12847_v58 = vcombine.high %v3188_v22, %v3196_v52  ;;  %v2884_v63 = vld [vmem:[%s18685_s6 + $0x1530] sm:$0xff]  ;;  %v3533_v56 = vrot.slane %v18045_v16, %v14669_v29 }
 0x66a   : > { %v2892_v5 = vld [vmem:[%s18685_s6 + $0x1570] sm:$0xff] }
 0x66b   : > { %11295 = vmatpush1.bf16.msra.mxu1 %v12398_v10  ;;  %11332 = vmatpush1.bf16.msra.mxu0 %v12686_v54  ;;  %v3172_v10 = vld [vmem:[%s18685_s6 + $0x1e30] sm:$0xff]  ;;  %v12543_v45 = vcombine.high %v2884_v63, %v2892_v5 }
 0x66c   : > { %11296 = vmatprep.subr.bf16.mxu1 %v12383_v38  ;;  %11333 = vmatprep.subr.bf16.mxu0 %v12671_v48  ;;  %v3180_v54 = vld [vmem:[%s18685_s6 + $0x1e70] sm:$0xff]  ;;  %v12558_v38 = vcombine.low %v2900_v25, %v2908_v9  ;;  %v12846_v48 = vcombine.low %v3188_v22, %v3196_v52  ;;  %v3537_v25 = vrot.slane %v18045_v16, %v14672_v13  ;;  %v2325_v13 = vld [vmem:[%s18685_s6 + $0x3b8] sm:$0xff] }
 0x66d   : > { %v12831_v20 = vcombine.high %v3172_v10, %v3180_v54  ;;  %v2868_v51 = vld [vmem:[%s18685_s6 + $0x14b0] sm:$0xff] }
 0x66e   : > { %v2876_v57 = vld [vmem:[%s18685_s6 + $0x14f0] sm:$0xff] }
 0x66f   : > { %11297 = vmatpush1.bf16.msra.mxu1 %v12382_v34  ;;  %11334 = vmatpush1.bf16.msra.mxu0 %v12670_v6  ;;  %v3156_v34 = vld [vmem:[%s18685_s6 + $0x1db0] sm:$0xff]  ;;  %v12527_v1 = vcombine.high %v2868_v51, %v2876_v57 }
 0x670   : > { %11298 = vmatprep.subr.bf16.mxu1 %v12623_v2  ;;  %11335 = vmatprep.subr.bf16.mxu0 %v12655_v61  ;;  %v3164_v6 = vld [vmem:[%s18685_s6 + $0x1df0] sm:$0xff]  ;;  %v12542_v2 = vcombine.low %v2884_v63, %v2892_v5  ;;  %v12830_v61 = vcombine.low %v3172_v10, %v3180_v54  ;;  %v11032_v10 = vadd.f32 %v17896_v28, %v3537_v25 }
 0x671   : > { %v12815_v11 = vcombine.high %v3156_v34, %v3164_v6  ;;  %v2852_v26 = vld [vmem:[%s18685_s6 + $0x1430] sm:$0xff] }
 0x672   : > { %v2860_v49 = vld [vmem:[%s18685_s6 + $0x1470] sm:$0xff] }
 0x673   : > { %11299 = vmatpush2.bf16.msra.mxu1 %v12622_v37  ;;  %11336 = vmatpush1.bf16.msra.mxu0 %v12654_v15  ;;  %v3140_v37 = vld [vmem:[%s18685_s6 + $0x1d30] sm:$0xff]  ;;  %v12511_v47 = vcombine.high %v2852_v26, %v2860_v49 }
 0x674   : > { %11300 = vmatprep.subr.bf16.mxu1 %v12607_v17  ;;  %11337 = vmatprep.subr.bf16.mxu0 %v12639_v30  ;;  %v3148_v15 = vld [vmem:[%s18685_s6 + $0x1d70] sm:$0xff]  ;;  %v12526_v17 = vcombine.low %v2868_v51, %v2876_v57  ;;  %v12814_v30 = vcombine.low %v3156_v34, %v3164_v6  ;;  %v2309_v34 = vld [vmem:[%s18685_s6 + $0x338] sm:$0xff] }
 0x675   : > { %v12799_v3 = vcombine.high %v3140_v37, %v3148_v15  ;;  %v3124_v4 = vld [vmem:[%s18685_s6 + $0x1cb0] sm:$0xff]  ;;  %v2317_v6 = vld [vmem:[%s18685_s6 + $0x378] sm:$0xff] }
 0x676   : > { %v3132_v23 = vld [vmem:[%s18685_s6 + $0x1cf0] sm:$0xff] }
 0x677   : > { %11301 = vmatpush2.bf16.msra.mxu1 %v12606_v36  ;;  %11338 = vmatpush1.bf16.msra.mxu0 %v12638_v31  ;;  %v3348_v36 = vld [vmem:[%s18685_s6 + $0x23b0] sm:$0xff]  ;;  %v12783_v35 = vcombine.high %v3124_v4, %v3132_v23  ;;  %v12782_v29 = vcombine.low %v3124_v4, %v3132_v23 }
 0x678   : > { %11302 = vmatprep.subr.bf16.mxu1 %v12591_v32  ;;  %11339 = vmatprep.subr.bf16.mxu0 %v12879_v18  ;;  %v3356_v31 = vld [vmem:[%s18685_s6 + $0x23f0] sm:$0xff]  ;;  %v12510_v32 = vcombine.low %v2852_v26, %v2860_v49  ;;  %v12798_v18 = vcombine.low %v3140_v37, %v3148_v15  ;;  %v11969_v49 = vcombine.high %v2309_v34, %v2317_v6  ;;  %v2293_v15 = vld [vmem:[%s18685_s6 + $0x2b8] sm:$0xff] }
 0x679   : > { %v13007_v41 = vcombine.high %v3348_v36, %v3356_v31  ;;  %v13006_v9 = vcombine.low %v3348_v36, %v3356_v31  ;;  %v3316_v52 = vld [vmem:[%s18685_s6 + $0x22b0] sm:$0xff] }
 0x67a   : > { %v3300_v51 = vld [vmem:[%s18685_s6 + $0x2230] sm:$0xff] }
 0x67b   : > { %11303 = vmatpush2.bf16.msra.mxu1 %v12590_v42  ;;  %11340 = vmatpush2.bf16.msra.mxu0 %v12878_v46  ;;  %v3108_v42 = vld [vmem:[%s18685_s6 + $0x1c30] sm:$0xff] }
 0x67c   : > { %11304 = vmatprep.subr.bf16.mxu1 %v12575_v59  ;;  %11341 = vmatprep.subr.bf16.mxu0 %v12863_v40  ;;  %v3116_v46 = vld [vmem:[%s18685_s6 + $0x1c70] sm:$0xff] }
 0x67d   : > { %v3332_v59 = vld [vmem:[%s18685_s6 + $0x2330] sm:$0xff]  ;;  %v12767_v22 = vcombine.high %v3108_v42, %v3116_v46  ;;  %v12766_v5 = vcombine.low %v3108_v42, %v3116_v46 }
 0x67e   : > { %v3340_v40 = vld [vmem:[%s18685_s6 + $0x2370] sm:$0xff] }
 0x67f   : > { %11305 = vmatpush2.bf16.msra.mxu1 %v12574_v62  ;;  %11342 = vmatpush2.bf16.msra.mxu0 %v12862_v24  ;;  %v11030_v62 = vadd.f32 %v17892_v44, %v3533_v56  ;;  %v12991_v24 = vcombine.high %v3332_v59, %v3340_v40  ;;  %v12990_v54 = vcombine.low %v3332_v59, %v3340_v40  ;;  %v3308_v28 = vld [vmem:[%s18685_s6 + $0x2270] sm:$0xff] }
 0x680   : > { %11306 = vmatprep.subr.bf16.mxu1 %v12559_v33  ;;  %11343 = vmatprep.subr.bf16.mxu0 %v12847_v58  ;;  %v3324_v33 = vld [vmem:[%s18685_s6 + $0x22f0] sm:$0xff]  ;;  %v2333_v58 = vld [vmem:[%s18685_s6 + $0x3f8] sm:$0xff] }
 0x681   : > { %v3284_v26 = vld [vmem:[%s18685_s6 + $0x21b0] sm:$0xff] }
 0x682   : > { %v3292_v37 = vld [vmem:[%s18685_s6 + $0x21f0] sm:$0xff] }
 0x683   : > { %11307 = vmatpush2.bf16.msra.mxu1 %v12558_v38  ;;  %11344 = vmatpush2.bf16.msra.mxu0 %v12846_v48  ;;  %v12975_v48 = vcombine.high %v3316_v52, %v3324_v33  ;;  %v12943_v23 = vcombine.high %v3284_v26, %v3292_v37  ;;  %v3268_v31 = vld [vmem:[%s18685_s6 + $0x2130] sm:$0xff] }
 0x684   : > { %11308 = vmatprep.subr.bf16.mxu1 %v12543_v45  ;;  %11345 = vmatprep.subr.bf16.mxu0 %v12831_v20  ;;  %v11985_v45 = vcombine.high %v2325_v13, %v2333_v58  ;;  %v3252_v40 = vld [vmem:[%s18685_s6 + $0x20b0] sm:$0xff] }
 0x685   : > { %v3260_v25 = vld [vmem:[%s18685_s6 + $0x20f0] sm:$0xff] }
 0x687   : > { %11309 = vmatpush2.bf16.msra.mxu1 %v12542_v2  ;;  %11346 = vmatpush2.bf16.msra.mxu0 %v12830_v61  ;;  %v12974_v2 = vcombine.low %v3316_v52, %v3324_v33  ;;  %v11984_v61 = vcombine.low %v2325_v13, %v2333_v58  ;;  %v3236_v33 = vld [vmem:[%s18685_s6 + $0x2030] sm:$0xff]  ;;  %v2245_v58 = vld [vmem:[%s18685_s6 + $0x138] sm:$0xff] }
 0x688   : > { %11310 = vmatprep.subr.bf16.mxu1 %v12527_v1  ;;  %11347 = vmatprep.subr.bf16.mxu0 %v12815_v11  ;;  %v12959_v11 = vcombine.high %v3300_v51, %v3308_v28  ;;  %v3244_v13 = vld [vmem:[%s18685_s6 + $0x2070] sm:$0xff] }
 0x68b   : > { %11311 = vmatpush2.bf16.msra.mxu1 %v12526_v17  ;;  %11348 = vmatpush2.bf16.msra.mxu0 %v12814_v30  ;;  %v2301_v17 = vld [vmem:[%s18685_s6 + $0x2f8] sm:$0xff] }
 0x68c   : > { %11312 = vmatprep.subr.bf16.mxu1 %v12511_v47  ;;  %11349 = vmatprep.subr.bf16.mxu0 %v12799_v3  ;;  %v12958_v47 = vcombine.low %v3300_v51, %v3308_v28  ;;  %v11968_v3 = vcombine.low %v2309_v34, %v2317_v6  ;;  %v11953_v36 = vcombine.high %v2293_v15, %v2301_v17  ;;  %v2229_v51 = vld [vmem:[%s18685_s6 + $0xb8] sm:$0xff] }
 0x68d   : > { %v11952_v56 = vcombine.low %v2293_v15, %v2301_v17  ;;  %v2237_v28 = vld [vmem:[%s18685_s6 + $0xf8] sm:$0xff] }
 0x68f   : > { %11313 = vmatpush2.bf16.msra.mxu1 %v12510_v32  ;;  %11350 = vmatpush2.bf16.msra.mxu0 %v12798_v18  ;;  %v3276_v32 = vld [vmem:[%s18685_s6 + $0x2170] sm:$0xff]  ;;  %v2277_v18 = vld [vmem:[%s18685_s6 + $0x238] sm:$0xff] }
 0x690   : > { %11351 = vmatprep.subr.bf16.mxu0 %v12783_v35  ;;  %11364 = vmatprep.subr.bf16.mxu1 %v13007_v41  ;;  %v12942_v41 = vcombine.low %v3284_v26, %v3292_v37  ;;  %v12927_v46 = vcombine.high %v3268_v31, %v3276_v32  ;;  %v2221_v26 = vld [vmem:[%s18685_s6 + $0x78] sm:$0xff]  ;;  %v11888_v37 = vcombine.low %v2229_v51, %v2237_v28 }
 0x692   : > { %v11070_v63 = vpop.f32.mrf.mxu1  ;;  %11315 = vmatmul.mubr.bf16.vlgmr.msra.gmra.mxu1 %v14959_v0 }
 0x693   : > { %v18078_v44 = vadd.f32 %v11070_v63, %v11030_v62  ;;  %11352 = vmatpush2.bf16.msra.mxu0 %v12782_v29  ;;  %11365 = vmatpush1.bf16.msra.mxu1 %v13006_v9  ;;  %v2261_v29 = vld [vmem:[%s18685_s6 + $0x1b8] sm:$0xff]  ;;  %v12911_v62 = vcombine.high %v3252_v40, %v3260_v25 }
 0x694   : > { %11396 = vmatprep.mubr.bf16.mxu1 %v14973_v21  ;;  %v11072_v38 = vpop.f32.mrf.mxu1  ;;  %11353 = vmatprep.subr.bf16.mxu0 %v12767_v22  ;;  %v2269_v9 = vld [vmem:[%s18685_s6 + $0x1f8] sm:$0xff]  ;;  %v12926_v22 = vcombine.low %v3268_v31, %v3276_v32 }
 0x695   : > { %v18081_v20 = vadd.f32 %v11072_v38, %v11032_v10  ;;  %11366 = vmatprep.subr.bf16.mxu1 %v12991_v24  ;;  %v11921_v24 = vcombine.high %v2261_v29, %v2269_v9  ;;  %v2253_v63 = vld [vmem:[%s18685_s6 + $0x178] sm:$0xff]  ;;  %v11920_v10 = vcombine.low %v2261_v29, %v2269_v9  ;;  %v3412_v29 = vld [vmem:[%s18685_s6 + $0x25b0] sm:$0xff] }
 0x696   : > { %v11074_v57 = vpop.f32.mrf.mxu1  ;;  %v11905_v38 = vcombine.high %v2245_v58, %v2253_v63  ;;  %v11904_v34 = vcombine.low %v2245_v58, %v2253_v63  ;;  %v3420_v9 = vld [vmem:[%s18685_s6 + $0x25f0] sm:$0xff] }
 0x697   : > { %11354 = vmatpush2.bf16.msra.mxu0 %v12766_v5  ;;  %11367 = vmatpush1.bf16.msra.mxu1 %v12990_v54  ;;  %v12910_v5 = vcombine.low %v3252_v40, %v3260_v25  ;;  %v12895_v54 = vcombine.high %v3236_v33, %v3244_v13  ;;  %v12894_v57 = vcombine.low %v3236_v33, %v3244_v13  ;;  %v3396_v58 = vld [vmem:[%s18685_s6 + $0x2530] sm:$0xff] }
 0x698   : > { %v11075_v1 = vpop.f32.mrf.mxu1  ;;  %11368 = vmatprep.subr.bf16.mxu1 %v12975_v48  ;;  %11405 = vmatprep.subr.bf16.mxu0 %v11985_v45  ;;  %v3476_v48 = vld [vmem:[%s18685_s6 + $0x27b0] sm:$0xff]  ;;  %v13071_v33 = vcombine.high %v3412_v29, %v3420_v9 }
 0x699   : > { %v3484_v45 = vld [vmem:[%s18685_s6 + $0x27f0] sm:$0xff] }
 0x69a   : > { %v18107_v30 = vpop.f32.mrf.mxu0  ;;  %11356 = vmatmul.mubr.bf16.vlgmr.msra.gmra.mxu0 %v14990_v39  ;;  %v13135_v6 = vcombine.high %v3476_v48, %v3484_v45  ;;  %v3468_v1 = vld [vmem:[%s18685_s6 + $0x2770] sm:$0xff] }
 0x69b   : > { %11369 = vmatpush1.bf16.msra.mxu1 %v12974_v2  ;;  %11406 = vmatpush1.bf16.msra.mxu0 %v11984_v61  ;;  %v11889_v2 = vcombine.high %v2229_v51, %v2237_v28  ;;  %v3460_v61 = vld [vmem:[%s18685_s6 + $0x2730] sm:$0xff] }
 0x69c   : > { %11437 = vmatprep.mubr.bf16.mxu0 %v14714_v27  ;;  %v18111_v4 = vpop.f32.mrf.mxu0  ;;  %11370 = vmatprep.subr.bf16.mxu1 %v12959_v11  ;;  %v2285_v27 = vld [vmem:[%s18685_s6 + $0x278] sm:$0xff]  ;;  %v13119_v15 = vcombine.high %v3460_v61, %v3468_v1  ;;  %v13118_v31 = vcombine.low %v3460_v61, %v3468_v1  ;;  %v3404_v63 = vld [vmem:[%s18685_s6 + $0x2570] sm:$0xff] }
 0x69d   : > { %11407 = vmatprep.subr.bf16.mxu0 %v11969_v49  ;;  %v11937_v59 = vcombine.high %v2277_v18, %v2285_v27  ;;  %v11936_v52 = vcombine.low %v2277_v18, %v2285_v27  ;;  %v2213_v11 = vld [vmem:[%s18685_s6 + $0x38] sm:$0xff]  ;;  %v13134_v49 = vcombine.low %v3476_v48, %v3484_v45  ;;  %v13055_v48 = vcombine.high %v3396_v58, %v3404_v63  ;;  %v3380_v51 = vld [vmem:[%s18685_s6 + $0x24b0] sm:$0xff] }
 0x69e   : > { %v11115_v35 = vpop.f32.mrf.mxu0  ;;  %v11873_v17 = vcombine.high %v2213_v11, %v2221_v26  ;;  %v11872_v32 = vcombine.low %v2213_v11, %v2221_v26  ;;  %v3388_v28 = vld [vmem:[%s18685_s6 + $0x24f0] sm:$0xff] }
 0x69f   : > { %11371 = vmatpush1.bf16.msra.mxu1 %v12958_v47  ;;  %11408 = vmatpush1.bf16.msra.mxu0 %v11968_v3  ;;  %v3444_v47 = vld [vmem:[%s18685_s6 + $0x26b0] sm:$0xff]  ;;  %v13039_v61 = vcombine.high %v3380_v51, %v3388_v28 }
 0x6a0   : > { %v11116_v42 = vpop.f32.mrf.mxu0  ;;  %11372 = vmatprep.subr.bf16.mxu1 %v12943_v23  ;;  %11409 = vmatprep.subr.bf16.mxu0 %v11953_v36  ;;  %v3452_v3 = vld [vmem:[%s18685_s6 + $0x26f0] sm:$0xff]  ;;  %v2453_v23 = vld [vmem:[%s18685_s6 + $0x7b8] sm:$0xff] }
 0x6a1   : > { %v2461_v36 = vld [vmem:[%s18685_s6 + $0x7f8] sm:$0xff]  ;;  %v13103_v18 = vcombine.high %v3444_v47, %v3452_v3  ;;  %v3428_v35 = vld [vmem:[%s18685_s6 + $0x2630] sm:$0xff] }
 0x6a2   : > { %v12113_v27 = vcombine.high %v2453_v23, %v2461_v36  ;;  %v2445_v42 = vld [vmem:[%s18685_s6 + $0x778] sm:$0xff]  ;;  %v3364_v11 = vld [vmem:[%s18685_s6 + $0x2430] sm:$0xff] }
 0x6a3   : > { %11373 = vmatpush1.bf16.msra.mxu1 %v12942_v41  ;;  %11410 = vmatpush1.bf16.msra.mxu0 %v11952_v56  ;;  %v3436_v41 = vld [vmem:[%s18685_s6 + $0x2670] sm:$0xff]  ;;  %v2437_v56 = vld [vmem:[%s18685_s6 + $0x738] sm:$0xff] }
 0x6a4   : > { %11374 = vmatprep.subr.bf16.mxu1 %v12927_v46  ;;  %11411 = vmatprep.subr.bf16.mxu0 %v11937_v59  ;;  %v13102_v46 = vcombine.low %v3444_v47, %v3452_v3  ;;  %v12112_v59 = vcombine.low %v2453_v23, %v2461_v36  ;;  %v13087_v40 = vcombine.high %v3428_v35, %v3436_v41  ;;  %v3372_v26 = vld [vmem:[%s18685_s6 + $0x2470] sm:$0xff]  ;;  %v2357_v23 = vld [vmem:[%s18685_s6 + $0x4b8] sm:$0xff] }
 0x6a5   : > { %v12097_v25 = vcombine.high %v2437_v56, %v2445_v42  ;;  %v13023_v47 = vcombine.high %v3364_v11, %v3372_v26  ;;  %v2365_v36 = vld [vmem:[%s18685_s6 + $0x4f8] sm:$0xff] }
 0x6a7   : > { %11375 = vmatpush1.bf16.msra.mxu1 %v12926_v22  ;;  %11412 = vmatpush1.bf16.msra.mxu0 %v11936_v52  ;;  %v2421_v22 = vld [vmem:[%s18685_s6 + $0x6b8] sm:$0xff] }
 0x6a8   : > { %11376 = vmatprep.subr.bf16.mxu1 %v12911_v62  ;;  %11413 = vmatprep.subr.bf16.mxu0 %v11921_v24  ;;  %v2429_v52 = vld [vmem:[%s18685_s6 + $0x6f8] sm:$0xff]  ;;  %v13086_v62 = vcombine.low %v3428_v35, %v3436_v41  ;;  %v12096_v24 = vcombine.low %v2437_v56, %v2445_v42  ;;  %v12017_v35 = vcombine.high %v2357_v23, %v2365_v36 }
 0x6a9   : > { %v12081_v13 = vcombine.high %v2421_v22, %v2429_v52  ;;  %v2341_v56 = vld [vmem:[%s18685_s6 + $0x438] sm:$0xff] }
 0x6aa   : > { %v2349_v42 = vld [vmem:[%s18685_s6 + $0x478] sm:$0xff] }
 0x6ab   : > { %11377 = vmatpush1.bf16.msra.mxu1 %v12910_v5  ;;  %11414 = vmatpush1.bf16.msra.mxu0 %v11920_v10  ;;  %v2405_v5 = vld [vmem:[%s18685_s6 + $0x638] sm:$0xff] }
 0x6ac   : > { %11378 = vmatprep.subr.bf16.mxu1 %v12895_v54  ;;  %11415 = vmatprep.subr.bf16.mxu0 %v11905_v38  ;;  %v2413_v10 = vld [vmem:[%s18685_s6 + $0x678] sm:$0xff]  ;;  %v13070_v54 = vcombine.low %v3412_v29, %v3420_v9  ;;  %v12080_v38 = vcombine.low %v2421_v22, %v2429_v52  ;;  %v12001_v29 = vcombine.high %v2341_v56, %v2349_v42 }
 0x6ad   : > { %v12065_v45 = vcombine.high %v2405_v5, %v2413_v10  ;;  %v2549_v9 = vld [vmem:[%s18685_s6 + $0xab8] sm:$0xff] }
 0x6ae   : > { %v2557_v52 = vld [vmem:[%s18685_s6 + $0xaf8] sm:$0xff] }
 0x6af   : > { %11379 = vmatpush1.bf16.msra.mxu1 %v12894_v57  ;;  %11416 = vmatpush1.bf16.msra.mxu0 %v11904_v34  ;;  %v2389_v57 = vld [vmem:[%s18685_s6 + $0x5b8] sm:$0xff] }
 0x6b0   : > { %11380 = vmatprep.subr.bf16.mxu1 %v13135_v6  ;;  %11417 = vmatprep.subr.bf16.mxu0 %v11889_v2  ;;  %v2397_v34 = vld [vmem:[%s18685_s6 + $0x5f8] sm:$0xff]  ;;  %v13054_v6 = vcombine.low %v3396_v58, %v3404_v63  ;;  %v12064_v2 = vcombine.low %v2405_v5, %v2413_v10  ;;  %v12209_v5 = vcombine.high %v2549_v9, %v2557_v52 }
 0x6b1   : > { %v12049_v1 = vcombine.high %v2389_v57, %v2397_v34 }
 0x6b3   : > { %11381 = vmatpush2.bf16.msra.mxu1 %v13134_v49  ;;  %11418 = vmatpush1.bf16.msra.mxu0 %v11888_v37  ;;  %v2373_v49 = vld [vmem:[%s18685_s6 + $0x538] sm:$0xff] }
 0x6b4   : > { %11382 = vmatprep.subr.bf16.mxu1 %v13119_v15  ;;  %11419 = vmatprep.subr.bf16.mxu0 %v11873_v17  ;;  %v2381_v37 = vld [vmem:[%s18685_s6 + $0x578] sm:$0xff]  ;;  %v13038_v15 = vcombine.low %v3380_v51, %v3388_v28  ;;  %v12048_v17 = vcombine.low %v2389_v57, %v2397_v34  ;;  %v11112_v51 = vadd.f32 %v18107_v30, %v18078_v44 }
 0x6b5   : > { %v12033_v3 = vcombine.high %v2373_v49, %v2381_v37  ;;  %v12208_v28 = vcombine.low %v2549_v9, %v2557_v52  ;;  %v2525_v44 = vld [vmem:[%s18685_s6 + $0x9f8] sm:$0xff] }
 0x6b6   : > { %v2805_v30 = vld [vmem:[%s18685_s6 + $0x12b8] sm:$0xff] }
 0x6b7   : > { %11383 = vmatpush2.bf16.msra.mxu1 %v13118_v31  ;;  %11420 = vmatpush1.bf16.msra.mxu0 %v11872_v32  ;;  %v2581_v31 = vld [vmem:[%s18685_s6 + $0xbb8] sm:$0xff] }
 0x6b8   : > { %11384 = vmatprep.subr.bf16.mxu1 %v13103_v18  ;;  %11421 = vmatprep.subr.bf16.mxu0 %v12113_v27  ;;  %v2589_v32 = vld [vmem:[%s18685_s6 + $0xbf8] sm:$0xff]  ;;  %v13022_v18 = vcombine.low %v3364_v11, %v3372_v26  ;;  %v12032_v27 = vcombine.low %v2373_v49, %v2381_v37 }
 0x6b9   : > { %v12241_v41 = vcombine.high %v2581_v31, %v2589_v32  ;;  %v2813_v26 = vld [vmem:[%s18685_s6 + $0x12f8] sm:$0xff] }
 0x6ba   : > { %v2469_v52 = vld [vmem:[%s18685_s6 + $0x838] sm:$0xff] }
 0x6bb   : > { %11385 = vmatpush2.bf16.msra.mxu1 %v13102_v46  ;;  %11422 = vmatpush2.bf16.msra.mxu0 %v12112_v59  ;;  %v2565_v46 = vld [vmem:[%s18685_s6 + $0xb38] sm:$0xff] }
 0x6bc   : > { %11386 = vmatprep.subr.bf16.mxu1 %v13087_v40  ;;  %11423 = vmatprep.subr.bf16.mxu0 %v12097_v25  ;;  %v2573_v59 = vld [vmem:[%s18685_s6 + $0xb78] sm:$0xff]  ;;  %v12016_v40 = vcombine.low %v2357_v23, %v2365_v36  ;;  %v12240_v25 = vcombine.low %v2581_v31, %v2589_v32 }
 0x6bd   : > { %v12225_v22 = vcombine.high %v2565_v46, %v2573_v59  ;;  %v12224_v58 = vcombine.low %v2565_v46, %v2573_v59  ;;  %v2501_v23 = vld [vmem:[%s18685_s6 + $0x938] sm:$0xff] }
 0x6be   : > { %v2789_v31 = vld [vmem:[%s18685_s6 + $0x1238] sm:$0xff] }
 0x6bf   : > { %11387 = vmatpush2.bf16.msra.mxu1 %v13086_v62  ;;  %11424 = vmatpush2.bf16.msra.mxu0 %v12096_v24  ;;  %v2837_v62 = vld [vmem:[%s18685_s6 + $0x13b8] sm:$0xff] }
 0x6c0   : > { %11388 = vmatprep.subr.bf16.mxu1 %v13071_v33  ;;  %11425 = vmatprep.subr.bf16.mxu0 %v12081_v13  ;;  %v2845_v24 = vld [vmem:[%s18685_s6 + $0x13f8] sm:$0xff]  ;;  %v12000_v13 = vcombine.low %v2341_v56, %v2349_v42 }
 0x6c1   : > { %v12497_v10 = vcombine.high %v2837_v62, %v2845_v24  ;;  %v12496_v57 = vcombine.low %v2837_v62, %v2845_v24  ;;  %v2485_v42 = vld [vmem:[%s18685_s6 + $0x8b8] sm:$0xff] }
 0x6c2   : > { %v2493_v46 = vld [vmem:[%s18685_s6 + $0x8f8] sm:$0xff] }
 0x6c3   : > { %11389 = vmatpush2.bf16.msra.mxu1 %v13070_v54  ;;  %11426 = vmatpush2.bf16.msra.mxu0 %v12080_v38  ;;  %v2533_v54 = vld [vmem:[%s18685_s6 + $0xa38] sm:$0xff]  ;;  %v12145_v9 = vcombine.high %v2485_v42, %v2493_v46 }
 0x6c4   : > { %11390 = vmatprep.subr.bf16.mxu1 %v13055_v48  ;;  %11427 = vmatprep.subr.bf16.mxu0 %v12065_v45  ;;  %v2541_v38 = vld [vmem:[%s18685_s6 + $0xa78] sm:$0xff] }
 0x6c5   : > { %v2821_v45 = vld [vmem:[%s18685_s6 + $0x1338] sm:$0xff]  ;;  %v12192_v37 = vcombine.low %v2533_v54, %v2541_v38 }
 0x6c6   : > { %v2773_v59 = vld [vmem:[%s18685_s6 + $0x11b8] sm:$0xff] }
 0x6c7   : > { %11391 = vmatpush2.bf16.msra.mxu1 %v13054_v6  ;;  %11428 = vmatpush2.bf16.msra.mxu0 %v12064_v2  ;;  %v12193_v6 = vcombine.high %v2533_v54, %v2541_v38  ;;  %v2517_v2 = vld [vmem:[%s18685_s6 + $0x9b8] sm:$0xff] }
 0x6c8   : > { %11392 = vmatprep.subr.bf16.mxu1 %v13039_v61  ;;  %11429 = vmatprep.subr.bf16.mxu0 %v12049_v1  ;;  %v11114_v61 = vadd.f32 %v18111_v4, %v18081_v20  ;;  %v2477_v62 = vld [vmem:[%s18685_s6 + $0x878] sm:$0xff] }
 0x6c9   : > { %v2757_v24 = vld [vmem:[%s18685_s6 + $0x1138] sm:$0xff] }
 0x6ca   : > { %v2717_v54 = vld [vmem:[%s18685_s6 + $0xff8] sm:$0xff] }
 0x6cb   : > { %11393 = vmatpush2.bf16.msra.mxu1 %v13038_v15  ;;  %11430 = vmatpush2.bf16.msra.mxu0 %v12048_v17  ;;  %v2741_v38 = vld [vmem:[%s18685_s6 + $0x10b8] sm:$0xff] }
 0x6cc   : > { %11394 = vmatprep.subr.bf16.mxu1 %v13023_v47  ;;  %11431 = vmatprep.subr.bf16.mxu0 %v12033_v3  ;;  %v12177_v47 = vcombine.high %v2517_v2, %v2525_v44  ;;  %v12465_v3 = vcombine.high %v2805_v30, %v2813_v26 }
 0x6cf   : > { %11395 = vmatpush2.bf16.msra.mxu1 %v13022_v18  ;;  %11432 = vmatpush2.bf16.msra.mxu0 %v12032_v27  ;;  %v12176_v18 = vcombine.low %v2517_v2, %v2525_v44  ;;  %v12464_v27 = vcombine.low %v2805_v30, %v2813_v26  ;;  %v2733_v2 = vld [vmem:[%s18685_s6 + $0x1078] sm:$0xff] }
 0x6d0   : > { %11433 = vmatprep.subr.bf16.mxu0 %v12017_v35  ;;  %11446 = vmatprep.subr.bf16.mxu1 %v12241_v41  ;;  %v2677_v30 = vld [vmem:[%s18685_s6 + $0xeb8] sm:$0xff] }
 0x6d1   : > { %v2685_v26 = vld [vmem:[%s18685_s6 + $0xef8] sm:$0xff] }
 0x6d2   : > { %v11152_v33 = vpop.f32.mrf.mxu1  ;;  %11397 = vmatmul.mubr.bf16.vlgmr.msra.gmra.mxu1 %v15169_v14 }
 0x6d3   : > { %11434 = vmatpush2.bf16.msra.mxu0 %v12016_v40  ;;  %11447 = vmatpush1.bf16.msra.mxu1 %v12240_v25  ;;  %v11153_v1 = vadd.f32 %v11152_v33, %v11112_v51  ;;  %v2781_v40 = vld [vmem:[%s18685_s6 + $0x11f8] sm:$0xff] }
 0x6d4   : > { %11478 = vmatprep.mubr.bf16.mxu1 %v14743_v43  ;;  %v11154_v63 = vpop.f32.mrf.mxu1  ;;  %11435 = vmatprep.subr.bf16.mxu0 %v12001_v29  ;;  %v2829_v43 = vld [vmem:[%s18685_s6 + $0x1378] sm:$0xff] }
 0x6d5   : > { %11448 = vmatprep.subr.bf16.mxu1 %v12225_v22  ;;  %v12481_v11 = vcombine.high %v2821_v45, %v2829_v43  ;;  %v11155_v20 = vadd.f32 %v11154_v63, %v11114_v61  ;;  %v12480_v15 = vcombine.low %v2821_v45, %v2829_v43  ;;  %v12433_v22 = vcombine.high %v2773_v59, %v2781_v40  ;;  %v2765_v33 = vld [vmem:[%s18685_s6 + $0x1178] sm:$0xff] }
 0x6d6   : > { %v11156_v48 = vpop.f32.mrf.mxu1  ;;  %v12129_v63 = vcombine.high %v2469_v52, %v2477_v62  ;;  %v12128_v45 = vcombine.low %v2469_v52, %v2477_v62  ;;  %v12416_v43 = vcombine.low %v2757_v24, %v2765_v33 }
 0x6d7   : > { %11436 = vmatpush2.bf16.msra.mxu0 %v12000_v13  ;;  %11449 = vmatpush1.bf16.msra.mxu1 %v12224_v58  ;;  %v12144_v13 = vcombine.low %v2485_v42, %v2493_v46  ;;  %v12432_v58 = vcombine.low %v2773_v59, %v2781_v40  ;;  %v2749_v48 = vld [vmem:[%s18685_s6 + $0x10f8] sm:$0xff] }
 0x6d8   : > { %v11157_v34 = vpop.f32.mrf.mxu1  ;;  %11450 = vmatprep.subr.bf16.mxu1 %v12209_v5  ;;  %11487 = vmatprep.subr.bf16.mxu0 %v12497_v10  ;;  %v12417_v5 = vcombine.high %v2757_v24, %v2765_v33  ;;  %v2709_v10 = vld [vmem:[%s18685_s6 + $0xfb8] sm:$0xff] }
 0x6d9   : > { %v12369_v51 = vcombine.high %v2709_v10, %v2717_v54  ;;  %v2701_v34 = vld [vmem:[%s18685_s6 + $0xf78] sm:$0xff]  ;;  %v12368_v61 = vcombine.low %v2709_v10, %v2717_v54 }
 0x6da   : > { %v11193_v49 = vpop.f32.mrf.mxu0  ;;  %11438 = vmatmul.mubr.bf16.vlgmr.msra.gmra.mxu0 %v14716_v55  ;;  %v2509_v55 = vld [vmem:[%s18685_s6 + $0x978] sm:$0xff] }
 0x6db   : > { %v11194_v4 = vadd.f32 %v11193_v49, %v11153_v1  ;;  %11451 = vmatpush1.bf16.msra.mxu1 %v12208_v28  ;;  %11488 = vmatpush1.bf16.msra.mxu0 %v12496_v57  ;;  %v12161_v41 = vcombine.high %v2501_v23, %v2509_v55  ;;  %v12160_v25 = vcombine.low %v2501_v23, %v2509_v55  ;;  %v2693_v57 = vld [vmem:[%s18685_s6 + $0xf38] sm:$0xff] }
 0x6dc   : > { %11519 = vmatprep.mubr.bf16.mxu0 %v14792_v19  ;;  %v11195_v17 = vpop.f32.mrf.mxu0  ;;  %11452 = vmatprep.subr.bf16.mxu1 %v12193_v6  ;;  %v2797_v19 = vld [vmem:[%s18685_s6 + $0x1278] sm:$0xff]  ;;  %v12401_v28 = vcombine.high %v2741_v38, %v2749_v48  ;;  %v12400_v1 = vcombine.low %v2741_v38, %v2749_v48  ;;  %v12336_v55 = vcombine.low %v2677_v30, %v2685_v26 }
 0x6dd   : > { %11620 = vst [vmem:[%s15798_s16 + $0x50] sm:$0xff] %v11194_v4  ;;  %v11196_v36 = vadd.f32 %v11195_v17, %v11155_v20  ;;  %11489 = vmatprep.subr.bf16.mxu0 %v12481_v11  ;;  %v12449_v56 = vcombine.high %v2789_v31, %v2797_v19  ;;  %v12448_v29 = vcombine.low %v2789_v31, %v2797_v19  ;;  %v2725_v6 = vld [vmem:[%s18685_s6 + $0x1038] sm:$0xff] }
 0x6de   : > { %v11197_v32 = vpop.f32.mrf.mxu0  ;;  %v12353_v11 = vcombine.high %v2693_v57, %v2701_v34  ;;  %v12385_v44 = vcombine.high %v2725_v6, %v2733_v2  ;;  %v2965_v49 = vld [vmem:[%s18685_s6 + $0x17b8] sm:$0xff]  ;;  %v12352_v20 = vcombine.low %v2693_v57, %v2701_v34  ;;  %v12384_v4 = vcombine.low %v2725_v6, %v2733_v2 }
 0x6df   : > { %11621 = vst [vmem:[%s15798_s16 + $0x58] sm:$0xff] %v11196_v36  ;;  %11453 = vmatpush1.bf16.msra.mxu1 %v12192_v37  ;;  %11490 = vmatpush1.bf16.msra.mxu0 %v12480_v15  ;;  %v2973_v37 = vld [vmem:[%s18685_s6 + $0x17f8] sm:$0xff]  ;;  %v12337_v15 = vcombine.high %v2677_v30, %v2685_v26 }
 0x6e0   : > { %v11198_v35 = vpop.f32.mrf.mxu0  ;;  %11454 = vmatprep.subr.bf16.mxu1 %v12177_v47  ;;  %11491 = vmatprep.subr.bf16.mxu0 %v12465_v3  ;;  %v12625_v17 = vcombine.high %v2965_v49, %v2973_v37  ;;  %v2661_v47 = vld [vmem:[%s18685_s6 + $0xe38] sm:$0xff]  ;;  %v12624_v31 = vcombine.low %v2965_v49, %v2973_v37 }
 0x6e1   : > { %v2669_v3 = vld [vmem:[%s18685_s6 + $0xe78] sm:$0xff] }
 0x6e2   : > { %v2949_v23 = vld [vmem:[%s18685_s6 + $0x1738] sm:$0xff]  ;;  %v12321_v19 = vcombine.high %v2661_v47, %v2669_v3 }
 0x6e3   : > { %11455 = vmatpush1.bf16.msra.mxu1 %v12176_v18  ;;  %11492 = vmatpush1.bf16.msra.mxu0 %v12464_v27  ;;  %v2957_v36 = vld [vmem:[%s18685_s6 + $0x1778] sm:$0xff] }
 0x6e4   : > { %11456 = vmatprep.subr.bf16.mxu1 %v12161_v41  ;;  %11493 = vmatprep.subr.bf16.mxu0 %v12449_v56  ;;  %v12609_v32 = vcombine.high %v2949_v23, %v2957_v36  ;;  %v2645_v18 = vld [vmem:[%s18685_s6 + $0xdb8] sm:$0xff]  ;;  %v12320_v56 = vcombine.low %v2661_v47, %v2669_v3  ;;  %v12608_v42 = vcombine.low %v2949_v23, %v2957_v36 }
 0x6e5   : > { %v2653_v27 = vld [vmem:[%s18685_s6 + $0xdf8] sm:$0xff] }
 0x6e6   : > { %v2933_v35 = vld [vmem:[%s18685_s6 + $0x16b8] sm:$0xff]  ;;  %v12305_v46 = vcombine.high %v2645_v18, %v2653_v27 }
 0x6e7   : > { %11457 = vmatpush1.bf16.msra.mxu1 %v12160_v25  ;;  %11494 = vmatpush1.bf16.msra.mxu0 %v12448_v29  ;;  %v2941_v41 = vld [vmem:[%s18685_s6 + $0x16f8] sm:$0xff] }
 0x6e8   : > { %11458 = vmatprep.subr.bf16.mxu1 %v12145_v9  ;;  %11495 = vmatprep.subr.bf16.mxu0 %v12433_v22  ;;  %v12593_v59 = vcombine.high %v2933_v35, %v2941_v41  ;;  %v2629_v40 = vld [vmem:[%s18685_s6 + $0xd38] sm:$0xff]  ;;  %v12304_v22 = vcombine.low %v2645_v18, %v2653_v27  ;;  %v12592_v52 = vcombine.low %v2933_v35, %v2941_v41 }
 0x6e9   : > { %v2637_v25 = vld [vmem:[%s18685_s6 + $0xd78] sm:$0xff] }
 0x6ea   : > { %v2917_v29 = vld [vmem:[%s18685_s6 + $0x1638] sm:$0xff]  ;;  %v12289_v62 = vcombine.high %v2629_v40, %v2637_v25 }
 0x6eb   : > { %11459 = vmatpush1.bf16.msra.mxu1 %v12144_v13  ;;  %11496 = vmatpush1.bf16.msra.mxu0 %v12432_v58  ;;  %v2925_v9 = vld [vmem:[%s18685_s6 + $0x1678] sm:$0xff] }
 0x6ec   : > { %11460 = vmatprep.subr.bf16.mxu1 %v12129_v63  ;;  %11497 = vmatprep.subr.bf16.mxu0 %v12417_v5  ;;  %v12577_v24 = vcombine.high %v2917_v29, %v2925_v9  ;;  %v2613_v33 = vld [vmem:[%s18685_s6 + $0xcb8] sm:$0xff]  ;;  %v12288_v5 = vcombine.low %v2629_v40, %v2637_v25  ;;  %v12576_v10 = vcombine.low %v2917_v29, %v2925_v9 }
 0x6ed   : > { %v2621_v13 = vld [vmem:[%s18685_s6 + $0xcf8] sm:$0xff] }
 0x6ee   : > { %v2901_v58 = vld [vmem:[%s18685_s6 + $0x15b8] sm:$0xff]  ;;  %v12273_v54 = vcombine.high %v2613_v33, %v2621_v13 }
 0x6ef   : > { %11461 = vmatpush1.bf16.msra.mxu1 %v12128_v45  ;;  %11498 = vmatpush1.bf16.msra.mxu0 %v12416_v43  ;;  %v2909_v63 = vld [vmem:[%s18685_s6 + $0x15f8] sm:$0xff] }
 0x6f0   : > { %11462 = vmatprep.subr.bf16.mxu1 %v12369_v51  ;;  %11499 = vmatprep.subr.bf16.mxu0 %v12401_v28  ;;  %v12561_v38 = vcombine.high %v2901_v58, %v2909_v63  ;;  %v2597_v48 = vld [vmem:[%s18685_s6 + $0xc38] sm:$0xff]  ;;  %v12272_v28 = vcombine.low %v2613_v33, %v2621_v13  ;;  %v12560_v57 = vcombine.low %v2901_v58, %v2909_v63 }
 0x6f1   : > { %v2605_v45 = vld [vmem:[%s18685_s6 + $0xc78] sm:$0xff] }
 0x6f2   : > { %v2885_v43 = vld [vmem:[%s18685_s6 + $0x1538] sm:$0xff]  ;;  %v12257_v34 = vcombine.high %v2597_v48, %v2605_v45 }
 0x6f3   : > { %11463 = vmatpush2.bf16.msra.mxu1 %v12368_v61  ;;  %11500 = vmatpush1.bf16.msra.mxu0 %v12400_v1  ;;  %v2893_v51 = vld [vmem:[%s18685_s6 + $0x1578] sm:$0xff] }
 0x6f4   : > { %11464 = vmatprep.subr.bf16.mxu1 %v12353_v11  ;;  %11501 = vmatprep.subr.bf16.mxu0 %v12385_v44  ;;  %v12545_v6 = vcombine.high %v2885_v43, %v2893_v51  ;;  %v2869_v2 = vld [vmem:[%s18685_s6 + $0x14b8] sm:$0xff]  ;;  %v12256_v44 = vcombine.low %v2597_v48, %v2605_v45  ;;  %v12544_v30 = vcombine.low %v2885_v43, %v2893_v51 }
 0x6f5   : > { %v2877_v61 = vld [vmem:[%s18685_s6 + $0x14f8] sm:$0xff] }
 0x6f6   : > { %v3093_v1 = vld [vmem:[%s18685_s6 + $0x1bb8] sm:$0xff]  ;;  %v12529_v26 = vcombine.high %v2869_v2, %v2877_v61 }
 0x6f7   : > { %11465 = vmatpush2.bf16.msra.mxu1 %v12352_v20  ;;  %11502 = vmatpush1.bf16.msra.mxu0 %v12384_v4  ;;  %v3101_v11 = vld [vmem:[%s18685_s6 + $0x1bf8] sm:$0xff] }
 0x6f8   : > { %11466 = vmatprep.subr.bf16.mxu1 %v12337_v15  ;;  %11503 = vmatprep.subr.bf16.mxu0 %v12625_v17  ;;  %v12753_v49 = vcombine.high %v3093_v1, %v3101_v11  ;;  %v2853_v37 = vld [vmem:[%s18685_s6 + $0x1438] sm:$0xff]  ;;  %v12528_v17 = vcombine.low %v2869_v2, %v2877_v61  ;;  %v12752_v47 = vcombine.low %v3093_v1, %v3101_v11 }
 0x6f9   : > { %v2861_v20 = vld [vmem:[%s18685_s6 + $0x1478] sm:$0xff] }
 0x6fa   : > { %v3077_v4 = vld [vmem:[%s18685_s6 + $0x1b38] sm:$0xff]  ;;  %v12513_v3 = vcombine.high %v2853_v37, %v2861_v20  ;;  %v12512_v18 = vcombine.low %v2853_v37, %v2861_v20 }
 0x6fb   : > { %11467 = vmatpush2.bf16.msra.mxu1 %v12336_v55  ;;  %11504 = vmatpush2.bf16.msra.mxu0 %v12624_v31  ;;  %v3085_v15 = vld [vmem:[%s18685_s6 + $0x1b78] sm:$0xff] }
 0x6fc   : > { %11468 = vmatprep.subr.bf16.mxu1 %v12321_v19  ;;  %11505 = vmatprep.subr.bf16.mxu0 %v12609_v32  ;;  %v3061_v23 = vld [vmem:[%s18685_s6 + $0x1ab8] sm:$0xff]  ;;  %v12737_v36 = vcombine.high %v3077_v4, %v3085_v15  ;;  %v12736_v27 = vcombine.low %v3077_v4, %v3085_v15 }
 0x6fd   : > { %v3069_v55 = vld [vmem:[%s18685_s6 + $0x1af8] sm:$0xff] }
 0x6fe   : > { %v3349_v31 = vld [vmem:[%s18685_s6 + $0x23b8] sm:$0xff]  ;;  %v12721_v41 = vcombine.high %v3061_v23, %v3069_v55  ;;  %v12720_v25 = vcombine.low %v3061_v23, %v3069_v55 }
 0x6ff   : > { %11469 = vmatpush2.bf16.msra.mxu1 %v12320_v56  ;;  %11506 = vmatpush2.bf16.msra.mxu0 %v12608_v42  ;;  %v3357_v19 = vld [vmem:[%s18685_s6 + $0x23f8] sm:$0xff]  ;;  %v3541_v42 = vrot.slane %v18045_v16, %v14746_v50  ;;  %v3545_v50 = vrot.slane %v18045_v16, %v14684_v60 }
 0x700   : > { %11470 = vmatprep.subr.bf16.mxu1 %v12305_v46  ;;  %11507 = vmatprep.subr.bf16.mxu0 %v12593_v59  ;;  %v13009_v56 = vcombine.high %v3349_v31, %v3357_v19  ;;  %v3045_v46 = vld [vmem:[%s18685_s6 + $0x1a38] sm:$0xff]  ;;  %v13008_v29 = vcombine.low %v3349_v31, %v3357_v19 }
 0x701   : > { %v3341_v40 = vld [vmem:[%s18685_s6 + $0x2378] sm:$0xff] }
 0x702   : > { %v3037_v33 = vld [vmem:[%s18685_s6 + $0x19f8] sm:$0xff] }
 0x703   : > { %11471 = vmatpush2.bf16.msra.mxu1 %v12304_v22  ;;  %11508 = vmatpush2.bf16.msra.mxu0 %v12592_v52  ;;  %v3029_v52 = vld [vmem:[%s18685_s6 + $0x19b8] sm:$0xff] }
 0x704   : > { %11472 = vmatprep.subr.bf16.mxu1 %v12289_v62  ;;  %11509 = vmatprep.subr.bf16.mxu0 %v12577_v24  ;;  %v3317_v60 = vld [vmem:[%s18685_s6 + $0x22b8] sm:$0xff] }
 0x705   : > { %v3325_v16 = vld [vmem:[%s18685_s6 + $0x22f8] sm:$0xff] }
 0x706   : > { %v12977_v48 = vcombine.high %v3317_v60, %v3325_v16  ;;  %v3013_v45 = vld [vmem:[%s18685_s6 + $0x1938] sm:$0xff] }
 0x707   : > { %11473 = vmatpush2.bf16.msra.mxu1 %v12288_v5  ;;  %11510 = vmatpush2.bf16.msra.mxu0 %v12576_v10  ;;  %v3301_v51 = vld [vmem:[%s18685_s6 + $0x2238] sm:$0xff] }
 0x708   : > { %11474 = vmatprep.subr.bf16.mxu1 %v12273_v54  ;;  %11511 = vmatprep.subr.bf16.mxu0 %v12561_v38  ;;  %v12689_v38 = vcombine.high %v3029_v52, %v3037_v33  ;;  %v2997_v1 = vld [vmem:[%s18685_s6 + $0x18b8] sm:$0xff] }
 0x709   : > { %v3005_v11 = vld [vmem:[%s18685_s6 + $0x18f8] sm:$0xff] }
 0x70a   : > { %v12657_v37 = vcombine.high %v2997_v1, %v3005_v11  ;;  %v2981_v4 = vld [vmem:[%s18685_s6 + $0x1838] sm:$0xff] }
 0x70b   : > { %11475 = vmatpush2.bf16.msra.mxu1 %v12272_v28  ;;  %11512 = vmatpush2.bf16.msra.mxu0 %v12560_v57  ;;  %v12688_v57 = vcombine.low %v3029_v52, %v3037_v33  ;;  %v2989_v15 = vld [vmem:[%s18685_s6 + $0x1878] sm:$0xff] }
 0x70c   : > { %11476 = vmatprep.subr.bf16.mxu1 %v12257_v34  ;;  %11513 = vmatprep.subr.bf16.mxu0 %v12545_v6  ;;  %v12976_v34 = vcombine.low %v3317_v60, %v3325_v16  ;;  %v3221_v31 = vld [vmem:[%s18685_s6 + $0x1fb8] sm:$0xff] }
 0x70d   : > { %v3229_v19 = vld [vmem:[%s18685_s6 + $0x1ff8] sm:$0xff] }
 0x70e   : > { %v3485_v52 = vld [vmem:[%s18685_s6 + $0x27f8] sm:$0xff] }
 0x70f   : > { %11477 = vmatpush2.bf16.msra.mxu1 %v12256_v44  ;;  %11514 = vmatpush2.bf16.msra.mxu0 %v12544_v30  ;;  %v3285_v44 = vld [vmem:[%s18685_s6 + $0x21b8] sm:$0xff] }
 0x710   : > { %11515 = vmatprep.subr.bf16.mxu0 %v12529_v26  ;;  %11528 = vmatprep.subr.bf16.mxu1 %v12753_v49  ;;  %v3293_v30 = vld [vmem:[%s18685_s6 + $0x21f8] sm:$0xff] }
 0x711   : > { %v12945_v20 = vcombine.high %v3285_v44, %v3293_v30  ;;  %v12944_v23 = vcombine.low %v3285_v44, %v3293_v30  ;;  %v3173_v16 = vld [vmem:[%s18685_s6 + $0x1e38] sm:$0xff] }
 0x712   : > { %v11234_v32 = vpop.f32.mrf.mxu1  ;;  %11479 = vmatmul.mubr.bf16.vlgmr.msra.gmra.mxu1 %v14748_v53  ;;  %v3053_v53 = vld [vmem:[%s18685_s6 + $0x1a78] sm:$0xff] }
 0x713   : > { %11516 = vmatpush2.bf16.msra.mxu0 %v12528_v17  ;;  %11529 = vmatpush1.bf16.msra.mxu1 %v12752_v47  ;;  %v12705_v22 = vcombine.high %v3045_v46, %v3053_v53  ;;  %v11235_v62 = vadd.f32 %v11234_v32, %v3541_v42  ;;  %v12704_v58 = vcombine.low %v3045_v46, %v3053_v53  ;;  %v3269_v17 = vld [vmem:[%s18685_s6 + $0x2138] sm:$0xff] }
 0x714   : > { %11560 = vmatprep.mubr.bf16.mxu1 %v14833_v8  ;;  %v11236_v35 = vpop.f32.mrf.mxu1  ;;  %11517 = vmatprep.subr.bf16.mxu0 %v12513_v3  ;;  %v3333_v8 = vld [vmem:[%s18685_s6 + $0x2338] sm:$0xff]  ;;  %v12656_v3 = vcombine.low %v2997_v1, %v3005_v11 }
 0x715   : > { %11530 = vmatprep.subr.bf16.mxu1 %v12737_v36  ;;  %v12993_v24 = vcombine.high %v3333_v8, %v3341_v40  ;;  %v11237_v63 = vadd.f32 %v11236_v35, %v3545_v50  ;;  %v12992_v10 = vcombine.low %v3333_v8, %v3341_v40  ;;  %v3277_v47 = vld [vmem:[%s18685_s6 + $0x2178] sm:$0xff]  ;;  %v12641_v36 = vcombine.high %v2981_v4, %v2989_v15 }
 0x716   : > { %v11238_v59 = vpop.f32.mrf.mxu1  ;;  %v12929_v55 = vcombine.high %v3269_v17, %v3277_v47  ;;  %v3253_v32 = vld [vmem:[%s18685_s6 + $0x20b8] sm:$0xff]  ;;  %v12928_v35 = vcombine.low %v3269_v17, %v3277_v47  ;;  %v12880_v8 = vcombine.low %v3221_v31, %v3229_v19 }
 0x717   : > { %11518 = vmatpush2.bf16.msra.mxu0 %v12512_v18  ;;  %11531 = vmatpush1.bf16.msra.mxu1 %v12736_v27  ;;  %v3261_v18 = vld [vmem:[%s18685_s6 + $0x20f8] sm:$0xff]  ;;  %v12640_v27 = vcombine.low %v2981_v4, %v2989_v15 }
 0x718   : > { %v11239_v9 = vpop.f32.mrf.mxu1  ;;  %11532 = vmatprep.subr.bf16.mxu1 %v12721_v41  ;;  %11569 = vmatprep.subr.bf16.mxu0 %v13009_v56  ;;  %v12881_v41 = vcombine.high %v3221_v31, %v3229_v19  ;;  %v12913_v56 = vcombine.high %v3253_v32, %v3261_v18  ;;  %v3205_v42 = vld [vmem:[%s18685_s6 + $0x1f38] sm:$0xff]  ;;  %v12912_v40 = vcombine.low %v3253_v32, %v3261_v18 }
 0x719   : > { %v3213_v46 = vld [vmem:[%s18685_s6 + $0x1f78] sm:$0xff] }
 0x71a   : > { %v11275_v13 = vpop.f32.mrf.mxu0  ;;  %11520 = vmatmul.mubr.bf16.vlgmr.msra.gmra.mxu0 %v14959_v0  ;;  %v3021_v0 = vld [vmem:[%s18685_s6 + $0x1978] sm:$0xff]  ;;  %v12865_v50 = vcombine.high %v3205_v42, %v3213_v46 }
 0x71b   : > { %v18514_v5 = vadd.f32 %v11275_v13, %v11235_v62  ;;  %11533 = vmatpush1.bf16.msra.mxu1 %v12720_v25  ;;  %11570 = vmatpush1.bf16.msra.mxu0 %v13008_v29  ;;  %v12673_v2 = vcombine.high %v3013_v45, %v3021_v0  ;;  %v12672_v26 = vcombine.low %v3013_v45, %v3021_v0  ;;  %v3237_v53 = vld [vmem:[%s18685_s6 + $0x2038] sm:$0xff] }
 0x71c   : > { %11601 = vmatprep.mubr.bf16.mxu0 %v14973_v21  ;;  %v11277_v54 = vpop.f32.mrf.mxu0  ;;  %11534 = vmatprep.subr.bf16.mxu1 %v12705_v22  ;;  %v3309_v21 = vld [vmem:[%s18685_s6 + $0x2278] sm:$0xff]  ;;  %v12864_v62 = vcombine.low %v3205_v42, %v3213_v46 }
 0x71d   : > { %v18520_v43 = vadd.f32 %v11277_v54, %v11237_v63  ;;  %11571 = vmatprep.subr.bf16.mxu0 %v12993_v24  ;;  %v12961_v61 = vcombine.high %v3301_v51, %v3309_v21  ;;  %v12960_v49 = vcombine.low %v3301_v51, %v3309_v21  ;;  %v3245_v59 = vld [vmem:[%s18685_s6 + $0x2078] sm:$0xff] }
 0x71e   : > { %v11279_v28 = vpop.f32.mrf.mxu0  ;;  %v12897_v25 = vcombine.high %v3237_v53, %v3245_v59  ;;  %v3189_v29 = vld [vmem:[%s18685_s6 + $0x1eb8] sm:$0xff]  ;;  %v12896_v24 = vcombine.low %v3237_v53, %v3245_v59 }
 0x71f   : > { %11535 = vmatpush1.bf16.msra.mxu1 %v12704_v58  ;;  %11572 = vmatpush1.bf16.msra.mxu0 %v12992_v10  ;;  %v3197_v9 = vld [vmem:[%s18685_s6 + $0x1ef8] sm:$0xff] }
 0x720   : > { %v11280_v6 = vpop.f32.mrf.mxu0  ;;  %11536 = vmatprep.subr.bf16.mxu1 %v12689_v38  ;;  %11573 = vmatprep.subr.bf16.mxu0 %v12977_v48  ;;  %v3477_v22 = vld [vmem:[%s18685_s6 + $0x27b8] sm:$0xff]  ;;  %v12849_v33 = vcombine.high %v3189_v29, %v3197_v9  ;;  %v12848_v10 = vcombine.low %v3189_v29, %v3197_v9 }
 0x721   : > { %v13137_v60 = vcombine.high %v3477_v22, %v3485_v52  ;;  %v3181_v13 = vld [vmem:[%s18685_s6 + $0x1e78] sm:$0xff]  ;;  %v13136_v54 = vcombine.low %v3477_v22, %v3485_v52 }
 0x722   : > { %v3461_v58 = vld [vmem:[%s18685_s6 + $0x2738] sm:$0xff]  ;;  %v12833_v38 = vcombine.high %v3173_v16, %v3181_v13  ;;  %v12832_v28 = vcombine.low %v3173_v16, %v3181_v13 }
 0x723   : > { %11537 = vmatpush1.bf16.msra.mxu1 %v12688_v57  ;;  %11574 = vmatpush1.bf16.msra.mxu0 %v12976_v34  ;;  %v3469_v63 = vld [vmem:[%s18685_s6 + $0x2778] sm:$0xff] }
 0x724   : > { %11538 = vmatprep.subr.bf16.mxu1 %v12673_v2  ;;  %11575 = vmatprep.subr.bf16.mxu0 %v12961_v61  ;;  %v13121_v48 = vcombine.high %v3461_v58, %v3469_v63  ;;  %v3157_v45 = vld [vmem:[%s18685_s6 + $0x1db8] sm:$0xff]  ;;  %v13120_v57 = vcombine.low %v3461_v58, %v3469_v63 }
 0x725   : > { %v3165_v0 = vld [vmem:[%s18685_s6 + $0x1df8] sm:$0xff] }
 0x726   : > { %v3445_v51 = vld [vmem:[%s18685_s6 + $0x26b8] sm:$0xff]  ;;  %v12817_v34 = vcombine.high %v3157_v45, %v3165_v0  ;;  %v12816_v44 = vcombine.low %v3157_v45, %v3165_v0 }
 0x727   : > { %11539 = vmatpush1.bf16.msra.mxu1 %v12672_v26  ;;  %11576 = vmatpush1.bf16.msra.mxu0 %v12960_v49  ;;  %v3453_v21 = vld [vmem:[%s18685_s6 + $0x26f8] sm:$0xff] }
 0x728   : > { %11540 = vmatprep.subr.bf16.mxu1 %v12657_v37  ;;  %11577 = vmatprep.subr.bf16.mxu0 %v12945_v20  ;;  %v13105_v6 = vcombine.high %v3445_v51, %v3453_v21  ;;  %v3141_v2 = vld [vmem:[%s18685_s6 + $0x1d38] sm:$0xff]  ;;  %v13104_v30 = vcombine.low %v3445_v51, %v3453_v21 }
 0x729   : > { %v3149_v61 = vld [vmem:[%s18685_s6 + $0x1d78] sm:$0xff] }
 0x72a   : > { %v3429_v1 = vld [vmem:[%s18685_s6 + $0x2638] sm:$0xff]  ;;  %v12801_v26 = vcombine.high %v3141_v2, %v3149_v61  ;;  %v12800_v17 = vcombine.low %v3141_v2, %v3149_v61 }
 0x72b   : > { %11541 = vmatpush1.bf16.msra.mxu1 %v12656_v3  ;;  %11578 = vmatpush1.bf16.msra.mxu0 %v12944_v23  ;;  %v3437_v11 = vld [vmem:[%s18685_s6 + $0x2678] sm:$0xff] }
 0x72c   : > { %11542 = vmatprep.subr.bf16.mxu1 %v12641_v36  ;;  %11579 = vmatprep.subr.bf16.mxu0 %v12929_v55  ;;  %v13089_v49 = vcombine.high %v3429_v1, %v3437_v11  ;;  %v3125_v37 = vld [vmem:[%s18685_s6 + $0x1cb8] sm:$0xff]  ;;  %v13088_v47 = vcombine.low %v3429_v1, %v3437_v11 }
 0x72d   : > { %v3133_v20 = vld [vmem:[%s18685_s6 + $0x1cf8] sm:$0xff] }
 0x72e   : > { %v3413_v4 = vld [vmem:[%s18685_s6 + $0x25b8] sm:$0xff]  ;;  %v12785_v3 = vcombine.high %v3125_v37, %v3133_v20  ;;  %v12784_v32 = vcombine.low %v3125_v37, %v3133_v20 }
 0x72f   : > { %11543 = vmatpush1.bf16.msra.mxu1 %v12640_v27  ;;  %11580 = vmatpush1.bf16.msra.mxu0 %v12928_v35  ;;  %v3421_v15 = vld [vmem:[%s18685_s6 + $0x25f8] sm:$0xff] }
 0x730   : > { %11544 = vmatprep.subr.bf16.mxu1 %v12881_v41  ;;  %11581 = vmatprep.subr.bf16.mxu0 %v12913_v56  ;;  %v13073_v23 = vcombine.high %v3413_v4, %v3421_v15  ;;  %v3109_v36 = vld [vmem:[%s18685_s6 + $0x1c38] sm:$0xff]  ;;  %v13072_v18 = vcombine.low %v3413_v4, %v3421_v15 }
 0x731   : > { %v3117_v55 = vld [vmem:[%s18685_s6 + $0x1c78] sm:$0xff] }
 0x732   : > { %v3397_v31 = vld [vmem:[%s18685_s6 + $0x2538] sm:$0xff]  ;;  %v12769_v27 = vcombine.high %v3109_v36, %v3117_v55  ;;  %v12768_v42 = vcombine.low %v3109_v36, %v3117_v55 }
 0x733   : > { %11545 = vmatpush2.bf16.msra.mxu1 %v12880_v8  ;;  %11582 = vmatpush1.bf16.msra.mxu0 %v12912_v40  ;;  %v3405_v19 = vld [vmem:[%s18685_s6 + $0x2578] sm:$0xff] }
 0x734   : > { %11546 = vmatprep.subr.bf16.mxu1 %v12865_v50  ;;  %11583 = vmatprep.subr.bf16.mxu0 %v12897_v25  ;;  %v13057_v35 = vcombine.high %v3397_v31, %v3405_v19  ;;  %v3381_v41 = vld [vmem:[%s18685_s6 + $0x24b8] sm:$0xff]  ;;  %v13056_v46 = vcombine.low %v3397_v31, %v3405_v19 }
 0x735   : > { %v3389_v56 = vld [vmem:[%s18685_s6 + $0x24f8] sm:$0xff] }
 0x736   : > { %v13041_v53 = vcombine.high %v3381_v41, %v3389_v56  ;;  %v3365_v59 = vld [vmem:[%s18685_s6 + $0x2438] sm:$0xff]  ;;  %v13040_v40 = vcombine.low %v3381_v41, %v3389_v56 }
 0x737   : > { %11547 = vmatpush2.bf16.msra.mxu1 %v12864_v62  ;;  %11584 = vmatpush1.bf16.msra.mxu0 %v12896_v24  ;;  %v3373_v8 = vld [vmem:[%s18685_s6 + $0x2478] sm:$0xff] }
 0x738   : > { %11548 = vmatprep.subr.bf16.mxu1 %v12849_v33  ;;  %11585 = vmatprep.subr.bf16.mxu0 %v13137_v60  ;;  %v13025_v50 = vcombine.high %v3365_v59, %v3373_v8  ;;  %v13024_v29 = vcombine.low %v3365_v59, %v3373_v8 }
 0x73b   : > { %11549 = vmatpush2.bf16.msra.mxu1 %v12848_v10  ;;  %11586 = vmatpush2.bf16.msra.mxu0 %v13136_v54 }
 0x73c   : > { %11550 = vmatprep.subr.bf16.mxu1 %v12833_v38  ;;  %11587 = vmatprep.subr.bf16.mxu0 %v13121_v48 }
 0x73f   : > { %11551 = vmatpush2.bf16.msra.mxu1 %v12832_v28  ;;  %11588 = vmatpush2.bf16.msra.mxu0 %v13120_v57 }
 0x740   : > { %11552 = vmatprep.subr.bf16.mxu1 %v12817_v34  ;;  %11589 = vmatprep.subr.bf16.mxu0 %v13105_v6 }
 0x743   : > { %11553 = vmatpush2.bf16.msra.mxu1 %v12816_v44  ;;  %11590 = vmatpush2.bf16.msra.mxu0 %v13104_v30 }
 0x744   : > { %11554 = vmatprep.subr.bf16.mxu1 %v12801_v26  ;;  %11591 = vmatprep.subr.bf16.mxu0 %v13089_v49 }
 0x747   : > { %11555 = vmatpush2.bf16.msra.mxu1 %v12800_v17  ;;  %11592 = vmatpush2.bf16.msra.mxu0 %v13088_v47 }
 0x748   : > { %11556 = vmatprep.subr.bf16.mxu1 %v12785_v3  ;;  %11593 = vmatprep.subr.bf16.mxu0 %v13073_v23 }
 0x74b   : > { %11557 = vmatpush2.bf16.msra.mxu1 %v12784_v32  ;;  %11594 = vmatpush2.bf16.msra.mxu0 %v13072_v18 }
 0x74c   : > { %11558 = vmatprep.subr.bf16.mxu1 %v12769_v27  ;;  %11595 = vmatprep.subr.bf16.mxu0 %v13057_v35 }
 0x74f   : > { %11559 = vmatpush2.bf16.msra.mxu1 %v12768_v42  ;;  %11596 = vmatpush2.bf16.msra.mxu0 %v13056_v46 }
 0x750   : > { %11597 = vmatprep.subr.bf16.mxu0 %v13041_v53 }
 0x752   : > { %v11316_v25 = vpop.f32.mrf.mxu1  ;;  %11561 = vmatmul.mubr.bf16.vlgmr.msra.gmra.mxu1 %v14990_v39 }
 0x753   : > { %11598 = vmatpush2.bf16.msra.mxu0 %v13040_v40  ;;  %v11317_v16 = vadd.f32 %v11316_v25, %v18514_v5  ;;  %v13622_v5 = vld [vmem:[%s18686_s7 + $0x8] sm:$0xff] }
 0x754   : > { %v11318_v9 = vpop.f32.mrf.mxu1  ;;  %11599 = vmatprep.subr.bf16.mxu0 %v13025_v50  ;;  %v3553_v28 = vrot.slane %v13622_v5, %v14694_v7 }
 0x755   : > { %v11319_v13 = vadd.f32 %v11318_v9, %v18520_v43  ;;  %v3549_v43 = vrot.slane %v13622_v5, %v14795_v12 }
 0x756   : > { %v11320_v22 = vpop.f32.mrf.mxu1 }
 0x757   : > { %11600 = vmatpush2.bf16.msra.mxu0 %v13024_v29 }
 0x758   : > { %v11321_v52 = vpop.f32.mrf.mxu1 }
 0x75a   : > { %v11357_v62 = vpop.f32.mrf.mxu0  ;;  %11602 = vmatmul.mubr.bf16.vlgmr.msra.gmra.mxu0 %v15169_v14 }
 0x75b   : > { %v11358_v39 = vadd.f32 %v11357_v62, %v11317_v16 }
 0x75c   : > { %v11359_v24 = vpop.f32.mrf.mxu0 }
 0x75d   : > { %v11360_v63 = vadd.f32 %v11359_v24, %v11319_v13 }
 0x75e   : > { %v11361_v33 = vpop.f32.mrf.mxu0 }
 0x760   : > { %v11362_v60 = vpop.f32.mrf.mxu0 }
 0x792   : > { %v11398_v58 = vpop.f32.mrf.mxu1 }
 0x793   : > { %v11399_v10 = vadd.f32 %v11398_v58, %v11358_v39 }
 0x794   : > { %v11400_v54 = vpop.f32.mrf.mxu1 }
 0x795   : > { %11622 = vst [vmem:[%s15798_s16 + $0x60] sm:$0xff] %v11399_v10  ;;  %v11401_v38 = vadd.f32 %v11400_v54, %v11360_v63 }
 0x796   : > { %v11402_v48 = vpop.f32.mrf.mxu1 }
 0x797   : > { %11623 = vst [vmem:[%s15798_s16 + $0x68] sm:$0xff] %v11401_v38 }
 0x798   : > { %v11403_v45 = vpop.f32.mrf.mxu1 }
 0x79a   : > { %v11439_v0 = vpop.f32.mrf.mxu0 }
 0x79b   : > { %v11440_v57 = vadd.f32 %v11439_v0, %v3549_v43 }
 0x79c   : > { %v11441_v51 = vpop.f32.mrf.mxu0 }
 0x79d   : > { %v11442_v6 = vadd.f32 %v11441_v51, %v3553_v28 }
 0x79e   : > { %v11443_v14 = vpop.f32.mrf.mxu0 }
 0x7a0   : > { %v11444_v21 = vpop.f32.mrf.mxu0 }
 0x7d2   : > { %v11480_v34 = vpop.f32.mrf.mxu1 }
 0x7d3   : > { %v11481_v2 = vadd.f32 %v11480_v34, %v11440_v57 }
 0x7d4   : > { %v11482_v61 = vpop.f32.mrf.mxu1 }
 0x7d5   : > { %v11483_v1 = vadd.f32 %v11482_v61, %v11442_v6 }
 0x7d6   : > { %v11484_v11 = vpop.f32.mrf.mxu1 }
 0x7d8   : > { %v11485_v44 = vpop.f32.mrf.mxu1 }
 0x7da   : > { %v11521_v30 = vpop.f32.mrf.mxu0 }
 0x7db   : > { %v11522_v12 = vadd.f32 %v11521_v30, %v11481_v2 }
 0x7dc   : > { %v11523_v26 = vpop.f32.mrf.mxu0 }
 0x7dd   : > { %v11524_v7 = vadd.f32 %v11523_v26, %v11483_v1 }
 0x7de   : > { %v11525_v49 = vpop.f32.mrf.mxu0 }
 0x7e0   : > { %v11526_v37 = vpop.f32.mrf.mxu0 }
 0x812   : > { %v11562_v20 = vpop.f32.mrf.mxu1 }
 0x813   : > { %v11563_v47 = vadd.f32 %v11562_v20, %v11522_v12 }
 0x814   : > { %v11564_v4 = vpop.f32.mrf.mxu1 }
 0x815   : > { %v11565_v23 = vadd.f32 %v11564_v4, %v11524_v7 }
 0x816   : > { %v11566_v15 = vpop.f32.mrf.mxu1 }
 0x818   : > { %v11567_v17 = vpop.f32.mrf.mxu1 }
 0x81a   : > { %v11603_v3 = vpop.f32.mrf.mxu0 }
 0x81b   : > { %v11604_v36 = vadd.f32 %v11603_v3, %v11563_v47 }
 0x81c   : > { %v11605_v55 = vpop.f32.mrf.mxu0 }
 0x81d   : > { %11624 = vst [vmem:[%s15798_s16 + $0x70] sm:$0xff] %v11604_v36  ;;  %v11606_v31 = vadd.f32 %v11605_v55, %v11565_v23 }
 0x81e   : > { %v11607_v19 = vpop.f32.mrf.mxu0 }
 0x81f   : > { %11625 = vst [vmem:[%s15798_s16 + $0x78] sm:$0xff] %v11606_v31 }
 0x820   : > { %v11608_v32 = vpop.f32.mrf.mxu0 }
 0x821 PF: > { %s18_s27 = sadd.s32 1, %s13629_s27  }
 0x822   : > { %p15_p5 = scmp.ge.s32.totalorder %s18_s27, 4  }
 0x824   :  { %17 = sbr.rel (!%p15_p5) target bundleno = 1 (0x1), region = 82 }

</bundles_post_ra>
